<compile_context>
chip_gen: v6e
topology: v6e:2x2x1
jax: 0.10.0
libtpu: 0.0.40
codegen_flags: <defaults>
</compile_context>

<pallas_src>
import functools

import numpy as np
import jax
import jax.numpy as jnp
from jax.experimental import pallas as pl
from jax.experimental.pallas import tpu as pltpu

POOL = 4           # MaxPool1d(4) everywhere
CLASSES = 6
BN_EPS = 1e-5
C1 = 16            # conv1 output channels
K1 = 4             # conv1 kernel size (filter_size1); conv2..5 use k=2 (filter_size2)


# ----------------------------------------------------------------------------
# Fused kernel: conv1..conv5 (+ReLU+MaxPool) + global avg pool + fc1(+BN) + fc2.
# Processes `nb` batch elements per grid step, folded into the matmul M dim.
# ----------------------------------------------------------------------------
def _spt_cnn_kernel(x4_ref, w1e_ref, b1e_ref,
                    w2_ref, b2_ref, w3_ref, b3_ref,
                    w4_ref, b4_ref, w5_ref, b5_ref,
                    fw1_ref, fb1_ref, fw2_ref, fb2_ref,
                    logits_ref, feat_ref, *, nb, s1, v5):
    f32 = jnp.float32

    # --- Stage 1: Conv1d(1->16, k=4) + ReLU + MaxPool1d(4) as ONE lane-dense matmul.
    # x4_ref[s, m*s1+p] = x[m, 4p+s]; w1e_ref row r*16+c holds conv1 channel-c weights at
    # tap offsets r..r+3 (pool phase r), so y[r*16+c, col] = conv output at position 4p+r
    # and MaxPool(4) becomes an elementwise max over the 4 contiguous row blocks.
    y = jnp.dot(w1e_ref[...], x4_ref[...], preferred_element_type=f32)    # (64, nb*s1)
    y = jnp.maximum(y + b1e_ref[...], 0.0)
    h = jnp.maximum(jnp.maximum(y[0:C1], y[C1:2 * C1]),
                    jnp.maximum(y[2 * C1:3 * C1], y[3 * C1:4 * C1]))      # (16, nb*s1)
    h = h.T                                                               # (nb*s1, 16) channels-last

    # --- Stages 2..5: Conv1d(k=2) + ReLU + MaxPool1d(4) on row-stacked batch segments.
    # Rows beyond each segment's valid length are garbage but (because the segment stride
    # is a power of 4) they are never read by any valid downstream position.
    def conv_relu_pool(h, w_ref, b_ref):
        r = h.shape[0]
        t = (r - 1) // POOL * POOL            # conv rows to compute (multiple of 4, <= r-1)
        acc = (jnp.dot(h[0:t], w_ref[0], preferred_element_type=f32)
               + jnp.dot(h[1:t + 1], w_ref[1], preferred_element_type=f32)
               + b_ref[...])
        acc = jnp.maximum(acc, 0.0)
        return jnp.max(acc.reshape(t // POOL, POOL, acc.shape[-1]), axis=1)

    h = conv_relu_pool(h, w2_ref, b2_ref)     # (nb*s1/4   - 1,  32)
    h = conv_relu_pool(h, w3_ref, b3_ref)     # (nb*s1/16  - 1,  64)
    h = conv_relu_pool(h, w4_ref, b4_ref)     # (nb*s1/64  - 1, 128)
    h = conv_relu_pool(h, w5_ref, b5_ref)     # (nb*s1/256 - 1, 256)

    # --- Head: AdaptiveAvgPool1d(1) as a tiny selection/averaging matmul over the v5
    # valid rows of each batch segment, then fc1 (eval-BatchNorm folded in) and fc2.
    s5 = s1 // POOL ** 4
    r5 = h.shape[0]
    col = jax.lax.broadcasted_iota(jnp.int32, (nb, r5), 1)
    seg = jax.lax.broadcasted_iota(jnp.int32, (nb, r5), 0) * s5
    sel = jnp.where((col >= seg) & (col < seg + v5), 1.0 / v5, 0.0)       # (nb, r5)
    feat = jnp.dot(sel, h, preferred_element_type=f32)                    # (nb, 256)
    feat_ref[...] = feat.astype(feat_ref.dtype)

    z = jnp.dot(feat, fw1_ref[...], preferred_element_type=f32) + fb1_ref[...]
    logits = jnp.dot(z, fw2_ref[...], preferred_element_type=f32) + fb2_ref[...]
    logits_ref[...] = logits.astype(logits_ref.dtype)


# ----------------------------------------------------------------------------
# Wrapper: layout plumbing + parameter reshapes (all free, trace-time XLA ops).
# ----------------------------------------------------------------------------
def spt_cnn_forward(x_ncl, p):
    n, cin, length = x_ncl.shape
    assert cin == 1
    assert length % POOL ** 5 == 0, "input length must be a multiple of 1024"

    s1 = length // POOL                          # per-example row stride after stage 1
    v = (length - (K1 - 1)) // POOL              # valid rows after stage 1
    for _ in range(4):
        v = (v - 1) // POOL                      # valid rows after stages 2..5
    v5 = v
    assert v5 >= 1, "input too short for the 5 conv/pool stages"

    nb = 2 if n % 2 == 0 else 1                  # batch elements per grid step
    g = n // nb

    # Stage-1 lane-dense input: x4[g, s, m*s1 + p] = x[g*nb+m, 4p+s], s in 0..7.
    x2 = x_ncl[:, 0, :]
    xp = jnp.pad(x2, ((0, 0), (0, 2 * POOL)))
    x4 = jnp.stack([xp[:, s:s + length:POOL] for s in range(2 * POOL)], axis=1)   # (n, 8, s1)
    x4 = x4.reshape(g, nb, 2 * POOL, s1).transpose(0, 2, 1, 3).reshape(g, 2 * POOL, nb * s1)

    # Stage-1 expanded weights: row r*16+c = conv1 channel c shifted by pool phase r.
    w1 = p['conv1_w'][:, 0, :].astype(jnp.float32)                        # (16, 4)
    w1e = jnp.zeros((POOL * C1, 2 * POOL), jnp.float32)
    for r in range(POOL):
        w1e = w1e.at[r * C1:(r + 1) * C1, r:r + K1].set(w1)
    b1e = jnp.tile(p['conv1_b'], POOL)[:, None]                           # (64, 1)

    def w_kio(w_oik):                                                     # (Cout,Cin,k)->(k,Cin,Cout)
        return jnp.transpose(w_oik, (2, 1, 0))

    # Head: fold eval-mode BatchNorm1d into fc1.
    scale = p['bn1_g'] * jax.lax.rsqrt(p['bn1_rv'] + BN_EPS)
    fw1 = p['fc1_w'].T * scale[None, :]                                   # (256, 128)
    fb1 = ((p['fc1_b'] - p['bn1_rm']) * scale + p['bn1_be'])[None, :]     # (1, 128)
    fw2 = p['fc2_w'].T                                                    # (128, 6)
    fb2 = p['fc2_b'][None, :]                                             # (1, 6)

    weights = [w1e, b1e,
               w_kio(p['conv2_w']), p['conv2_b'][None, :],
               w_kio(p['conv3_w']), p['conv3_b'][None, :],
               w_kio(p['conv4_w']), p['conv4_b'][None, :],
               w_kio(p['conv5_w']), p['conv5_b'][None, :],
               fw1, fb1, fw2, fb2]

    def full_spec(arr):
        nd = arr.ndim
        return pl.BlockSpec(arr.shape, lambda i: (0,) * nd)

    kern = functools.partial(_spt_cnn_kernel, nb=nb, s1=s1, v5=v5)
    logits3, feat3 = pl.pallas_call(
        kern,
        out_shape=(jax.ShapeDtypeStruct((g, nb, CLASSES), jnp.float32),
                   jax.ShapeDtypeStruct((g, nb, 256), jnp.float32)),
        grid=(g,),
        in_specs=[pl.BlockSpec((None, 2 * POOL, nb * s1), lambda i: (i, 0, 0))]
                 + [full_spec(w) for w in weights],
        out_specs=(pl.BlockSpec((None, nb, CLASSES), lambda i: (i, 0, 0)),
                   pl.BlockSpec((None, nb, 256), lambda i: (i, 0, 0))),
        compiler_params=pltpu.CompilerParams(dimension_semantics=("parallel",)),
    )(x4, *weights)

    logits = logits3.reshape(n, CLASSES)
    feature = feat3.reshape(n, 256)[:, :, None]            # torch spt_feature_x: (N, 256, 1)
    return logits, feature


# ----------------------------------------------------------------------------
# Pure-JAX reference (matches PyTorch semantics) for validation.
# ----------------------------------------------------------------------------
def reference_forward(x_ncl, p):
    def conv(x, w_oik, b):
        y = jax.lax.conv_general_dilated(
            x, w_oik, window_strides=(1,), padding='VALID',
            dimension_numbers=('NCH', 'OIH', 'NCH'))
        return y + b[None, :, None]

    def pool(x):
        n, c, l = x.shape
        lp = l // POOL
        return jnp.max(x[:, :, :lp * POOL].reshape(n, c, lp, POOL), axis=-1)

    h = x_ncl
    for i in range(1, 6):
        h = pool(jax.nn.relu(conv(h, p[f'conv{i}_w'], p[f'conv{i}_b'])))
    feat = jnp.mean(h, axis=-1)                               # (N, 256)
    z = feat @ p['fc1_w'].T + p['fc1_b']
    z = (z - p['bn1_rm']) / jnp.sqrt(p['bn1_rv'] + BN_EPS) * p['bn1_g'] + p['bn1_be']
    logits = z @ p['fc2_w'].T + p['fc2_b']
    return logits, feat[:, :, None]


# ----------------------------------------------------------------------------
# Deterministic parameter init (torch-shaped weights).
# ----------------------------------------------------------------------------
def make_params(key):
    ks = jax.random.split(key, 16)
    p = {}

    def u(k, shape, fan_in):
        s = 1.0 / np.sqrt(fan_in)
        return jax.random.uniform(k, shape, jnp.float32, -s, s)

    conv_dims = [(16, 1, 4), (32, 16, 2), (64, 32, 2), (128, 64, 2), (256, 128, 2)]
    for i, (co, ci, kk) in enumerate(conv_dims, start=1):
        p[f'conv{i}_w'] = u(ks[2 * (i - 1)], (co, ci, kk), ci * kk)   # torch (Cout, Cin, k)
        p[f'conv{i}_b'] = u(ks[2 * (i - 1) + 1], (co,), ci * kk)

    p['fc1_w'] = u(ks[10], (128, 256), 256)                   # torch (out, in)
    p['fc1_b'] = u(ks[11], (128,), 256)
    p['fc2_w'] = u(ks[12], (CLASSES, 128), 128)
    p['fc2_b'] = u(ks[13], (CLASSES,), 128)

    p['bn1_g'] = 1.0 + 0.1 * jax.random.normal(ks[14], (128,), jnp.float32)
    kb = jax.random.split(ks[15], 3)
    p['bn1_be'] = 0.1 * jax.random.normal(kb[0], (128,), jnp.float32)
    p['bn1_rm'] = 0.1 * jax.random.normal(kb[1], (128,), jnp.float32)
    p['bn1_rv'] = 1.0 + 0.5 * jnp.abs(jax.random.normal(kb[2], (128,), jnp.float32))
    # NOTE: spt_bn2 / spt_fc3 exist in the torch module but are unused in forward().
    return p


if __name__ == "__main__":
    key = jax.random.PRNGKey(0)
    kx, kp = jax.random.split(key)

    # The 5x (conv + MaxPool(4)) stack requires L >= 1367; the fused kernel's segment
    # layout additionally wants L % 1024 == 0, so use L = 2048.
    N, L = 4, 2048
    x = jax.random.normal(kx, (N, 1, L), jnp.float32)         # torch NCL input, Cin = 1
    params = make_params(kp)

    logits, feature = jax.jit(spt_cnn_forward)(x, params)
    logits = jax.block_until_ready(logits)
    feature = jax.block_until_ready(feature)

    ref_logits, ref_feature = reference_forward(x, params)
    np.testing.assert_allclose(np.asarray(logits), np.asarray(ref_logits),
                               rtol=1e-3, atol=1e-3)
    np.testing.assert_allclose(np.asarray(feature), np.asarray(ref_feature),
                               rtol=1e-3, atol=1e-3)
    assert logits.shape == (N, CLASSES)
    assert feature.shape == (N, 256, 1)
    print("KERNEL_OK")
</pallas_src>

<mosaic_0001>
module attributes {stable_mosaic.version = 11 : i64} {
  func.func @_spt_cnn_kernel(%arg0: i32, %arg1: memref<1x8x1024xf32, #tpu.memory_space<vmem>>, %arg2: memref<64x8xf32, #tpu.memory_space<vmem>>, %arg3: memref<64x1xf32, #tpu.memory_space<vmem>>, %arg4: memref<2x16x32xf32, #tpu.memory_space<vmem>>, %arg5: memref<1x32xf32, #tpu.memory_space<vmem>>, %arg6: memref<2x32x64xf32, #tpu.memory_space<vmem>>, %arg7: memref<1x64xf32, #tpu.memory_space<vmem>>, %arg8: memref<2x64x128xf32, #tpu.memory_space<vmem>>, %arg9: memref<1x128xf32, #tpu.memory_space<vmem>>, %arg10: memref<2x128x256xf32, #tpu.memory_space<vmem>>, %arg11: memref<1x256xf32, #tpu.memory_space<vmem>>, %arg12: memref<256x128xf32, #tpu.memory_space<vmem>>, %arg13: memref<1x128xf32, #tpu.memory_space<vmem>>, %arg14: memref<128x6xf32, #tpu.memory_space<vmem>>, %arg15: memref<1x6xf32, #tpu.memory_space<vmem>>, %arg16: memref<1x2x6xf32, #tpu.memory_space<vmem>>, %arg17: memref<1x2x256xf32, #tpu.memory_space<vmem>>) attributes {dimension_semantics = [#tpu.dimension_semantics<parallel>], iteration_bounds = array<i64: 2>, scalar_prefetch = 0 : i64, scratch_operands = 0 : i64, tpu.core_type = #tpu.core_type<tc>, window_params = [{transform_indices = @transform_0, window_bounds = array<i64: 1, 8, 1024>}, {pipeline_mode = #tpu.pipeline_mode<synchronous>, transform_indices = @transform_1, window_bounds = array<i64: 64, 8>}, {pipeline_mode = #tpu.pipeline_mode<synchronous>, transform_indices = @transform_2, window_bounds = array<i64: 64, 1>}, {pipeline_mode = #tpu.pipeline_mode<synchronous>, transform_indices = @transform_3, window_bounds = array<i64: 2, 16, 32>}, {pipeline_mode = #tpu.pipeline_mode<synchronous>, transform_indices = @transform_4, window_bounds = array<i64: 1, 32>}, {pipeline_mode = #tpu.pipeline_mode<synchronous>, transform_indices = @transform_5, window_bounds = array<i64: 2, 32, 64>}, {pipeline_mode = #tpu.pipeline_mode<synchronous>, transform_indices = @transform_6, window_bounds = array<i64: 1, 64>}, {pipeline_mode = #tpu.pipeline_mode<synchronous>, transform_indices = @transform_7, window_bounds = array<i64: 2, 64, 128>}, {pipeline_mode = #tpu.pipeline_mode<synchronous>, transform_indices = @transform_8, window_bounds = array<i64: 1, 128>}, {pipeline_mode = #tpu.pipeline_mode<synchronous>, transform_indices = @transform_9, window_bounds = array<i64: 2, 128, 256>}, {pipeline_mode = #tpu.pipeline_mode<synchronous>, transform_indices = @transform_10, window_bounds = array<i64: 1, 256>}, {pipeline_mode = #tpu.pipeline_mode<synchronous>, transform_indices = @transform_11, window_bounds = array<i64: 256, 128>}, {pipeline_mode = #tpu.pipeline_mode<synchronous>, transform_indices = @transform_12, window_bounds = array<i64: 1, 128>}, {pipeline_mode = #tpu.pipeline_mode<synchronous>, transform_indices = @transform_13, window_bounds = array<i64: 128, 6>}, {pipeline_mode = #tpu.pipeline_mode<synchronous>, transform_indices = @transform_14, window_bounds = array<i64: 1, 6>}, {transform_indices = @transform_15, window_bounds = array<i64: 1, 2, 6>}, {transform_indices = @transform_16, window_bounds = array<i64: 1, 2, 256>}]} {
    %c0 = arith.constant 0 : index
    %c0_0 = arith.constant 0 : index
    %0 = vector.load %arg2[%c0, %c0_0] : memref<64x8xf32, #tpu.memory_space<vmem>>, vector<64x8xf32>
    %c0_1 = arith.constant 0 : index
    %c0_2 = arith.constant 0 : index
    %c0_3 = arith.constant 0 : index
    %1 = vector.load %arg1[%c0_1, %c0_2, %c0_3] : memref<1x8x1024xf32, #tpu.memory_space<vmem>>, vector<1x8x1024xf32>
    %2 = vector.shape_cast %1 : vector<1x8x1024xf32> to vector<8x1024xf32>
    %cst = arith.constant dense<0.000000e+00> : vector<64x1024xf32>
    %3 = tpu.matmul %0, %2, %cst {dimension_numbers = #tpu.dot_dimension_numbers<[1], [0], [0], [1], [0, 0, 1, 1], [], []>} : vector<64x8xf32>, vector<8x1024xf32>, vector<64x1024xf32> -> vector<64x1024xf32>
    %c0_4 = arith.constant 0 : index
    %c0_5 = arith.constant 0 : index
    %4 = vector.load %arg3[%c0_4, %c0_5] : memref<64x1xf32, #tpu.memory_space<vmem>>, vector<64x1xf32>
    %5 = vector.broadcast %4 : vector<64x1xf32> to vector<64x1024xf32>
    %6 = arith.addf %3, %5 : vector<64x1024xf32>
    %cst_6 = arith.constant 0.000000e+00 : f32
    %7 = vector.broadcast %cst_6 : f32 to vector<64x1024xf32>
    %8 = arith.maximumf %6, %7 : vector<64x1024xf32>
    %9 = vector.extract_strided_slice %8 {offsets = [0, 0], sizes = [16, 1024], strides = [1, 1]} : vector<64x1024xf32> to vector<16x1024xf32>
    %10 = vector.extract_strided_slice %8 {offsets = [16, 0], sizes = [16, 1024], strides = [1, 1]} : vector<64x1024xf32> to vector<16x1024xf32>
    %11 = arith.maximumf %9, %10 : vector<16x1024xf32>
    %12 = vector.extract_strided_slice %8 {offsets = [32, 0], sizes = [16, 1024], strides = [1, 1]} : vector<64x1024xf32> to vector<16x1024xf32>
    %13 = vector.extract_strided_slice %8 {offsets = [48, 0], sizes = [16, 1024], strides = [1, 1]} : vector<64x1024xf32> to vector<16x1024xf32>
    %14 = arith.maximumf %12, %13 : vector<16x1024xf32>
    %15 = arith.maximumf %11, %14 : vector<16x1024xf32>
    %16 = tpu.transpose %15, [1, 0] : vector<16x1024xf32> -> vector<1024x16xf32>
    %17 = vector.extract_strided_slice %16 {offsets = [0, 0], sizes = [1020, 16], strides = [1, 1]} : vector<1024x16xf32> to vector<1020x16xf32>
    %c0_7 = arith.constant 0 : index
    %c0_8 = arith.constant 0 : index
    %c0_9 = arith.constant 0 : index
    %18 = vector.load %arg4[%c0_7, %c0_8, %c0_9] : memref<2x16x32xf32, #tpu.memory_space<vmem>>, vector<1x16x32xf32>
    %19 = vector.shape_cast %18 : vector<1x16x32xf32> to vector<16x32xf32>
    %cst_10 = arith.constant dense<0.000000e+00> : vector<1020x32xf32>
    %20 = tpu.matmul %17, %19, %cst_10 {dimension_numbers = #tpu.dot_dimension_numbers<[1], [0], [0], [1], [0, 0, 1, 1], [], []>} : vector<1020x16xf32>, vector<16x32xf32>, vector<1020x32xf32> -> vector<1020x32xf32>
    %21 = vector.extract_strided_slice %16 {offsets = [1, 0], sizes = [1020, 16], strides = [1, 1]} : vector<1024x16xf32> to vector<1020x16xf32>
    %c1 = arith.constant 1 : index
    %c0_11 = arith.constant 0 : index
    %c0_12 = arith.constant 0 : index
    %22 = vector.load %arg4[%c1, %c0_11, %c0_12] : memref<2x16x32xf32, #tpu.memory_space<vmem>>, vector<1x16x32xf32>
    %23 = vector.shape_cast %22 : vector<1x16x32xf32> to vector<16x32xf32>
    %cst_13 = arith.constant dense<0.000000e+00> : vector<1020x32xf32>
    %24 = tpu.matmul %21, %23, %cst_13 {dimension_numbers = #tpu.dot_dimension_numbers<[1], [0], [0], [1], [0, 0, 1, 1], [], []>} : vector<1020x16xf32>, vector<16x32xf32>, vector<1020x32xf32> -> vector<1020x32xf32>
    %25 = arith.addf %20, %24 : vector<1020x32xf32>
    %c0_14 = arith.constant 0 : index
    %c0_15 = arith.constant 0 : index
    %26 = vector.load %arg5[%c0_14, %c0_15] : memref<1x32xf32, #tpu.memory_space<vmem>>, vector<1x32xf32>
    %27 = vector.broadcast %26 : vector<1x32xf32> to vector<1020x32xf32>
    %28 = arith.addf %25, %27 : vector<1020x32xf32>
    %cst_16 = arith.constant 0.000000e+00 : f32
    %29 = vector.broadcast %cst_16 : f32 to vector<1020x32xf32>
    %30 = arith.maximumf %28, %29 : vector<1020x32xf32>
    %31 = vector.shape_cast %30 : vector<1020x32xf32> to vector<255x4x32xf32>
    %cst_17 = arith.constant dense<0xFF800000> : vector<255x32xf32>
    %32 = vector.multi_reduction <maximumf>, %31, %cst_17 [1] : vector<255x4x32xf32> to vector<255x32xf32>
    %33 = vector.extract_strided_slice %32 {offsets = [0, 0], sizes = [252, 32], strides = [1, 1]} : vector<255x32xf32> to vector<252x32xf32>
    %c0_18 = arith.constant 0 : index
    %c0_19 = arith.constant 0 : index
    %c0_20 = arith.constant 0 : index
    %34 = vector.load %arg6[%c0_18, %c0_19, %c0_20] : memref<2x32x64xf32, #tpu.memory_space<vmem>>, vector<1x32x64xf32>
    %35 = vector.shape_cast %34 : vector<1x32x64xf32> to vector<32x64xf32>
    %cst_21 = arith.constant dense<0.000000e+00> : vector<252x64xf32>
    %36 = tpu.matmul %33, %35, %cst_21 {dimension_numbers = #tpu.dot_dimension_numbers<[1], [0], [0], [1], [0, 0, 1, 1], [], []>} : vector<252x32xf32>, vector<32x64xf32>, vector<252x64xf32> -> vector<252x64xf32>
    %37 = vector.extract_strided_slice %32 {offsets = [1, 0], sizes = [252, 32], strides = [1, 1]} : vector<255x32xf32> to vector<252x32xf32>
    %c1_22 = arith.constant 1 : index
    %c0_23 = arith.constant 0 : index
    %c0_24 = arith.constant 0 : index
    %38 = vector.load %arg6[%c1_22, %c0_23, %c0_24] : memref<2x32x64xf32, #tpu.memory_space<vmem>>, vector<1x32x64xf32>
    %39 = vector.shape_cast %38 : vector<1x32x64xf32> to vector<32x64xf32>
    %cst_25 = arith.constant dense<0.000000e+00> : vector<252x64xf32>
    %40 = tpu.matmul %37, %39, %cst_25 {dimension_numbers = #tpu.dot_dimension_numbers<[1], [0], [0], [1], [0, 0, 1, 1], [], []>} : vector<252x32xf32>, vector<32x64xf32>, vector<252x64xf32> -> vector<252x64xf32>
    %41 = arith.addf %36, %40 : vector<252x64xf32>
    %c0_26 = arith.constant 0 : index
    %c0_27 = arith.constant 0 : index
    %42 = vector.load %arg7[%c0_26, %c0_27] : memref<1x64xf32, #tpu.memory_space<vmem>>, vector<1x64xf32>
    %43 = vector.broadcast %42 : vector<1x64xf32> to vector<252x64xf32>
    %44 = arith.addf %41, %43 : vector<252x64xf32>
    %cst_28 = arith.constant 0.000000e+00 : f32
    %45 = vector.broadcast %cst_28 : f32 to vector<252x64xf32>
    %46 = arith.maximumf %44, %45 : vector<252x64xf32>
    %47 = vector.shape_cast %46 : vector<252x64xf32> to vector<63x4x64xf32>
    %cst_29 = arith.constant dense<0xFF800000> : vector<63x64xf32>
    %48 = vector.multi_reduction <maximumf>, %47, %cst_29 [1] : vector<63x4x64xf32> to vector<63x64xf32>
    %49 = vector.extract_strided_slice %48 {offsets = [0, 0], sizes = [60, 64], strides = [1, 1]} : vector<63x64xf32> to vector<60x64xf32>
    %c0_30 = arith.constant 0 : index
    %c0_31 = arith.constant 0 : index
    %c0_32 = arith.constant 0 : index
    %50 = vector.load %arg8[%c0_30, %c0_31, %c0_32] : memref<2x64x128xf32, #tpu.memory_space<vmem>>, vector<1x64x128xf32>
    %51 = vector.shape_cast %50 : vector<1x64x128xf32> to vector<64x128xf32>
    %cst_33 = arith.constant dense<0.000000e+00> : vector<60x128xf32>
    %52 = tpu.matmul %49, %51, %cst_33 {dimension_numbers = #tpu.dot_dimension_numbers<[1], [0], [0], [1], [0, 0, 1, 1], [], []>} : vector<60x64xf32>, vector<64x128xf32>, vector<60x128xf32> -> vector<60x128xf32>
    %53 = vector.extract_strided_slice %48 {offsets = [1, 0], sizes = [60, 64], strides = [1, 1]} : vector<63x64xf32> to vector<60x64xf32>
    %c1_34 = arith.constant 1 : index
    %c0_35 = arith.constant 0 : index
    %c0_36 = arith.constant 0 : index
    %54 = vector.load %arg8[%c1_34, %c0_35, %c0_36] : memref<2x64x128xf32, #tpu.memory_space<vmem>>, vector<1x64x128xf32>
    %55 = vector.shape_cast %54 : vector<1x64x128xf32> to vector<64x128xf32>
    %cst_37 = arith.constant dense<0.000000e+00> : vector<60x128xf32>
    %56 = tpu.matmul %53, %55, %cst_37 {dimension_numbers = #tpu.dot_dimension_numbers<[1], [0], [0], [1], [0, 0, 1, 1], [], []>} : vector<60x64xf32>, vector<64x128xf32>, vector<60x128xf32> -> vector<60x128xf32>
    %57 = arith.addf %52, %56 : vector<60x128xf32>
    %c0_38 = arith.constant 0 : index
    %c0_39 = arith.constant 0 : index
    %58 = vector.load %arg9[%c0_38, %c0_39] : memref<1x128xf32, #tpu.memory_space<vmem>>, vector<1x128xf32>
    %59 = vector.broadcast %58 : vector<1x128xf32> to vector<60x128xf32>
    %60 = arith.addf %57, %59 : vector<60x128xf32>
    %cst_40 = arith.constant 0.000000e+00 : f32
    %61 = vector.broadcast %cst_40 : f32 to vector<60x128xf32>
    %62 = arith.maximumf %60, %61 : vector<60x128xf32>
    %63 = vector.shape_cast %62 : vector<60x128xf32> to vector<15x4x128xf32>
    %cst_41 = arith.constant dense<0xFF800000> : vector<15x128xf32>
    %64 = vector.multi_reduction <maximumf>, %63, %cst_41 [1] : vector<15x4x128xf32> to vector<15x128xf32>
    %65 = vector.extract_strided_slice %64 {offsets = [0, 0], sizes = [12, 128], strides = [1, 1]} : vector<15x128xf32> to vector<12x128xf32>
    %c0_42 = arith.constant 0 : index
    %c0_43 = arith.constant 0 : index
    %c0_44 = arith.constant 0 : index
    %66 = vector.load %arg10[%c0_42, %c0_43, %c0_44] : memref<2x128x256xf32, #tpu.memory_space<vmem>>, vector<1x128x256xf32>
    %67 = vector.shape_cast %66 : vector<1x128x256xf32> to vector<128x256xf32>
    %cst_45 = arith.constant dense<0.000000e+00> : vector<12x256xf32>
    %68 = tpu.matmul %65, %67, %cst_45 {dimension_numbers = #tpu.dot_dimension_numbers<[1], [0], [0], [1], [0, 0, 1, 1], [], []>} : vector<12x128xf32>, vector<128x256xf32>, vector<12x256xf32> -> vector<12x256xf32>
    %69 = vector.extract_strided_slice %64 {offsets = [1, 0], sizes = [12, 128], strides = [1, 1]} : vector<15x128xf32> to vector<12x128xf32>
    %c1_46 = arith.constant 1 : index
    %c0_47 = arith.constant 0 : index
    %c0_48 = arith.constant 0 : index
    %70 = vector.load %arg10[%c1_46, %c0_47, %c0_48] : memref<2x128x256xf32, #tpu.memory_space<vmem>>, vector<1x128x256xf32>
    %71 = vector.shape_cast %70 : vector<1x128x256xf32> to vector<128x256xf32>
    %cst_49 = arith.constant dense<0.000000e+00> : vector<12x256xf32>
    %72 = tpu.matmul %69, %71, %cst_49 {dimension_numbers = #tpu.dot_dimension_numbers<[1], [0], [0], [1], [0, 0, 1, 1], [], []>} : vector<12x128xf32>, vector<128x256xf32>, vector<12x256xf32> -> vector<12x256xf32>
    %73 = arith.addf %68, %72 : vector<12x256xf32>
    %c0_50 = arith.constant 0 : index
    %c0_51 = arith.constant 0 : index
    %74 = vector.load %arg11[%c0_50, %c0_51] : memref<1x256xf32, #tpu.memory_space<vmem>>, vector<1x256xf32>
    %75 = vector.broadcast %74 : vector<1x256xf32> to vector<12x256xf32>
    %76 = arith.addf %73, %75 : vector<12x256xf32>
    %cst_52 = arith.constant 0.000000e+00 : f32
    %77 = vector.broadcast %cst_52 : f32 to vector<12x256xf32>
    %78 = arith.maximumf %76, %77 : vector<12x256xf32>
    %79 = vector.shape_cast %78 : vector<12x256xf32> to vector<3x4x256xf32>
    %cst_53 = arith.constant dense<0xFF800000> : vector<3x256xf32>
    %80 = vector.multi_reduction <maximumf>, %79, %cst_53 [1] : vector<3x4x256xf32> to vector<3x256xf32>
    %81 = tpu.iota {dimensions = array<i32: 1>} : vector<2x3xi32>
    %82 = tpu.iota {dimensions = array<i32: 0>} : vector<2x3xi32>
    %c2_i32 = arith.constant 2 : i32
    %83 = vector.broadcast %c2_i32 : i32 to vector<2x3xi32>
    %84 = arith.muli %82, %83 : vector<2x3xi32>
    %85 = arith.cmpi sge, %81, %84 : vector<2x3xi32>
    %c1_i32 = arith.constant 1 : i32
    %86 = vector.broadcast %c1_i32 : i32 to vector<2x3xi32>
    %87 = arith.addi %84, %86 : vector<2x3xi32>
    %88 = arith.cmpi slt, %81, %87 : vector<2x3xi32>
    %89 = arith.andi %85, %88 : vector<2x3xi1>
    %cst_54 = arith.constant 1.000000e+00 : f32
    %cst_55 = arith.constant 0.000000e+00 : f32
    %90 = vector.broadcast %cst_54 : f32 to vector<2x3xf32>
    %91 = vector.broadcast %cst_55 : f32 to vector<2x3xf32>
    %92 = arith.select %89, %90, %91 : vector<2x3xi1>, vector<2x3xf32>
    %cst_56 = arith.constant dense<0.000000e+00> : vector<2x256xf32>
    %93 = tpu.matmul %92, %80, %cst_56 {dimension_numbers = #tpu.dot_dimension_numbers<[1], [0], [0], [1], [0, 0, 1, 1], [], []>} : vector<2x3xf32>, vector<3x256xf32>, vector<2x256xf32> -> vector<2x256xf32>
    %c0_57 = arith.constant 0 : index
    %c0_58 = arith.constant 0 : index
    %c0_59 = arith.constant 0 : index
    %94 = vector.load %arg17[%c0_57, %c0_58, %c0_59] : memref<1x2x256xf32, #tpu.memory_space<vmem>>, vector<1x2x256xf32>
    %95 = vector.shape_cast %94 : vector<1x2x256xf32> to vector<2x256xf32>
    %96 = vector.shape_cast %93 : vector<2x256xf32> to vector<1x2x256xf32>
    tpu.vector_store %arg17[%c0_57, %c0_58, %c0_59], %96 {strides = array<i32>} : memref<1x2x256xf32, #tpu.memory_space<vmem>>, vector<1x2x256xf32>,
    %c0_60 = arith.constant 0 : index
    %c0_61 = arith.constant 0 : index
    %97 = vector.load %arg12[%c0_60, %c0_61] : memref<256x128xf32, #tpu.memory_space<vmem>>, vector<256x128xf32>
    %cst_62 = arith.constant dense<0.000000e+00> : vector<2x128xf32>
    %98 = tpu.matmul %93, %97, %cst_62 {dimension_numbers = #tpu.dot_dimension_numbers<[1], [0], [0], [1], [0, 0, 1, 1], [], []>} : vector<2x256xf32>, vector<256x128xf32>, vector<2x128xf32> -> vector<2x128xf32>
    %c0_63 = arith.constant 0 : index
    %c0_64 = arith.constant 0 : index
    %99 = vector.load %arg13[%c0_63, %c0_64] : memref<1x128xf32, #tpu.memory_space<vmem>>, vector<1x128xf32>
    %100 = vector.broadcast %99 : vector<1x128xf32> to vector<2x128xf32>
    %101 = arith.addf %98, %100 : vector<2x128xf32>
    %c0_65 = arith.constant 0 : index
    %c0_66 = arith.constant 0 : index
    %102 = vector.load %arg14[%c0_65, %c0_66] : memref<128x6xf32, #tpu.memory_space<vmem>>, vector<128x6xf32>
    %cst_67 = arith.constant dense<0.000000e+00> : vector<2x6xf32>
    %103 = tpu.matmul %101, %102, %cst_67 {dimension_numbers = #tpu.dot_dimension_numbers<[1], [0], [0], [1], [0, 0, 1, 1], [], []>} : vector<2x128xf32>, vector<128x6xf32>, vector<2x6xf32> -> vector<2x6xf32>
    %c0_68 = arith.constant 0 : index
    %c0_69 = arith.constant 0 : index
    %104 = vector.load %arg15[%c0_68, %c0_69] : memref<1x6xf32, #tpu.memory_space<vmem>>, vector<1x6xf32>
    %105 = vector.broadcast %104 : vector<1x6xf32> to vector<2x6xf32>
    %106 = arith.addf %103, %105 : vector<2x6xf32>
    %c0_70 = arith.constant 0 : index
    %c0_71 = arith.constant 0 : index
    %c0_72 = arith.constant 0 : index
    %107 = vector.load %arg16[%c0_70, %c0_71, %c0_72] : memref<1x2x6xf32, #tpu.memory_space<vmem>>, vector<1x2x6xf32>
    %108 = vector.shape_cast %107 : vector<1x2x6xf32> to vector<2x6xf32>
    %109 = vector.shape_cast %106 : vector<2x6xf32> to vector<1x2x6xf32>
    tpu.vector_store %arg16[%c0_70, %c0_71, %c0_72], %109 {strides = array<i32>} : memref<1x2x6xf32, #tpu.memory_space<vmem>>, vector<1x2x6xf32>,
    return
  }
  func.func @transform_0(%arg0: i32) -> (i32, i32, i32) {
    %c0_i32 = arith.constant 0 : i32
    %c0_i32_0 = arith.constant 0 : i32
    %c0_i32_1 = arith.constant 0 : i32
    return %arg0, %c0_i32, %c0_i32_0 : i32, i32, i32
  }
  func.func @transform_1(%arg0: i32) -> (i32, i32) {
    %c0_i32 = arith.constant 0 : i32
    %c0_i32_0 = arith.constant 0 : i32
    %c0_i32_1 = arith.constant 0 : i32
    return %c0_i32, %c0_i32_0 : i32, i32
  }
  func.func @transform_2(%arg0: i32) -> (i32, i32) {
    %c0_i32 = arith.constant 0 : i32
    %c0_i32_0 = arith.constant 0 : i32
    %c0_i32_1 = arith.constant 0 : i32
    return %c0_i32, %c0_i32_0 : i32, i32
  }
  func.func @transform_3(%arg0: i32) -> (i32, i32, i32) {
    %c0_i32 = arith.constant 0 : i32
    %c0_i32_0 = arith.constant 0 : i32
    %c0_i32_1 = arith.constant 0 : i32
    %c0_i32_2 = arith.constant 0 : i32
    return %c0_i32, %c0_i32_0, %c0_i32_1 : i32, i32, i32
  }
  func.func @transform_4(%arg0: i32) -> (i32, i32) {
    %c0_i32 = arith.constant 0 : i32
    %c0_i32_0 = arith.constant 0 : i32
    %c0_i32_1 = arith.constant 0 : i32
    return %c0_i32, %c0_i32_0 : i32, i32
  }
  func.func @transform_5(%arg0: i32) -> (i32, i32, i32) {
    %c0_i32 = arith.constant 0 : i32
    %c0_i32_0 = arith.constant 0 : i32
    %c0_i32_1 = arith.constant 0 : i32
    %c0_i32_2 = arith.constant 0 : i32
    return %c0_i32, %c0_i32_0, %c0_i32_1 : i32, i32, i32
  }
  func.func @transform_6(%arg0: i32) -> (i32, i32) {
    %c0_i32 = arith.constant 0 : i32
    %c0_i32_0 = arith.constant 0 : i32
    %c0_i32_1 = arith.constant 0 : i32
    return %c0_i32, %c0_i32_0 : i32, i32
  }
  func.func @transform_7(%arg0: i32) -> (i32, i32, i32) {
    %c0_i32 = arith.constant 0 : i32
    %c0_i32_0 = arith.constant 0 : i32
    %c0_i32_1 = arith.constant 0 : i32
    %c0_i32_2 = arith.constant 0 : i32
    return %c0_i32, %c0_i32_0, %c0_i32_1 : i32, i32, i32
  }
  func.func @transform_8(%arg0: i32) -> (i32, i32) {
    %c0_i32 = arith.constant 0 : i32
    %c0_i32_0 = arith.constant 0 : i32
    %c0_i32_1 = arith.constant 0 : i32
    return %c0_i32, %c0_i32_0 : i32, i32
  }
  func.func @transform_9(%arg0: i32) -> (i32, i32, i32) {
    %c0_i32 = arith.constant 0 : i32
    %c0_i32_0 = arith.constant 0 : i32
    %c0_i32_1 = arith.constant 0 : i32
    %c0_i32_2 = arith.constant 0 : i32
    return %c0_i32, %c0_i32_0, %c0_i32_1 : i32, i32, i32
  }
  func.func @transform_10(%arg0: i32) -> (i32, i32) {
    %c0_i32 = arith.constant 0 : i32
    %c0_i32_0 = arith.constant 0 : i32
    %c0_i32_1 = arith.constant 0 : i32
    return %c0_i32, %c0_i32_0 : i32, i32
  }
  func.func @transform_11(%arg0: i32) -> (i32, i32) {
    %c0_i32 = arith.constant 0 : i32
    %c0_i32_0 = arith.constant 0 : i32
    %c0_i32_1 = arith.constant 0 : i32
    return %c0_i32, %c0_i32_0 : i32, i32
  }
  func.func @transform_12(%arg0: i32) -> (i32, i32) {
    %c0_i32 = arith.constant 0 : i32
    %c0_i32_0 = arith.constant 0 : i32
    %c0_i32_1 = arith.constant 0 : i32
    return %c0_i32, %c0_i32_0 : i32, i32
  }
  func.func @transform_13(%arg0: i32) -> (i32, i32) {
    %c0_i32 = arith.constant 0 : i32
    %c0_i32_0 = arith.constant 0 : i32
    %c0_i32_1 = arith.constant 0 : i32
    return %c0_i32, %c0_i32_0 : i32, i32
  }
  func.func @transform_14(%arg0: i32) -> (i32, i32) {
    %c0_i32 = arith.constant 0 : i32
    %c0_i32_0 = arith.constant 0 : i32
    %c0_i32_1 = arith.constant 0 : i32
    return %c0_i32, %c0_i32_0 : i32, i32
  }
  func.func @transform_15(%arg0: i32) -> (i32, i32, i32) {
    %c0_i32 = arith.constant 0 : i32
    %c0_i32_0 = arith.constant 0 : i32
    %c0_i32_1 = arith.constant 0 : i32
    return %arg0, %c0_i32, %c0_i32_0 : i32, i32, i32
  }
  func.func @transform_16(%arg0: i32) -> (i32, i32, i32) {
    %c0_i32 = arith.constant 0 : i32
    %c0_i32_0 = arith.constant 0 : i32
    %c0_i32_1 = arith.constant 0 : i32
    return %arg0, %c0_i32, %c0_i32_0 : i32, i32, i32
  }
}

</mosaic_0001>

<bundles_post_ra>
// kernel: tile.8
= control target key start
LH: loop header
LB: loop body
LE: loop exit
PB: predicated region body
PF: predicated region fallthrough
CT: control target
= control target key end

     0   :  { %s22_s0 = inlined_call_operand.vmem [shape: f32[16], index: 0, kind: input, shape index: {}]   ;;  %s23_s1 = inlined_call_operand.vmem [shape: f32[4,16], index: 1, kind: output, shape index: {}]  }
   0x1   :  { %v4_v0 = vld [vmem:[%s22_s0] ss:$0 sm:$0xff] }
   0x2   :  { %5 = vst [vmem:[%s23_s1] sm:$0xf] %v4_v0 }

// kernel: tile.0
= control target key start
LH: loop header
LB: loop body
LE: loop exit
PB: predicated region body
PF: predicated region fallthrough
CT: control target
= control target key end

     0   :  { %s177_s8 = smov 125   ;;  %s178_s9 = smov 126   ;;  %vm8_vm0 = vcmask 7168   ;;  %s332_s0 = inlined_call_operand.vmem [shape: f32[4,16], index: 0, kind: input, shape index: {}]   ;;  %s333_s1 = inlined_call_operand.vmem [shape: f32[64,1], index: 1, kind: output, shape index: {}]  }
   0x1   :  { %v5_v0 = vld [vmem:[%s332_s0] sm:$0xf]  ;;  %s176_s0 = smov 127   ;;  %s179_s10 = smov 124  }
   0x2   :  { %6 = vst [vmem:[#allocation0] sm:$0xf] %v5_v0  ;;  %s180_s11 = smov 123   ;;  %s181_s12 = smov 122  }
   0x3   :  { %s182_s13 = smov 121   ;;  %s183_s14 = smov 120  }
   0x4   :  { %s184_s19 = smov 119   ;;  %s185_s20 = smov 118  }
   0x5   :  { %s186_s21 = smov 117   ;;  %s187_s22 = smov 116  }
   0x6   :  { %s188_s23 = smov 115   ;;  %s189_s24 = smov 114  }
   0x7   :  { %s190_s25 = smov 113  }
   0x9   :  { %v11_v1 = vld [vmem:[#allocation0] sm:$0xf]  }
   0xa   :  { %v27_v2 = vld [vmem:[#allocation0] sm:$0xf]   ;;  %12 = vrot.lane.b32.xlu0 %v11_v1, %s176_s0 }
   0xb   :  { %28 = vrot.lane.b32.xlu1 %v27_v2, %s177_s8  ;;  %v19_v3 = vld [vmem:[#allocation0] sm:$0xf]  }
   0xc   :  { %v35_v4 = vld [vmem:[#allocation0] sm:$0xf]  }
   0xd   :  { %v43_v5 = vld [vmem:[#allocation0] sm:$0xf]  }
   0xe   :  { %20 = vrot.lane.b32.xlu0 %v19_v3, %s178_s9  ;;  %v51_v6 = vld [vmem:[#allocation0] sm:$0xf]  }
   0xf   :  { %36 = vrot.lane.b32.xlu1 %v35_v4, %s179_s10  ;;  %v59_v7 = vld [vmem:[#allocation0] sm:$0xf]  }
  0x10   :  { %v67_v8 = vld [vmem:[#allocation0] sm:$0xf]  }
  0x11   :  { %v75_v9 = vld [vmem:[#allocation0] sm:$0xf]  }
  0x12   :  { %44 = vrot.lane.b32.xlu0 %v43_v5, %s180_s11  ;;  %v83_v10 = vld [vmem:[#allocation0] sm:$0xf]  }
  0x13   :  { %52 = vrot.lane.b32.xlu1 %v51_v6, %s181_s12  ;;  %v7_v11 = vld [vmem:[#allocation0] sm:$0xf]  }
  0x14   :  { %9 = vst.msk [vmem:[%s333_s1] ss:$16 sm:$0x3] %vm8_vm0, %v7_v11   ;;  %10 = vst.msk [vmem:[%s333_s1] ss:$16 sm:$0xc] %vm8_vm0, %v7_v11  }
  0x15   :  { %v91_v12 = vld [vmem:[#allocation0] sm:$0xf]  }
  0x16   :  { %60 = vrot.lane.b32.xlu0 %v59_v7, %s182_s13  ;;  %v99_v13 = vld [vmem:[#allocation0] sm:$0xf]  }
  0x17   :  { %68 = vrot.lane.b32.xlu1 %v67_v8, %s183_s14  ;;  %v107_v14 = vld [vmem:[#allocation0] sm:$0xf]  }
  0x18   :  { %v115_v15 = vld [vmem:[#allocation0] sm:$0xf]  }
  0x19   :  { %v123_v16 = vld [vmem:[#allocation0] sm:$0xf]  }
  0x1a   :  { %76 = vrot.lane.b32.xlu0 %v75_v9, %s184_s19 }
  0x1b   :  { %84 = vrot.lane.b32.xlu1 %v83_v10, %s185_s20 }
  0x1e   :  { %92 = vrot.lane.b32.xlu0 %v91_v12, %s186_s21 }
  0x1f   :  { %100 = vrot.lane.b32.xlu1 %v99_v13, %s187_s22 }
  0x22   :  { %108 = vrot.lane.b32.xlu0 %v107_v14, %s188_s23 }
  0x23   :  { %116 = vrot.lane.b32.xlu1 %v115_v15, %s189_s24 }
  0x26   :  { %124 = vrot.lane.b32.xlu0 %v123_v16, %s190_s25 }
  0x7c   :  { %v13_v17 = vpop.permute.xlu0 %12  }
  0x7d   :  { %v29_v18 = vpop.permute.xlu1 %28   ;;  %131 = vst.msk [vmem:[%s333_s1 + $0x1] ss:$16 sm:$0x3] %vm8_vm0, %v13_v17   ;;  %132 = vst.msk [vmem:[%s333_s1 + $0x1] ss:$16 sm:$0xc] %vm8_vm0, %v13_v17  }
  0x7e   :  { %135 = vst.msk [vmem:[%s333_s1 + $0x3] ss:$16 sm:$0x3] %vm8_vm0, %v29_v18   ;;  %136 = vst.msk [vmem:[%s333_s1 + $0x3] ss:$16 sm:$0xc] %vm8_vm0, %v29_v18  }
  0x80   :  { %v21_v19 = vpop.permute.xlu0 %20  }
  0x81   :  { %v37_v20 = vpop.permute.xlu1 %36   ;;  %133 = vst.msk [vmem:[%s333_s1 + $0x2] ss:$16 sm:$0x3] %vm8_vm0, %v21_v19   ;;  %134 = vst.msk [vmem:[%s333_s1 + $0x2] ss:$16 sm:$0xc] %vm8_vm0, %v21_v19  }
  0x82   :  { %137 = vst.msk [vmem:[%s333_s1 + $0x4] ss:$16 sm:$0x3] %vm8_vm0, %v37_v20   ;;  %138 = vst.msk [vmem:[%s333_s1 + $0x4] ss:$16 sm:$0xc] %vm8_vm0, %v37_v20  }
  0x84   :  { %v45_v21 = vpop.permute.xlu0 %44  }
  0x85   :  { %v53_v22 = vpop.permute.xlu1 %52   ;;  %139 = vst.msk [vmem:[%s333_s1 + $0x5] ss:$16 sm:$0x3] %vm8_vm0, %v45_v21   ;;  %140 = vst.msk [vmem:[%s333_s1 + $0x5] ss:$16 sm:$0xc] %vm8_vm0, %v45_v21  }
  0x86   :  { %141 = vst.msk [vmem:[%s333_s1 + $0x6] ss:$16 sm:$0x3] %vm8_vm0, %v53_v22   ;;  %142 = vst.msk [vmem:[%s333_s1 + $0x6] ss:$16 sm:$0xc] %vm8_vm0, %v53_v22  }
  0x88   :  { %v61_v23 = vpop.permute.xlu0 %60  }
  0x89   :  { %v69_v24 = vpop.permute.xlu1 %68   ;;  %143 = vst.msk [vmem:[%s333_s1 + $0x7] ss:$16 sm:$0x3] %vm8_vm0, %v61_v23   ;;  %144 = vst.msk [vmem:[%s333_s1 + $0x7] ss:$16 sm:$0xc] %vm8_vm0, %v61_v23  }
  0x8a   :  { %145 = vst.msk [vmem:[%s333_s1 + $0x8] ss:$16 sm:$0x3] %vm8_vm0, %v69_v24   ;;  %146 = vst.msk [vmem:[%s333_s1 + $0x8] ss:$16 sm:$0xc] %vm8_vm0, %v69_v24  }
  0x8c   :  { %v77_v25 = vpop.permute.xlu0 %76  }
  0x8d   :  { %v85_v26 = vpop.permute.xlu1 %84   ;;  %147 = vst.msk [vmem:[%s333_s1 + $0x9] ss:$16 sm:$0x3] %vm8_vm0, %v77_v25   ;;  %148 = vst.msk [vmem:[%s333_s1 + $0x9] ss:$16 sm:$0xc] %vm8_vm0, %v77_v25  }
  0x8e   :  { %149 = vst.msk [vmem:[%s333_s1 + $0xa] ss:$16 sm:$0x3] %vm8_vm0, %v85_v26   ;;  %150 = vst.msk [vmem:[%s333_s1 + $0xa] ss:$16 sm:$0xc] %vm8_vm0, %v85_v26  }
  0x90   :  { %v93_v27 = vpop.permute.xlu0 %92  }
  0x91   :  { %v101_v28 = vpop.permute.xlu1 %100   ;;  %151 = vst.msk [vmem:[%s333_s1 + $0xb] ss:$16 sm:$0x3] %vm8_vm0, %v93_v27   ;;  %152 = vst.msk [vmem:[%s333_s1 + $0xb] ss:$16 sm:$0xc] %vm8_vm0, %v93_v27  }
  0x92   :  { %153 = vst.msk [vmem:[%s333_s1 + $0xc] ss:$16 sm:$0x3] %vm8_vm0, %v101_v28   ;;  %154 = vst.msk [vmem:[%s333_s1 + $0xc] ss:$16 sm:$0xc] %vm8_vm0, %v101_v28  }
  0x94   :  { %v109_v29 = vpop.permute.xlu0 %108  }
  0x95   :  { %v117_v30 = vpop.permute.xlu1 %116   ;;  %155 = vst.msk [vmem:[%s333_s1 + $0xd] ss:$16 sm:$0x3] %vm8_vm0, %v109_v29   ;;  %156 = vst.msk [vmem:[%s333_s1 + $0xd] ss:$16 sm:$0xc] %vm8_vm0, %v109_v29  }
  0x96   :  { %157 = vst.msk [vmem:[%s333_s1 + $0xe] ss:$16 sm:$0x3] %vm8_vm0, %v117_v30   ;;  %158 = vst.msk [vmem:[%s333_s1 + $0xe] ss:$16 sm:$0xc] %vm8_vm0, %v117_v30  }
  0x98   :  { %v125_v31 = vpop.permute.xlu0 %124  }
  0x99   :  { %159 = vst.msk [vmem:[%s333_s1 + $0xf] ss:$16 sm:$0x3] %vm8_vm0, %v125_v31   ;;  %160 = vst.msk [vmem:[%s333_s1 + $0xf] ss:$16 sm:$0xc] %vm8_vm0, %v125_v31  }

// kernel: spt_cnn_forward.1
= control target key start
LH: loop header
LB: loop body
LE: loop exit
PB: predicated region body
PF: predicated region fallthrough
CT: control target
= control target key end

     0   :  { %s15726_s0 = inlined_call_operand.vmem [shape: f32[2,8,1024], index: 0, kind: input, shape index: {}]   ;;  %s15727_s1 = inlined_call_operand.vmem [shape: f32[64,8], index: 1, kind: input, shape index: {}]   ;;  %s15728_s2 = inlined_call_operand.vmem [shape: f32[64,1], index: 2, kind: input, shape index: {}]   ;;  %s15729_s3 = inlined_call_operand.vmem [shape: f32[2,16,32], index: 3, kind: input, shape index: {}]   ;;  %s15730_s4 = inlined_call_operand.vmem [shape: f32[1,32], index: 4, kind: input, shape index: {}]   ;;  %s15731_s5 = inlined_call_operand.vmem [shape: f32[2,32,64], index: 5, kind: input, shape index: {}]   ;;  %s15732_s6 = inlined_call_operand.vmem [shape: f32[1,64], index: 6, kind: input, shape index: {}]   ;;  %s15733_s7 = inlined_call_operand.vmem [shape: f32[2,64,128], index: 7, kind: input, shape index: {}]   ;;  %s15734_s8 = inlined_call_operand.vmem [shape: f32[1,128], index: 8, kind: input, shape index: {}]   ;;  %s15735_s9 = inlined_call_operand.vmem [shape: f32[2,128,256], index: 9, kind: input, shape index: {}]   ;;  %s15736_s10 = inlined_call_operand.vmem [shape: f32[1,256], index: 10, kind: input, shape index: {}]   ;;  %s15737_s11 = inlined_call_operand.vmem [shape: f32[256,128], index: 11, kind: input, shape index: {}]   ;;  %s15738_s12 = inlined_call_operand.vmem [shape: f32[1,128], index: 12, kind: input, shape index: {}]   ;;  %s15739_s13 = inlined_call_operand.vmem [shape: f32[128,6], index: 13, kind: input, shape index: {}]   ;;  %s15740_s14 = inlined_call_operand.vmem [shape: f32[1,6], index: 14, kind: input, shape index: {}]   ;;  %s15741_s15 = inlined_call_operand.hbm [shape: f32[2,2,6], index: 15, kind: output, shape index: {0}]   ;;  %s15742_s16 = inlined_call_operand.vmem [shape: f32[2,2,256], index: 16, kind: output, shape index: {1}]  }
   0x1   :  { %15775 = sst [smem:[#allocation47_spill]] %s15726_s0 }
   0x2   :  { %22 = vsyncpa [#allocation3], 0 }
   0x3   :  { %24 = vsyncpa [#allocation3 + $0x1], 0  ;;  %s11002_s21 = smov 0   ;;  %s11004_s22 = smov 0  }
   0x4   :  { %s11006_s23 = smov 0   ;;  %s11008_s24 = smov 0  }
   0x5 LB: > { %15776 = sst [smem:[#allocation5_spill]] %s10899_s21  ;;  %s11023_s25 = sadd.s32 4294967295, %s10911_s24   ;;  %s10911_s24 = sphi %s11008_s24, %s16022_s24   ;;  %s10907_s23 = sphi %s11006_s23, %s16024_s23   ;;  %s10903_s22 = sphi %s11004_s22, %s16026_s22   ;;  %s10899_s21 = sphi %s11002_s21, %s16025_s21  }
   0x6   : > { %15777 = sst [smem:[#allocation6_spill]] %s10907_s23  ;;  %s9346_s26 = sadd.s32 4294967294, %s10911_s24  }
   0x7   : > { %15778 = sst [smem:[#allocation7_spill]] %s10911_s24  ;;  %s11027_s27 = sadd.s32 1, %s10911_s24  }
   0x8   : > { %15779 = sst [smem:[#allocation8_spill]] %s11027_s27  ;;  %s357_s28 = sadd.s32 1, %s10907_s23 }
   0x9   : > { %s354_s29 = ssub.s32 %s10911_s24, %s11027_s27  ;;  %p367_p0 = scmp.ne.s32.totalorder %s10907_s23, %s10903_s22 }
   0xa   : > { %p355_p1 = scmp.eq.s32.totalorder %s354_s29, 0  ;;  %p368_p2 = scmp.eq.s32.totalorder %s11023_s25, 1 }
   0xb   : > { %p373_p3 = scmp.ne.s32.totalorder %s10903_s22, %s10899_s21  ;;  %p374_p4 = scmp.eq.s32.totalorder %s9346_s26, 1 }
   0xc   : > { %s11038_s30 = scalar_select %p355_p1, %s10907_s23, %s357_s28  }
   0xd   : > { %p11040_p5 = por %p368_p2, %p367_p0  ;;  %p11044_p6 = por %p374_p4, %p373_p3 }
   0xe   : > { %15780 = sst [smem:[#allocation9_spill]] %s11038_s30  ;;  %p9349_p7 = scmp.ge.s32.totalorder %s10911_s24, 1 }
   0xf   : > { %s15782_s17 = scalar_select %p11044_p6, 1, 0 }
  0x10   : > { %p468_p8 = scmp.lt.s32.totalorder %s10911_s24, 3 }
  0x11   : > { %15783 = sst [smem:[#allocation10_spill]] %s15782_s17 }
  0x12   : > { %p469_p9 = pnand %p9349_p7, %p468_p8 }
  0x14   : > { %472 = sbr.rel (%p469_p9) target bundleno = 2572 (0xa0c), region = 80 }
  0x19   : > { %p523_p10 = scmp.lt.s32.totalorder %s11023_s25, 1  ;;  %v15749_v0 = vmov 0.0   ;;  %v10914_v1 = vmov 0   ;;  %v549_v2 = vld [vmem:[%s15728_s2] sm:$0xff]  ;;  %s15784_s27 = sld [smem:[#allocation47_spill]]  ;;  %vm597_vm0 = vcmask 64512  }
  0x1a   : > { %686 = vmatprep.mubr.f32.mxu0 %v15749_v0  ;;  %728 = vmatprep.mubr.f32.mxu1 %v15749_v0  ;;  %v553_v3 = vld [vmem:[%s15728_s2 + $0x20] sm:$0xff]  ;;  %v11074_v7 = vld [vmem:[%s15727_s1 + $0x38] sm:$0xff]  ;;  %v11084_v12 = vld [vmem:[%s15727_s1 + $0x8] sm:$0xff]  ;;  %vm1831_vm1 = vcmask 130048   ;;  %vm1575_vm2 = vcmask 1046528   ;;  %vm4391_vm3 = vcmask 257024  }
  0x1b   : > { %s11054_s18 = scalar_select %p523_p10, %s11023_s25, 1  ;;  %10842 = vset.pattern.permute.xlu0 %v10914_v1  ;;  %10843 = vset.pattern.permute.xlu1 %v10914_v1  ;;  %v11069_v4 = vld [vmem:[%s15727_s1] sm:$0xff]  ;;  %v551_v15 = vld [vmem:[%s15728_s2 + $0x10] sm:$0xff]  ;;  %v550_v18 = vld [vmem:[%s15728_s2 + $0x8] sm:$0xff]  ;;  %vm6424_vm4 = vcmask 1041409   ;;  %vm6426_vm5 = vcmask 1042434  }
  0x1c   : > { %559 = vperm.xlu0 %10842, %v549_v2   ;;  %579 = vperm.xlu1 %10843, %v553_v3   ;;  %v555_v16 = vld [vmem:[%s15728_s2 + $0x30] sm:$0xff]  ;;  %v552_v19 = vld [vmem:[%s15728_s2 + $0x18] sm:$0xff]  ;;  %v554_v22 = vld [vmem:[%s15728_s2 + $0x28] sm:$0xff]  ;;  %vm6428_vm6 = vcmask 1043459   ;;  %vm6430_vm7 = vcmask 1044484   ;;  %vm6432_vm8 = vcmask 1045509  }
  0x1d   : > { %s9785_s29 = sshll.u32 %s11054_s18, 6  ;;  %v535_v17 = vld [vmem:[%s15727_s1 + $0x10] sm:$0xff]  ;;  %v536_v20 = vld [vmem:[%s15727_s1 + $0x18] sm:$0xff]  ;;  %v537_v23 = vld [vmem:[%s15727_s1 + $0x20] sm:$0xff]  ;;  %vm6434_vm9 = vcmask 1046534   ;;  %vm6436_vm10 = vcmask 1047559  }
  0x1e   : > { %v556_v21 = vld [vmem:[%s15728_s2 + $0x38] sm:$0xff]  ;;  %v538_v24 = vld [vmem:[%s15727_s1 + $0x28] sm:$0xff]  ;;  %v539_v25 = vld [vmem:[%s15727_s1 + $0x30] sm:$0xff]  ;;  %vm6651_vm11 = vcmask 261120   ;;  %vm7608_vm12 = vcmask 519168   ;;  %vm8165_vm13 = vcmask 523264  }
  0x1f   : > { %s527_s17 = scalar_lea.vmem %s15784_s27, %s9785_s29  ;;  %vm8498_vm14 = vcmask 1043456   ;;  %s9786_s20 = sshll.u32 %s11054_s18, 2 }
  0x20   : > { %v542_v5 = vld [vmem:[%s527_s17 + $0x8] sm:$0xff]  ;;  %v541_v6 = vld [vmem:[%s527_s17] sm:$0xff]  ;;  %v544_v8 = vld [vmem:[%s527_s17 + $0x18] sm:$0xff]  ;;  %569 = vperm.xlu0 %10842, %v551_v15   ;;  %589 = vperm.xlu1 %10843, %v555_v16   ;;  %s532_s24 = scalar_lea.vmem %s15742_s16, %s9786_s20  ;;  %s513_s23 = sand.u32 1, %s10903_s22  }
  0x21   : > { %652 = vmatprep.subr.mxu0 %v542_v5  ;;  %10798 = vmatprep.subr.mxu1 %v542_v5  ;;  %v543_v9 = vld [vmem:[%s527_s17 + $0x10] sm:$0xff]  ;;  %v546_v10 = vld [vmem:[%s527_s17 + $0x28] sm:$0xff]  ;;  %v548_v11 = vld [vmem:[%s527_s17 + $0x38] sm:$0xff]  ;;  %s9782_s26 = sshll.u32 %s11023_s25, 5  ;;  %s9241_s20 = scalar_lea.sflag [#allocation3], %s513_s23 }
  0x22   : > { %653 = vmatpush1.msra.mxu0 %v541_v6  ;;  %10799 = vmatpush1.msra.mxu1 %v541_v6  ;;  %v545_v13 = vld [vmem:[%s527_s17 + $0x20] sm:$0xff]  ;;  %v547_v14 = vld [vmem:[%s527_s17 + $0x30] sm:$0xff]  ;;  %s15691_s19 = scalar_lea.hbm %s15741_s15, %s9782_s26  ;;  %s10916_s25 = smov [#allocation2]  }
  0x23   : > { %9355 = vmatmul.mubr.msk.f32.vlgmr.msra.gmra.mxu0 %vm597_vm0, %v11069_v4  ;;  %9362 = vmatmul.mubr.msk.f32.vlgmr.msra.gmra.mxu1 %vm597_vm0, %v11074_v7 }
  0x24   : > { %765 = vmatprep.subr.mxu1 %v544_v8  ;;  %692 = vmatprep.mubr.f32.mxu0 %v15749_v0 }
  0x25   : > { %766 = vmatpush1.msra.mxu1 %v543_v9  ;;  %799 = vmatprep.mubr.f32.mxu1 %v15749_v0 }
  0x26   : > { %878 = vmatprep.subr.mxu0 %v546_v10  ;;  %991 = vmatprep.subr.mxu1 %v548_v11 }
  0x27   : > { %9356 = vmatmul.mubr.msk.f32.gmra.mxu0 %vm597_vm0, %v11084_v12  ;;  %9363 = vmatmul.mubr.msk.f32.vlgmr.msra.gmra.mxu1 %vm597_vm0, %v11069_v4 }
  0x28   : > { %698 = vmatprep.mubr.f32.mxu0 %v15749_v0  ;;  %805 = vmatprep.mubr.f32.mxu1 %v15749_v0 }
  0x29   : > { %879 = vmatpush1.msra.mxu0 %v545_v13  ;;  %992 = vmatpush1.msra.mxu1 %v547_v14 }
  0x2a   : > { %564 = vperm.xlu0 %10842, %v550_v18   ;;  %574 = vperm.xlu1 %10843, %v552_v19   ;;  %v1443_v19 = vld [vmem:[%s15729_s3 + $0x8] sm:$0xff] }
  0x2b   : > { %9357 = vmatmul.mubr.msk.f32.gmra.mxu0 %vm597_vm0, %v535_v17  ;;  %9364 = vmatmul.mubr.msk.f32.gmra.mxu1 %vm597_vm0, %v11084_v12 }
  0x2c   : > { %704 = vmatprep.mubr.f32.mxu0 %v15749_v0  ;;  %811 = vmatprep.mubr.f32.mxu1 %v15749_v0 }
  0x2d   : > { %10399 = vmatprep.subr.mxu1 %v1443_v19 }
  0x2e   : > { %594 = vperm.xlu1 %10843, %v556_v21   ;;  %584 = vperm.xlu0 %10842, %v554_v22  }
  0x2f   : > { %9358 = vmatmul.mubr.msk.f32.gmra.mxu0 %vm597_vm0, %v536_v20  ;;  %9365 = vmatmul.mubr.msk.f32.gmra.mxu1 %vm597_vm0, %v535_v17 }
  0x30   : > { %710 = vmatprep.mubr.f32.mxu0 %v15749_v0  ;;  %817 = vmatprep.mubr.f32.mxu1 %v15749_v0 }
  0x33   : > { %9359 = vmatmul.mubr.msk.f32.gmra.mxu0 %vm597_vm0, %v537_v23  ;;  %9366 = vmatmul.mubr.msk.f32.gmra.mxu1 %vm597_vm0, %v536_v20 }
  0x34   : > { %716 = vmatprep.mubr.f32.mxu0 %v15749_v0  ;;  %823 = vmatprep.mubr.f32.mxu1 %v15749_v0 }
  0x37   : > { %9360 = vmatmul.mubr.msk.f32.gmra.mxu0 %vm597_vm0, %v538_v24  ;;  %9367 = vmatmul.mubr.msk.f32.gmra.mxu1 %vm597_vm0, %v537_v23 }
  0x38   : > { %722 = vmatprep.mubr.f32.mxu0 %v15749_v0  ;;  %829 = vmatprep.mubr.f32.mxu1 %v15749_v0 }
  0x3b   : > { %9361 = vmatmul.mubr.msk.f32.gmra.mxu0 %vm597_vm0, %v539_v25  ;;  %9368 = vmatmul.mubr.msk.f32.gmra.mxu1 %vm597_vm0, %v538_v24 }
  0x3c   : > { %835 = vmatprep.mubr.f32.mxu1 %v15749_v0  ;;  %912 = vmatprep.mubr.f32.mxu0 %v15749_v0 }
  0x3f   : > { %9369 = vmatmul.mubr.msk.f32.gmra.mxu1 %vm597_vm0, %v539_v25  ;;  %9371 = vmatmul.mubr.msk.f32.vlgmr.msra.gmra.mxu0 %vm597_vm0, %v11069_v4 }
  0x40   : > { %841 = vmatprep.mubr.f32.mxu1 %v15749_v0  ;;  %918 = vmatprep.mubr.f32.mxu0 %v15749_v0 }
  0x43   : > { %9370 = vmatmul.mubr.msk.f32.gmra.mxu1 %vm597_vm0, %v11074_v7  ;;  %9372 = vmatmul.mubr.msk.f32.gmra.mxu0 %vm597_vm0, %v11084_v12 }
  0x44   : > { %924 = vmatprep.mubr.f32.mxu0 %v15749_v0  ;;  %1025 = vmatprep.mubr.f32.mxu1 %v15749_v0 }
  0x47   : > { %9373 = vmatmul.mubr.msk.f32.gmra.mxu0 %vm597_vm0, %v535_v17  ;;  %9379 = vmatmul.mubr.msk.f32.vlgmr.msra.gmra.mxu1 %vm597_vm0, %v11069_v4 }
  0x48   : > { %930 = vmatprep.mubr.f32.mxu0 %v15749_v0  ;;  %1031 = vmatprep.mubr.f32.mxu1 %v15749_v0 }
  0x49   : > { %10400 = vmatpush3.msra.mxu1 %v1443_v19 }
  0x4b   : > { %9374 = vmatmul.mubr.msk.f32.gmra.mxu0 %vm597_vm0, %v536_v20  ;;  %9380 = vmatmul.mubr.msk.f32.gmra.mxu1 %vm597_vm0, %v11084_v12 }
  0x4c   : > { %936 = vmatprep.mubr.f32.mxu0 %v15749_v0  ;;  %1037 = vmatprep.mubr.f32.mxu1 %v15749_v0 }
  0x4f   : > { %9375 = vmatmul.mubr.msk.f32.gmra.mxu0 %vm597_vm0, %v537_v23  ;;  %9381 = vmatmul.mubr.msk.f32.gmra.mxu1 %vm597_vm0, %v535_v17 }
  0x50   : > { %942 = vmatprep.mubr.f32.mxu0 %v15749_v0  ;;  %1043 = vmatprep.mubr.f32.mxu1 %v15749_v0 }
  0x53   : > { %9376 = vmatmul.mubr.msk.f32.gmra.mxu0 %vm597_vm0, %v538_v24  ;;  %9382 = vmatmul.mubr.msk.f32.gmra.mxu1 %vm597_vm0, %v536_v20 }
  0x54   : > { %948 = vmatprep.mubr.f32.mxu0 %v15749_v0  ;;  %1049 = vmatprep.mubr.f32.mxu1 %v15749_v0 }
  0x57   : > { %9377 = vmatmul.mubr.msk.f32.gmra.mxu0 %vm597_vm0, %v539_v25  ;;  %9383 = vmatmul.mubr.msk.f32.gmra.mxu1 %vm597_vm0, %v537_v23 }
  0x58   : > { %954 = vmatprep.mubr.f32.mxu0 %v15749_v0  ;;  %1055 = vmatprep.mubr.f32.mxu1 %v15749_v0 }
  0x5b   : > { %9378 = vmatmul.mubr.msk.f32.gmra.mxu0 %vm597_vm0, %v11074_v7  ;;  %9384 = vmatmul.mubr.msk.f32.gmra.mxu1 %vm597_vm0, %v538_v24 }
  0x5c   : > { %1061 = vmatprep.mubr.f32.mxu1 %v15749_v0 }
  0x5f   : > { %9385 = vmatmul.mubr.msk.f32.gmra.mxu1 %vm597_vm0, %v539_v25 }
  0x60   : > { %1067 = vmatprep.mubr.f32.mxu1 %v15749_v0 }
  0x63   : > { %9386 = vmatmul.mubr.msk.f32.gmra.mxu1 %vm597_vm0, %v11074_v7 }
  0x97   : > { %v11188_v28 = vpop.permute.xlu1 %579  ;;  %v11190_v31 = vpop.permute.xlu0 %559 }
  0x9b   : > { %v11192_v33 = vpop.permute.xlu1 %589  ;;  %v11194_v36 = vpop.permute.xlu0 %569 }
  0xa5   : > { %v11196_v38 = vpop.permute.xlu1 %574  ;;  %v11198_v42 = vpop.permute.xlu0 %564 }
  0xa9   : > { %v11201_v46 = vpop.permute.xlu1 %594  ;;  %v11204_v49 = vpop.permute.xlu0 %584 }
  0xe3   : > { %v688_v26 = vpop.f32.mrf.mxu0  ;;  %v730_v39 = vpop.f32.mrf.mxu1 }
  0xe4   : > { %v689_v45 = vadd.f32 %v688_v26, %v11190_v31  ;;  %v731_v54 = vadd.f32 %v730_v39, %v11201_v46 }
  0xe5   : > { %v690_v27 = vpop.f32.mrf.mxu0  ;;  %v732_v43 = vpop.f32.mrf.mxu1 }
  0xe6   : > { %v1074_v56 = vmax.f32 %v689_v45, 0.0  ;;  %v691_v57 = vadd.f32 %v690_v27, %v11190_v31  ;;  %v733_v63 = vadd.f32 %v732_v43, %v11201_v46  ;;  %v1130_v10 = vmax.f32 %v731_v54, 0.0 }
  0xe7   : > { %v694_v29 = vpop.f32.mrf.mxu0  ;;  %v11207_v51 = vpop.f32.mrf.mxu1 }
  0xe8   : > { %v695_v2 = vadd.f32 %v694_v29, %v11198_v42  ;;  %v1075_v11 = vmax.f32 %v691_v57, 0.0  ;;  %v1131_v21 = vmax.f32 %v733_v63, 0.0  ;;  %v1442_v29 = vld [vmem:[%s15729_s3] sm:$0xff] }
  0xe9   : > { %v696_v30 = vpop.f32.mrf.mxu0  ;;  %v803_v6 = vpop.f32.mrf.mxu1  ;;  %10401 = vmatprep.subr.mxu1 %v1442_v29 }
  0xea   : > { %v697_v15 = vadd.f32 %v696_v30, %v11198_v42  ;;  %v1082_v20 = vmax.f32 %v695_v2, 0.0  ;;  %10402 = vmatpush3.msra.mxu1 %v1442_v29 }
  0xeb   : > { %v700_v32 = vpop.f32.mrf.mxu0  ;;  %v807_v23 = vpop.f32.mrf.mxu1 }
  0xec   : > { %v701_v47 = vadd.f32 %v700_v32, %v11194_v36  ;;  %v1083_v30 = vmax.f32 %v697_v15, 0.0 }
  0xed   : > { %v702_v34 = vpop.f32.mrf.mxu0  ;;  %v809_v39 = vpop.f32.mrf.mxu1 }
  0xee   : > { %v703_v52 = vadd.f32 %v702_v34, %v11194_v36  ;;  %v1090_v60 = vmax.f32 %v701_v47, 0.0 }
  0xef   : > { %v706_v35 = vpop.f32.mrf.mxu0  ;;  %v813_v45 = vpop.f32.mrf.mxu1 }
  0xf0   : > { %v707_v61 = vadd.f32 %v706_v35, %v11196_v38  ;;  %v1091_v7 = vmax.f32 %v703_v52, 0.0  ;;  %v1138_v16 = vmax.f32 %v1074_v56, %v1090_v60  ;;  %v802_v60 = vadd.f32 %v11207_v51, %v11190_v31 }
  0xf1   : > { %v708_v37 = vpop.f32.mrf.mxu0  ;;  %v815_v47 = vpop.f32.mrf.mxu1  ;;  %v808_v51 = vadd.f32 %v807_v23, %v11198_v42 }
  0xf2   : > { %v709_v8 = vadd.f32 %v708_v37, %v11196_v38  ;;  %v1098_v17 = vmax.f32 %v707_v61, 0.0  ;;  %v1139_v24 = vmax.f32 %v1075_v11, %v1091_v7  ;;  %v9388_v37 = vld [vmem:[%s15729_s3 + $0x18] sm:$0xff]  ;;  %v814_v61 = vadd.f32 %v813_v45, %v11194_v36 }
  0xf3   : > { %v712_v40 = vpop.f32.mrf.mxu0  ;;  %10203 = vmatprep.subr.mxu0 %v9388_v37  ;;  %v816_v2 = vadd.f32 %v815_v47, %v11194_v36  ;;  %v1084_v23 = vmax.f32 %v808_v51, 0.0 }
  0xf4   : > { %v713_v50 = vadd.f32 %v712_v40, %v11188_v28  ;;  %v1099_v25 = vmax.f32 %v709_v8, 0.0  ;;  %v1146_v32 = vmax.f32 %v1082_v20, %v1098_v17  ;;  %10204 = vmatpush3.msra.mxu0 %v9388_v37 }
  0xf5   : > { %v714_v41 = vpop.f32.mrf.mxu0 }
  0xf6   : > { %v715_v58 = vadd.f32 %v714_v41, %v11188_v28  ;;  %v1106_v3 = vmax.f32 %v713_v50, 0.0  ;;  %v1147_v40 = vmax.f32 %v1083_v30, %v1099_v25 }
  0xf7   : > { %v718_v44 = vpop.f32.mrf.mxu0 }
  0xf8   : > { %v719_v53 = vadd.f32 %v718_v44, %v11204_v49  ;;  %v1107_v12 = vmax.f32 %v715_v58, 0.0  ;;  %v9387_v44 = vld [vmem:[%s15729_s3 + $0x10] sm:$0xff] }
  0xf9   : > { %v720_v48 = vpop.f32.mrf.mxu0  ;;  %10205 = vmatprep.subr.mxu0 %v9387_v44 }
  0xfa   : > { %v721_v62 = vadd.f32 %v720_v48, %v11204_v49  ;;  %v1114_v9 = vmax.f32 %v719_v53, 0.0  ;;  %10206 = vmatpush3.msra.mxu0 %v9387_v44  ;;  %v819_v48 = vpop.f32.mrf.mxu1 }
  0xfb   : > { %v724_v55 = vpop.f32.mrf.mxu0  ;;  %v820_v11 = vadd.f32 %v819_v48, %v11196_v38 }
  0xfc   : > { %v725_v59 = vadd.f32 %v724_v55, %v11192_v33  ;;  %v1115_v18 = vmax.f32 %v721_v62, 0.0  ;;  %v1162_v26 = vmax.f32 %v1114_v9, %v1130_v10  ;;  %v821_v50 = vpop.f32.mrf.mxu1  ;;  %v1076_v9 = vmax.f32 %v802_v60, 0.0 }
  0xfd   : > { %v726_v1 = vpop.f32.mrf.mxu0  ;;  %v1092_v10 = vmax.f32 %v814_v61, 0.0  ;;  %v822_v17 = vadd.f32 %v821_v50, %v11196_v38 }
  0xfe   : > { %v1122_v4 = vmax.f32 %v725_v59, 0.0  ;;  %v727_v5 = vadd.f32 %v726_v1, %v11192_v33  ;;  %v1163_v34 = vmax.f32 %v1115_v18, %v1131_v21  ;;  %v1178_v41 = vmax.f32 %v1146_v32, %v1162_v26  ;;  %v825_v52 = vpop.f32.mrf.mxu1 }
  0xff   : > { %v826_v62 = vadd.f32 %v825_v52, %v11188_v28  ;;  %v804_v1 = vadd.f32 %v803_v6, %v11190_v31  ;;  %v914_v7 = vpop.f32.mrf.mxu0  ;;  %v1140_v25 = vmax.f32 %v1076_v9, %v1092_v10  ;;  %v1100_v26 = vmax.f32 %v820_v11, 0.0 }
 0x100   : > { %v1154_v13 = vmax.f32 %v1106_v3, %v1122_v4  ;;  %v1123_v14 = vmax.f32 %v727_v5, 0.0  ;;  %v1179_v43 = vmax.f32 %v1147_v40, %v1163_v34  ;;  %v827_v53 = vpop.f32.mrf.mxu1  ;;  %v1101_v34 = vmax.f32 %v822_v17, 0.0 }
 0x101   : > { %v828_v4 = vadd.f32 %v827_v53, %v11188_v28  ;;  %v1077_v15 = vmax.f32 %v804_v1, 0.0  ;;  %v916_v21 = vpop.f32.mrf.mxu0  ;;  %v1148_v44 = vmax.f32 %v1084_v23, %v1100_v26 }
 0x102   : > { %v1155_v22 = vmax.f32 %v1107_v12, %v1123_v14  ;;  %v1170_v27 = vmax.f32 %v1138_v16, %v1154_v13  ;;  %v831_v54 = vpop.f32.mrf.mxu1  ;;  %v1108_v12 = vmax.f32 %v826_v62, 0.0  ;;  %v1093_v16 = vmax.f32 %v816_v2, 0.0 }
 0x103   : > { %v832_v13 = vadd.f32 %v831_v54, %v11204_v49  ;;  %v1109_v18 = vmax.f32 %v828_v4, 0.0  ;;  %v920_v40 = vpop.f32.mrf.mxu0 }
 0x104   : > { %1186 = vxpose.xlu0.b32.start [1/2] (short) %v1170_v27, 128  ;;  %v1171_v35 = vmax.f32 %v1139_v24, %v1155_v22  ;;  %v833_v55 = vpop.f32.mrf.mxu1  ;;  %v810_v24 = vadd.f32 %v809_v39, %v11198_v42  ;;  %v1141_v32 = vmax.f32 %v1077_v15, %v1093_v16 }
 0x105   : > { %v834_v19 = vadd.f32 %v833_v55, %v11204_v49  ;;  %v1116_v27 = vmax.f32 %v832_v13, 0.0  ;;  %v922_v52 = vpop.f32.mrf.mxu0  ;;  %v917_v13 = vadd.f32 %v916_v21, %v11190_v31 }
 0x106   : > { %1218 = vxpose.xlu1.b32.start [1/2] (short) %v1171_v35, 128  ;;  %v837_v56 = vpop.f32.mrf.mxu1 }
 0x107   : > { %v838_v59 = vadd.f32 %v837_v56, %v11192_v33  ;;  %v1117_v35 = vmax.f32 %v834_v19, 0.0  ;;  %v926_v53 = vpop.f32.mrf.mxu0  ;;  %v921_v19 = vadd.f32 %v920_v40, %v11198_v42 }
 0x108   : > { %1187 = vxpose.xlu0.b32.end [2/2] (short) %v1178_v41, 128  ;;  %v839_v57 = vpop.f32.mrf.mxu1  ;;  %v927_v2 = vadd.f32 %v926_v53, %v11194_v36 }
 0x109   : > { %v840_v63 = vadd.f32 %v839_v57, %v11192_v33  ;;  %v1124_v5 = vmax.f32 %v838_v59, 0.0  ;;  %v928_v54 = vpop.f32.mrf.mxu0 }
 0x10a   : > { %1219 = vxpose.xlu1.b32.end [2/2] (short) %v1179_v43, 128  ;;  %v843_v58 = vpop.f32.mrf.mxu1  ;;  %v1085_v43 = vmax.f32 %v810_v24, 0.0 }
 0x10b   : > { %v844_v8 = vadd.f32 %v843_v58, %v11201_v46  ;;  %v1125_v14 = vmax.f32 %v840_v63, 0.0  ;;  %v1156_v20 = vmax.f32 %v1108_v12, %v1124_v5  ;;  %v932_v55 = vpop.f32.mrf.mxu0  ;;  %v915_v5 = vadd.f32 %v914_v7, %v11190_v31 }
 0x10c   : > { %v845_v3 = vpop.f32.mrf.mxu1  ;;  %v1149_v48 = vmax.f32 %v1085_v43, %v1101_v34 }
 0x10d   : > { %v846_v6 = vadd.f32 %v845_v3, %v11201_v46  ;;  %v1132_v22 = vmax.f32 %v844_v8, 0.0  ;;  %v1157_v29 = vmax.f32 %v1109_v18, %v1125_v14  ;;  %v1172_v41 = vmax.f32 %v1140_v25, %v1156_v20  ;;  %v934_v56 = vpop.f32.mrf.mxu0 }
 0x10e   : > { %v929_v8 = vadd.f32 %v928_v54, %v11194_v36  ;;  %v11257_v51 = vpop.f32.mrf.mxu1  ;;  %v1094_v14 = vmax.f32 %v927_v2, 0.0  ;;  %v1078_v18 = vmax.f32 %v915_v5, 0.0 }
 0x10f   : > { %v1133_v30 = vmax.f32 %v846_v6, 0.0  ;;  %v1164_v37 = vmax.f32 %v1116_v27, %v1132_v22  ;;  %v1173_v47 = vmax.f32 %v1141_v32, %v1157_v29  ;;  %v938_v57 = vpop.f32.mrf.mxu0  ;;  %v933_v6 = vadd.f32 %v932_v55, %v11196_v38 }
 0x110   : > { %v939_v3 = vadd.f32 %v938_v57, %v11188_v28  ;;  %v1095_v20 = vmax.f32 %v929_v8, 0.0  ;;  %v935_v22 = vadd.f32 %v934_v56, %v11196_v38  ;;  %v11267_v23 = vpop.f32.mrf.mxu1  ;;  %v1079_v27 = vmax.f32 %v917_v13, 0.0 }
 0x111   : > { %v1165_v45 = vmax.f32 %v1117_v35, %v1133_v30  ;;  %v1180_v50 = vmax.f32 %v1148_v44, %v1164_v37  ;;  %v940_v58 = vpop.f32.mrf.mxu0  ;;  %v923_v29 = vadd.f32 %v922_v52, %v11198_v42  ;;  %v1142_v30 = vmax.f32 %v1078_v18, %v1094_v14 }
 0x112   : > { %v941_v10 = vadd.f32 %v940_v58, %v11188_v28  ;;  %v1110_v15 = vmax.f32 %v939_v3, 0.0  ;;  %v1102_v32 = vmax.f32 %v933_v6, 0.0  ;;  %v1143_v40 = vmax.f32 %v1079_v27, %v1095_v20  ;;  %v11271_v43 = vpop.f32.mrf.mxu1 }
 0x113   : > { %v1181_v39 = vmax.f32 %v1149_v48, %v1165_v45  ;;  %v944_v59 = vpop.f32.mrf.mxu0  ;;  %v1103_v44 = vmax.f32 %v935_v22, 0.0 }
 0x114   : > { %v945_v16 = vadd.f32 %v944_v59, %v11204_v49  ;;  %v1111_v24 = vmax.f32 %v941_v10, 0.0  ;;  %v11273_v55 = vpop.f32.mrf.mxu1 }
 0x115   : > { %v946_v60 = vpop.f32.mrf.mxu0 }
 0x116   : > { %v947_v21 = vadd.f32 %v946_v60, %v11204_v49  ;;  %v1118_v34 = vmax.f32 %v945_v16, 0.0  ;;  %v11278_v60 = vpop.f32.mrf.mxu1 }
 0x117   : > { %v950_v61 = vpop.f32.mrf.mxu0 }
 0x118   : > { %v951_v1 = vadd.f32 %v950_v61, %v11192_v33  ;;  %v1119_v45 = vmax.f32 %v947_v21, 0.0  ;;  %v11284_v3 = vpop.f32.mrf.mxu1 }
 0x119   : > { %v952_v62 = vpop.f32.mrf.mxu0 }
 0x11a   : > { %v953_v4 = vadd.f32 %v952_v62, %v11192_v33  ;;  %v1126_v11 = vmax.f32 %v951_v1, 0.0  ;;  %v11291_v10 = vpop.f32.mrf.mxu1 }
 0x11b   : > { %v956_v63 = vpop.f32.mrf.mxu0 }
 0x11c   : > { %v957_v12 = vadd.f32 %v956_v63, %v11201_v46  ;;  %v1127_v17 = vmax.f32 %v953_v4, 0.0  ;;  %v1158_v25 = vmax.f32 %v1110_v15, %v1126_v11  ;;  %v11298_v6 = vpop.f32.mrf.mxu1 }
 0x11d   : > { %v958_v9 = vpop.f32.mrf.mxu0 }
 0x11e   : > { %v959_v7 = vadd.f32 %v958_v9, %v11201_v46  ;;  %v1134_v26 = vmax.f32 %v957_v12, 0.0  ;;  %v1159_v35 = vmax.f32 %v1111_v24, %v1127_v17  ;;  %v1051_v18 = vpop.f32.mrf.mxu1 }
 0x120   : > { %v1135_v37 = vmax.f32 %v959_v7, 0.0  ;;  %v1166_v48 = vmax.f32 %v1118_v34, %v1134_v26  ;;  %v1175_v53 = vmax.f32 %v1143_v40, %v1159_v35  ;;  %v1053_v21 = vpop.f32.mrf.mxu1 }
 0x122   : > { %v1167_v54 = vmax.f32 %v1119_v45, %v1135_v37 }
 0x141   : > { %1250 = vxpose.xlu0.b32.start [1/2] (short) %v1172_v41, 128  ;;  %v1086_v41 = vmax.f32 %v921_v19, 0.0 }
 0x143   : > { %1282 = vxpose.xlu1.b32.start [1/2] (short) %v1173_v47, 128  ;;  %v1174_v47 = vmax.f32 %v1142_v30, %v1158_v25  ;;  %v1057_v30 = vpop.f32.mrf.mxu1 }
 0x145   : > { %1251 = vxpose.xlu0.b32.end [2/2] (short) %v1180_v50, 128  ;;  %v1087_v50 = vmax.f32 %v923_v29, 0.0 }
 0x147   : > { %1283 = vxpose.xlu1.b32.end [2/2] (short) %v1181_v39, 128  ;;  %v1150_v39 = vmax.f32 %v1086_v41, %v1102_v32  ;;  %v1151_v52 = vmax.f32 %v1087_v50, %v1103_v44  ;;  %v1059_v41 = vpop.f32.mrf.mxu1 }
 0x149   : > { %v1182_v56 = vmax.f32 %v1150_v39, %v1166_v48  ;;  %v1183_v58 = vmax.f32 %v1151_v52, %v1167_v54  ;;  %v1063_v48 = vpop.f32.mrf.mxu1 }
 0x14b   : > { %v1065_v52 = vpop.f32.mrf.mxu1 }
 0x17e   : > { %1314 = vxpose.xlu0.b32.start [1/2] (short) %v1174_v47, 128 }
 0x180   : > { %1346 = vxpose.xlu1.b32.start [1/2] (short) %v1175_v53, 128  ;;  %v1202_v57 = vpop.trf.xlu0 }
 0x181   : > { %10403 = vmatprep.mubr.msk.f32.mxu1 %vm1831_vm1, %v1202_v57  ;;  %v1576_v62 = vrot.slane %v1202_v57, 1 }
 0x182   : > { %1315 = vxpose.xlu0.b32.end [2/2] (short) %v1182_v56, 128  ;;  %v11276_v59 = vpop.trf.xlu1 }
 0x184   : > { %1347 = vxpose.xlu1.b32.end [2/2] (short) %v1183_v58, 128  ;;  %v1203_v61 = vpop.trf.xlu0 }
 0x185   : > { %v1577_v63 = vrot.slane %v1203_v61, 1  ;;  %10404 = vmatmul.mubr.msk.f32.vlgmr.msra.gmra.mxu1 %vm1831_vm1, %v1203_v61 }
 0x186   : > { %v11281_v1 = vpop.trf.xlu1 }
 0x187   : > { %v1578_v2 = vsel %vm1575_vm2, %v1576_v62, %v1577_v63  ;;  %v1069_v62 = vpop.f32.mrf.mxu1 }
 0x188   : > { %10207 = vmatprep.mubr.msk.f32.mxu0 %vm1831_vm1, %v1578_v2  ;;  %v1204_v4 = vpop.trf.xlu0  ;;  %v1028_v2 = vadd.f32 %v11257_v51, %v11190_v31  ;;  %v1054_v51 = vadd.f32 %v1053_v21, %v11188_v28  ;;  %v1058_v21 = vadd.f32 %v1057_v30, %v11204_v49 }
 0x189   : > { %v1579_v5 = vrot.slane %v1204_v4, 1  ;;  %10406 = vmatprep.mubr.msk.f32.mxu1 %vm1831_vm1, %v1204_v4  ;;  %v1064_v4 = vadd.f32 %v1063_v48, %v11192_v33  ;;  %v1036_v48 = vadd.f32 %v11273_v55, %v11198_v42 }
 0x18a   : > { %v11288_v8 = vpop.trf.xlu1 }
 0x18b   : > { %v1580_v9 = vsel %vm1575_vm2, %v1577_v63, %v1579_v5 }
 0x18c   : > { %10208 = vmatmul.mubr.msk.f32.vlgmr.msra.gmra.mxu0 %vm1831_vm1, %v1580_v9  ;;  %v1205_v11 = vpop.trf.xlu0  ;;  %v1040_v9 = vadd.f32 %v11278_v60, %v11194_v36  ;;  %v1070_v60 = vadd.f32 %v1069_v62, %v11201_v46 }
 0x18d   : > { %v1581_v12 = vrot.slane %v1205_v11, 1  ;;  %10407 = vmatmul.mubr.msk.f32.gmra.mxu1 %vm1831_vm1, %v1205_v11  ;;  %v1052_v11 = vadd.f32 %v1051_v18, %v11188_v28 }
 0x18e   : > { %v11295_v13 = vpop.trf.xlu1  ;;  %v1136_v30 = vmax.f32 %v1070_v60, 0.0 }
 0x18f   : > { %v1582_v14 = vsel %vm1575_vm2, %v1579_v5, %v1581_v12 }
 0x190   : > { %10210 = vmatprep.mubr.msk.f32.mxu0 %vm1831_vm1, %v1582_v14  ;;  %v1206_v15 = vpop.trf.xlu0  ;;  %v1066_v14 = vadd.f32 %v1065_v52, %v11192_v33  ;;  %v1030_v33 = vadd.f32 %v11267_v23, %v11190_v31  ;;  %v1048_v31 = vadd.f32 %v11298_v6, %v11196_v38  ;;  %v1113_v23 = vmax.f32 %v1054_v51, 0.0 }
 0x191   : > { %v1583_v16 = vrot.slane %v1206_v15, 1  ;;  %10409 = vmatprep.mubr.msk.f32.mxu1 %vm1831_vm1, %v1206_v15  ;;  %v1607_v51 = vrot.slane %v11276_v59, 1 }
 0x192   : > { %v11302_v17 = vpop.trf.xlu1 }
 0x193   : > { %v1584_v7 = vsel %vm1575_vm2, %v1581_v12, %v1583_v16 }
 0x194   : > { %10211 = vmatmul.mubr.msk.f32.gmra.mxu0 %vm1831_vm1, %v1584_v7  ;;  %v1207_v19 = vpop.trf.xlu0  ;;  %v1071_v7 = vpop.f32.mrf.mxu1 }
 0x195   : > { %v1585_v20 = vrot.slane %v1207_v19, 1  ;;  %10410 = vmatmul.mubr.msk.f32.gmra.mxu1 %vm1831_vm1, %v1207_v19 }
 0x196   : > { %v11307_v22 = vpop.trf.xlu1 }
 0x197   : > { %v1586_v24 = vsel %vm1575_vm2, %v1583_v16, %v1585_v20  ;;  %v1042_v16 = vadd.f32 %v11284_v3, %v11194_v36  ;;  %v1046_v36 = vadd.f32 %v11291_v10, %v11196_v38  ;;  %v1112_v3 = vmax.f32 %v1052_v11, 0.0 }
 0x198   : > { %10213 = vmatprep.mubr.msk.f32.mxu0 %vm1831_vm1, %v1586_v24  ;;  %v1208_v25 = vpop.trf.xlu0  ;;  %v1128_v24 = vmax.f32 %v1064_v4, 0.0  ;;  %v1120_v38 = vmax.f32 %v1058_v21, 0.0  ;;  %v9649_v21 = vld [vmem:[%s15731_s5 + $0x38] sm:$0xff] }
 0x199   : > { %v1587_v26 = vrot.slane %v1208_v25, 1  ;;  %10412 = vmatprep.mubr.msk.f32.mxu1 %vm1831_vm1, %v1208_v25  ;;  %v1096_v25 = vmax.f32 %v1040_v9, 0.0  ;;  %10595 = vmatprep.subr.mxu0 %v9649_v21 }
 0x19a   : > { %v11312_v27 = vpop.trf.xlu1  ;;  %10596 = vmatpush3.msra.mxu0 %v9649_v21 }
 0x19b   : > { %v1588_v29 = vsel %vm1575_vm2, %v1585_v20, %v1587_v26  ;;  %v1080_v20 = vmax.f32 %v1028_v2, 0.0 }
 0x19c   : > { %10214 = vmatmul.mubr.msk.f32.gmra.mxu0 %vm1831_vm1, %v1588_v29  ;;  %v1209_v32 = vpop.trf.xlu0  ;;  %v1072_v29 = vadd.f32 %v1071_v7, %v11201_v46  ;;  %v1081_v46 = vmax.f32 %v1030_v33, 0.0  ;;  %v1609_v7 = vrot.slane %v11281_v1, 1  ;;  %v1611_v33 = vrot.slane %v11288_v8, 1 }
 0x19d   : > { %v1589_v34 = vrot.slane %v1209_v32, 1  ;;  %10413 = vmatmul.mubr.msk.f32.gmra.mxu1 %vm1831_vm1, %v1209_v32 }
 0x19e   : > { %v11317_v35 = vpop.trf.xlu1 }
 0x19f   : > { %v1590_v37 = vsel %vm1575_vm2, %v1587_v26, %v1589_v34  ;;  %v1129_v26 = vmax.f32 %v1066_v14, 0.0 }
 0x1a0   : > { %10216 = vmatprep.mubr.msk.f32.mxu0 %vm1831_vm1, %v1590_v37  ;;  %v1210_v40 = vpop.trf.xlu0  ;;  %v1097_v37 = vmax.f32 %v1042_v16, 0.0 }
 0x1a1   : > { %v1591_v44 = vrot.slane %v1210_v40, 1  ;;  %10415 = vmatprep.mubr.msk.f32.mxu1 %vm1831_vm1, %v1210_v40  ;;  %v1060_v40 = vadd.f32 %v1059_v41, %v11204_v49  ;;  %v1161_v6 = vmax.f32 %v1113_v23, %v1129_v26  ;;  %v1105_v41 = vmax.f32 %v1048_v31, 0.0  ;;  %v6166_v26 = vld [vmem:[%s15731_s5 + $0x18] sm:$0xff] }
 0x1a2   : > { %v11322_v45 = vpop.trf.xlu1  ;;  %v1145_v49 = vmax.f32 %v1081_v46, %v1097_v37  ;;  %10651 = vmatprep.subr.mxu1 %v6166_v26  ;;  %v1619_v31 = vrot.slane %v11312_v27, 1 }
 0x1a3   : > { %v1592_v47 = vsel %vm1575_vm2, %v1589_v34, %v1591_v44  ;;  %v1034_v34 = vadd.f32 %v11271_v43, %v11198_v42  ;;  %v1144_v43 = vmax.f32 %v1080_v20, %v1096_v25  ;;  %v1089_v42 = vmax.f32 %v1036_v48, 0.0  ;;  %10652 = vmatpush3.msra.mxu1 %v6166_v26 }
 0x1a4   : > { %10217 = vmatmul.mubr.msk.f32.gmra.mxu0 %vm1831_vm1, %v1592_v47  ;;  %v1211_v50 = vpop.trf.xlu0 }
 0x1a5   : > { %v1593_v39 = vrot.slane %v1211_v50, 1  ;;  %10416 = vmatmul.mubr.msk.f32.gmra.mxu1 %vm1831_vm1, %v1211_v50  ;;  %v1104_v50 = vmax.f32 %v1046_v36, 0.0  ;;  %v1153_v14 = vmax.f32 %v1089_v42, %v1105_v41  ;;  %v1613_v36 = vrot.slane %v11295_v13, 1 }
 0x1a6   : > { %v11327_v53 = vpop.trf.xlu1 }
 0x1a7   : > { %v1594_v54 = vsel %vm1575_vm2, %v1591_v44, %v1593_v39  ;;  %v1160_v44 = vmax.f32 %v1112_v3, %v1128_v24  ;;  %v1625_v46 = vrot.slane %v11327_v53, 1 }
 0x1a8   : > { %10219 = vmatprep.mubr.msk.f32.mxu0 %vm1831_vm1, %v1594_v54  ;;  %v1212_v56 = vpop.trf.xlu0  ;;  %v1137_v54 = vmax.f32 %v1072_v29, 0.0  ;;  %v1615_v29 = vrot.slane %v11302_v17, 1 }
 0x1a9   : > { %v1595_v57 = vrot.slane %v1212_v56, 1  ;;  %10418 = vmatprep.mubr.msk.f32.mxu1 %vm1831_vm1, %v1212_v56  ;;  %v1088_v56 = vmax.f32 %v1034_v34, 0.0  ;;  %v1176_v62 = vmax.f32 %v1144_v43, %v1160_v44  ;;  %v1617_v34 = vrot.slane %v11307_v22, 1 }
 0x1aa   : > { %v11332_v58 = vpop.trf.xlu1 }
 0x1ab   : > { %v1596_v61 = vsel %vm1575_vm2, %v1593_v39, %v1595_v57  ;;  %v1152_v4 = vmax.f32 %v1088_v56, %v1104_v50 }
 0x1ac   : > { %10220 = vmatmul.mubr.msk.f32.gmra.mxu0 %vm1831_vm1, %v1596_v61  ;;  %v1213_v63 = vpop.trf.xlu0  ;;  %v1121_v61 = vmax.f32 %v1060_v40, 0.0  ;;  %v1621_v40 = vrot.slane %v11317_v35, 1 }
 0x1ad   : > { %v1597_v5 = vrot.slane %v1213_v63, 1  ;;  %10419 = vmatmul.mubr.msk.f32.gmra.mxu1 %vm1831_vm1, %v1213_v63  ;;  %v1168_v63 = vmax.f32 %v1120_v38, %v1136_v30 }
 0x1ae   : > { %v11343_v12 = vpop.trf.xlu1  ;;  %v1169_v9 = vmax.f32 %v1121_v61, %v1137_v54  ;;  %v1622_v48 = vsel %vm1575_vm2, %v1619_v31, %v1621_v40 }
 0x1af   : > { %v1598_v15 = vsel %vm1575_vm2, %v1595_v57, %v1597_v5  ;;  %v1184_v16 = vmax.f32 %v1152_v4, %v1168_v63  ;;  %v1629_v38 = vrot.slane %v11343_v12, 1 }
 0x1b0   : > { %10222 = vmatprep.mubr.msk.f32.mxu0 %vm1831_vm1, %v1598_v15  ;;  %v1214_v19 = vpop.trf.xlu0  ;;  %v1185_v24 = vmax.f32 %v1153_v14, %v1169_v9 }
 0x1b1   : > { %v1599_v18 = vrot.slane %v1214_v19, 1  ;;  %10421 = vmatprep.mubr.msk.f32.mxu1 %vm1831_vm1, %v1214_v19 }
 0x1b2   : > { %v11357_v28 = vpop.trf.xlu1 }
 0x1b3   : > { %v1600_v32 = vsel %vm1575_vm2, %v1597_v5, %v1599_v18  ;;  %v1177_v5 = vmax.f32 %v1145_v49, %v1161_v6 }
 0x1b4   : > { %10223 = vmatmul.mubr.msk.f32.gmra.mxu0 %vm1831_vm1, %v1600_v32  ;;  %v1215_v10 = vpop.trf.xlu0 }
 0x1b5   : > { %v1601_v47 = vrot.slane %v1215_v10, 1  ;;  %10422 = vmatmul.mubr.msk.f32.gmra.mxu1 %vm1831_vm1, %v1215_v10  ;;  %v1616_v10 = vsel %vm1575_vm2, %v1613_v36, %v1615_v29 }
 0x1b6   : > { %v11371_v39 = vpop.trf.xlu1 }
 0x1b7   : > { %v1602_v52 = vsel %vm1575_vm2, %v1599_v18, %v1601_v47  ;;  %v1633_v56 = vrot.slane %v11371_v39, 1 }
 0x1b8   : > { %10225 = vmatprep.mubr.msk.f32.mxu0 %vm1831_vm1, %v1602_v52  ;;  %v1216_v57 = vpop.trf.xlu0 }
 0x1b9   : > { %v1603_v2 = vrot.slane %v1216_v57, 1  ;;  %10424 = vmatprep.mubr.msk.f32.mxu1 %vm1831_vm1, %v1216_v57 }
 0x1ba   : > { %v11376_v55 = vpop.trf.xlu1 }
 0x1bb   : > { %1378 = vxpose.xlu0.b32.start [1/2] (short) %v1176_v62, 128  ;;  %v1604_v11 = vsel %vm1575_vm2, %v1601_v47, %v1603_v2  ;;  %v1620_v47 = vsel %vm1575_vm2, %v1617_v34, %v1619_v31 }
 0x1bc   : > { %10226 = vmatmul.mubr.msk.f32.gmra.mxu0 %vm1831_vm1, %v1604_v11  ;;  %v1217_v15 = vpop.trf.xlu0 }
 0x1bd   : > { %v1605_v19 = vrot.slane %v1217_v15, 1  ;;  %1410 = vxpose.xlu1.b32.start [1/2] (short) %v1177_v5, 128  ;;  %10425 = vmatmul.mubr.msk.f32.gmra.mxu1 %vm1831_vm1, %v1217_v15 }
 0x1be   : > { %10427 = vmatprep.mubr.msk.f32.mxu1 %vm1831_vm1, %v11276_v59  ;;  %v11385_v20 = vpop.trf.xlu1  ;;  %v1610_v59 = vsel %vm1575_vm2, %v1607_v51, %v1609_v7 }
 0x1bf   : > { %1379 = vxpose.xlu0.b32.end [2/2] (short) %v1184_v16, 128  ;;  %v1606_v60 = vsel %vm1575_vm2, %v1603_v2, %v1605_v19  ;;  %v1608_v18 = vsel %vm1575_vm2, %v1605_v19, %v1607_v51  ;;  %v1637_v62 = vrot.slane %v11385_v20, 1 }
 0x1c0   : > { %10228 = vmatprep.mubr.msk.f32.mxu0 %vm1831_vm1, %v1606_v60  ;;  %v11391_v25 = vpop.trf.xlu0 }
 0x1c1   : > { %1411 = vxpose.xlu1.b32.end [2/2] (short) %v1185_v24, 128  ;;  %10229 = vmatmul.mubr.msk.f32.gmra.mxu0 %vm1831_vm1, %v1608_v18 }
 0x1c2   : > { %10428 = vmatmul.mubr.msk.f32.gmra.mxu1 %vm1831_vm1, %v11281_v1  ;;  %10231 = vmatprep.mubr.msk.f32.mxu0 %vm1831_vm1, %v1610_v59  ;;  %v11399_v3 = vpop.trf.xlu1  ;;  %v1612_v1 = vsel %vm1575_vm2, %v1609_v7, %v1611_v33 }
 0x1c3   : > { %10430 = vmatprep.mubr.msk.f32.mxu1 %vm1831_vm1, %v11288_v8  ;;  %v1614_v8 = vsel %vm1575_vm2, %v1611_v33, %v1613_v36 }
 0x1c4   : > { %v11410_v32 = vpop.trf.xlu0 }
 0x1c5   : > { %10232 = vmatmul.mubr.msk.f32.gmra.mxu0 %vm1831_vm1, %v1612_v1  ;;  %v1641_v42 = vrot.slane %v11410_v32, 1 }
 0x1c6   : > { %10431 = vmatmul.mubr.msk.f32.gmra.mxu1 %vm1831_vm1, %v11295_v13  ;;  %10234 = vmatprep.mubr.msk.f32.mxu0 %vm1831_vm1, %v1614_v8  ;;  %v11419_v37 = vpop.trf.xlu1  ;;  %v1618_v13 = vsel %vm1575_vm2, %v1615_v29, %v1617_v34 }
 0x1c7   : > { %10433 = vmatprep.mubr.msk.f32.mxu1 %vm1831_vm1, %v11302_v17  ;;  %v1623_v17 = vrot.slane %v11322_v45, 1 }
 0x1c8   : > { %v11424_v23 = vpop.trf.xlu0 }
 0x1c9   : > { %10235 = vmatmul.mubr.msk.f32.gmra.mxu0 %vm1831_vm1, %v1616_v10  ;;  %v1624_v50 = vsel %vm1575_vm2, %v1621_v40, %v1623_v17  ;;  %v1626_v6 = vsel %vm1575_vm2, %v1623_v17, %v1625_v46 }
 0x1ca   : > { %10434 = vmatmul.mubr.msk.f32.gmra.mxu1 %vm1831_vm1, %v11307_v22  ;;  %10237 = vmatprep.mubr.msk.f32.mxu0 %vm1831_vm1, %v1618_v13  ;;  %v11433_v44 = vpop.trf.xlu1 }
 0x1cb   : > { %10436 = vmatprep.mubr.msk.f32.mxu1 %vm1831_vm1, %v11312_v27  ;;  %v1627_v27 = vrot.slane %v11332_v58, 1 }
 0x1cc   : > { %v11438_v30 = vpop.trf.xlu0 }
 0x1cd   : > { %10238 = vmatmul.mubr.msk.f32.gmra.mxu0 %vm1831_vm1, %v1620_v47  ;;  %v1628_v52 = vsel %vm1575_vm2, %v1625_v46, %v1627_v27  ;;  %v1630_v49 = vsel %vm1575_vm2, %v1627_v27, %v1629_v38  ;;  %v1645_v11 = vrot.slane %v11438_v30, 1 }
 0x1ce   : > { %10437 = vmatmul.mubr.msk.f32.gmra.mxu1 %vm1831_vm1, %v11317_v35  ;;  %10240 = vmatprep.mubr.msk.f32.mxu0 %vm1831_vm1, %v1622_v48  ;;  %v11447_v22 = vpop.trf.xlu1 }
 0x1cf   : > { %10439 = vmatprep.mubr.msk.f32.mxu1 %vm1831_vm1, %v11322_v45  ;;  %v1631_v45 = vrot.slane %v11357_v28, 1 }
 0x1d0   : > { %v11452_v43 = vpop.trf.xlu0 }
 0x1d1   : > { %10241 = vmatmul.mubr.msk.f32.gmra.mxu0 %vm1831_vm1, %v1624_v50  ;;  %v1632_v57 = vsel %vm1575_vm2, %v1629_v38, %v1631_v45  ;;  %v1634_v61 = vsel %vm1575_vm2, %v1631_v45, %v1633_v56  ;;  %v1647_v16 = vrot.slane %v11452_v43, 1 }
 0x1d2   : > { %10440 = vmatmul.mubr.msk.f32.gmra.mxu1 %vm1831_vm1, %v11327_v53  ;;  %10243 = vmatprep.mubr.msk.f32.mxu0 %vm1831_vm1, %v1626_v6  ;;  %v11461_v35 = vpop.trf.xlu1 }
 0x1d3   : > { %10442 = vmatprep.mubr.msk.f32.mxu1 %vm1831_vm1, %v11332_v58  ;;  %v1635_v58 = vrot.slane %v11376_v55, 1  ;;  %v1648_v33 = vsel %vm1575_vm2, %v1645_v11, %v1647_v16 }
 0x1d4   : > { %v11466_v54 = vpop.trf.xlu0 }
 0x1d5   : > { %10244 = vmatmul.mubr.msk.f32.gmra.mxu0 %vm1831_vm1, %v1628_v52  ;;  %v1636_v2 = vsel %vm1575_vm2, %v1633_v56, %v1635_v58  ;;  %v1649_v19 = vrot.slane %v11466_v54, 1  ;;  %v1671_v56 = vrot.slane %v11399_v3, 1 }
 0x1d6   : > { %10443 = vmatmul.mubr.msk.f32.gmra.mxu1 %vm1831_vm1, %v11343_v12  ;;  %10246 = vmatprep.mubr.msk.f32.mxu0 %vm1831_vm1, %v1630_v49  ;;  %v11475_v53 = vpop.trf.xlu1  ;;  %v1673_v49 = vrot.slane %v11419_v37, 1 }
 0x1d7   : > { %10445 = vmatprep.mubr.msk.f32.mxu1 %vm1831_vm1, %v11357_v28  ;;  %v1639_v28 = vrot.slane %v11391_v25, 1  ;;  %v1650_v36 = vsel %vm1575_vm2, %v1647_v16, %v1649_v19 }
 0x1d8   : > { %v1272_v41 = vpop.trf.xlu0 }
 0x1d9   : > { %10247 = vmatmul.mubr.msk.f32.gmra.mxu0 %vm1831_vm1, %v1632_v57  ;;  %v1640_v9 = vsel %vm1575_vm2, %v1637_v62, %v1639_v28  ;;  %v1642_v14 = vsel %vm1575_vm2, %v1639_v28, %v1641_v42  ;;  %v1651_v60 = vrot.slane %v1272_v41, 1 }
 0x1da   : > { %10446 = vmatmul.mubr.msk.f32.gmra.mxu1 %vm1831_vm1, %v11371_v39  ;;  %10249 = vmatprep.mubr.msk.f32.mxu0 %vm1831_vm1, %v1634_v61  ;;  %v11486_v12 = vpop.trf.xlu1  ;;  %v1638_v39 = vsel %vm1575_vm2, %v1635_v58, %v1637_v62  ;;  %v1675_v62 = vrot.slane %v11433_v44, 1 }
 0x1db   : > { %10448 = vmatprep.mubr.msk.f32.mxu1 %vm1831_vm1, %v11376_v55  ;;  %v1643_v55 = vrot.slane %v11424_v23, 1  ;;  %v1652_v29 = vsel %vm1575_vm2, %v1649_v19, %v1651_v60 }
 0x1dc   : > { %v1273_v63 = vpop.trf.xlu0 }
 0x1dd   : > { %10250 = vmatmul.mubr.msk.f32.gmra.mxu0 %vm1831_vm1, %v1636_v2  ;;  %v1644_v7 = vsel %vm1575_vm2, %v1641_v42, %v1643_v55  ;;  %v1674_v2 = vsel %vm1575_vm2, %v1671_v56, %v1673_v49  ;;  %v1679_v42 = vrot.slane %v11461_v35, 1 }
 0x1de   : > { %10449 = vmatmul.mubr.msk.f32.gmra.mxu1 %vm1831_vm1, %v11385_v20  ;;  %10252 = vmatprep.mubr.msk.f32.mxu0 %vm1831_vm1, %v1638_v39  ;;  %v11499_v4 = vpop.trf.xlu1  ;;  %v1646_v20 = vsel %vm1575_vm2, %v1643_v55, %v1645_v11  ;;  %v1676_v55 = vsel %vm1575_vm2, %v1673_v49, %v1675_v62 }
 0x1df   : > { %10451 = vmatprep.mubr.msk.f32.mxu1 %vm1831_vm1, %v11391_v25  ;;  %v1653_v25 = vrot.slane %v1273_v63, 1  ;;  %v1685_v16 = vrot.slane %v11499_v4, 1 }
 0x1e0   : > { %v1274_v5 = vpop.trf.xlu0 }
 0x1e1   : > { %10253 = vmatmul.mubr.msk.f32.gmra.mxu0 %vm1831_vm1, %v1640_v9  ;;  %v1655_v21 = vrot.slane %v1274_v5, 1  ;;  %v1654_v1 = vsel %vm1575_vm2, %v1651_v60, %v1653_v25 }
 0x1e2   : > { %10452 = vmatmul.mubr.msk.f32.gmra.mxu1 %vm1831_vm1, %v11410_v32  ;;  %10255 = vmatprep.mubr.msk.f32.mxu0 %vm1831_vm1, %v1642_v14  ;;  %v11511_v15 = vpop.trf.xlu1 }
 0x1e3   : > { %10454 = vmatprep.mubr.msk.f32.mxu1 %vm1831_vm1, %v11424_v23  ;;  %v1656_v23 = vsel %vm1575_vm2, %v1653_v25, %v1655_v21 }
 0x1e4   : > { %v1275_v51 = vpop.trf.xlu0 }
 0x1e5   : > { %10256 = vmatmul.mubr.msk.f32.gmra.mxu0 %vm1831_vm1, %v1644_v7  ;;  %v1657_v32 = vrot.slane %v1275_v51, 1 }
 0x1e6   : > { %10455 = vmatmul.mubr.msk.f32.gmra.mxu1 %vm1831_vm1, %v11438_v30  ;;  %10258 = vmatprep.mubr.msk.f32.mxu0 %vm1831_vm1, %v1646_v20  ;;  %v11523_v24 = vpop.trf.xlu1 }
 0x1e7   : > { %10457 = vmatprep.mubr.msk.f32.mxu1 %vm1831_vm1, %v11452_v43  ;;  %v1658_v40 = vsel %vm1575_vm2, %v1655_v21, %v1657_v32  ;;  %v1689_v20 = vrot.slane %v11523_v24, 1 }
 0x1e8   : > { %v1276_v18 = vpop.trf.xlu0 }
 0x1e9   : > { %10259 = vmatmul.mubr.msk.f32.gmra.mxu0 %vm1831_vm1, %v1648_v33  ;;  %v1659_v8 = vrot.slane %v1276_v18, 1 }
 0x1ea   : > { %10458 = vmatmul.mubr.msk.f32.gmra.mxu1 %vm1831_vm1, %v11466_v54  ;;  %10261 = vmatprep.mubr.msk.f32.mxu0 %vm1831_vm1, %v1650_v36  ;;  %v11533_v59 = vpop.trf.xlu1 }
 0x1eb   : > { %10460 = vmatprep.mubr.msk.f32.mxu1 %vm1831_vm1, %v1272_v41  ;;  %v1660_v47 = vsel %vm1575_vm2, %v1657_v32, %v1659_v8 }
 0x1ec   : > { %v1277_v26 = vpop.trf.xlu0 }
 0x1ed   : > { %10262 = vmatmul.mubr.msk.f32.gmra.mxu0 %vm1831_vm1, %v1652_v29  ;;  %v1661_v10 = vrot.slane %v1277_v26, 1 }
 0x1ee   : > { %10461 = vmatmul.mubr.msk.f32.gmra.mxu1 %vm1831_vm1, %v1273_v63  ;;  %10264 = vmatprep.mubr.msk.f32.mxu0 %vm1831_vm1, %v1654_v1  ;;  %v11541_v34 = vpop.trf.xlu1  ;;  %v1677_v63 = vrot.slane %v11447_v22, 1 }
 0x1ef   : > { %10463 = vmatprep.mubr.msk.f32.mxu1 %vm1831_vm1, %v1274_v5  ;;  %v1662_v48 = vsel %vm1575_vm2, %v1659_v8, %v1661_v10  ;;  %v1681_v5 = vrot.slane %v11475_v53, 1  ;;  %v1693_v25 = vrot.slane %v11541_v34, 1 }
 0x1f0   : > { %v1278_v31 = vpop.trf.xlu0  ;;  %v1678_v9 = vsel %vm1575_vm2, %v1675_v62, %v1677_v63  ;;  %v1680_v14 = vsel %vm1575_vm2, %v1677_v63, %v1679_v42 }
 0x1f1   : > { %10265 = vmatmul.mubr.msk.f32.gmra.mxu0 %vm1831_vm1, %v1656_v23  ;;  %v1663_v17 = vrot.slane %v1278_v31, 1 }
 0x1f2   : > { %10464 = vmatmul.mubr.msk.f32.gmra.mxu1 %vm1831_vm1, %v1275_v51  ;;  %10267 = vmatprep.mubr.msk.f32.mxu0 %vm1831_vm1, %v1658_v40  ;;  %v11549_v13 = vpop.trf.xlu1  ;;  %v1682_v51 = vsel %vm1575_vm2, %v1679_v42, %v1681_v5 }
 0x1f3   : > { %10466 = vmatprep.mubr.msk.f32.mxu1 %vm1831_vm1, %v1276_v18  ;;  %v1664_v50 = vsel %vm1575_vm2, %v1661_v10, %v1663_v17 }
 0x1f4   : > { %v1279_v30 = vpop.trf.xlu0 }
 0x1f5   : > { %v1665_v46 = vrot.slane %v1279_v30, 1  ;;  %10268 = vmatmul.mubr.msk.f32.gmra.mxu0 %vm1831_vm1, %v1660_v47 }
 0x1f6   : > { %10467 = vmatmul.mubr.msk.f32.gmra.mxu1 %vm1831_vm1, %v1277_v26  ;;  %10270 = vmatprep.mubr.msk.f32.mxu0 %vm1831_vm1, %v1662_v48  ;;  %v11557_v27 = vpop.trf.xlu1 }
 0x1f7   : > { %10469 = vmatprep.mubr.msk.f32.mxu1 %vm1831_vm1, %v1278_v31  ;;  %v1666_v6 = vsel %vm1575_vm2, %v1663_v17, %v1665_v46  ;;  %v1697_v29 = vrot.slane %v11557_v27, 1 }
 0x1f8   : > { %v1280_v43 = vpop.trf.xlu0 }
 0x1f9   : > { %v1667_v38 = vrot.slane %v1280_v43, 1  ;;  %10271 = vmatmul.mubr.msk.f32.gmra.mxu0 %vm1831_vm1, %v1664_v50 }
 0x1fa   : > { %10470 = vmatmul.mubr.msk.f32.gmra.mxu1 %vm1831_vm1, %v1279_v30  ;;  %10273 = vmatprep.mubr.msk.f32.mxu0 %vm1831_vm1, %v1666_v6  ;;  %v11565_v45 = vpop.trf.xlu1  ;;  %v9648_v6 = vld [vmem:[%s15731_s5 + $0x30] sm:$0xff] }
 0x1fb   : > { %10472 = vmatprep.mubr.msk.f32.mxu1 %vm1831_vm1, %v1280_v43  ;;  %v1668_v54 = vsel %vm1575_vm2, %v1665_v46, %v1667_v38  ;;  %10597 = vmatprep.subr.mxu0 %v9648_v6 }
 0x1fc   : > { %v1281_v52 = vpop.trf.xlu0  ;;  %10598 = vmatpush3.msra.mxu0 %v9648_v6 }
 0x1fd   : > { %v1669_v58 = vrot.slane %v1281_v52, 1  ;;  %10274 = vmatmul.mubr.msk.f32.gmra.mxu0 %vm1831_vm1, %v1668_v54 }
 0x1fe   : > { %10473 = vmatmul.mubr.msk.f32.gmra.mxu1 %vm1831_vm1, %v1281_v52  ;;  %v11573_v41 = vpop.trf.xlu1 }
 0x1ff   : > { %10475 = vmatprep.mubr.msk.f32.mxu1 %vm1831_vm1, %v11399_v3  ;;  %v1670_v57 = vsel %vm1575_vm2, %v1667_v38, %v1669_v58  ;;  %v1672_v61 = vsel %vm1575_vm2, %v1669_v58, %v1671_v56  ;;  %v1701_v23 = vrot.slane %v11573_v41, 1 }
 0x200   : > { %10276 = vmatprep.mubr.msk.f32.mxu0 %vm1831_vm1, %v1670_v57  ;;  %v11581_v28 = vpop.trf.xlu0 }
 0x201   : > { %10277 = vmatmul.mubr.msk.f32.gmra.mxu0 %vm1831_vm1, %v1672_v61  ;;  %v1703_v10 = vrot.slane %v11581_v28, 1 }
 0x202   : > { %10476 = vmatmul.mubr.msk.f32.gmra.mxu1 %vm1831_vm1, %v11419_v37  ;;  %10279 = vmatprep.mubr.msk.f32.mxu0 %vm1831_vm1, %v1674_v2  ;;  %v11589_v3 = vpop.trf.xlu1 }
 0x203   : > { %10478 = vmatprep.mubr.msk.f32.mxu1 %vm1831_vm1, %v11433_v44  ;;  %v1683_v44 = vrot.slane %v11486_v12, 1 }
 0x204   : > { %v11594_v39 = vpop.trf.xlu0 }
 0x205   : > { %10280 = vmatmul.mubr.msk.f32.gmra.mxu0 %vm1831_vm1, %v1676_v55  ;;  %v1684_v19 = vsel %vm1575_vm2, %v1681_v5, %v1683_v44  ;;  %v1686_v60 = vsel %vm1575_vm2, %v1683_v44, %v1685_v16  ;;  %v1705_v17 = vrot.slane %v11594_v39, 1 }
 0x206   : > { %10479 = vmatmul.mubr.msk.f32.gmra.mxu1 %vm1831_vm1, %v11447_v22  ;;  %10282 = vmatprep.mubr.msk.f32.mxu0 %vm1831_vm1, %v1678_v9  ;;  %v11603_v37 = vpop.trf.xlu1 }
 0x207   : > { %10481 = vmatprep.mubr.msk.f32.mxu1 %vm1831_vm1, %v11461_v35  ;;  %v1687_v35 = vrot.slane %v11511_v15, 1  ;;  %v1706_v50 = vsel %vm1575_vm2, %v1703_v10, %v1705_v17 }
 0x208   : > { %v11608_v11 = vpop.trf.xlu0 }
 0x209   : > { %10283 = vmatmul.mubr.msk.f32.gmra.mxu0 %vm1831_vm1, %v1680_v14  ;;  %v1688_v33 = vsel %vm1575_vm2, %v1685_v16, %v1687_v35  ;;  %v1690_v36 = vsel %vm1575_vm2, %v1687_v35, %v1689_v20  ;;  %v1707_v46 = vrot.slane %v11608_v11, 1 }
 0x20a   : > { %10482 = vmatmul.mubr.msk.f32.gmra.mxu1 %vm1831_vm1, %v11475_v53  ;;  %10285 = vmatprep.mubr.msk.f32.mxu0 %vm1831_vm1, %v1682_v51  ;;  %v11617_v22 = vpop.trf.xlu1 }
 0x20b   : > { %10484 = vmatprep.mubr.msk.f32.mxu1 %vm1831_vm1, %v11486_v12  ;;  %v1691_v12 = vrot.slane %v11533_v59, 1  ;;  %v1708_v56 = vsel %vm1575_vm2, %v1705_v17, %v1707_v46 }
 0x20c   : > { %v11622_v7 = vpop.trf.xlu0 }
 0x20d   : > { %10286 = vmatmul.mubr.msk.f32.gmra.mxu0 %vm1831_vm1, %v1684_v19  ;;  %v1692_v26 = vsel %vm1575_vm2, %v1689_v20, %v1691_v12  ;;  %v1694_v32 = vsel %vm1575_vm2, %v1691_v12, %v1693_v25  ;;  %v1709_v43 = vrot.slane %v11622_v7, 1 }
 0x20e   : > { %10485 = vmatmul.mubr.msk.f32.gmra.mxu1 %vm1831_vm1, %v11499_v4  ;;  %10288 = vmatprep.mubr.msk.f32.mxu0 %vm1831_vm1, %v1686_v60  ;;  %v11631_v53 = vpop.trf.xlu1 }
 0x20f   : > { %10487 = vmatprep.mubr.msk.f32.mxu1 %vm1831_vm1, %v11511_v15  ;;  %v1695_v15 = vrot.slane %v11549_v13, 1  ;;  %v1710_v58 = vsel %vm1575_vm2, %v1707_v46, %v1709_v43  ;;  %v1741_v17 = vrot.slane %v11631_v53, 1 }
 0x210   : > { %v11636_v18 = vpop.trf.xlu0 }
 0x211   : > { %10289 = vmatmul.mubr.msk.f32.gmra.mxu0 %vm1831_vm1, %v1688_v33  ;;  %v1696_v8 = vsel %vm1575_vm2, %v1693_v25, %v1695_v15  ;;  %v1698_v31 = vsel %vm1575_vm2, %v1695_v15, %v1697_v29  ;;  %v1711_v54 = vrot.slane %v11636_v18, 1 }
 0x212   : > { %10488 = vmatmul.mubr.msk.f32.gmra.mxu1 %vm1831_vm1, %v11523_v24  ;;  %10291 = vmatprep.mubr.msk.f32.mxu0 %vm1831_vm1, %v1690_v36  ;;  %v11645_v4 = vpop.trf.xlu1 }
 0x213   : > { %10490 = vmatprep.mubr.msk.f32.mxu1 %vm1831_vm1, %v11533_v59  ;;  %v1699_v59 = vrot.slane %v11565_v45, 1  ;;  %v1712_v62 = vsel %vm1575_vm2, %v1709_v43, %v1711_v54  ;;  %v1743_v46 = vrot.slane %v11645_v4, 1 }
 0x214   : > { %v11650_v21 = vpop.trf.xlu0 }
 0x215   : > { %10292 = vmatmul.mubr.msk.f32.gmra.mxu0 %vm1831_vm1, %v1692_v26  ;;  %v1702_v30 = vsel %vm1575_vm2, %v1699_v59, %v1701_v23  ;;  %v1713_v49 = vrot.slane %v11650_v21, 1 }
 0x216   : > { %10491 = vmatmul.mubr.msk.f32.gmra.mxu1 %vm1831_vm1, %v11541_v34  ;;  %10294 = vmatprep.mubr.msk.f32.mxu0 %vm1831_vm1, %v1694_v32  ;;  %v11659_v24 = vpop.trf.xlu1 }
 0x217   : > { %10493 = vmatprep.mubr.msk.f32.mxu1 %vm1831_vm1, %v11549_v13  ;;  %v1700_v13 = vsel %vm1575_vm2, %v1697_v29, %v1699_v59  ;;  %v1714_v63 = vsel %vm1575_vm2, %v1711_v54, %v1713_v49  ;;  %v1735_v59 = vrot.slane %v11589_v3, 1  ;;  %v1745_v43 = vrot.slane %v11659_v24, 1 }
 0x218   : > { %v1336_v1 = vpop.trf.xlu0 }
 0x219   : > { %10295 = vmatmul.mubr.msk.f32.gmra.mxu0 %vm1831_vm1, %v1696_v8  ;;  %v1715_v57 = vrot.slane %v1336_v1, 1 }
 0x21a   : > { %10494 = vmatmul.mubr.msk.f32.gmra.mxu1 %vm1831_vm1, %v11557_v27  ;;  %10297 = vmatprep.mubr.msk.f32.mxu0 %vm1831_vm1, %v1698_v31  ;;  %v11670_v34 = vpop.trf.xlu1  ;;  %v1704_v27 = vsel %vm1575_vm2, %v1701_v23, %v1703_v10 }
 0x21b   : > { %10496 = vmatprep.mubr.msk.f32.mxu1 %vm1831_vm1, %v11565_v45  ;;  %v6165_v45 = vld [vmem:[%s15731_s5 + $0x10] sm:$0xff]  ;;  %v1716_v55 = vsel %vm1575_vm2, %v1713_v49, %v1715_v57  ;;  %v1744_v49 = vsel %vm1575_vm2, %v1741_v17, %v1743_v46 }
 0x21c   : > { %v1337_v40 = vpop.trf.xlu0  ;;  %10653 = vmatprep.subr.mxu1 %v6165_v45 }
 0x21d   : > { %10298 = vmatmul.mubr.msk.f32.gmra.mxu0 %vm1831_vm1, %v1700_v13  ;;  %10654 = vmatpush3.msra.mxu1 %v6165_v45 }
 0x21e   : > { %10497 = vmatmul.mubr.msk.f32.gmra.mxu1 %vm1831_vm1, %v11573_v41  ;;  %10300 = vmatprep.mubr.msk.f32.mxu0 %vm1831_vm1, %v1702_v30  ;;  %v11683_v47 = vpop.trf.xlu1 }
 0x21f   : > { %10499 = vmatprep.mubr.msk.f32.mxu1 %vm1831_vm1, %v11581_v28  ;;  %v1717_v28 = vrot.slane %v1337_v40, 1  ;;  %v1749_v6 = vrot.slane %v11683_v47, 1 }
 0x220   : > { %v1338_v48 = vpop.trf.xlu0 }
 0x221   : > { %10301 = vmatmul.mubr.msk.f32.gmra.mxu0 %vm1831_vm1, %v1704_v27  ;;  %v1719_v42 = vrot.slane %v1338_v48, 1  ;;  %v1718_v9 = vsel %vm1575_vm2, %v1715_v57, %v1717_v28 }
 0x222   : > { %10500 = vmatmul.mubr.msk.f32.gmra.mxu1 %vm1831_vm1, %v11594_v39  ;;  %10303 = vmatprep.mubr.msk.f32.mxu0 %vm1831_vm1, %v1706_v50  ;;  %v11695_v38 = vpop.trf.xlu1 }
 0x223   : > { %10502 = vmatprep.mubr.msk.f32.mxu1 %vm1831_vm1, %v11608_v11  ;;  %v1720_v16 = vsel %vm1575_vm2, %v1717_v28, %v1719_v42  ;;  %v1751_v45 = vrot.slane %v11695_v38, 1 }
 0x224   : > { %v1339_v52 = vpop.trf.xlu0 }
 0x225   : > { %10304 = vmatmul.mubr.msk.f32.gmra.mxu0 %vm1831_vm1, %v1708_v56  ;;  %v1721_v5 = vrot.slane %v1339_v52, 1 }
 0x226   : > { %10503 = vmatmul.mubr.msk.f32.gmra.mxu1 %vm1831_vm1, %v11622_v7  ;;  %10306 = vmatprep.mubr.msk.f32.mxu0 %vm1831_vm1, %v1710_v58  ;;  %v11713_v41 = vpop.trf.xlu1 }
 0x227   : > { %10505 = vmatprep.mubr.msk.f32.mxu1 %vm1831_vm1, %v11636_v18  ;;  %v1722_v35 = vsel %vm1575_vm2, %v1719_v42, %v1721_v5  ;;  %v1753_v54 = vrot.slane %v11713_v41, 1  ;;  %v1752_v42 = vsel %vm1575_vm2, %v1749_v6, %v1751_v45 }
 0x228   : > { %v1340_v61 = vpop.trf.xlu0 }
 0x229   : > { %10307 = vmatmul.mubr.msk.f32.gmra.mxu0 %vm1831_vm1, %v1712_v62  ;;  %v1723_v11 = vrot.slane %v1340_v61, 1 }
 0x22a   : > { %10506 = vmatmul.mubr.msk.f32.gmra.mxu1 %vm1831_vm1, %v11650_v21  ;;  %10309 = vmatprep.mubr.msk.f32.mxu0 %vm1831_vm1, %v1714_v63  ;;  %v11723_v2 = vpop.trf.xlu1 }
 0x22b   : > { %10508 = vmatprep.mubr.msk.f32.mxu1 %vm1831_vm1, %v1336_v1  ;;  %v1724_v60 = vsel %vm1575_vm2, %v1721_v5, %v1723_v11  ;;  %v1737_v1 = vrot.slane %v11603_v37, 1 }
 0x22c   : > { %v1341_v39 = vpop.trf.xlu0 }
 0x22d   : > { %10310 = vmatmul.mubr.msk.f32.gmra.mxu0 %vm1831_vm1, %v1716_v55  ;;  %v1725_v51 = vrot.slane %v1341_v39, 1  ;;  %v1738_v30 = vsel %vm1575_vm2, %v1735_v59, %v1737_v1 }
 0x22e   : > { %10509 = vmatmul.mubr.msk.f32.gmra.mxu1 %vm1831_vm1, %v1337_v40  ;;  %10312 = vmatprep.mubr.msk.f32.mxu0 %vm1831_vm1, %v1718_v9  ;;  %v11731_v44 = vpop.trf.xlu1  ;;  %v1739_v40 = vrot.slane %v11617_v22, 1 }
 0x22f   : > { %10511 = vmatprep.mubr.msk.f32.mxu1 %vm1831_vm1, %v1338_v48  ;;  %v1726_v18 = vsel %vm1575_vm2, %v1723_v11, %v1725_v51  ;;  %v11827_v11 = vld [vmem:[%s15730_s4] ss:$0 sm:$0xff] }
 0x230   : > { %v1342_v14 = vpop.trf.xlu0  ;;  %v1740_v27 = vsel %vm1575_vm2, %v1737_v1, %v1739_v40  ;;  %v1742_v50 = vsel %vm1575_vm2, %v1739_v40, %v1741_v17 }
 0x231   : > { %10313 = vmatmul.mubr.msk.f32.gmra.mxu0 %vm1831_vm1, %v1720_v16  ;;  %v1727_v19 = vrot.slane %v1342_v14, 1 }
 0x232   : > { %10512 = vmatmul.mubr.msk.f32.gmra.mxu1 %vm1831_vm1, %v1339_v52  ;;  %10315 = vmatprep.mubr.msk.f32.mxu0 %vm1831_vm1, %v1722_v35  ;;  %v11739_v7 = vpop.trf.xlu1  ;;  %v1755_v52 = vrot.slane %v11723_v2, 1 }
 0x233   : > { %10514 = vmatprep.mubr.msk.f32.mxu1 %vm1831_vm1, %v1340_v61  ;;  %v1728_v36 = vsel %vm1575_vm2, %v1725_v51, %v1727_v19  ;;  %v1759_v58 = vrot.slane %v11739_v7, 1  ;;  %v1746_v61 = vsel %vm1575_vm2, %v1743_v46, %v1745_v43 }
 0x234   : > { %v1343_v20 = vpop.trf.xlu0 }
 0x235   : > { %v1729_v12 = vrot.slane %v1343_v20, 1  ;;  %10316 = vmatmul.mubr.msk.f32.gmra.mxu0 %vm1831_vm1, %v1724_v60 }
 0x236   : > { %10515 = vmatmul.mubr.msk.f32.gmra.mxu1 %vm1831_vm1, %v1341_v39  ;;  %10318 = vmatprep.mubr.msk.f32.mxu0 %vm1831_vm1, %v1726_v18  ;;  %v11747_v33 = vpop.trf.xlu1  ;;  %v1754_v39 = vsel %vm1575_vm2, %v1751_v45, %v1753_v54 }
 0x237   : > { %10517 = vmatprep.mubr.msk.f32.mxu1 %vm1831_vm1, %v1342_v14  ;;  %v1730_v21 = vsel %vm1575_vm2, %v1727_v19, %v1729_v12  ;;  %v1761_v28 = vrot.slane %v11747_v33, 1 }
 0x238   : > { %v1344_v25 = vpop.trf.xlu0 }
 0x239   : > { %v1731_v15 = vrot.slane %v1344_v25, 1  ;;  %10319 = vmatmul.mubr.msk.f32.gmra.mxu0 %vm1831_vm1, %v1728_v36 }
 0x23a   : > { %10518 = vmatmul.mubr.msk.f32.gmra.mxu1 %vm1831_vm1, %v1343_v20  ;;  %10321 = vmatprep.mubr.msk.f32.mxu0 %vm1831_vm1, %v1730_v21  ;;  %v11755_v26 = vpop.trf.xlu1 }
 0x23b   : > { %10520 = vmatprep.mubr.msk.f32.mxu1 %vm1831_vm1, %v1344_v25  ;;  %v1732_v29 = vsel %vm1575_vm2, %v1729_v12, %v1731_v15 }
 0x23c   : > { %v1345_v32 = vpop.trf.xlu0 }
 0x23d   : > { %v1733_v8 = vrot.slane %v1345_v32, 1  ;;  %10322 = vmatmul.mubr.msk.f32.gmra.mxu0 %vm1831_vm1, %v1732_v29 }
 0x23e   : > { %10521 = vmatmul.mubr.msk.f32.gmra.mxu1 %vm1831_vm1, %v1345_v32  ;;  %v11763_v31 = vpop.trf.xlu1 }
 0x23f   : > { %10523 = vmatprep.mubr.msk.f32.mxu1 %vm1831_vm1, %v11589_v3  ;;  %v1734_v23 = vsel %vm1575_vm2, %v1731_v15, %v1733_v8  ;;  %v1736_v10 = vsel %vm1575_vm2, %v1733_v8, %v1735_v59  ;;  %v1765_v55 = vrot.slane %v11763_v31, 1 }
 0x240   : > { %10324 = vmatprep.mubr.msk.f32.mxu0 %vm1831_vm1, %v1734_v23  ;;  %v11771_v13 = vpop.trf.xlu0 }
 0x241   : > { %10325 = vmatmul.mubr.msk.f32.gmra.mxu0 %vm1831_vm1, %v1736_v10  ;;  %v1767_v5 = vrot.slane %v11771_v13, 1 }
 0x242   : > { %10524 = vmatmul.mubr.msk.f32.gmra.mxu1 %vm1831_vm1, %v11603_v37  ;;  %10327 = vmatprep.mubr.msk.f32.mxu0 %vm1831_vm1, %v1738_v30  ;;  %v11779_v3 = vpop.trf.xlu1  ;;  %v1747_v37 = vrot.slane %v11670_v34, 1 }
 0x243   : > { %10526 = vmatprep.mubr.msk.f32.mxu1 %vm1831_vm1, %v11617_v22  ;;  %v1799_v18 = vrot.slane %v11779_v3, 1  ;;  %v11863_v23 = vsel %vm1575_vm2, %v1765_v55, %v1767_v5 }
 0x244   : > { %v11784_v48 = vpop.trf.xlu0  ;;  %v1750_v63 = vsel %vm1575_vm2, %v1747_v37, %v1749_v6 }
 0x245   : > { %10328 = vmatmul.mubr.msk.f32.gmra.mxu0 %vm1831_vm1, %v1740_v27  ;;  %v10405_v57 = vpop.f32.mrf.mxu1  ;;  %v1769_v16 = vrot.slane %v11784_v48, 1 }
 0x246   : > { %10527 = vmatmul.mubr.msk.f32.gmra.mxu1 %vm1831_vm1, %v11631_v53  ;;  %10330 = vmatprep.mubr.msk.f32.mxu0 %vm1831_vm1, %v1742_v50  ;;  %v11794_v22 = vpop.trf.xlu1  ;;  %v1757_v53 = vrot.slane %v11731_v44, 1 }
 0x247   : > { %10529 = vmatprep.mubr.msk.f32.mxu1 %vm1831_vm1, %v11645_v4  ;;  %v1748_v4 = vsel %vm1575_vm2, %v1745_v43, %v1747_v37  ;;  %v3114_v51 = vpop.f32.mrf.mxu1  ;;  %v1801_v25 = vrot.slane %v11794_v22, 1  ;;  %v11870_v46 = vsel %vm1575_vm2, %v1767_v5, %v1769_v16 }
 0x248   : > { %v11802_v56 = vpop.trf.xlu0  ;;  %v1758_v19 = vsel %vm1575_vm2, %v1755_v52, %v1757_v53  ;;  %v11836_v20 = vsel %vm1575_vm2, %v1757_v53, %v1759_v58 }
 0x249   : > { %10331 = vmatmul.mubr.msk.f32.gmra.mxu0 %vm1831_vm1, %v1744_v49  ;;  %v1771_v60 = vrot.slane %v11802_v56, 1  ;;  %v11883_v50 = vsel %vm1575_vm2, %v1799_v18, %v1801_v25 }
 0x24a   : > { %10530 = vmatmul.mubr.msk.f32.gmra.mxu1 %vm1831_vm1, %v11659_v24  ;;  %10333 = vmatprep.mubr.msk.f32.mxu0 %vm1831_vm1, %v1746_v61  ;;  %v11813_v62 = vpop.trf.xlu1  ;;  %v1763_v24 = vrot.slane %v11755_v26, 1 }
 0x24b   : > { %10532 = vmatprep.mubr.msk.f32.mxu1 %vm1831_vm1, %v11670_v34  ;;  %v1756_v34 = vsel %vm1575_vm2, %v1753_v54, %v1755_v52  ;;  %v1803_v36 = vrot.slane %v11813_v62, 1  ;;  %v11876_v27 = vsel %vm1575_vm2, %v1769_v16, %v1771_v60 }
 0x24c   : > { %v10209_v9 = vpop.f32.mrf.mxu0  ;;  %v11829_v14 = vpop.trf.xlu0  ;;  %v11857_v1 = vsel %vm1575_vm2, %v1761_v28, %v1763_v24  ;;  %v11860_v8 = vsel %vm1575_vm2, %v1763_v24, %v1765_v55 }
 0x24d   : > { %v3120_v35 = vadd.f32 %v10405_v57, %v10209_v9  ;;  %10334 = vmatmul.mubr.msk.f32.gmra.mxu0 %vm1831_vm1, %v1748_v4  ;;  %v1773_v29 = vrot.slane %v11829_v14, 1  ;;  %v10408_v17 = vpop.f32.mrf.mxu1  ;;  %v11886_v37 = vsel %vm1575_vm2, %v1801_v25, %v1803_v36 }
 0x24e   : > { %10533 = vmatmul.mubr.msk.f32.gmra.mxu1 %vm1831_vm1, %v11683_v47  ;;  %v2154_v12 = vpop.f32.mrf.mxu0  ;;  %10336 = vmatprep.mubr.msk.f32.mxu0 %vm1831_vm1, %v1750_v63  ;;  %v11845_v15 = vpop.trf.xlu1  ;;  %v11852_v47 = vsel %vm1575_vm2, %v1759_v58, %v1761_v28 }
 0x24f   : > { %v3760_v21 = vadd.f32 %v11827_v11, %v3120_v35  ;;  %v3115_v32 = vadd.f32 %v3114_v51, %v2154_v12  ;;  %10535 = vmatprep.mubr.msk.f32.mxu1 %vm1831_vm1, %v11695_v38  ;;  %v15751_v10 = vrot.slane %v11845_v15, 1  ;;  %v3124_v63 = vpop.f32.mrf.mxu1 }
 0x250   : > { %v11854_v59 = vpop.trf.xlu0 }
 0x251   : > { %v3887_v40 = vmax.f32 %v3760_v21, 0.0  ;;  %v3759_v38 = vadd.f32 %v11827_v11, %v3115_v32  ;;  %v1775_v30 = vrot.slane %v11854_v59, 1  ;;  %10337 = vmatmul.mubr.msk.f32.gmra.mxu0 %vm1831_vm1, %v1752_v42  ;;  %v11903_v61 = vsel %vm1575_vm2, %v1803_v36, %v15751_v10 }
 0x252   : > { %10536 = vmatmul.mubr.msk.f32.gmra.mxu1 %vm1831_vm1, %v11713_v41  ;;  %10339 = vmatprep.mubr.msk.f32.mxu0 %vm1831_vm1, %v1754_v39  ;;  %v11878_v43 = vpop.trf.xlu1  ;;  %v11892_v41 = vsel %vm1575_vm2, %v1771_v60, %v1773_v29 }
 0x253   : > { %v4140_v6 = vcombine.high %v3887_v40, %v3887_v40  ;;  %v4406_v45 = vsel %vm4391_vm3, %v3887_v40, -inf  ;;  %v3886_v54 = vmax.f32 %v3759_v38, 0.0  ;;  %10538 = vmatprep.mubr.msk.f32.mxu1 %vm1831_vm1, %v11723_v2  ;;  %v11897_v58 = vsel %vm1575_vm2, %v1773_v29, %v1775_v30 }
 0x254   : > { %v4407_v52 = vrot.slane %v4406_v45, 4  ;;  %v10212_v49 = vpop.f32.mrf.mxu0  ;;  %v11894_v53 = vpop.trf.xlu0 }
 0x255   : > { %v4413_v4 = vsel %vm4391_vm3, %v4140_v6, -inf  ;;  %v4139_v2 = vcombine.high %v3886_v54, %v3886_v54  ;;  %v4392_v28 = vsel %vm4391_vm3, %v3886_v54, -inf  ;;  %v3130_v42 = vadd.f32 %v10408_v17, %v10212_v49  ;;  %10340 = vmatmul.mubr.msk.f32.gmra.mxu0 %vm1831_vm1, %v1756_v34 }
 0x256   : > { %v4408_v39 = vmax.f32 %v4406_v45, %v4407_v52  ;;  %v4414_v24 = vrot.slane %v4413_v4, 4  ;;  %v4393_v55 = vrot.slane %v4392_v28, 4  ;;  %v1777_v5 = vrot.slane %v11894_v53, 1  ;;  %10539 = vmatmul.mubr.msk.f32.gmra.mxu1 %vm1831_vm1, %v11731_v44  ;;  %v2164_v9 = vpop.f32.mrf.mxu0  ;;  %10342 = vmatprep.mubr.msk.f32.mxu0 %vm1831_vm1, %v1758_v19  ;;  %v11912_v16 = vpop.trf.xlu1 }
 0x257   : > { %v4399_v51 = vsel %vm4391_vm3, %v4139_v2, -inf  ;;  %v3762_v35 = vadd.f32 %v11827_v11, %v3130_v42  ;;  %v3125_v60 = vadd.f32 %v3124_v63, %v2164_v9  ;;  %10541 = vmatprep.mubr.msk.f32.mxu1 %vm1831_vm1, %v11739_v7  ;;  %v6164_v7 = vld [vmem:[%s15731_s5 + $0x8] sm:$0xff] }
 0x258   : > { %v4409_v12 = vrot.slane %v4408_v39, 2  ;;  %v4415_v25 = vmax.f32 %v4413_v4, %v4414_v24  ;;  %v4394_v36 = vmax.f32 %v4392_v28, %v4393_v55  ;;  %v4400_v21 = vrot.slane %v4399_v51, 4  ;;  %v11919_v44 = vpop.trf.xlu0  ;;  %10655 = vmatprep.subr.mxu1 %v6164_v7 }
 0x259   : > { %v3889_v19 = vmax.f32 %v3762_v35, 0.0  ;;  %v3761_v29 = vadd.f32 %v11827_v11, %v3125_v60  ;;  %v1779_v32 = vrot.slane %v11919_v44, 1  ;;  %10343 = vmatmul.mubr.msk.f32.gmra.mxu0 %vm1831_vm1, %v11836_v20  ;;  %v11926_v40 = vsel %vm1575_vm2, %v1775_v30, %v1777_v5  ;;  %10656 = vmatpush3.msra.mxu1 %v6164_v7 }
 0x25a   : > { %v4410_v17 = vmax.f32 %v4408_v39, %v4409_v12  ;;  %v4416_v38 = vrot.slane %v4415_v25, 2  ;;  %v4395_v6 = vrot.slane %v4394_v36, 2  ;;  %v4401_v45 = vmax.f32 %v4399_v51, %v4400_v21  ;;  %10542 = vmatmul.mubr.msk.f32.gmra.mxu1 %vm1831_vm1, %v11747_v33  ;;  %10345 = vmatprep.mubr.msk.f32.mxu0 %vm1831_vm1, %v11852_v47  ;;  %v10411_v39 = vpop.f32.mrf.mxu1 }
 0x25b   : > { %v4142_v54 = vcombine.high %v3889_v19, %v3889_v19  ;;  %v4434_v20 = vsel %vm4391_vm3, %v3889_v19, -inf  ;;  %v3888_v52 = vmax.f32 %v3761_v29, 0.0  ;;  %10544 = vmatprep.mubr.msk.f32.mxu1 %vm1831_vm1, %v11755_v26  ;;  %v11941_v30 = vsel %vm1575_vm2, %v1777_v5, %v1779_v32 }
 0x25c   : > { %v4411_v49 = vrot.slane %v4410_v17, 1  ;;  %v4417_v4 = vmax.f32 %v4415_v25, %v4416_v38  ;;  %v4396_v2 = vmax.f32 %v4394_v36, %v4395_v6  ;;  %v4402_v33 = vrot.slane %v4401_v45, 2  ;;  %v10215_v28 = vpop.f32.mrf.mxu0  ;;  %v11943_v63 = vpop.trf.xlu0 }
 0x25d   : > { %v4435_v47 = vrot.slane %v4434_v20, 4  ;;  %v4441_v42 = vsel %vm4391_vm3, %v4142_v54, -inf  ;;  %v4141_v24 = vcombine.high %v3888_v52, %v3888_v52  ;;  %v4420_v26 = vsel %vm4391_vm3, %v3888_v52, -inf  ;;  %10346 = vmatmul.mubr.msk.f32.gmra.mxu0 %vm1831_vm1, %v11857_v1  ;;  %v3134_v38 = vpop.f32.mrf.mxu1 }
 0x25e   : > { %v11949_v55 = vmax.f32 %v4410_v17, %v4411_v49  ;;  %v4418_v5 = vrot.slane %v4417_v4, 1  ;;  %v4397_v9 = vrot.slane %v4396_v2, 1  ;;  %v4403_v51 = vmax.f32 %v4401_v45, %v4402_v33  ;;  %10545 = vmatmul.mubr.msk.f32.gmra.mxu1 %vm1831_vm1, %v11763_v31  ;;  %10348 = vmatprep.mubr.msk.f32.mxu0 %vm1831_vm1, %v11860_v8  ;;  %v2174_v36 = vpop.f32.mrf.mxu0 }
 0x25f   : > { %v4436_v35 = vmax.f32 %v4434_v20, %v4435_v47  ;;  %v4442_v60 = vrot.slane %v4441_v42, 4  ;;  %v4421_v12 = vrot.slane %v4420_v26, 4  ;;  %v4427_v25 = vsel %vm4391_vm3, %v4141_v24, -inf  ;;  %10547 = vmatprep.mubr.msk.f32.mxu1 %vm1831_vm1, %v11771_v13  ;;  %v10414_v33 = vpop.f32.mrf.mxu1 }
 0x260   : > { %v11958_v1 = vmax.f32 %v4417_v4, %v4418_v5  ;;  %v4398_v21 = vmax.f32 %v4396_v2, %v4397_v9  ;;  %v4404_v19 = vrot.slane %v4403_v51, 1  ;;  %v4428_v29 = vrot.slane %v4427_v25, 4  ;;  %v11960_v7 = vpop.trf.xlu0 }
 0x261   : > { %v4437_v31 = vrot.slane %v4436_v35, 2  ;;  %v11962_v17 = vmax.f32 %v4441_v42, %v4442_v60  ;;  %v4422_v8 = vmax.f32 %v4420_v26, %v4421_v12  ;;  %v3140_v6 = vadd.f32 %v10411_v39, %v10215_v28  ;;  %10349 = vmatmul.mubr.msk.f32.gmra.mxu0 %vm1831_vm1, %v11863_v23 }
 0x262   : > { %v11966_v45 = vmax.f32 %v4403_v51, %v4404_v19  ;;  %v4429_v54 = vmax.f32 %v4427_v25, %v4428_v29  ;;  %v1781_v13 = vrot.slane %v11943_v63, 1  ;;  %v3135_v20 = vadd.f32 %v3134_v38, %v2174_v36  ;;  %10548 = vmatmul.mubr.msk.f32.gmra.mxu1 %vm1831_vm1, %v11784_v48  ;;  %10351 = vmatprep.mubr.msk.f32.mxu0 %vm1831_vm1, %v11870_v46 }
 0x263   : > { %v4438_v52 = vmax.f32 %v4436_v35, %v4437_v31  ;;  %v4423_v4 = vrot.slane %v4422_v8, 2  ;;  %v3764_v2 = vadd.f32 %v11827_v11, %v3140_v6  ;;  %10550 = vmatprep.mubr.msk.f32.mxu1 %vm1831_vm1, %v11802_v56  ;;  %v1783_v47 = vrot.slane %v11960_v7, 1  ;;  %v3144_v6 = vpop.f32.mrf.mxu1 }
 0x264   : > { %v11979_v23 = vsel %vm6424_vm4, %v11966_v45, %v4398_v21  ;;  %v4430_v28 = vrot.slane %v4429_v54, 2  ;;  %v3763_v48 = vadd.f32 %v11827_v11, %v3135_v20  ;;  %v10218_v46 = vpop.f32.mrf.mxu0  ;;  %v11983_v42 = vpop.trf.xlu0  ;;  %v1782_v35 = vsel %vm1575_vm2, %v1779_v32, %v1781_v13 }
 0x265   : > { %v4439_v39 = vrot.slane %v4438_v52, 1  ;;  %v4424_v24 = vmax.f32 %v4422_v8, %v4423_v4  ;;  %v3891_v26 = vmax.f32 %v3764_v2, 0.0  ;;  %v3150_v5 = vadd.f32 %v10414_v33, %v10218_v46  ;;  %10352 = vmatmul.mubr.msk.f32.gmra.mxu0 %vm1831_vm1, %v11876_v27  ;;  %v12002_v21 = vpop.trf.xlu1 }
 0x266   : > { %v11987_v56 = vmax.f32 %v4429_v54, %v4430_v28  ;;  %v3890_v9 = vmax.f32 %v3763_v48, 0.0  ;;  %v1785_v51 = vrot.slane %v11983_v42, 1  ;;  %10551 = vmatmul.mubr.msk.f32.gmra.mxu1 %vm1831_vm1, %v11829_v14  ;;  %10354 = vmatprep.mubr.msk.f32.mxu0 %vm1831_vm1, %v11892_v41  ;;  %v2184_v36 = vpop.f32.mrf.mxu0 }
 0x267   : > { %v11997_v60 = vmax.f32 %v4438_v52, %v4439_v39  ;;  %v4425_v12 = vrot.slane %v4424_v24, 1  ;;  %v4144_v25 = vcombine.high %v3891_v26, %v3891_v26  ;;  %v4462_v27 = vsel %vm4391_vm3, %v3891_v26, -inf  ;;  %10553 = vmatprep.mubr.msk.f32.mxu1 %vm1831_vm1, %v11854_v59 }
 0x268   : > { %v4463_v19 = vrot.slane %v4462_v27, 4  ;;  %v4143_v41 = vcombine.high %v3890_v9, %v3890_v9  ;;  %v4448_v29 = vsel %vm4391_vm3, %v3890_v9, -inf  ;;  %v12006_v31 = vpop.trf.xlu0  ;;  %v3766_v54 = vadd.f32 %v11827_v11, %v3150_v5 }
 0x269   : > { %v12008_v32 = vmax.f32 %v4424_v24, %v4425_v12  ;;  %v4469_v8 = vsel %vm4391_vm3, %v4144_v25, -inf  ;;  %v4449_v38 = vrot.slane %v4448_v29, 4  ;;  %10355 = vmatmul.mubr.msk.f32.gmra.mxu0 %vm1831_vm1, %v11897_v58  ;;  %v3145_v4 = vadd.f32 %v3144_v6, %v2184_v36 }
 0x26a   : > { %v4464_v59 = vmax.f32 %v4462_v27, %v4463_v19  ;;  %v4470_v20 = vrot.slane %v4469_v8, 4  ;;  %v4455_v52 = vsel %vm4391_vm3, %v4143_v41, -inf  ;;  %10554 = vmatmul.mubr.msk.f32.gmra.mxu1 %vm1831_vm1, %v11894_v53  ;;  %10357 = vmatprep.mubr.msk.f32.mxu0 %vm1831_vm1, %v11926_v40  ;;  %v3893_v28 = vmax.f32 %v3766_v54, 0.0  ;;  %v10417_v19 = vpop.f32.mrf.mxu1 }
 0x26b   : > { %v4450_v2 = vmax.f32 %v4448_v29, %v4449_v38  ;;  %v4456_v33 = vrot.slane %v4455_v52, 4  ;;  %v1787_v48 = vrot.slane %v12006_v31, 1  ;;  %10556 = vmatprep.mubr.msk.f32.mxu1 %vm1831_vm1, %v11919_v44  ;;  %v3765_v39 = vadd.f32 %v11827_v11, %v3145_v4  ;;  %v12031_v44 = vpop.trf.xlu1 }
 0x26c   : > { %v4465_v58 = vrot.slane %v4464_v59, 2  ;;  %v4471_v46 = vmax.f32 %v4469_v8, %v4470_v20  ;;  %v10221_v24 = vpop.f32.mrf.mxu0  ;;  %v12023_v26 = vpop.trf.xlu0  ;;  %v1784_v53 = vsel %vm1575_vm2, %v1781_v13, %v1783_v47  ;;  %v4146_v9 = vcombine.high %v3893_v28, %v3893_v28 }
 0x26d   : > { %v4451_v40 = vrot.slane %v4450_v2, 2  ;;  %v4457_v5 = vmax.f32 %v4455_v52, %v4456_v33  ;;  %v4490_v12 = vsel %vm4391_vm3, %v3893_v28, -inf  ;;  %10358 = vmatmul.mubr.msk.f32.gmra.mxu0 %vm1831_vm1, %v11941_v30  ;;  %v3892_v41 = vmax.f32 %v3765_v39, 0.0 }
 0x26e   : > { %v4466_v25 = vmax.f32 %v4464_v59, %v4465_v58  ;;  %v4472_v27 = vrot.slane %v4471_v46, 2  ;;  %v4491_v36 = vrot.slane %v4490_v12, 4  ;;  %10557 = vmatmul.mubr.msk.f32.gmra.mxu1 %vm1831_vm1, %v11943_v63  ;;  %10360 = vmatprep.mubr.msk.f32.mxu0 %vm1831_vm1, %v1782_v35  ;;  %v4497_v8 = vsel %vm4391_vm3, %v4146_v9, -inf  ;;  %v2194_v9 = vpop.f32.mrf.mxu0 }
 0x26f   : > { %v4452_v13 = vmax.f32 %v4450_v2, %v4451_v40  ;;  %v4458_v29 = vrot.slane %v4457_v5, 2  ;;  %v3160_v38 = vadd.f32 %v10417_v19, %v10221_v24  ;;  %10559 = vmatprep.mubr.msk.f32.mxu1 %vm1831_vm1, %v11960_v7  ;;  %v4498_v59 = vrot.slane %v4497_v8, 4  ;;  %v6163_v19 = vld [vmem:[%s15731_s5] sm:$0xff] }
 0x270   : > { %v4467_v30 = vrot.slane %v4466_v25, 1  ;;  %v4473_v6 = vmax.f32 %v4471_v46, %v4472_v27  ;;  %v4492_v54 = vmax.f32 %v4490_v12, %v4491_v36  ;;  %v12039_v20 = vpop.trf.xlu0  ;;  %v4145_v4 = vcombine.high %v3892_v41, %v3892_v41  ;;  %10657 = vmatprep.subr.mxu1 %v6163_v19 }
 0x271   : > { %v4453_v52 = vrot.slane %v4452_v13, 1  ;;  %v4459_v63 = vmax.f32 %v4457_v5, %v4458_v29  ;;  %v4476_v35 = vsel %vm4391_vm3, %v3892_v41, -inf  ;;  %10361 = vmatmul.mubr.msk.f32.gmra.mxu0 %vm1831_vm1, %v1784_v53  ;;  %v4499_v58 = vmax.f32 %v4497_v8, %v4498_v59  ;;  %v12050_v5 = vpop.trf.xlu1  ;;  %v9647_v41 = vld [vmem:[%s15731_s5 + $0x28] sm:$0xff]  ;;  %v3154_v8 = vpop.f32.mrf.mxu1  ;;  %10658 = vmatpush3.msra.mxu1 %v6163_v19 }
 0x272   : > { %v4468_v2 = vmax.f32 %v4466_v25, %v4467_v30  ;;  %v4474_v33 = vrot.slane %v4473_v6, 1  ;;  %v4493_v28 = vrot.slane %v4492_v54, 2  ;;  %10560 = vmatmul.mubr.msk.f32.gmra.mxu1 %vm1831_vm1, %v11983_v42  ;;  %v4477_v24 = vrot.slane %v4476_v35, 4  ;;  %10599 = vmatprep.subr.mxu0 %v9647_v41 }
 0x273   : > { %v12045_v46 = vmax.f32 %v4452_v13, %v4453_v52  ;;  %v4460_v39 = vrot.slane %v4459_v63, 1  ;;  %v4483_v40 = vsel %vm4391_vm3, %v4145_v4, -inf  ;;  %10562 = vmatprep.mubr.msk.f32.mxu1 %vm1831_vm1, %v12006_v31  ;;  %v4500_v25 = vrot.slane %v4499_v58, 2  ;;  %10600 = vmatpush3.msra.mxu0 %v9647_v41 }
 0x274   : > { %v4475_v53 = vmax.f32 %v4473_v6, %v4474_v33  ;;  %v4494_v12 = vmax.f32 %v4492_v54, %v4493_v28  ;;  %v4484_v27 = vrot.slane %v4483_v40, 4  ;;  %v12052_v36 = vpop.trf.xlu0  ;;  %v4478_v29 = vmax.f32 %v4476_v35, %v4477_v24 }
 0x275   : > { %v4461_v13 = vmax.f32 %v4459_v63, %v4460_v39  ;;  %v3768_v30 = vadd.f32 %v11827_v11, %v3160_v38  ;;  %v1789_v6 = vrot.slane %v12023_v26, 1  ;;  %v4501_v59 = vmax.f32 %v4499_v58, %v4500_v25 }
 0x276   : > { %v4495_v54 = vrot.slane %v4494_v12, 1  ;;  %v4485_v52 = vmax.f32 %v4483_v40, %v4484_v27  ;;  %v3155_v4 = vadd.f32 %v3154_v8, %v2194_v9  ;;  %10563 = vmatmul.mubr.msk.f32.gmra.mxu1 %vm1831_vm1, %v12023_v26  ;;  %v4479_v35 = vrot.slane %v4478_v29, 2  ;;  %v10224_v40 = vpop.f32.mrf.mxu0  ;;  %v12076_v8 = vpop.trf.xlu1 }
 0x277   : > { %v6438_v33 = vsel %vm6424_vm4, %v4468_v2, %v4461_v13  ;;  %v6948_v63 = vsel %vm6424_vm4, %v4461_v13, %v12045_v46  ;;  %v3895_v38 = vmax.f32 %v3768_v30, 0.0  ;;  %10565 = vmatprep.mubr.msk.f32.mxu1 %vm1831_vm1, %v12039_v20  ;;  %v4502_v39 = vrot.slane %v4501_v59, 1 }
 0x278   : > { %v6949_v28 = vsel %vm6426_vm5, %v4468_v2, %v6948_v63  ;;  %v12070_v58 = vmax.f32 %v4494_v12, %v4495_v54  ;;  %v4486_v24 = vrot.slane %v4485_v52, 2  ;;  %v12072_v9 = vpop.trf.xlu0  ;;  %v4480_v25 = vmax.f32 %v4478_v29, %v4479_v35 }
 0x279   : > { %v6439_v27 = vsel %vm6426_vm5, %v4475_v53, %v6438_v33  ;;  %v6950_v41 = vsel %vm6428_vm6, %v4475_v53, %v6949_v28  ;;  %v4148_v13 = vcombine.high %v3895_v38, %v3895_v38  ;;  %v12078_v30 = vmax.f32 %v4501_v59, %v4502_v39  ;;  %v10420_v33 = vpop.f32.mrf.mxu1  ;;  %v9646_v39 = vld [vmem:[%s15731_s5 + $0x20] sm:$0xff] }
 0x27a   : > { %v4487_v19 = vmax.f32 %v4485_v52, %v4486_v24  ;;  %v4518_v2 = vsel %vm4391_vm3, %v3895_v38, -inf  ;;  %v3767_v12 = vadd.f32 %v11827_v11, %v3155_v4  ;;  %10566 = vmatmul.mubr.msk.f32.gmra.mxu1 %vm1831_vm1, %v12052_v36  ;;  %v4481_v54 = vrot.slane %v4480_v25, 1  ;;  %v2204_v38 = vpop.f32.mrf.mxu0  ;;  %10601 = vmatprep.subr.mxu0 %v9646_v39 }
 0x27b   : > { %v4519_v63 = vrot.slane %v4518_v2, 4  ;;  %v4525_v29 = vsel %vm4391_vm3, %v4148_v13, -inf  ;;  %v1791_v53 = vrot.slane %v12039_v20, 1  ;;  %10568 = vmatprep.mubr.msk.f32.mxu1 %vm1831_vm1, %v12072_v9  ;;  %v1786_v4 = vsel %vm1575_vm2, %v1783_v47, %v1785_v51  ;;  %10602 = vmatpush3.msra.mxu0 %v9646_v39 }
 0x27c   : > { %v4488_v59 = vrot.slane %v4487_v19, 1  ;;  %v4526_v35 = vrot.slane %v4525_v29, 4  ;;  %v3894_v52 = vmax.f32 %v3767_v12, 0.0  ;;  %v12093_v28 = vpop.trf.xlu0  ;;  %v4482_v24 = vmax.f32 %v4480_v25, %v4481_v54  ;;  %10363 = vmatprep.mubr.msk.f32.mxu0 %vm1831_vm1, %v1786_v4  ;;  %v12103_v34 = vpop.f32.mrf.mxu0 }
 0x27d   : > { %v4520_v13 = vmax.f32 %v4518_v2, %v4519_v63  ;;  %v3170_v12 = vadd.f32 %v10420_v33, %v10224_v40  ;;  %v1793_v4 = vrot.slane %v12052_v36, 1 }
 0x27e   : > { %v12100_v49 = vmax.f32 %v4487_v19, %v4488_v59  ;;  %v4527_v7 = vmax.f32 %v4525_v29, %v4526_v35  ;;  %v4147_v14 = vcombine.high %v3894_v52, %v3894_v52  ;;  %v4504_v47 = vsel %vm4391_vm3, %v3894_v52, -inf  ;;  %10569 = vmatmul.mubr.msk.f32.gmra.mxu1 %vm1831_vm1, %v12093_v28  ;;  %v12113_v19 = vpop.trf.xlu1  ;;  %v3164_v59 = vpop.f32.mrf.mxu1 }
 0x27f   : > { %v6440_v25 = vsel %vm6428_vm6, %v4482_v24, %v6439_v27  ;;  %v12109_v2 = vsel %vm6430_vm7, %v4482_v24, %v6950_v41  ;;  %v4521_v54 = vrot.slane %v4520_v13, 2  ;;  %v4505_v40 = vrot.slane %v4504_v47, 4  ;;  %10571 = vmatprep.mubr.msk.f32.mxu1 %vm1831_vm1, %v11779_v3  ;;  %v2214_v57 = vpop.f32.mrf.mxu0 }
 0x280   : > { %v12117_v63 = vsel %vm6430_vm7, %v12100_v49, %v6440_v25  ;;  %v4528_v29 = vrot.slane %v4527_v7, 2  ;;  %v4511_v33 = vsel %vm4391_vm3, %v4147_v14, -inf  ;;  %v3770_v27 = vadd.f32 %v11827_v11, %v3170_v12  ;;  %v10423_v0 = vpop.f32.mrf.mxu1 }
 0x281   : > { %v4522_v35 = vmax.f32 %v4520_v13, %v4521_v54  ;;  %v4506_v41 = vmax.f32 %v4504_v47, %v4505_v40  ;;  %v4512_v52 = vrot.slane %v4511_v33, 4  ;;  %v1788_v25 = vsel %vm1575_vm2, %v1785_v51, %v1787_v48 }
 0x282   : > { %v4529_v39 = vmax.f32 %v4527_v7, %v4528_v29  ;;  %v3897_v24 = vmax.f32 %v3770_v27, 0.0  ;;  %v3165_v10 = vadd.f32 %v3164_v59, %v2204_v38  ;;  %10572 = vmatmul.mubr.msk.f32.gmra.mxu1 %vm1831_vm1, %v11794_v22  ;;  %10364 = vmatmul.mubr.msk.f32.gmra.mxu0 %vm1831_vm1, %v1788_v25  ;;  %v1790_v7 = vsel %vm1575_vm2, %v1787_v48, %v1789_v6  ;;  %v3174_v59 = vpop.f32.mrf.mxu1 }
 0x283   : > { %v4523_v14 = vrot.slane %v4522_v35, 1  ;;  %v4507_v13 = vrot.slane %v4506_v41, 2  ;;  %v4513_v12 = vmax.f32 %v4511_v33, %v4512_v52  ;;  %10574 = vmatprep.mubr.msk.f32.mxu1 %vm1831_vm1, %v11813_v62  ;;  %10366 = vmatprep.mubr.msk.f32.mxu0 %vm1831_vm1, %v1790_v7  ;;  %v12142_v33 = vpop.trf.xlu1  ;;  %v10230_v52 = vpop.f32.mrf.mxu0  ;;  %v1794_v26 = vsel %vm1575_vm2, %v1791_v53, %v1793_v4 }
 0x284   : > { %v4530_v42 = vrot.slane %v4529_v39, 1  ;;  %v4150_v51 = vcombine.high %v3897_v24, %v3897_v24  ;;  %v4546_v38 = vsel %vm4391_vm3, %v3897_v24, -inf  ;;  %v3769_v22 = vadd.f32 %v11827_v11, %v3165_v10  ;;  %v10426_v7 = vpop.f32.mrf.mxu1 }
 0x285   : > { %v12140_v47 = vmax.f32 %v4522_v35, %v4523_v14  ;;  %v4508_v54 = vmax.f32 %v4506_v41, %v4507_v13  ;;  %v4514_v40 = vrot.slane %v4513_v12, 2  ;;  %v4547_v29 = vrot.slane %v4546_v38, 4 }
 0x286   : > { %v12144_v31 = vmax.f32 %v4529_v39, %v4530_v42  ;;  %v4553_v48 = vsel %vm4391_vm3, %v4150_v51, -inf  ;;  %v3896_v62 = vmax.f32 %v3769_v22, 0.0  ;;  %10575 = vmatmul.mubr.msk.f32.gmra.mxu1 %vm1831_vm1, %v11845_v15  ;;  %v1795_v14 = vrot.slane %v12072_v9, 1  ;;  %v2224_v9 = vpop.f32.mrf.mxu0 }
 0x287   : > { %v4509_v10 = vrot.slane %v4508_v54, 1  ;;  %v4515_v35 = vmax.f32 %v4513_v12, %v4514_v40  ;;  %v4548_v24 = vmax.f32 %v4546_v38, %v4547_v29  ;;  %v4554_v41 = vrot.slane %v4553_v48, 4  ;;  %10577 = vmatprep.mubr.msk.f32.mxu1 %vm1831_vm1, %v11878_v43  ;;  %v12179_v20 = vpop.trf.xlu1 }
 0x288   : > { %v4149_v25 = vcombine.high %v3896_v62, %v3896_v62  ;;  %v4532_v39 = vsel %vm4391_vm3, %v3896_v62, -inf  ;;  %v1792_v13 = vsel %vm1575_vm2, %v1789_v6, %v1791_v53 }
 0x289   : > { %v12159_v42 = vmax.f32 %v4508_v54, %v4509_v10  ;;  %v4516_v12 = vrot.slane %v4515_v35, 1  ;;  %v4549_v51 = vrot.slane %v4548_v24, 2  ;;  %v12161_v38 = vmax.f32 %v4553_v48, %v4554_v41  ;;  %10367 = vmatmul.mubr.msk.f32.gmra.mxu0 %vm1831_vm1, %v1792_v13 }
 0x28a   : > { %v4533_v22 = vrot.slane %v4532_v39, 4  ;;  %v4539_v40 = vsel %vm4391_vm3, %v4149_v25, -inf  ;;  %10578 = vmatmul.mubr.msk.f32.gmra.mxu1 %vm1831_vm1, %v11912_v16  ;;  %10369 = vmatprep.mubr.msk.f32.mxu0 %vm1831_vm1, %v1794_v26  ;;  %v3180_v10 = vadd.f32 %v10423_v0, %v12103_v34  ;;  %v1797_v41 = vrot.slane %v12093_v28, 1  ;;  %v10233_v28 = vpop.f32.mrf.mxu0 }
 0x28b   : > { %v12173_v54 = vmax.f32 %v4515_v35, %v4516_v12  ;;  %v4550_v29 = vmax.f32 %v4548_v24, %v4549_v51  ;;  %v4540_v62 = vrot.slane %v4539_v40, 4  ;;  %10580 = vmatprep.mubr.msk.f32.mxu1 %vm1831_vm1, %v12002_v21  ;;  %v1796_v35 = vsel %vm1575_vm2, %v1793_v4, %v1795_v14  ;;  %v3184_v24 = vpop.f32.mrf.mxu1 }
 0x28c   : > { %v4534_v53 = vmax.f32 %v4532_v39, %v4533_v22  ;;  %v3175_v51 = vadd.f32 %v3174_v59, %v2214_v57  ;;  %v3772_v0 = vadd.f32 %v11827_v11, %v3180_v10  ;;  %v1800_v34 = vsel %vm1575_vm2, %v1797_v41, %v1799_v18 }
 0x28d   : > { %15785 = vst [vmem:[#allocation11_spill] sm:$0xff] %v12173_v54  ;;  %v12189_v25 = vsel %vm6424_vm4, %v12173_v54, %v12159_v42  ;;  %v4551_v13 = vrot.slane %v4550_v29, 1  ;;  %v4541_v12 = vmax.f32 %v4539_v40, %v4540_v62  ;;  %10370 = vmatmul.mubr.msk.f32.gmra.mxu0 %vm1831_vm1, %v1796_v35  ;;  %v1798_v57 = vsel %vm1575_vm2, %v1795_v14, %v1797_v41  ;;  %v10429_v26 = vpop.f32.mrf.mxu1 }
 0x28e   : > { %v4535_v39 = vrot.slane %v4534_v53, 2  ;;  %10581 = vmatmul.mubr.msk.f32.gmra.mxu1 %vm1831_vm1, %v12031_v44  ;;  %v3771_v40 = vadd.f32 %v11827_v11, %v3175_v51  ;;  %v3899_v3 = vmax.f32 %v3772_v0, 0.0  ;;  %10372 = vmatprep.mubr.msk.f32.mxu0 %vm1831_vm1, %v1798_v57  ;;  %v3190_v18 = vadd.f32 %v10426_v7, %v10230_v52  ;;  %v12210_v51 = vpop.trf.xlu1 }
 0x28f   : > { %v12199_v4 = vmax.f32 %v4550_v29, %v4551_v13  ;;  %v4542_v22 = vrot.slane %v4541_v12, 2  ;;  %10583 = vmatprep.mubr.msk.f32.mxu1 %vm1831_vm1, %v12050_v5  ;;  %v3185_v62 = vadd.f32 %v3184_v24, %v2224_v9  ;;  %v3200_v13 = vadd.f32 %v10429_v26, %v10233_v28 }
 0x290   : > { %v4536_v59 = vmax.f32 %v4534_v53, %v4535_v39  ;;  %v3898_v35 = vmax.f32 %v3771_v40, 0.0  ;;  %v4152_v41 = vcombine.high %v3899_v3, %v3899_v3  ;;  %v4574_v53 = vsel %vm4391_vm3, %v3899_v3, -inf }
 0x291   : > { %v12206_v10 = vmax.f32 %v4541_v12, %v4542_v22  ;;  %10373 = vmatmul.mubr.msk.f32.gmra.mxu0 %vm1831_vm1, %v1800_v34  ;;  %v3774_v39 = vadd.f32 %v11827_v11, %v3190_v18  ;;  %v4575_v7 = vrot.slane %v4574_v53, 4  ;;  %v3773_v57 = vadd.f32 %v11827_v11, %v3185_v62 }
 0x292   : > { %v4537_v14 = vrot.slane %v4536_v59, 1  ;;  %10375 = vmatprep.mubr.msk.f32.mxu0 %vm1831_vm1, %v11883_v50  ;;  %10584 = vmatmul.mubr.msk.f32.gmra.mxu1 %vm1831_vm1, %v12076_v8  ;;  %v4151_v9 = vcombine.high %v3898_v35, %v3898_v35  ;;  %v4560_v24 = vsel %vm4391_vm3, %v3898_v35, -inf  ;;  %v4581_v0 = vsel %vm4391_vm3, %v4152_v41, -inf }
 0x293   : > { %10586 = vmatprep.mubr.msk.f32.mxu1 %vm1831_vm1, %v12113_v19  ;;  %v4561_v34 = vrot.slane %v4560_v24, 4  ;;  %v3901_v28 = vmax.f32 %v3774_v39, 0.0  ;;  %v4576_v22 = vmax.f32 %v4574_v53, %v4575_v7  ;;  %v4582_v50 = vrot.slane %v4581_v0, 4  ;;  %v12234_v39 = vpop.trf.xlu1 }
 0x294   : > { %v12222_v12 = vmax.f32 %v4536_v59, %v4537_v14  ;;  %v4567_v40 = vsel %vm4391_vm3, %v4151_v9, -inf  ;;  %v3900_v53 = vmax.f32 %v3773_v57, 0.0  ;;  %v3776_v9 = vadd.f32 %v11827_v11, %v3200_v13 }
 0x295   : > { %10376 = vmatmul.mubr.msk.f32.gmra.mxu0 %vm1831_vm1, %v11886_v37  ;;  %v4562_v3 = vmax.f32 %v4560_v24, %v4561_v34  ;;  %v4568_v18 = vrot.slane %v4567_v40, 4  ;;  %v4154_v26 = vcombine.high %v3901_v28, %v3901_v28  ;;  %v4602_v35 = vsel %vm4391_vm3, %v3901_v28, -inf }
 0x296   : > { %10378 = vmatprep.mubr.msk.f32.mxu0 %vm1831_vm1, %v11903_v61  ;;  %10587 = vmatmul.mubr.msk.f32.gmra.mxu1 %vm1831_vm1, %v12142_v33  ;;  %v4577_v59 = vrot.slane %v4576_v22, 2  ;;  %v4583_v14 = vmax.f32 %v4581_v0, %v4582_v50  ;;  %v4603_v41 = vrot.slane %v4602_v35, 4  ;;  %v4153_v0 = vcombine.high %v3900_v53, %v3900_v53 }
 0x297   : > { %10589 = vmatprep.mubr.msk.f32.mxu1 %vm1831_vm1, %v12179_v20  ;;  %v4563_v37 = vrot.slane %v4562_v3, 2  ;;  %v4569_v62 = vmax.f32 %v4567_v40, %v4568_v18  ;;  %v4609_v7 = vsel %vm4391_vm3, %v4154_v26, -inf  ;;  %v4588_v50 = vsel %vm4391_vm3, %v3900_v53, -inf }
 0x298   : > { %v4578_v24 = vmax.f32 %v4576_v22, %v4577_v59  ;;  %v4584_v61 = vrot.slane %v4583_v14, 2  ;;  %v4604_v34 = vmax.f32 %v4602_v35, %v4603_v41  ;;  %v4610_v28 = vrot.slane %v4609_v7, 4 }
 0x299   : > { %v4564_v48 = vmax.f32 %v4562_v3, %v4563_v37  ;;  %v4570_v52 = vrot.slane %v4569_v62, 2  ;;  %v4589_v18 = vrot.slane %v4588_v50, 4  ;;  %v4595_v26 = vsel %vm4391_vm3, %v4153_v0, -inf  ;;  %v2234_v3 = vpop.f32.mrf.mxu0  ;;  %v12248_v37 = vpop.trf.xlu1 }
 0x29a   : > { %10590 = vmatmul.mubr.msk.f32.gmra.mxu1 %vm1831_vm1, %v12210_v51  ;;  %v4579_v57 = vrot.slane %v4578_v24, 1  ;;  %v4585_v29 = vmax.f32 %v4583_v14, %v4584_v61  ;;  %v4605_v36 = vrot.slane %v4604_v34, 2  ;;  %v4611_v40 = vmax.f32 %v4609_v7, %v4610_v28  ;;  %v3194_v28 = vpop.f32.mrf.mxu1 }
 0x29b   : > { %10592 = vmatprep.mubr.msk.f32.mxu1 %vm1831_vm1, %v12234_v39  ;;  %v4565_v13 = vrot.slane %v4564_v48, 1  ;;  %v4571_v22 = vmax.f32 %v4569_v62, %v4570_v52  ;;  %v4590_v7 = vmax.f32 %v4588_v50, %v4589_v18  ;;  %v4596_v61 = vrot.slane %v4595_v26, 4  ;;  %v10236_v54 = vpop.f32.mrf.mxu0 }
 0x29c   : > { %v12246_v35 = vmax.f32 %v4578_v24, %v4579_v57  ;;  %v4586_v59 = vrot.slane %v4585_v29, 1  ;;  %v4606_v41 = vmax.f32 %v4604_v34, %v4605_v36  ;;  %v4612_v53 = vrot.slane %v4611_v40, 2 }
 0x29d   : > { %v12250_v6 = vmax.f32 %v4564_v48, %v4565_v13  ;;  %v4572_v14 = vrot.slane %v4571_v22, 1  ;;  %v3903_v24 = vmax.f32 %v3776_v9, 0.0  ;;  %v4591_v36 = vrot.slane %v4590_v7, 2 }
 0x29e   : > { %15786 = vst [vmem:[#allocation12_spill] sm:$0xff] %v12246_v35  ;;  %10593 = vmatmul.mubr.msk.f32.gmra.mxu1 %vm1831_vm1, %v12248_v37  ;;  %v12254_v52 = vmax.f32 %v4585_v29, %v4586_v59  ;;  %v4607_v62 = vrot.slane %v4606_v41, 1  ;;  %v12256_v0 = vmax.f32 %v4611_v40, %v4612_v53  ;;  %v4597_v34 = vmax.f32 %v4595_v26, %v4596_v61  ;;  %v10432_v26 = vpop.f32.mrf.mxu1 }
 0x29f   : > { %15787 = vst [vmem:[#allocation13_spill] sm:$0xff] %v12250_v6  ;;  %v4573_v57 = vmax.f32 %v4571_v22, %v4572_v14  ;;  %v3195_v27 = vadd.f32 %v3194_v28, %v2234_v3  ;;  %v4156_v13 = vcombine.high %v3903_v24, %v3903_v24  ;;  %v4630_v18 = vsel %vm4391_vm3, %v3903_v24, -inf  ;;  %v2244_v24 = vpop.f32.mrf.mxu0 }
 0x2a0   : > { %15788 = vst [vmem:[#allocation14_spill] sm:$0xff] %v12254_v52  ;;  %v12258_v48 = vmax.f32 %v4606_v41, %v4607_v62  ;;  %v4592_v9 = vmax.f32 %v4590_v7, %v4591_v36  ;;  %v4598_v22 = vrot.slane %v4597_v34, 2  ;;  %v4631_v3 = vrot.slane %v4630_v18, 4 }
 0x2a1   : > { %v12264_v29 = vsel %vm6424_vm4, %v12246_v35, %v4573_v57  ;;  %v12268_v40 = vsel %vm6424_vm4, %v4573_v57, %v12250_v6  ;;  %v4637_v59 = vsel %vm4391_vm3, %v4156_v13, -inf  ;;  %v3775_v41 = vadd.f32 %v11827_v11, %v3195_v27 }
 0x2a2   : > { %15789 = vst [vmem:[#allocation15_spill] sm:$0xff] %v12258_v48  ;;  %15790 = vst [vmem:[#allocation16_spill] sm:$0xff] %v12264_v29  ;;  %v4593_v14 = vrot.slane %v4592_v9, 1  ;;  %v4599_v61 = vmax.f32 %v4597_v34, %v4598_v22  ;;  %v4638_v28 = vrot.slane %v4637_v59, 4  ;;  %v3210_v62 = vadd.f32 %v10432_v26, %v10236_v54  ;;  %v3204_v54 = vpop.f32.mrf.mxu1 }
 0x2a3   : > { %v4632_v50 = vmax.f32 %v4630_v18, %v4631_v3  ;;  %v3902_v29 = vmax.f32 %v3775_v41, 0.0  ;;  %v15791_v57 = vrot.slane %v11878_v43, 1  ;;  %v15792_v7 = vrot.slane %v11845_v15, 1 }
 0x2a4   : > { %v15793_v6 = vrot.slane %v11912_v16, 1  ;;  %v12283_v53 = vmax.f32 %v4592_v9, %v4593_v14  ;;  %v4600_v34 = vrot.slane %v4599_v61, 1  ;;  %v4639_v22 = vmax.f32 %v4637_v59, %v4638_v28  ;;  %v10239_v14 = vpop.f32.mrf.mxu0 }
 0x2a5   : > { %v1808_v36 = vsel %vm1575_vm2, %v15792_v7, %v15791_v57  ;;  %v15794_v13 = vmov %v15791_v57  ;;  %v3778_v18 = vadd.f32 %v11827_v11, %v3210_v62  ;;  %v4633_v26 = vrot.slane %v4632_v50, 2  ;;  %v12295_v11 = vld [vmem:[%s15730_s4] ss:$0 sm:$0xff] }
 0x2a6   : > { %v1810_v27 = vsel %vm1575_vm2, %v15794_v13, %v15793_v6  ;;  %15795 = vst [vmem:[#allocation17_spill] sm:$0xff] %v12283_v53  ;;  %10379 = vmatmul.mubr.msk.f32.gmra.mxu0 %vm1831_vm1, %v1808_v36  ;;  %v4155_v3 = vcombine.high %v3902_v29, %v3902_v29  ;;  %v4616_v15 = vsel %vm4391_vm3, %v3902_v29, -inf  ;;  %v3205_v41 = vadd.f32 %v3204_v54, %v2244_v24  ;;  %v10435_v13 = vpop.f32.mrf.mxu1 }
 0x2a7   : > { %10381 = vmatprep.mubr.msk.f32.mxu0 %vm1831_vm1, %v1810_v27  ;;  %v12289_v57 = vmax.f32 %v4599_v61, %v4600_v34  ;;  %v4640_v43 = vrot.slane %v4639_v22, 2  ;;  %v4617_v6 = vrot.slane %v4616_v15, 4  ;;  %v3905_v9 = vmax.f32 %v3778_v18, 0.0 }
 0x2a8   : > { %v4634_v7 = vmax.f32 %v4632_v50, %v4633_v26  ;;  %v4623_v59 = vsel %vm4391_vm3, %v4155_v3, -inf  ;;  %v3777_v28 = vadd.f32 %v12295_v11, %v3205_v41  ;;  %v3220_v54 = vadd.f32 %v10435_v13, %v10239_v14 }
 0x2a9   : > { %15796 = vst [vmem:[#allocation18_spill] sm:$0xff] %v12289_v57  ;;  %v4641_v62 = vmax.f32 %v4639_v22, %v4640_v43  ;;  %v4618_v24 = vmax.f32 %v4616_v15, %v4617_v6  ;;  %v4624_v61 = vrot.slane %v4623_v59, 4  ;;  %v4158_v36 = vcombine.high %v3905_v9, %v3905_v9  ;;  %v2254_v57 = vpop.f32.mrf.mxu0 }
 0x2aa   : > { %v4635_v27 = vrot.slane %v4634_v7, 1  ;;  %v4658_v34 = vsel %vm4391_vm3, %v3905_v9, -inf  ;;  %v3904_v50 = vmax.f32 %v3777_v28, 0.0  ;;  %v3214_v9 = vpop.f32.mrf.mxu1 }
 0x2ab   : > { %v4642_v18 = vrot.slane %v4641_v62, 1  ;;  %v4619_v26 = vrot.slane %v4618_v24, 2  ;;  %v4625_v3 = vmax.f32 %v4623_v59, %v4624_v61  ;;  %v4659_v48 = vrot.slane %v4658_v34, 4 }
 0x2ac   : > { %v12300_v53 = vmax.f32 %v4634_v7, %v4635_v27  ;;  %v4665_v41 = vsel %vm4391_vm3, %v4158_v36, -inf  ;;  %v4157_v29 = vcombine.high %v3904_v50, %v3904_v50  ;;  %v4644_v22 = vsel %vm4391_vm3, %v3904_v50, -inf  ;;  %v10242_v36 = vpop.f32.mrf.mxu0 }
 0x2ad   : > { %v12304_v15 = vmax.f32 %v4641_v62, %v4642_v18  ;;  %v4620_v43 = vmax.f32 %v4618_v24, %v4619_v26  ;;  %v4626_v6 = vrot.slane %v4625_v3, 2  ;;  %v4660_v52 = vmax.f32 %v4658_v34, %v4659_v48 }
 0x2ae   : > { %15797 = vst [vmem:[#allocation19_spill] sm:$0xff] %v12300_v53  ;;  %v4666_v28 = vrot.slane %v4665_v41, 4  ;;  %v4645_v14 = vrot.slane %v4644_v22, 4  ;;  %v4651_v13 = vsel %vm4391_vm3, %v4157_v29, -inf  ;;  %v3780_v59 = vadd.f32 %v12295_v11, %v3220_v54 }
 0x2af   : > { %15798 = vst [vmem:[#allocation20_spill] sm:$0xff] %v12304_v15  ;;  %v4621_v61 = vrot.slane %v4620_v43, 1  ;;  %v4627_v7 = vmax.f32 %v4625_v3, %v4626_v6  ;;  %v4661_v27 = vrot.slane %v4660_v52, 2  ;;  %v4652_v53 = vrot.slane %v4651_v13, 4  ;;  %v10438_v3 = vpop.f32.mrf.mxu1 }
 0x2b0   : > { %v12308_v35 = vmax.f32 %v4665_v41, %v4666_v28  ;;  %v4646_v50 = vmax.f32 %v4644_v22, %v4645_v14  ;;  %v3907_v62 = vmax.f32 %v3780_v59, 0.0  ;;  %v15799_v24 = vrot.slane %v12002_v21, 1 }
 0x2b1   : > { %v15800_v48 = vrot.slane %v11912_v16, 1  ;;  %v12315_v18 = vmax.f32 %v4620_v43, %v4621_v61  ;;  %v4628_v29 = vrot.slane %v4627_v7, 1  ;;  %v4662_v26 = vmax.f32 %v4660_v52, %v4661_v27 }
 0x2b2   : > { %v4653_v54 = vmax.f32 %v4651_v13, %v4652_v53  ;;  %v4647_v41 = vrot.slane %v4646_v50, 2  ;;  %v4160_v28 = vcombine.high %v3907_v62, %v3907_v62  ;;  %v4686_v22 = vsel %vm4391_vm3, %v3907_v62, -inf }
 0x2b3   : > { %v1812_v34 = vsel %vm1575_vm2, %v15800_v48, %v15799_v24  ;;  %15801 = vst [vmem:[#allocation21_spill] sm:$0xff] %v12315_v18  ;;  %v12320_v14 = vmax.f32 %v4627_v7, %v4628_v29  ;;  %v4663_v59 = vrot.slane %v4662_v26, 1  ;;  %v4687_v15 = vrot.slane %v4686_v22, 4  ;;  %v2264_v24 = vpop.f32.mrf.mxu0 }
 0x2b4   : > { %10382 = vmatmul.mubr.msk.f32.gmra.mxu0 %vm1831_vm1, %v1812_v34  ;;  %v4654_v16 = vrot.slane %v4653_v54, 2  ;;  %v4648_v43 = vmax.f32 %v4646_v50, %v4647_v41  ;;  %v4693_v61 = vsel %vm4391_vm3, %v4160_v28, -inf  ;;  %v15803_v52 = vrot.slane %v12031_v44, 1  ;;  %v3224_v50 = vpop.f32.mrf.mxu1 }
 0x2b5   : > { %15802 = vst [vmem:[#allocation22_spill] sm:$0xff] %v12320_v14  ;;  %v15804_v53 = vrot.slane %v12002_v21, 1  ;;  %v3215_v27 = vadd.f32 %v3214_v9, %v2254_v57  ;;  %v12331_v62 = vsel %vm6424_vm4, %v12320_v14, %v12315_v18  ;;  %v12333_v7 = vmax.f32 %v4662_v26, %v4663_v59 }
 0x2b6   : > { %15805 = vst [vmem:[#allocation23_spill] sm:$0xff] %v12331_v62  ;;  %v12335_v48 = vmax.f32 %v4653_v54, %v4654_v16  ;;  %v4688_v34 = vmax.f32 %v4686_v22, %v4687_v15  ;;  %v4649_v29 = vrot.slane %v4648_v43, 1  ;;  %v4694_v41 = vrot.slane %v4693_v61, 4  ;;  %v10245_v15 = vpop.f32.mrf.mxu0  ;;  %v10441_v57 = vpop.f32.mrf.mxu1 }
 0x2b7   : > { %v1814_v13 = vsel %vm1575_vm2, %v15804_v53, %v15803_v52  ;;  %15806 = vst [vmem:[#allocation24_spill] sm:$0xff] %v12333_v7  ;;  %v3779_v21 = vadd.f32 %v12295_v11, %v3215_v27  ;;  %v3230_v52 = vadd.f32 %v10438_v3, %v10242_v36  ;;  %v15807_v53 = vrot.slane %v12050_v5, 1 }
 0x2b8   : > { %10384 = vmatprep.mubr.msk.f32.mxu0 %vm1831_vm1, %v1814_v13  ;;  %v4689_v9 = vrot.slane %v4688_v34, 2  ;;  %v15808_v26 = vrot.slane %v12031_v44, 1  ;;  %v12346_v22 = vmax.f32 %v4648_v43, %v4649_v29  ;;  %v4695_v59 = vmax.f32 %v4693_v61, %v4694_v41 }
 0x2b9   : > { %v3906_v16 = vmax.f32 %v3779_v21, 0.0  ;;  %v15810_v13 = vrot.slane %v12076_v8, 1  ;;  %v15811_v27 = vmov %v15807_v53  ;;  %v3782_v3 = vadd.f32 %v12295_v11, %v3230_v52 }
 0x2ba   : > { %v1816_v54 = vsel %vm1575_vm2, %v15808_v26, %v15807_v53  ;;  %15809 = vst [vmem:[#allocation25_spill] sm:$0xff] %v12346_v22  ;;  %v4690_v36 = vmax.f32 %v4688_v34, %v4689_v9  ;;  %v3225_v44 = vadd.f32 %v3224_v50, %v2264_v24  ;;  %v4696_v29 = vrot.slane %v4695_v59, 2 }
 0x2bb   : > { %10385 = vmatmul.mubr.msk.f32.gmra.mxu0 %vm1831_vm1, %v1816_v54  ;;  %v1818_v6 = vsel %vm1575_vm2, %v15811_v27, %v15810_v13  ;;  %v4159_v61 = vcombine.high %v3906_v16, %v3906_v16  ;;  %v4672_v41 = vsel %vm4391_vm3, %v3906_v16, -inf  ;;  %v3240_v21 = vadd.f32 %v10441_v57, %v10245_v15 }
 0x2bc   : > { %10387 = vmatprep.mubr.msk.f32.mxu0 %vm1831_vm1, %v1818_v6  ;;  %v4691_v53 = vrot.slane %v4690_v36, 1  ;;  %v4673_v26 = vrot.slane %v4672_v41, 4  ;;  %v3909_v54 = vmax.f32 %v3782_v3, 0.0  ;;  %v3781_v5 = vadd.f32 %v12295_v11, %v3225_v44 }
 0x2bd   : > { %v4697_v13 = vmax.f32 %v4695_v59, %v4696_v29  ;;  %v4679_v34 = vsel %vm4391_vm3, %v4159_v61, -inf  ;;  %v3784_v9 = vadd.f32 %v12295_v11, %v3240_v21  ;;  %v15812_v6 = vrot.slane %v12113_v19, 1 }
 0x2be   : > { %v15813_v24 = vrot.slane %v12076_v8, 1  ;;  %v12366_v52 = vmax.f32 %v4690_v36, %v4691_v53  ;;  %v4674_v16 = vmax.f32 %v4672_v41, %v4673_v26  ;;  %v4680_v57 = vrot.slane %v4679_v34, 4  ;;  %v2274_v53 = vpop.f32.mrf.mxu0 }
 0x2bf   : > { %v4162_v15 = vcombine.high %v3909_v54, %v3909_v54  ;;  %v4698_v27 = vrot.slane %v4697_v13, 1  ;;  %v4714_v59 = vsel %vm4391_vm3, %v3909_v54, -inf  ;;  %v3908_v3 = vmax.f32 %v3781_v5, 0.0 }
 0x2c0   : > { %v1820_v50 = vsel %vm1575_vm2, %v15813_v24, %v15812_v6  ;;  %v3911_v44 = vmax.f32 %v3784_v9, 0.0  ;;  %v4675_v29 = vrot.slane %v4674_v16, 2  ;;  %v4681_v61 = vmax.f32 %v4679_v34, %v4680_v57  ;;  %v3234_v9 = vpop.f32.mrf.mxu1 }
 0x2c1   : > { %10388 = vmatmul.mubr.msk.f32.gmra.mxu0 %vm1831_vm1, %v1820_v50  ;;  %v4715_v21 = vrot.slane %v4714_v59, 4  ;;  %v4721_v43 = vsel %vm4391_vm3, %v4162_v15, -inf  ;;  %v12371_v8 = vmax.f32 %v4697_v13, %v4698_v27  ;;  %v4161_v36 = vcombine.high %v3908_v3, %v3908_v3 }
 0x2c2   : > { %v4722_v6 = vrot.slane %v4721_v43, 4  ;;  %v4700_v41 = vsel %vm4391_vm3, %v3908_v3, -inf  ;;  %v12374_v26 = vmax.f32 %v4674_v16, %v4675_v29  ;;  %v4682_v24 = vrot.slane %v4681_v61, 2  ;;  %v10248_v29 = vpop.f32.mrf.mxu0 }
 0x2c3   : > { %15814 = vst [vmem:[#allocation26_spill] sm:$0xff] %v12371_v8  ;;  %v4716_v50 = vmax.f32 %v4714_v59, %v4715_v21  ;;  %v4701_v28 = vrot.slane %v4700_v41, 4  ;;  %v4707_v5 = vsel %vm4391_vm3, %v4161_v36, -inf  ;;  %v4164_v34 = vcombine.high %v3911_v44, %v3911_v44 }
 0x2c4   : > { %15815 = vst [vmem:[#allocation27_spill] sm:$0xff] %v12374_v26  ;;  %v4723_v54 = vmax.f32 %v4721_v43, %v4722_v6  ;;  %v4742_v57 = vsel %vm4391_vm3, %v3911_v44, -inf  ;;  %v4683_v15 = vmax.f32 %v4681_v61, %v4682_v24  ;;  %v4708_v8 = vrot.slane %v4707_v5, 4 }
 0x2c5   : > { %v4717_v13 = vrot.slane %v4716_v50, 2  ;;  %v4702_v27 = vmax.f32 %v4700_v41, %v4701_v28  ;;  %v4743_v14 = vrot.slane %v4742_v57, 4  ;;  %v4749_v3 = vsel %vm4391_vm3, %v4164_v34, -inf  ;;  %v10444_v41 = vpop.f32.mrf.mxu1 }
 0x2c6   : > { %v4724_v18 = vrot.slane %v4723_v54, 2  ;;  %v15816_v16 = vrot.slane %v12142_v33, 1  ;;  %v15817_v59 = vrot.slane %v12113_v19, 1  ;;  %v4684_v21 = vrot.slane %v4683_v15, 1 }
 0x2c7   : > { %v4718_v6 = vmax.f32 %v4716_v50, %v4717_v13  ;;  %v4703_v36 = vrot.slane %v4702_v27, 2  ;;  %v4709_v26 = vmax.f32 %v4707_v5, %v4708_v8  ;;  %v4744_v28 = vmax.f32 %v4742_v57, %v4743_v14  ;;  %v2284_v8 = vpop.f32.mrf.mxu0 }
 0x2c8   : > { %v1822_v43 = vsel %vm1575_vm2, %v15817_v59, %v15816_v16  ;;  %v12385_v44 = vmax.f32 %v4723_v54, %v4724_v18  ;;  %v4750_v61 = vrot.slane %v4749_v3, 4  ;;  %v3235_v24 = vadd.f32 %v3234_v9, %v2274_v53 }
 0x2c9   : > { %10390 = vmatprep.mubr.msk.f32.mxu0 %vm1831_vm1, %v1822_v43  ;;  %v12387_v34 = vmax.f32 %v4683_v15, %v4684_v21  ;;  %v4719_v7 = vrot.slane %v4718_v6, 1  ;;  %v4704_v22 = vmax.f32 %v4702_v27, %v4703_v36  ;;  %v4710_v19 = vrot.slane %v4709_v26, 2  ;;  %v3244_v15 = vpop.f32.mrf.mxu1 }
 0x2ca   : > { %v4726_v16 = vrot.slane %v12385_v44, 1  ;;  %v4745_v59 = vrot.slane %v4744_v28, 2  ;;  %v4751_v62 = vmax.f32 %v4749_v3, %v4750_v61  ;;  %v3783_v50 = vadd.f32 %v12295_v11, %v3235_v24 }
 0x2cb   : > { %v12394_v18 = vsel %vm6424_vm4, %v12366_v52, %v12387_v34  ;;  %v12396_v14 = vmax.f32 %v4718_v6, %v4719_v7  ;;  %v4705_v53 = vrot.slane %v4704_v22, 1  ;;  %v4711_v54 = vmax.f32 %v4709_v26, %v4710_v19 }
 0x2cc   : > { %v4746_v5 = vmax.f32 %v4744_v28, %v4745_v59  ;;  %v4752_v9 = vrot.slane %v4751_v62, 2  ;;  %v3910_v57 = vmax.f32 %v3783_v50, 0.0  ;;  %v1829_v13 = vrot.slane %v12248_v37, 1  ;;  %v10251_v28 = vpop.f32.mrf.mxu0 }
 0x2cd   : > { %v12399_v27 = vmax.f32 %v4704_v22, %v4705_v53  ;;  %v4712_v3 = vrot.slane %v4711_v54, 1  ;;  %v3250_v43 = vadd.f32 %v10444_v41, %v10248_v29  ;;  %v15818_v21 = vrot.slane %v12179_v20, 1  ;;  %v10447_v53 = vpop.f32.mrf.mxu1 }
 0x2ce   : > { %v15819_v36 = vrot.slane %v12142_v33, 1  ;;  %v4747_v7 = vrot.slane %v4746_v5, 1  ;;  %v4753_v6 = vmax.f32 %v4751_v62, %v4752_v9  ;;  %v4163_v24 = vcombine.high %v3910_v57, %v3910_v57 }
 0x2cf   : > { %v4728_v26 = vsel %vm4391_vm3, %v3910_v57, -inf  ;;  %v12408_v19 = vmax.f32 %v4711_v54, %v4712_v3  ;;  %v3786_v22 = vadd.f32 %v12295_v11, %v3250_v43  ;;  %v15820_v29 = vrot.slane %v12210_v51, 1 }
 0x2d0   : > { %v1824_v61 = vsel %vm1575_vm2, %v15819_v36, %v15818_v21  ;;  %v4729_v37 = vrot.slane %v4728_v26, 4  ;;  %v15821_v41 = vmov %v15818_v21  ;;  %v12416_v59 = vmax.f32 %v4746_v5, %v4747_v7 }
 0x2d1   : > { %10391 = vmatmul.mubr.msk.f32.gmra.mxu0 %vm1831_vm1, %v1824_v61  ;;  %v1826_v33 = vsel %vm1575_vm2, %v15821_v41, %v15820_v29  ;;  %v4754_v62 = vrot.slane %v4753_v6, 1  ;;  %v4735_v50 = vsel %vm4391_vm3, %v4163_v24, -inf  ;;  %v3245_v9 = vadd.f32 %v3244_v15, %v2284_v8 }
 0x2d2   : > { %10393 = vmatprep.mubr.msk.f32.mxu0 %vm1831_vm1, %v1826_v33  ;;  %v4730_v54 = vmax.f32 %v4728_v26, %v4729_v37  ;;  %v4736_v57 = vrot.slane %v4735_v50, 4  ;;  %v3913_v3 = vmax.f32 %v3786_v22, 0.0  ;;  %v3260_v21 = vadd.f32 %v10447_v53, %v10251_v28 }
 0x2d3   : > { %v12420_v43 = vmax.f32 %v4753_v6, %v4754_v62  ;;  %v3785_v36 = vadd.f32 %v12295_v11, %v3245_v9  ;;  %v15822_v20 = vrot.slane %v12234_v39, 1  ;;  %v15823_v5 = vmov %v15820_v29 }
 0x2d4   : > { %v4731_v29 = vrot.slane %v4730_v54, 2  ;;  %v4737_v8 = vmax.f32 %v4735_v50, %v4736_v57  ;;  %v4166_v15 = vcombine.high %v3913_v3, %v3913_v3  ;;  %v4770_v26 = vsel %vm4391_vm3, %v3913_v3, -inf }
 0x2d5   : > { %v1828_v61 = vsel %vm1575_vm2, %v15823_v5, %v15822_v20  ;;  %v15824_v7 = vmov %v15822_v20  ;;  %v4771_v6 = vrot.slane %v4770_v26, 4  ;;  %v3912_v28 = vmax.f32 %v3785_v36, 0.0 }
 0x2d6   : > { %v1830_v24 = vsel %vm1575_vm2, %v15824_v7, %v1829_v13  ;;  %10394 = vmatmul.mubr.msk.f32.gmra.mxu0 %vm1831_vm1, %v1828_v61  ;;  %v3788_v37 = vadd.f32 %v12295_v11, %v3260_v21  ;;  %v15825_v51 = vrot.slane %v11987_v56, 1  ;;  %v12440_v39 = vmax.f32 %v4730_v54, %v4731_v29 }
 0x2d7   : > { %10396 = vmatprep.mubr.msk.f32.mxu0 %vm1831_vm1, %v1830_v24  ;;  %v4738_v41 = vrot.slane %v4737_v8, 2  ;;  %v4777_v33 = vsel %vm4391_vm3, %v4166_v15, -inf  ;;  %v15826_v62 = vrot.slane %v11962_v17, 2  ;;  %v4772_v53 = vmax.f32 %v4770_v26, %v4771_v6  ;;  %v2294_v26 = vpop.f32.mrf.mxu0 }
 0x2d8   : > { %v12438_v22 = vmax.f32 %v11987_v56, %v15825_v51  ;;  %v4778_v9 = vrot.slane %v4777_v33, 4  ;;  %v4165_v57 = vcombine.high %v3912_v28, %v3912_v28  ;;  %v4756_v3 = vsel %vm4391_vm3, %v3912_v28, -inf }
 0x2d9   : > { %v4445_v50 = vmax.f32 %v11962_v17, %v15826_v62  ;;  %v4739_v36 = vmax.f32 %v4737_v8, %v4738_v41  ;;  %v4757_v20 = vrot.slane %v4756_v3, 4  ;;  %v3915_v56 = vmax.f32 %v3788_v37, 0.0  ;;  %v10254_v28 = vpop.f32.mrf.mxu0 }
 0x2da   : > { %10397 = vmatmul.mubr.msk.f32.gmra.mxu0 %vm1831_vm1, %v1829_v13  ;;  %v4773_v54 = vrot.slane %v4772_v53, 2  ;;  %v12449_v5 = vmax.f32 %v4777_v33, %v4778_v9  ;;  %v4763_v61 = vsel %vm4391_vm3, %v4165_v57, -inf  ;;  %v3254_v33 = vpop.f32.mrf.mxu1  ;;  %vm8948_vm2 = vcmask 1042432  }
 0x2db   : > { %v4446_v7 = vrot.slane %v4445_v50, 1  ;;  %v4740_v24 = vrot.slane %v4739_v36, 1  ;;  %v4758_v17 = vmax.f32 %v4756_v3, %v4757_v20  ;;  %v4764_v29 = vrot.slane %v4763_v61, 4 }
 0x2dc   : > { %v4168_v15 = vcombine.high %v3915_v56, %v3915_v56  ;;  %v4774_v6 = vmax.f32 %v4772_v53, %v4773_v54  ;;  %v4798_v8 = vsel %vm4391_vm3, %v3915_v56, -inf }
 0x2dd   : > { %v12454_v51 = vmax.f32 %v4445_v50, %v4446_v7  ;;  %v12456_v37 = vmax.f32 %v4739_v36, %v4740_v24  ;;  %v4759_v13 = vrot.slane %v4758_v17, 2  ;;  %v4765_v41 = vmax.f32 %v4763_v61, %v4764_v29  ;;  %v10450_v24 = vpop.f32.mrf.mxu1 }
 0x2de   : > { %v4799_v62 = vrot.slane %v4798_v8, 4  ;;  %v4775_v9 = vrot.slane %v4774_v6, 1  ;;  %v4805_v57 = vsel %vm4391_vm3, %v4168_v15, -inf  ;;  %v6942_v50 = vsel %vm6426_vm5, %v11949_v55, %v11979_v23 }
 0x2df   : > { %v4760_v3 = vmax.f32 %v4758_v17, %v4759_v13  ;;  %v4766_v20 = vrot.slane %v4765_v41, 2  ;;  %v4806_v54 = vrot.slane %v4805_v57, 4  ;;  %v6943_v17 = vsel %vm6428_vm6, %v11958_v1, %v6942_v50 }
 0x2e0   : > { %v4800_v53 = vmax.f32 %v4798_v8, %v4799_v62  ;;  %v12459_v21 = vmax.f32 %v4774_v6, %v4775_v9  ;;  %v3255_v29 = vadd.f32 %v3254_v33, %v2294_v26  ;;  %v3270_v15 = vadd.f32 %v10450_v24, %v10254_v28 }
 0x2e1   : > { %v4761_v36 = vrot.slane %v4760_v3, 1  ;;  %v12464_v56 = vmax.f32 %v4765_v41, %v4766_v20  ;;  %v4807_v7 = vmax.f32 %v4805_v57, %v4806_v54  ;;  %v6952_v6 = vsel %vm6432_vm8, %v12100_v49, %v12109_v2 }
 0x2e2   : > { %v4801_v61 = vrot.slane %v4800_v53, 2  ;;  %v6944_v41 = vsel %vm6430_vm7, %v12008_v32, %v6943_v17  ;;  %v3787_v9 = vadd.f32 %v12295_v11, %v3255_v29  ;;  %v3790_v57 = vadd.f32 %v12295_v11, %v3270_v15 }
 0x2e3   : > { %v12471_v8 = vmax.f32 %v4760_v3, %v4761_v36  ;;  %v4768_v13 = vrot.slane %v12464_v56, 1  ;;  %v4808_v62 = vrot.slane %v4807_v7, 2  ;;  %v6953_v26 = vsel %vm6434_vm9, %v12070_v58, %v6952_v6 }
 0x2e4   : > { %v4802_v23 = vmax.f32 %v4800_v53, %v4801_v61  ;;  %v6945_v49 = vsel %vm6432_vm8, %v12438_v22, %v6944_v41  ;;  %v6954_v2 = vsel %vm6436_vm10, %v12078_v30, %v6953_v26  ;;  %v3914_v20 = vmax.f32 %v3787_v9, 0.0 }
 0x2e5   : > { %v4809_v33 = vmax.f32 %v4807_v7, %v4808_v62  ;;  %v6946_v3 = vsel %vm6434_vm9, %v11997_v60, %v6945_v49  ;;  %v3917_v53 = vmax.f32 %v3790_v57, 0.0  ;;  %v6425_v54 = vsel %vm6424_vm4, %v11949_v55, %v11966_v45  ;;  %v2304_v62 = vpop.f32.mrf.mxu0  ;;  %v3264_v49 = vpop.f32.mrf.mxu1 }
 0x2e6   : > { %v4803_v28 = vrot.slane %v4802_v23, 1  ;;  %v6947_v61 = vsel %vm6436_vm10, %v12454_v51, %v6946_v3  ;;  %v6427_v7 = vsel %vm6426_vm5, %v11958_v1, %v6425_v54  ;;  %v4167_v24 = vcombine.high %v3914_v20, %v3914_v20 }
 0x2e7   : > { %v4810_v36 = vrot.slane %v4809_v33, 1  ;;  %10659 = vmatprep.mubr.msk.f32.mxu1 %vm6651_vm11, %v6947_v61  ;;  %v4784_v17 = vsel %vm4391_vm3, %v3914_v20, -inf  ;;  %v4170_v29 = vcombine.high %v3917_v53, %v3917_v53  ;;  %v4826_v15 = vsel %vm4391_vm3, %v3917_v53, -inf }
 0x2e8   : > { %v12489_v50 = vmax.f32 %v4802_v23, %v4803_v28  ;;  %v4785_v55 = vrot.slane %v4784_v17, 4  ;;  %v4827_v45 = vrot.slane %v4826_v15, 4  ;;  %10660 = vmatmul.mubr.msk.f32.vlgmr.msra.gmra.mxu1 %vm6651_vm11, %v6954_v2  ;;  %v6429_v23 = vsel %vm6428_vm6, %v12008_v32, %v6427_v7 }
 0x2e9   : > { %v12498_v6 = vmax.f32 %v4809_v33, %v4810_v36  ;;  %v4791_v1 = vsel %vm4391_vm3, %v4167_v24, -inf  ;;  %v4833_v41 = vsel %vm4391_vm3, %v4170_v29, -inf  ;;  %v6431_v9 = vsel %vm6430_vm7, %v12438_v22, %v6429_v23 }
 0x2ea   : > { %v15827_v57 = vrot.slane %v12206_v10, 1  ;;  %v4786_v28 = vmax.f32 %v4784_v17, %v4785_v55  ;;  %v4792_v33 = vrot.slane %v4791_v1, 4  ;;  %v4828_v2 = vmax.f32 %v4826_v15, %v4827_v45 }
 0x2eb   : > { %v4834_v3 = vrot.slane %v4833_v41, 4  ;;  %v6433_v32 = vsel %vm6432_vm8, %v11997_v60, %v6431_v9  ;;  %v15828_v20 = vrot.slane %v12161_v38, 2  ;;  %v6956_v22 = vsel %vm6426_vm5, %v12140_v47, %v12189_v25  ;;  %v10257_v25 = vpop.f32.mrf.mxu0 }
 0x2ec   : > { %v12510_v26 = vmax.f32 %v12206_v10, %v15827_v57  ;;  %v3265_v54 = vadd.f32 %v3264_v49, %v2304_v62  ;;  %v4787_v36 = vrot.slane %v4786_v28, 2  ;;  %v4793_v10 = vmax.f32 %v4791_v1, %v4792_v33  ;;  %v10453_v33 = vpop.f32.mrf.mxu1 }
 0x2ed   : > { %v4557_v53 = vmax.f32 %v12161_v38, %v15828_v20  ;;  %v4829_v61 = vrot.slane %v4828_v2, 2  ;;  %v4835_v7 = vmax.f32 %v4833_v41, %v4834_v3  ;;  %v6435_v24 = vsel %vm6434_vm9, %v12454_v51, %v6433_v32 }
 0x2ee   : > { %v6957_v60 = vsel %vm6428_vm6, %v12144_v31, %v6956_v22  ;;  %v3789_v29 = vadd.f32 %v12295_v11, %v3265_v54  ;;  %v12525_v15 = vmax.f32 %v4786_v28, %v4787_v36  ;;  %v4794_v38 = vrot.slane %v4793_v10, 2 }
 0x2ef   : > { %v4558_v17 = vrot.slane %v4557_v53, 1  ;;  %v4830_v55 = vmax.f32 %v4828_v2, %v4829_v61  ;;  %v4836_v45 = vrot.slane %v4835_v7, 2  ;;  %v6437_v23 = vsel %vm6436_vm10, %v12045_v46, %v6435_v24 }
 0x2f0   : > { %v6958_v51 = vsel %vm6430_vm7, %v12222_v12, %v6957_v60  ;;  %v3916_v1 = vmax.f32 %v3789_v29, 0.0  ;;  %v4795_v41 = vmax.f32 %v4793_v10, %v4794_v38  ;;  %10603 = vmatprep.mubr.msk.f32.mxu0 %vm6651_vm11, %v6437_v23  ;;  %v3280_v3 = vadd.f32 %v10453_v33, %v10257_v25  ;;  %v15830_v25 = vld [vmem:[#allocation12_spill] sm:$0xff]  ;;  %v15831_v23 = vld [vmem:[#allocation14_spill] sm:$0xff] }
 0x2f1   : > { %v12529_v62 = vmax.f32 %v4557_v53, %v4558_v17  ;;  %v4831_v9 = vrot.slane %v4830_v55, 1  ;;  %v12533_v57 = vmax.f32 %v4835_v7, %v4836_v45  ;;  %v6959_v28 = vsel %vm6432_vm8, %v12510_v26, %v6958_v51  ;;  %v15832_v51 = vld [vmem:[#allocation11_spill] sm:$0xff] }
 0x2f2   : > { %v6960_v49 = vsel %vm6434_vm9, %v12199_v4, %v6959_v28  ;;  %v4169_v46 = vcombine.high %v3916_v1, %v3916_v1  ;;  %v4812_v2 = vsel %vm4391_vm3, %v3916_v1, -inf  ;;  %v4796_v32 = vrot.slane %v4795_v41, 1 }
 0x2f3   : > { %v12541_v20 = vmax.f32 %v4830_v55, %v4831_v9  ;;  %v4838_v53 = vrot.slane %v12533_v57, 1  ;;  %v6961_v22 = vsel %vm6436_vm10, %v12529_v62, %v6960_v49  ;;  %v4813_v54 = vrot.slane %v4812_v2, 4 }
 0x2f4   : > { %10662 = vmatprep.mubr.msk.f32.mxu1 %vm6651_vm11, %v6961_v22  ;;  %v4819_v36 = vsel %vm4391_vm3, %v4169_v46, -inf  ;;  %v3792_v10 = vadd.f32 %v12295_v11, %v3280_v3  ;;  %v6442_v61 = vsel %vm6432_vm8, %v12070_v58, %v12117_v63  ;;  %v12552_v7 = vmax.f32 %v4795_v41, %v4796_v32  ;;  %v15834_v46 = vld [vmem:[#allocation18_spill] sm:$0xff]  ;;  %v2314_v32 = vpop.f32.mrf.mxu0 }
 0x2f5   : > { %v4820_v24 = vrot.slane %v4819_v36, 4  ;;  %v6443_v17 = vsel %vm6434_vm9, %v12078_v30, %v6442_v61  ;;  %v15829_v60 = vrot.slane %v12256_v0, 1  ;;  %v4814_v38 = vmax.f32 %v4812_v2, %v4813_v54 }
 0x2f6   : > { %v3919_v55 = vmax.f32 %v3792_v10, 0.0  ;;  %v6444_v45 = vsel %vm6436_vm10, %v12159_v42, %v6443_v17  ;;  %v6963_v58 = vsel %vm6426_vm5, %v15830_v25, %v12268_v40  ;;  %v12569_v63 = vsel %vm6424_vm4, %v12489_v50, %v12552_v7  ;;  %v15833_v40 = vld [vmem:[#allocation17_spill] sm:$0xff] }
 0x2f7   : > { %v12559_v29 = vmax.f32 %v12256_v0, %v15829_v60  ;;  %v4821_v30 = vmax.f32 %v4819_v36, %v4820_v24  ;;  %10604 = vmatmul.mubr.msk.f32.vlgmr.msra.gmra.mxu0 %vm6651_vm11, %v6444_v45  ;;  %v6964_v0 = vsel %vm6428_vm6, %v15831_v23, %v6963_v58  ;;  %v6445_v1 = vsel %vm6424_vm4, %v12140_v47, %v15832_v51  ;;  %v15835_v47 = vld [vmem:[#allocation15_spill] sm:$0xff]  ;;  %v3274_v24 = vpop.f32.mrf.mxu1 }
 0x2f8   : > { %v4815_v42 = vrot.slane %v4814_v38, 2  ;;  %v4172_v41 = vcombine.high %v3919_v55, %v3919_v55  ;;  %v4854_v9 = vsel %vm4391_vm3, %v3919_v55, -inf  ;;  %v6965_v33 = vsel %vm6430_vm7, %v15833_v40, %v6964_v0 }
 0x2f9   : > { %v4822_v28 = vrot.slane %v4821_v30, 2  ;;  %v4855_v49 = vrot.slane %v4854_v9, 4  ;;  %v6966_v2 = vsel %vm6432_vm8, %v15834_v46, %v6965_v33  ;;  %v6446_v3 = vsel %vm6426_vm5, %v12144_v31, %v6445_v1  ;;  %v15838_v33 = vld [vmem:[#allocation23_spill] sm:$0xff] }
 0x2fa   : > { %v4816_v22 = vmax.f32 %v4814_v38, %v4815_v42  ;;  %v4861_v54 = vsel %vm4391_vm3, %v4172_v41, -inf  ;;  %v6967_v36 = vsel %vm6434_vm9, %v15835_v47, %v6966_v2  ;;  %v6447_v10 = vsel %vm6428_vm6, %v12222_v12, %v6446_v3  ;;  %v10260_v42 = vpop.f32.mrf.mxu0  ;;  %v10456_v3 = vpop.f32.mrf.mxu1 }
 0x2fb   : > { %v4823_v61 = vmax.f32 %v4821_v30, %v4822_v28  ;;  %v4856_v17 = vmax.f32 %v4854_v9, %v4855_v49  ;;  %v4862_v60 = vrot.slane %v4861_v54, 4  ;;  %v6968_v55 = vsel %vm6436_vm10, %v12559_v29, %v6967_v36 }
 0x2fc   : > { %v4817_v45 = vrot.slane %v4816_v22, 1  ;;  %10663 = vmatmul.mubr.msk.f32.gmra.mxu1 %vm6651_vm11, %v6968_v55  ;;  %v6448_v31 = vsel %vm6430_vm7, %v12510_v26, %v6447_v10  ;;  %v15836_v38 = vrot.slane %v12335_v48, 1  ;;  %v15837_v12 = vrot.slane %v12308_v35, 2 }
 0x2fd   : > { %v4824_v30 = vrot.slane %v4823_v61, 1  ;;  %v4857_v0 = vrot.slane %v4856_v17, 2  ;;  %v4863_v51 = vmax.f32 %v4861_v54, %v4862_v60  ;;  %v6449_v1 = vsel %vm6432_vm8, %v12199_v4, %v6448_v31  ;;  %v15840_v54 = vld [vmem:[#allocation13_spill] sm:$0xff] }
 0x2fe   : > { %v12597_v25 = vmax.f32 %v12335_v48, %v15836_v38  ;;  %v4669_v58 = vmax.f32 %v12308_v35, %v15837_v12  ;;  %v12604_v41 = vmax.f32 %v4816_v22, %v4817_v45  ;;  %v6450_v26 = vsel %vm6434_vm9, %v12529_v62, %v6449_v1  ;;  %v15839_v48 = vld [vmem:[#allocation19_spill] sm:$0xff]  ;;  %v15841_v22 = vld [vmem:[#allocation20_spill] sm:$0xff]  ;;  %v15842_v31 = vld [vmem:[#allocation25_spill] sm:$0xff] }
 0x2ff   : > { %v6970_v28 = vsel %vm6426_vm5, %v15839_v48, %v15838_v33  ;;  %v12611_v49 = vmax.f32 %v4823_v61, %v4824_v30  ;;  %v4858_v35 = vmax.f32 %v4856_v17, %v4857_v0  ;;  %v4864_v2 = vrot.slane %v4863_v51, 2  ;;  %v15843_v17 = vld [vmem:[#allocation16_spill] sm:$0xff] }
 0x300   : > { %v4670_v9 = vrot.slane %v4669_v58, 1  ;;  %v6451_v36 = vsel %vm6436_vm10, %v15840_v54, %v6450_v26  ;;  %v6971_v62 = vsel %vm6428_vm6, %v15841_v22, %v6970_v28  ;;  %v3275_v10 = vadd.f32 %v3274_v24, %v2314_v32  ;;  %v15846_v54 = vld [vmem:[#allocation22_spill] sm:$0xff] }
 0x301   : > { %10606 = vmatprep.mubr.msk.f32.mxu0 %vm6651_vm11, %v6451_v36  ;;  %v3290_v60 = vadd.f32 %v10456_v3, %v10260_v42  ;;  %v4859_v55 = vrot.slane %v4858_v35, 1  ;;  %v4865_v45 = vmax.f32 %v4863_v51, %v4864_v2  ;;  %v6972_v61 = vsel %vm6430_vm7, %v15842_v31, %v6971_v62  ;;  %v15844_v51 = vld [vmem:[#allocation24_spill] sm:$0xff]  ;;  %v2324_v36 = vpop.f32.mrf.mxu0 }
 0x302   : > { %v12616_v4 = vmax.f32 %v4669_v58, %v4670_v9  ;;  %v6453_v38 = vsel %vm6426_vm5, %v15831_v23, %v15843_v17  ;;  %v6973_v12 = vsel %vm6432_vm8, %v12597_v25, %v6972_v61  ;;  %v3791_v58 = vadd.f32 %v12295_v11, %v3275_v10  ;;  %v3284_v9 = vpop.f32.mrf.mxu1  ;;  %v15847_v61 = vld [vmem:[#allocation21_spill] sm:$0xff] }
 0x303   : > { %v3794_v30 = vadd.f32 %v12295_v11, %v3290_v60  ;;  %v6454_v32 = vsel %vm6428_vm6, %v15833_v40, %v6453_v38  ;;  %v12631_v24 = vmax.f32 %v4858_v35, %v4859_v55  ;;  %v4866_v0 = vrot.slane %v4865_v45, 1  ;;  %v15845_v35 = vld [vmem:[#allocation27_spill] sm:$0xff] }
 0x304   : > { %v6974_v1 = vsel %vm6434_vm9, %v15844_v51, %v6973_v12  ;;  %v6455_v42 = vsel %vm6430_vm7, %v15834_v46, %v6454_v32  ;;  %v3918_v26 = vmax.f32 %v3791_v58, 0.0  ;;  %v4677_v3 = vrot.slane %v15845_v35, 1  ;;  %v10459_v58 = vpop.f32.mrf.mxu1 }
 0x305   : > { %v6975_v23 = vsel %vm6436_vm10, %v12616_v4, %v6974_v1  ;;  %v3921_v33 = vmax.f32 %v3794_v30, 0.0  ;;  %v6456_v28 = vsel %vm6432_vm8, %v15835_v47, %v6455_v42  ;;  %v12641_v2 = vmax.f32 %v4865_v45, %v4866_v0 }
 0x306   : > { %10665 = vmatprep.mubr.msk.f32.mxu1 %vm6651_vm11, %v6975_v23  ;;  %v6457_v40 = vsel %vm6434_vm9, %v12559_v29, %v6456_v28  ;;  %v6459_v46 = vsel %vm6424_vm4, %v15839_v48, %v15846_v54  ;;  %v4171_v62 = vcombine.high %v3918_v26, %v3918_v26  ;;  %v4840_v10 = vsel %vm4391_vm3, %v3918_v26, -inf  ;;  %v10263_v23 = vpop.f32.mrf.mxu0 }
 0x307   : > { %v4174_v60 = vcombine.high %v3921_v33, %v3921_v33  ;;  %v4882_v47 = vsel %vm4391_vm3, %v3921_v33, -inf  ;;  %v4841_v55 = vrot.slane %v4840_v10, 4  ;;  %v6458_v17 = vsel %vm6436_vm10, %v15847_v61, %v6457_v40 }
 0x308   : > { %v4883_v45 = vrot.slane %v4882_v47, 4  ;;  %v4678_v29 = vmax.f32 %v15845_v35, %v4677_v3  ;;  %v4847_v38 = vsel %vm4391_vm3, %v4171_v62, -inf  ;;  %10607 = vmatmul.mubr.msk.f32.gmra.mxu0 %vm6651_vm11, %v6458_v17  ;;  %v6460_v48 = vsel %vm6426_vm5, %v15841_v22, %v6459_v46  ;;  %v2334_v61 = vpop.f32.mrf.mxu0 }
 0x309   : > { %v4889_v12 = vsel %vm4391_vm3, %v4174_v60, -inf  ;;  %v3285_v30 = vadd.f32 %v3284_v9, %v2324_v36  ;;  %v4842_v32 = vmax.f32 %v4840_v10, %v4841_v55  ;;  %v4848_v0 = vrot.slane %v4847_v38, 4  ;;  %v3294_v36 = vpop.f32.mrf.mxu1 }
 0x30a   : > { %v4884_v1 = vmax.f32 %v4882_v47, %v4883_v45  ;;  %v4890_v42 = vrot.slane %v4889_v12, 4  ;;  %v6461_v26 = vsel %vm6428_vm6, %v15842_v31, %v6460_v48  ;;  %v6976_v33 = vsel %vm6424_vm4, %v12387_v34, %v4678_v29  ;;  %v15848_v45 = vld [vmem:[#allocation26_spill] sm:$0xff] }
 0x30b   : > { %v3793_v28 = vadd.f32 %v12295_v11, %v3285_v30  ;;  %v4727_v40 = vmax.f32 %v12385_v44, %v4726_v16  ;;  %v4843_v35 = vrot.slane %v4842_v32, 2  ;;  %v4849_v22 = vmax.f32 %v4847_v38, %v4848_v0 }
 0x30c   : > { %v4885_v9 = vrot.slane %v4884_v1, 2  ;;  %v12668_v3 = vmax.f32 %v4889_v12, %v4890_v42  ;;  %v6462_v54 = vsel %vm6430_vm7, %v12597_v25, %v6461_v26  ;;  %v6977_v31 = vsel %vm6426_vm5, %v12366_v52, %v6976_v33 }
 0x30d   : > { %v3920_v46 = vmax.f32 %v3793_v28, 0.0  ;;  %v3300_v34 = vadd.f32 %v10459_v58, %v10263_v23  ;;  %v12674_v62 = vmax.f32 %v4842_v32, %v4843_v35  ;;  %v4850_v10 = vrot.slane %v4849_v22, 2  ;;  %v10462_v32 = vpop.f32.mrf.mxu1  ;;  %v10266_v35 = vpop.f32.mrf.mxu0 }
 0x30e   : > { %v4886_v60 = vmax.f32 %v4884_v1, %v4885_v9  ;;  %v4892_v44 = vrot.slane %v12668_v3, 2  ;;  %v6463_v16 = vsel %vm6432_vm8, %v15844_v51, %v6462_v54  ;;  %v6978_v25 = vsel %vm6428_vm6, %v15848_v45, %v6977_v31 }
 0x30f   : > { %v4173_v47 = vcombine.high %v3920_v46, %v3920_v46  ;;  %v4868_v55 = vsel %vm4391_vm3, %v3920_v46, -inf  ;;  %v4845_v52 = vrot.slane %v12674_v62, 1  ;;  %v4851_v17 = vmax.f32 %v4849_v22, %v4850_v10 }
 0x310   : > { %v4887_v38 = vrot.slane %v4886_v60, 1  ;;  %v6464_v12 = vsel %vm6434_vm9, %v12616_v4, %v6463_v16  ;;  %v4869_v48 = vrot.slane %v4868_v55, 4  ;;  %v6979_v51 = vsel %vm6430_vm7, %v12399_v27, %v6978_v25 }
 0x311   : > { %v6465_v58 = vsel %vm6436_vm10, %v4678_v29, %v6464_v12  ;;  %v4875_v30 = vsel %vm4391_vm3, %v4173_v47, -inf  ;;  %v4852_v0 = vrot.slane %v4851_v17, 1  ;;  %v6980_v23 = vsel %vm6432_vm8, %v12408_v19, %v6979_v51 }
 0x312   : > { %v12689_v1 = vmax.f32 %v4886_v60, %v4887_v38  ;;  %10609 = vmatprep.mubr.msk.f32.mxu0 %vm6651_vm11, %v6465_v58  ;;  %v4876_v42 = vrot.slane %v4875_v30, 4  ;;  %v4870_v26 = vmax.f32 %v4868_v55, %v4869_v48  ;;  %v6981_v4 = vsel %vm6434_vm9, %v12396_v14, %v6980_v23  ;;  %v3304_v60 = vpop.f32.mrf.mxu1 }
 0x313   : > { %v3796_v29 = vadd.f32 %v12295_v11, %v3300_v34  ;;  %v15849_v33 = vrot.slane %v12440_v39, 1  ;;  %v12700_v22 = vmax.f32 %v4851_v17, %v4852_v0  ;;  %v6982_v54 = vsel %vm6436_vm10, %v4727_v40, %v6981_v4 }
 0x314   : > { %v4877_v9 = vmax.f32 %v4875_v30, %v4876_v42  ;;  %v6467_v31 = vsel %vm6426_vm5, %v15848_v45, %v12394_v18  ;;  %v4871_v46 = vrot.slane %v4870_v26, 2  ;;  %10666 = vmatmul.mubr.msk.f32.gmra.mxu1 %vm6651_vm11, %v6982_v54  ;;  %v3295_v55 = vadd.f32 %v3294_v36, %v2334_v61  ;;  %v2344_v30 = vpop.f32.mrf.mxu0 }
 0x315   : > { %v4734_v28 = vmax.f32 %v12440_v39, %v15849_v33  ;;  %v3923_v10 = vmax.f32 %v3796_v29, 0.0  ;;  %v6468_v34 = vsel %vm6428_vm6, %v12399_v27, %v6467_v31  ;;  %v3310_v25 = vadd.f32 %v10462_v32, %v10266_v35  ;;  %v12725_v32 = vpop.f32.mrf.mxu1 }
 0x316   : > { %v4878_v16 = vrot.slane %v4877_v9, 2  ;;  %v6469_v47 = vsel %vm6430_vm7, %v12408_v19, %v6468_v34  ;;  %v4872_v17 = vmax.f32 %v4870_v26, %v4871_v46  ;;  %v3795_v48 = vadd.f32 %v12295_v11, %v3295_v55  ;;  %v12741_v46 = vld [vmem:[%s15730_s4] ss:$0 sm:$0xff] }
 0x317   : > { %v12711_v39 = vsel %vm6424_vm4, %v12456_v37, %v4734_v28  ;;  %v4176_v18 = vcombine.high %v3923_v10, %v3923_v10  ;;  %v4910_v45 = vsel %vm4391_vm3, %v3923_v10, -inf  ;;  %v6470_v38 = vsel %vm6432_vm8, %v12396_v14, %v6469_v47  ;;  %v12744_v34 = vpop.f32.mrf.mxu1 }
 0x318   : > { %v12718_v12 = vmax.f32 %v4877_v9, %v4878_v16  ;;  %v4911_v27 = vrot.slane %v4910_v45, 4  ;;  %v6471_v58 = vsel %vm6434_vm9, %v4727_v40, %v6470_v38  ;;  %v4873_v51 = vrot.slane %v4872_v17, 1 }
 0x319   : > { %v4917_v19 = vsel %vm4391_vm3, %v4176_v18, -inf  ;;  %v6472_v36 = vsel %vm6436_vm10, %v4734_v28, %v6471_v58  ;;  %v3798_v61 = vadd.f32 %v12295_v11, %v3310_v25  ;;  %v3922_v23 = vmax.f32 %v3795_v48, 0.0  ;;  %v10269_v18 = vpop.f32.mrf.mxu0 }
 0x31a   : > { %v4880_v0 = vrot.slane %v12718_v12, 1  ;;  %v4912_v14 = vmax.f32 %v4910_v45, %v4911_v27  ;;  %v4918_v42 = vrot.slane %v4917_v19, 4  ;;  %10610 = vmatmul.mubr.msk.f32.gmra.mxu0 %vm6651_vm11, %v6472_v36  ;;  %v12729_v40 = vmax.f32 %v4872_v17, %v4873_v51  ;;  %v10468_v36 = vpop.f32.mrf.mxu1 }
 0x31b   : > { %v3925_v26 = vmax.f32 %v3798_v61, 0.0  ;;  %v3305_v4 = vadd.f32 %v3304_v60, %v2344_v30  ;;  %v12734_v29 = vmax.f32 %v12464_v56, %v4768_v13  ;;  %v4175_v28 = vcombine.high %v3922_v23, %v3922_v23 }
 0x31c   : > { %v4913_v33 = vrot.slane %v4912_v14, 2  ;;  %v4919_v11 = vmax.f32 %v4917_v19, %v4918_v42  ;;  %v4896_v35 = vsel %vm4391_vm3, %v3922_v23, -inf }
 0x31d   : > { %v4897_v9 = vrot.slane %v4896_v35, 4  ;;  %v4178_v54 = vcombine.high %v3925_v26, %v3925_v26  ;;  %v4938_v31 = vsel %vm4391_vm3, %v3925_v26, -inf  ;;  %v3797_v10 = vadd.f32 %v12741_v46, %v3305_v4 }
 0x31e   : > { %v4914_v56 = vmax.f32 %v4912_v14, %v4913_v33  ;;  %v4920_v13 = vrot.slane %v4919_v11, 2  ;;  %v4903_v60 = vsel %vm4391_vm3, %v4175_v28, -inf  ;;  %v4939_v16 = vrot.slane %v4938_v31, 4 }
 0x31f   : > { %v4898_v47 = vmax.f32 %v4896_v35, %v4897_v9  ;;  %v4904_v55 = vrot.slane %v4903_v60, 4  ;;  %v4945_v25 = vsel %vm4391_vm3, %v4178_v54, -inf  ;;  %v3924_v17 = vmax.f32 %v3797_v10, 0.0 }
 0x320   : > { %v4915_v45 = vrot.slane %v4914_v56, 1  ;;  %v4921_v38 = vmax.f32 %v4919_v11, %v4920_v13  ;;  %v4940_v27 = vmax.f32 %v4938_v31, %v4939_v16  ;;  %v4946_v58 = vrot.slane %v4945_v25, 4  ;;  %v2354_v11 = vpop.f32.mrf.mxu0 }
 0x321   : > { %v4899_v48 = vrot.slane %v4898_v47, 2  ;;  %v4905_v30 = vmax.f32 %v4903_v60, %v4904_v55  ;;  %v4177_v51 = vcombine.high %v3924_v17, %v3924_v17  ;;  %v4924_v19 = vsel %vm4391_vm3, %v3924_v17, -inf }
 0x322   : > { %v12749_v61 = vmax.f32 %v4914_v56, %v4915_v45  ;;  %v4922_v14 = vrot.slane %v4921_v38, 1  ;;  %v4941_v42 = vrot.slane %v4940_v27, 2  ;;  %v4947_v23 = vmax.f32 %v4945_v25, %v4946_v58 }
 0x323   : > { %v12751_v26 = vmax.f32 %v4898_v47, %v4899_v48  ;;  %v4906_v4 = vrot.slane %v4905_v30, 2  ;;  %v4925_v33 = vrot.slane %v4924_v19, 4  ;;  %v4931_v28 = vsel %vm4391_vm3, %v4177_v51, -inf  ;;  %v3324_v47 = vpop.f32.mrf.mxu1 }
 0x324   : > { %v12754_v35 = vmax.f32 %v4921_v38, %v4922_v14  ;;  %v4942_v9 = vmax.f32 %v4940_v27, %v4941_v42  ;;  %v4948_v54 = vrot.slane %v4947_v23, 2  ;;  %v4932_v31 = vrot.slane %v4931_v28, 4 }
 0x325   : > { %v4907_v10 = vmax.f32 %v4905_v30, %v4906_v4  ;;  %v4926_v13 = vmax.f32 %v4924_v19, %v4925_v33  ;;  %v15850_v56 = vrot.slane %v12449_v5, 2  ;;  %v6984_v16 = vsel %vm6426_vm5, %v12416_v59, %v12711_v39  ;;  %v10272_v30 = vpop.f32.mrf.mxu0  ;;  %v10471_v33 = vpop.f32.mrf.mxu1 }
 0x326   : > { %v4943_v55 = vrot.slane %v4942_v9, 1  ;;  %v12762_v25 = vmax.f32 %v4947_v23, %v4948_v54  ;;  %v4933_v17 = vmax.f32 %v4931_v28, %v4932_v31  ;;  %v6985_v45 = vsel %vm6428_vm6, %v12420_v43, %v6984_v16 }
 0x327   : > { %v4781_v60 = vmax.f32 %v12449_v5, %v15850_v56  ;;  %v4908_v38 = vrot.slane %v4907_v10, 1  ;;  %v4927_v27 = vrot.slane %v4926_v13, 2  ;;  %v6986_v48 = vsel %vm6430_vm7, %v12471_v8, %v6985_v45  ;;  %v2364_v16 = vpop.f32.mrf.mxu0 }
 0x328   : > { %v12768_v5 = vmax.f32 %v4942_v9, %v4943_v55  ;;  %v4950_v51 = vrot.slane %v12762_v25, 1  ;;  %v4934_v39 = vrot.slane %v4933_v17, 2  ;;  %v6987_v19 = vsel %vm6432_vm8, %v12734_v29, %v6986_v48 }
 0x329   : > { %v4782_v58 = vrot.slane %v4781_v60, 1  ;;  %v12773_v14 = vmax.f32 %v4907_v10, %v4908_v38  ;;  %v4928_v42 = vmax.f32 %v4926_v13, %v4927_v27  ;;  %v6988_v4 = vsel %vm6434_vm9, %v12459_v21, %v6987_v19 }
 0x32a   : > { %v4935_v28 = vmax.f32 %v4933_v17, %v4934_v39  ;;  %v3320_v54 = vadd.f32 %v12725_v32, %v10269_v18  ;;  %v4789_v9 = vrot.slane %v12525_v15, 1  ;;  %v6473_v31 = vsel %vm6424_vm4, %v12416_v59, %v12456_v37 }
 0x32b   : > { %v4783_v23 = vmax.f32 %v4781_v60, %v4782_v58  ;;  %v12785_v10 = vsel %vm6424_vm4, %v12749_v61, %v12773_v14  ;;  %v4929_v13 = vrot.slane %v4928_v42, 1  ;;  %v6474_v60 = vsel %vm6426_vm5, %v12420_v43, %v6473_v31  ;;  %v12800_v43 = vpop.f32.mrf.mxu1 }
 0x32c   : > { %v4936_v55 = vrot.slane %v4935_v28, 1  ;;  %v3800_v32 = vadd.f32 %v12741_v46, %v3320_v54  ;;  %v4790_v18 = vmax.f32 %v12525_v15, %v4789_v9  ;;  %v6475_v59 = vsel %vm6428_vm6, %v12471_v8, %v6474_v60 }
 0x32d   : > { %v6989_v56 = vsel %vm6436_vm10, %v4783_v23, %v6988_v4  ;;  %v12795_v37 = vmax.f32 %v4928_v42, %v4929_v13  ;;  %v6476_v17 = vsel %vm6430_vm7, %v12734_v29, %v6475_v59  ;;  %v3315_v45 = vadd.f32 %v12744_v34, %v2354_v11 }
 0x32e   : > { %10668 = vmatprep.mubr.msk.f32.mxu1 %vm6651_vm11, %v6989_v56  ;;  %v3330_v38 = vadd.f32 %v10468_v36, %v10272_v30  ;;  %v12802_v27 = vmax.f32 %v4935_v28, %v4936_v55  ;;  %v3927_v58 = vmax.f32 %v3800_v32, 0.0  ;;  %v6477_v48 = vsel %vm6432_vm8, %v12459_v21, %v6476_v17  ;;  %v10275_v36 = vpop.f32.mrf.mxu0 }
 0x32f   : > { %v6990_v15 = vsel %vm6424_vm4, %v12552_v7, %v4790_v18  ;;  %v6478_v8 = vsel %vm6434_vm9, %v4783_v23, %v6477_v48  ;;  %v3799_v29 = vadd.f32 %v12741_v46, %v3315_v45  ;;  %v3325_v42 = vadd.f32 %v3324_v47, %v2364_v16  ;;  %v12821_v23 = vpop.f32.mrf.mxu1 }
 0x330   : > { %v6991_v39 = vsel %vm6426_vm5, %v12489_v50, %v6990_v15  ;;  %v3802_v34 = vadd.f32 %v12741_v46, %v3330_v38  ;;  %v4180_v11 = vcombine.high %v3927_v58, %v3927_v58  ;;  %v4966_v30 = vsel %vm4391_vm3, %v3927_v58, -inf  ;;  %v12830_v45 = vpop.f32.mrf.mxu0 }
 0x331   : > { %v6479_v19 = vsel %vm6436_vm10, %v4790_v18, %v6478_v8  ;;  %v4967_v21 = vrot.slane %v4966_v30, 4  ;;  %v3926_v7 = vmax.f32 %v3799_v29, 0.0  ;;  %v12819_v50 = vmax.f32 %v12533_v57, %v4838_v53  ;;  %v12832_v38 = vpop.f32.mrf.mxu1 }
 0x332   : > { %10612 = vmatprep.mubr.msk.f32.mxu0 %vm6651_vm11, %v6479_v19  ;;  %v3929_v4 = vmax.f32 %v3802_v34, 0.0  ;;  %v4973_v28 = vsel %vm4391_vm3, %v4180_v11, -inf  ;;  %v3801_v54 = vadd.f32 %v12741_v46, %v3325_v42  ;;  %v6992_v9 = vsel %vm6428_vm6, %v12498_v6, %v6991_v39 }
 0x333   : > { %v3340_v47 = vadd.f32 %v10471_v33, %v10275_v36  ;;  %v4968_v31 = vmax.f32 %v4966_v30, %v4967_v21  ;;  %v4974_v13 = vrot.slane %v4973_v28, 4  ;;  %v4179_v56 = vcombine.high %v3926_v7, %v3926_v7 }
 0x334   : > { %v4952_v60 = vsel %vm4391_vm3, %v3926_v7, -inf  ;;  %v4182_v55 = vcombine.high %v3929_v4, %v3929_v4  ;;  %v4994_v57 = vsel %vm4391_vm3, %v3929_v4, -inf  ;;  %v3928_v53 = vmax.f32 %v3801_v54, 0.0  ;;  %v12839_v54 = vpop.f32.mrf.mxu1 }
 0x335   : > { %v4953_v16 = vrot.slane %v4952_v60, 4  ;;  %v4969_v32 = vrot.slane %v4968_v31, 2  ;;  %v4975_v18 = vmax.f32 %v4973_v28, %v4974_v13  ;;  %v4959_v59 = vsel %vm4391_vm3, %v4179_v56, -inf  ;;  %v10278_v28 = vpop.f32.mrf.mxu0 }
 0x336   : > { %v4995_v17 = vrot.slane %v4994_v57, 4  ;;  %v4960_v58 = vrot.slane %v4959_v59, 4  ;;  %v5001_v48 = vsel %vm4391_vm3, %v4182_v55, -inf  ;;  %v4181_v15 = vcombine.high %v3928_v53, %v3928_v53 }
 0x337   : > { %v4954_v33 = vmax.f32 %v4952_v60, %v4953_v16  ;;  %v4970_v8 = vmax.f32 %v4968_v31, %v4969_v32  ;;  %v4976_v39 = vrot.slane %v4975_v18, 2  ;;  %v5002_v34 = vrot.slane %v5001_v48, 4 }
 0x338   : > { %v4996_v29 = vmax.f32 %v4994_v57, %v4995_v17  ;;  %v4961_v11 = vmax.f32 %v4959_v59, %v4960_v58  ;;  %v4980_v30 = vsel %vm4391_vm3, %v3928_v53, -inf  ;;  %v4987_v19 = vsel %vm4391_vm3, %v4181_v15, -inf }
 0x339   : > { %v4955_v36 = vrot.slane %v4954_v33, 2  ;;  %v4971_v42 = vrot.slane %v4970_v8, 1  ;;  %v4977_v21 = vmax.f32 %v4975_v18, %v4976_v39  ;;  %v12837_v4 = vmax.f32 %v5001_v48, %v5002_v34  ;;  %v2384_v39 = vpop.f32.mrf.mxu0 }
 0x33a   : > { %v4997_v7 = vrot.slane %v4996_v29, 2  ;;  %v4962_v31 = vrot.slane %v4961_v11, 2  ;;  %v4981_v56 = vrot.slane %v4980_v30, 4  ;;  %v4988_v60 = vrot.slane %v4987_v19, 4 }
 0x33b   : > { %v12841_v13 = vmax.f32 %v4954_v33, %v4955_v36  ;;  %v12843_v16 = vmax.f32 %v4970_v8, %v4971_v42  ;;  %v4978_v55 = vrot.slane %v4977_v21, 1  ;;  %v6993_v33 = vsel %vm6430_vm7, %v12604_v41, %v6992_v9  ;;  %v12852_v8 = vpop.f32.mrf.mxu1 }
 0x33c   : > { %v4998_v57 = vmax.f32 %v4996_v29, %v4997_v7  ;;  %v4963_v18 = vmax.f32 %v4961_v11, %v4962_v31  ;;  %v4982_v59 = vmax.f32 %v4980_v30, %v4981_v56  ;;  %v4989_v17 = vmax.f32 %v4987_v19, %v4988_v60 }
 0x33d   : > { %v4957_v32 = vrot.slane %v12841_v13, 1  ;;  %v12847_v58 = vmax.f32 %v4977_v21, %v4978_v55  ;;  %v3804_v15 = vadd.f32 %v12741_v46, %v3340_v47  ;;  %v6994_v42 = vsel %vm6432_vm8, %v12611_v49, %v6993_v33 }
 0x33e   : > { %v4999_v48 = vrot.slane %v4998_v57, 1  ;;  %v4964_v34 = vrot.slane %v4963_v18, 1  ;;  %v4983_v29 = vrot.slane %v4982_v59, 2  ;;  %v4990_v36 = vrot.slane %v4989_v17, 2 }
 0x33f   : > { %v6995_v30 = vsel %vm6434_vm9, %v12541_v20, %v6994_v42  ;;  %v3931_v19 = vmax.f32 %v3804_v15, 0.0  ;;  %v4846_v9 = vmax.f32 %v12674_v62, %v4845_v52  ;;  %v6481_v55 = vsel %vm6426_vm5, %v12498_v6, %v12569_v63  ;;  %v10281_v52 = vpop.f32.mrf.mxu0 }
 0x340   : > { %v12856_v11 = vmax.f32 %v4998_v57, %v4999_v48  ;;  %v12863_v47 = vmax.f32 %v4963_v18, %v4964_v34  ;;  %v4984_v21 = vmax.f32 %v4982_v59, %v4983_v29  ;;  %v12865_v7 = vmax.f32 %v4989_v17, %v4990_v36  ;;  %v12876_v57 = vpop.f32.mrf.mxu1 }
 0x341   : > { %v6996_v31 = vsel %vm6436_vm10, %v12819_v50, %v6995_v30  ;;  %v4184_v56 = vcombine.high %v3931_v19, %v3931_v19  ;;  %v5022_v60 = vsel %vm4391_vm3, %v3931_v19, -inf  ;;  %v6997_v62 = vsel %vm6424_vm4, %v12700_v22, %v4846_v9 }
 0x342   : > { %10669 = vmatmul.mubr.msk.f32.gmra.mxu1 %vm6651_vm11, %v6996_v31  ;;  %v4985_v18 = vrot.slane %v4984_v21, 1  ;;  %v5023_v17 = vrot.slane %v5022_v60, 4  ;;  %v6482_v48 = vsel %vm6428_vm6, %v12604_v41, %v6481_v55  ;;  %v3335_v6 = vadd.f32 %v12800_v43, %v12830_v45  ;;  %v12896_v31 = vpop.f32.mrf.mxu0  ;;  %v12898_v43 = vpop.f32.mrf.mxu1 }
 0x343   : > { %v5029_v33 = vsel %vm4391_vm3, %v4184_v56, -inf  ;;  %v6483_v15 = vsel %vm6430_vm7, %v12611_v49, %v6482_v48  ;;  %v3350_v63 = vadd.f32 %v12821_v23, %v10278_v28  ;;  %v3345_v49 = vadd.f32 %v12832_v38, %v2384_v39 }
 0x344   : > { %v12887_v34 = vmax.f32 %v4984_v21, %v4985_v18  ;;  %v5024_v29 = vmax.f32 %v5022_v60, %v5023_v17  ;;  %v5030_v36 = vrot.slane %v5029_v33, 4  ;;  %v6484_v42 = vsel %vm6432_vm8, %v12541_v20, %v6483_v15  ;;  %v12916_v48 = vpop.f32.mrf.mxu0 }
 0x345   : > { %v6485_v41 = vsel %vm6434_vm9, %v12819_v50, %v6484_v42  ;;  %v3803_v30 = vadd.f32 %v12741_v46, %v3335_v6  ;;  %v3806_v19 = vadd.f32 %v12741_v46, %v3350_v63  ;;  %v12904_v20 = vmax.f32 %v12718_v12, %v4880_v0 }
 0x346   : > { %v5025_v23 = vrot.slane %v5024_v29, 2  ;;  %v5031_v45 = vmax.f32 %v5029_v33, %v5030_v36  ;;  %v6486_v28 = vsel %vm6436_vm10, %v4846_v9, %v6485_v41  ;;  %v3805_v56 = vadd.f32 %v12741_v46, %v3345_v49  ;;  %v12918_v33 = vpop.f32.mrf.mxu1 }
 0x347   : > { %10613 = vmatmul.mubr.msk.f32.gmra.mxu0 %vm6651_vm11, %v6486_v28  ;;  %v3930_v50 = vmax.f32 %v3803_v30, 0.0  ;;  %v3933_v21 = vmax.f32 %v3806_v19, 0.0  ;;  %v4893_v38 = vmax.f32 %v12668_v3, %v4892_v44  ;;  %v6998_v9 = vsel %vm6426_vm5, %v12631_v24, %v6997_v62  ;;  %v12925_v28 = vpop.f32.mrf.mxu0 }
 0x348   : > { %v5026_v39 = vmax.f32 %v5024_v29, %v5025_v23  ;;  %v5032_v60 = vrot.slane %v5031_v45, 2  ;;  %v3360_v55 = vadd.f32 %v12839_v54, %v10281_v52  ;;  %v3932_v29 = vmax.f32 %v3805_v56, 0.0 }
 0x349   : > { %v4183_v18 = vcombine.high %v3930_v50, %v3930_v50  ;;  %v5008_v12 = vsel %vm4391_vm3, %v3930_v50, -inf  ;;  %v4186_v0 = vcombine.high %v3933_v21, %v3933_v21  ;;  %v5050_v17 = vsel %vm4391_vm3, %v3933_v21, -inf }
 0x34a   : > { %v5027_v15 = vrot.slane %v5026_v39, 1  ;;  %v5033_v6 = vmax.f32 %v5031_v45, %v5032_v60  ;;  %v5009_v3 = vrot.slane %v5008_v12, 4  ;;  %v5051_v44 = vrot.slane %v5050_v17, 4  ;;  %v12927_v45 = vpop.f32.mrf.mxu1 }
 0x34b   : > { %v5015_v63 = vsel %vm4391_vm3, %v4183_v18, -inf  ;;  %v5057_v62 = vsel %vm4391_vm3, %v4186_v0, -inf  ;;  %v4894_v54 = vrot.slane %v4893_v38, 1  ;;  %v4185_v49 = vcombine.high %v3932_v29, %v3932_v29 }
 0x34c   : > { %v12922_v52 = vmax.f32 %v5026_v39, %v5027_v15  ;;  %v5034_v36 = vrot.slane %v5033_v6, 1  ;;  %v5010_v42 = vmax.f32 %v5008_v12, %v5009_v3  ;;  %v5016_v41 = vrot.slane %v5015_v63, 4 }
 0x34d   : > { %v5052_v30 = vmax.f32 %v5050_v17, %v5051_v44  ;;  %v5058_v19 = vrot.slane %v5057_v62, 4  ;;  %v5036_v23 = vsel %vm4391_vm3, %v3932_v29, -inf  ;;  %v5043_v0 = vsel %vm4391_vm3, %v4185_v49, -inf }
 0x34e   : > { %v12929_v50 = vmax.f32 %v5033_v6, %v5034_v36  ;;  %v5011_v21 = vrot.slane %v5010_v42, 2  ;;  %v5017_v60 = vmax.f32 %v5015_v63, %v5016_v41  ;;  %v5037_v56 = vrot.slane %v5036_v23, 4  ;;  %v12937_v36 = vpop.f32.mrf.mxu0  ;;  %v12939_v63 = vpop.f32.mrf.mxu1 }
 0x34f   : > { %v5053_v18 = vrot.slane %v5052_v30, 2  ;;  %v5059_v39 = vmax.f32 %v5057_v62, %v5058_v19  ;;  %v4895_v12 = vmax.f32 %v4893_v38, %v4894_v54  ;;  %v5044_v44 = vrot.slane %v5043_v0, 4 }
 0x350   : > { %v12932_v15 = vmax.f32 %v5010_v42, %v5011_v21  ;;  %v5018_v17 = vrot.slane %v5017_v60, 2  ;;  %v5038_v3 = vmax.f32 %v5036_v23, %v5037_v56  ;;  %v6999_v59 = vsel %vm6428_vm6, %v12641_v2, %v6998_v9 }
 0x351   : > { %v5054_v29 = vmax.f32 %v5052_v30, %v5053_v18  ;;  %v5060_v53 = vrot.slane %v5059_v39, 2  ;;  %v3808_v6 = vadd.f32 %v12741_v46, %v3360_v55  ;;  %v5045_v19 = vmax.f32 %v5043_v0, %v5044_v44  ;;  %v12953_v0 = vpop.f32.mrf.mxu0 }
 0x352   : > { %v5019_v62 = vmax.f32 %v5017_v60, %v5018_v17  ;;  %v5039_v41 = vrot.slane %v5038_v3, 2  ;;  %v7000_v38 = vsel %vm6430_vm7, %v12729_v40, %v6999_v59 }
 0x353   : > { %v5055_v54 = vrot.slane %v5054_v29, 1  ;;  %v12943_v42 = vmax.f32 %v5059_v39, %v5060_v53  ;;  %v7001_v30 = vsel %vm6432_vm8, %v12904_v20, %v7000_v38  ;;  %v3935_v49 = vmax.f32 %v3808_v6, 0.0  ;;  %v12955_v53 = vpop.f32.mrf.mxu1 }
 0x354   : > { %v5020_v9 = vrot.slane %v5019_v62, 1  ;;  %v5040_v23 = vmax.f32 %v5038_v3, %v5039_v41  ;;  %v5046_v55 = vrot.slane %v5045_v19, 2  ;;  %v7002_v21 = vsel %vm6434_vm9, %v12689_v1, %v7001_v30 }
 0x355   : > { %v12949_v56 = vmax.f32 %v5054_v29, %v5055_v54  ;;  %v7003_v18 = vsel %vm6436_vm10, %v4895_v12, %v7002_v21  ;;  %v4188_v59 = vcombine.high %v3935_v49, %v3935_v49  ;;  %v5078_v3 = vsel %vm4391_vm3, %v3935_v49, -inf }
 0x356   : > { %v12957_v39 = vmax.f32 %v5019_v62, %v5020_v9  ;;  %v5041_v17 = vrot.slane %v5040_v23, 1  ;;  %v5047_v44 = vmax.f32 %v5045_v19, %v5046_v55  ;;  %10671 = vmatprep.mubr.msk.f32.mxu1 %vm6651_vm11, %v7003_v18  ;;  %v5079_v6 = vrot.slane %v5078_v3, 4  ;;  %v12978_v18 = vpop.f32.mrf.mxu0 }
 0x357   : > { %v5085_v29 = vsel %vm4391_vm3, %v4188_v59, -inf  ;;  %v4901_v41 = vrot.slane %v12751_v26, 1  ;;  %v6487_v38 = vsel %vm6424_vm4, %v12631_v24, %v12700_v22  ;;  %v3355_v21 = vadd.f32 %v12852_v8, %v12896_v31  ;;  %v12980_v24 = vpop.f32.mrf.mxu1 }
 0x358   : > { %v12969_v62 = vsel %vm6424_vm4, %v12922_v52, %v12957_v39  ;;  %v12971_v54 = vmax.f32 %v5040_v23, %v5041_v17  ;;  %v5048_v19 = vrot.slane %v5047_v44, 1  ;;  %v5086_v30 = vrot.slane %v5085_v29, 4 }
 0x359   : > { %v5080_v9 = vmax.f32 %v5078_v3, %v5079_v6  ;;  %v4902_v49 = vmax.f32 %v12751_v26, %v4901_v41  ;;  %v6488_v55 = vsel %vm6426_vm5, %v12641_v2, %v6487_v38  ;;  %v3370_v17 = vadd.f32 %v12876_v57, %v12916_v48  ;;  %v13001_v41 = vpop.f32.mrf.mxu0 }
 0x35a   : > { %v12982_v22 = vmax.f32 %v5047_v44, %v5048_v19  ;;  %v5087_v59 = vmax.f32 %v5085_v29, %v5086_v30  ;;  %v6489_v23 = vsel %vm6428_vm6, %v12729_v40, %v6488_v55  ;;  %v3807_v31 = vadd.f32 %v12741_v46, %v3355_v21 }
 0x35b   : > { %v5081_v26 = vrot.slane %v5080_v9, 2  ;;  %v6490_v2 = vsel %vm6430_vm7, %v12904_v20, %v6489_v23  ;;  %v7004_v8 = vsel %vm6424_vm4, %v12773_v14, %v4902_v49  ;;  %v3810_v40 = vadd.f32 %v12741_v46, %v3370_v17  ;;  %v13003_v14 = vpop.f32.mrf.mxu1 }
 0x35c   : > { %v5088_v3 = vrot.slane %v5087_v59, 2  ;;  %v6491_v44 = vsel %vm6432_vm8, %v12689_v1, %v6490_v2  ;;  %v7005_v6 = vsel %vm6426_vm5, %v12749_v61, %v7004_v8  ;;  %v3934_v48 = vmax.f32 %v3807_v31, 0.0 }
 0x35d   : > { %v5082_v29 = vmax.f32 %v5080_v9, %v5081_v26  ;;  %v6492_v57 = vsel %vm6434_vm9, %v4895_v12, %v6491_v44  ;;  %v3365_v20 = vadd.f32 %v12898_v43, %v12925_v28  ;;  %v3937_v1 = vmax.f32 %v3810_v40, 0.0  ;;  %v13020_v26 = vpop.f32.mrf.mxu1 }
 0x35e   : > { %v5089_v38 = vmax.f32 %v5087_v59, %v5088_v3  ;;  %v6493_v19 = vsel %vm6436_vm10, %v4902_v49, %v6492_v57  ;;  %v13009_v61 = vmax.f32 %v12762_v25, %v4950_v51  ;;  %v4187_v12 = vcombine.high %v3934_v48, %v3934_v48  ;;  %v13018_v51 = vpop.f32.mrf.mxu0 }
 0x35f   : > { %v5083_v30 = vrot.slane %v5082_v29, 1  ;;  %10615 = vmatprep.mubr.msk.f32.mxu0 %vm6651_vm11, %v6493_v19  ;;  %v5064_v9 = vsel %vm4391_vm3, %v3934_v48, -inf  ;;  %v3809_v43 = vadd.f32 %v12741_v46, %v3365_v20  ;;  %v4190_v21 = vcombine.high %v3937_v1, %v3937_v1 }
 0x360   : > { %v5090_v28 = vrot.slane %v5089_v38, 1  ;;  %v5065_v55 = vrot.slane %v5064_v9, 4  ;;  %v5106_v59 = vsel %vm4391_vm3, %v3937_v1, -inf  ;;  %v5071_v23 = vsel %vm4391_vm3, %v4187_v12, -inf }
 0x361   : > { %v13015_v49 = vmax.f32 %v5082_v29, %v5083_v30  ;;  %v5107_v17 = vrot.slane %v5106_v59, 4  ;;  %v3936_v25 = vmax.f32 %v3809_v43, 0.0  ;;  %v5072_v31 = vrot.slane %v5071_v23, 4  ;;  %v13033_v43 = vpop.f32.mrf.mxu0 }
 0x362   : > { %v13022_v2 = vmax.f32 %v5089_v38, %v5090_v28  ;;  %v5066_v8 = vmax.f32 %v5064_v9, %v5065_v55  ;;  %v5113_v3 = vsel %vm4391_vm3, %v4190_v21, -inf  ;;  %v7006_v1 = vsel %vm6428_vm6, %v12754_v35, %v7005_v6  ;;  %v13035_v28 = vpop.f32.mrf.mxu1 }
 0x363   : > { %v5108_v44 = vmax.f32 %v5106_v59, %v5107_v17  ;;  %v5114_v40 = vrot.slane %v5113_v3, 4  ;;  %v4189_v57 = vcombine.high %v3936_v25, %v3936_v25  ;;  %v5092_v29 = vsel %vm4391_vm3, %v3936_v25, -inf }
 0x364   : > { %v5067_v48 = vrot.slane %v5066_v8, 2  ;;  %v5073_v20 = vmax.f32 %v5071_v23, %v5072_v31  ;;  %v5093_v19 = vrot.slane %v5092_v29, 4  ;;  %v7007_v9 = vsel %vm6430_vm7, %v12795_v37, %v7006_v1 }
 0x365   : > { %v5109_v30 = vrot.slane %v5108_v44, 2  ;;  %v13028_v12 = vmax.f32 %v5113_v3, %v5114_v40  ;;  %v5099_v38 = vsel %vm4391_vm3, %v4189_v57, -inf  ;;  %v7008_v25 = vsel %vm6432_vm8, %v12802_v27, %v7007_v9 }
 0x366   : > { %v13037_v55 = vmax.f32 %v5066_v8, %v5067_v48  ;;  %v5074_v21 = vrot.slane %v5073_v20, 2  ;;  %v5094_v59 = vmax.f32 %v5092_v29, %v5093_v19  ;;  %v5100_v23 = vrot.slane %v5099_v38, 4  ;;  %v13051_v48 = vpop.f32.mrf.mxu0  ;;  %v13053_v19 = vpop.f32.mrf.mxu1 }
 0x367   : > { %v5110_v17 = vmax.f32 %v5108_v44, %v5109_v30  ;;  %v3380_v31 = vadd.f32 %v12918_v33, %v12937_v36  ;;  %v7009_v8 = vsel %vm6434_vm9, %v12768_v5, %v7008_v25  ;;  %v4958_v44 = vmax.f32 %v12841_v13, %v4957_v32 }
 0x368   : > { %v5075_v40 = vmax.f32 %v5073_v20, %v5074_v21  ;;  %v5095_v57 = vrot.slane %v5094_v59, 2  ;;  %v5101_v1 = vmax.f32 %v5099_v38, %v5100_v23  ;;  %v7010_v20 = vsel %vm6436_vm10, %v13009_v61, %v7009_v8 }
 0x369   : > { %v5111_v60 = vrot.slane %v5110_v17, 1  ;;  %v3812_v29 = vadd.f32 %v12741_v46, %v3380_v31  ;;  %10672 = vmatmul.mubr.msk.f32.gmra.mxu1 %vm6651_vm11, %v7010_v20  ;;  %v6495_v21 = vsel %vm6426_vm5, %v12754_v35, %v12785_v10  ;;  %v7011_v13 = vsel %vm6424_vm4, %v12863_v47, %v4958_v44  ;;  %v13076_v10 = vpop.f32.mrf.mxu0 }
 0x36a   : > { %v5076_v33 = vrot.slane %v5075_v40, 1  ;;  %v5096_v36 = vmax.f32 %v5094_v59, %v5095_v57  ;;  %v5102_v30 = vrot.slane %v5101_v1, 2  ;;  %v6496_v25 = vsel %vm6428_vm6, %v12795_v37, %v6495_v21  ;;  %v13078_v57 = vpop.f32.mrf.mxu1 }
 0x36b   : > { %v13057_v38 = vmax.f32 %v5110_v17, %v5111_v60  ;;  %v3939_v9 = vmax.f32 %v3812_v29, 0.0  ;;  %v6497_v31 = vsel %vm6430_vm7, %v12802_v27, %v6496_v25  ;;  %v3375_v35 = vadd.f32 %v12927_v45, %v12953_v0 }
 0x36c   : > { %v13065_v32 = vmax.f32 %v5075_v40, %v5076_v33  ;;  %v5097_v23 = vrot.slane %v5096_v36, 1  ;;  %v13067_v59 = vmax.f32 %v5101_v1, %v5102_v30  ;;  %v6498_v37 = vsel %vm6432_vm8, %v12768_v5, %v6497_v31 }
 0x36d   : > { %15851 = vst [vmem:[#allocation12_spill] sm:$0xff] %v13057_v38  ;;  %v4192_v60 = vcombine.high %v3939_v9, %v3939_v9  ;;  %v5134_v17 = vsel %vm4391_vm3, %v3939_v9, -inf  ;;  %v6499_v27 = vsel %vm6434_vm9, %v13009_v61, %v6498_v37  ;;  %v3811_v33 = vadd.f32 %v12741_v46, %v3375_v35 }
 0x36e   : > { %v13080_v40 = vmax.f32 %v5096_v36, %v5097_v23  ;;  %v5135_v8 = vrot.slane %v5134_v17, 4  ;;  %v3390_v45 = vadd.f32 %v12939_v63, %v12978_v18  ;;  %v6500_v36 = vsel %vm6436_vm10, %v4958_v44, %v6499_v27  ;;  %v13104_v18 = vpop.f32.mrf.mxu0  ;;  %v13106_v44 = vpop.f32.mrf.mxu1 }
 0x36f   : > { %v5141_v29 = vsel %vm4391_vm3, %v4192_v60, -inf  ;;  %v3385_v20 = vadd.f32 %v12955_v53, %v13001_v41  ;;  %10616 = vmatmul.mubr.msk.f32.gmra.mxu0 %vm6651_vm11, %v6500_v36  ;;  %v3938_v5 = vmax.f32 %v3811_v33, 0.0  ;;  %v15853_v21 = vrot.slane %v12865_v7, 1 }
 0x370   : > { %15852 = vst [vmem:[#allocation14_spill] sm:$0xff] %v13080_v40  ;;  %v5136_v0 = vmax.f32 %v5134_v17, %v5135_v8  ;;  %v5142_v30 = vrot.slane %v5141_v29, 4  ;;  %v3814_v9 = vadd.f32 %v12741_v46, %v3390_v45  ;;  %v15854_v23 = vrot.slane %v12837_v4, 2 }
 0x371   : > { %v13099_v61 = vmax.f32 %v12865_v7, %v15853_v21  ;;  %v3813_v41 = vadd.f32 %v12741_v46, %v3385_v20  ;;  %v7012_v60 = vsel %vm6426_vm5, %v12843_v16, %v7011_v13  ;;  %v4191_v17 = vcombine.high %v3938_v5, %v3938_v5  ;;  %v13118_v20 = vpop.f32.mrf.mxu1 }
 0x372   : > { %v5005_v63 = vmax.f32 %v12837_v4, %v15854_v23  ;;  %v5137_v25 = vrot.slane %v5136_v0, 2  ;;  %v5143_v53 = vmax.f32 %v5141_v29, %v5142_v30  ;;  %v5120_v31 = vsel %vm4391_vm3, %v3938_v5, -inf  ;;  %v13116_v30 = vpop.f32.mrf.mxu0 }
 0x373   : > { %v3941_v7 = vmax.f32 %v3814_v9, 0.0  ;;  %v5121_v27 = vrot.slane %v5120_v31, 4  ;;  %v3940_v4 = vmax.f32 %v3813_v41, 0.0  ;;  %v5127_v33 = vsel %vm4391_vm3, %v4191_v17, -inf }
 0x374   : > { %v5006_v35 = vrot.slane %v5005_v63, 1  ;;  %v5138_v8 = vmax.f32 %v5136_v0, %v5137_v25  ;;  %v5144_v37 = vrot.slane %v5143_v53, 2  ;;  %v5128_v9 = vrot.slane %v5127_v33, 4  ;;  %v13125_v40 = vpop.f32.mrf.mxu0 }
 0x375   : > { %v4194_v45 = vcombine.high %v3941_v7, %v3941_v7  ;;  %v5162_v36 = vsel %vm4391_vm3, %v3941_v7, -inf  ;;  %v5122_v5 = vmax.f32 %v5120_v31, %v5121_v27  ;;  %v4193_v25 = vcombine.high %v3940_v4, %v3940_v4 }
 0x376   : > { %v13114_v29 = vmax.f32 %v5005_v63, %v5006_v35  ;;  %v5139_v13 = vrot.slane %v5138_v8, 1  ;;  %v5145_v21 = vmax.f32 %v5143_v53, %v5144_v37  ;;  %v5163_v23 = vrot.slane %v5162_v36, 4  ;;  %v13127_v53 = vpop.f32.mrf.mxu1 }
 0x377   : > { %v5169_v0 = vsel %vm4391_vm3, %v4194_v45, -inf  ;;  %v5148_v41 = vsel %vm4391_vm3, %v3940_v4, -inf  ;;  %v5123_v7 = vrot.slane %v5122_v5, 2  ;;  %v5129_v63 = vmax.f32 %v5127_v33, %v5128_v9 }
 0x378   : > { %v13122_v17 = vmax.f32 %v5138_v8, %v5139_v13  ;;  %v5146_v6 = vrot.slane %v5145_v21, 1  ;;  %v5164_v35 = vmax.f32 %v5162_v36, %v5163_v23  ;;  %v5170_v1 = vrot.slane %v5169_v0, 4 }
 0x379   : > { %v5149_v3 = vrot.slane %v5148_v41, 4  ;;  %v5155_v38 = vsel %vm4391_vm3, %v4193_v25, -inf  ;;  %v13131_v37 = vmax.f32 %v5122_v5, %v5123_v7  ;;  %v5130_v27 = vrot.slane %v5129_v63, 2 }
 0x37a   : > { %v13129_v31 = vmax.f32 %v5145_v21, %v5146_v6  ;;  %v5156_v4 = vrot.slane %v5155_v38, 4  ;;  %v5165_v8 = vrot.slane %v5164_v35, 2  ;;  %v5171_v45 = vmax.f32 %v5169_v0, %v5170_v1 }
 0x37b   : > { %v5150_v13 = vmax.f32 %v5148_v41, %v5149_v3  ;;  %v7013_v33 = vsel %vm6428_vm6, %v12847_v58, %v7012_v60  ;;  %v5131_v36 = vmax.f32 %v5129_v63, %v5130_v27  ;;  %v3400_v25 = vadd.f32 %v12980_v24, %v13018_v51  ;;  %v13143_v3 = vpop.f32.mrf.mxu1 }
 0x37c   : > { %15855 = vst [vmem:[#allocation11_spill] sm:$0xff] %v13129_v31  ;;  %v5157_v9 = vmax.f32 %v5155_v38, %v5156_v4  ;;  %v7014_v23 = vsel %vm6430_vm7, %v12887_v34, %v7013_v33  ;;  %v5166_v6 = vmax.f32 %v5164_v35, %v5165_v8  ;;  %v5172_v21 = vrot.slane %v5171_v45, 2  ;;  %v13141_v31 = vpop.f32.mrf.mxu0 }
 0x37d   : > { %v5151_v5 = vrot.slane %v5150_v13, 2  ;;  %v7015_v7 = vsel %vm6432_vm8, %v13099_v61, %v7014_v23  ;;  %v5132_v1 = vrot.slane %v5131_v36, 1  ;;  %v3816_v0 = vadd.f32 %v12741_v46, %v3400_v25 }
 0x37e   : > { %v5158_v60 = vrot.slane %v5157_v9, 2  ;;  %v7016_v38 = vsel %vm6434_vm9, %v12856_v11, %v7015_v7  ;;  %v5167_v41 = vrot.slane %v5166_v6, 1  ;;  %v13148_v63 = vmax.f32 %v5171_v45, %v5172_v21  ;;  %v13164_v21 = vpop.f32.mrf.mxu1 }
 0x37f   : > { %v5152_v24 = vmax.f32 %v5150_v13, %v5151_v5  ;;  %v7017_v51 = vsel %vm6436_vm10, %v13114_v29, %v7016_v38  ;;  %v13152_v35 = vmax.f32 %v5131_v36, %v5132_v1  ;;  %v3943_v4 = vmax.f32 %v3816_v0, 0.0  ;;  %v13162_v13 = vpop.f32.mrf.mxu0 }
 0x380   : > { %v5159_v27 = vmax.f32 %v5157_v9, %v5158_v60  ;;  %10674 = vmatprep.mubr.msk.f32.mxu1 %vm6651_vm11, %v7017_v51  ;;  %v5013_v8 = vrot.slane %v12932_v15, 1  ;;  %v13156_v33 = vmax.f32 %v5166_v6, %v5167_v41  ;;  %v6501_v45 = vsel %vm6424_vm4, %v12843_v16, %v12863_v47 }
 0x381   : > { %v5153_v25 = vrot.slane %v5152_v24, 1  ;;  %v13169_v36 = vsel %vm6424_vm4, %v13122_v17, %v13152_v35  ;;  %v4196_v5 = vcombine.high %v3943_v4, %v3943_v4  ;;  %v5190_v6 = vsel %vm4391_vm3, %v3943_v4, -inf }
 0x382   : > { %v5160_v9 = vrot.slane %v5159_v27, 1  ;;  %v5191_v1 = vrot.slane %v5190_v6, 4  ;;  %v5014_v60 = vmax.f32 %v12932_v15, %v5013_v8  ;;  %v6502_v16 = vsel %vm6426_vm5, %v12847_v58, %v6501_v45  ;;  %v13188_v8 = vpop.f32.mrf.mxu0  ;;  %v13190_v58 = vpop.f32.mrf.mxu1 }
 0x383   : > { %v13172_v7 = vmax.f32 %v5152_v24, %v5153_v25  ;;  %v5197_v38 = vsel %vm4391_vm3, %v4196_v5, -inf  ;;  %v6503_v0 = vsel %vm6428_vm6, %v12887_v34, %v6502_v16  ;;  %v3395_v41 = vadd.f32 %v13003_v14, %v13033_v43 }
 0x384   : > { %v13177_v47 = vmax.f32 %v5159_v27, %v5160_v9  ;;  %v5192_v51 = vmax.f32 %v5190_v6, %v5191_v1  ;;  %v5198_v4 = vrot.slane %v5197_v38, 4  ;;  %v6504_v24 = vsel %vm6430_vm7, %v13099_v61, %v6503_v0 }
 0x385   : > { %v7018_v15 = vsel %vm6424_vm4, %v12957_v39, %v5014_v60  ;;  %v6505_v27 = vsel %vm6432_vm8, %v12856_v11, %v6504_v24  ;;  %v3815_v14 = vadd.f32 %v12741_v46, %v3395_v41  ;;  %v3410_v43 = vadd.f32 %v13020_v26, %v13051_v48 }
 0x386   : > { %v7019_v34 = vsel %vm6426_vm5, %v12922_v52, %v7018_v15  ;;  %v5193_v25 = vrot.slane %v5192_v51, 2  ;;  %v5199_v61 = vmax.f32 %v5197_v38, %v5198_v4  ;;  %v6506_v39 = vsel %vm6434_vm9, %v13114_v29, %v6505_v27 }
 0x387   : > { %v3405_v45 = vadd.f32 %v13035_v28, %v13076_v10  ;;  %v6507_v9 = vsel %vm6436_vm10, %v5014_v60, %v6506_v39  ;;  %v3942_v5 = vmax.f32 %v3815_v14, 0.0  ;;  %v3818_v11 = vadd.f32 %v12741_v46, %v3410_v43  ;;  %v13214_v28 = vpop.f32.mrf.mxu0  ;;  %v13216_v10 = vpop.f32.mrf.mxu1 }
 0x388   : > { %v15856_v52 = vrot.slane %v12943_v42, 1  ;;  %v5194_v1 = vmax.f32 %v5192_v51, %v5193_v25  ;;  %v5200_v26 = vrot.slane %v5199_v61, 2  ;;  %10618 = vmatprep.mubr.msk.f32.mxu0 %vm6651_vm11, %v6507_v9  ;;  %v7020_v29 = vsel %vm6428_vm6, %v12929_v50, %v7019_v34 }
 0x389   : > { %v3817_v48 = vadd.f32 %v12741_v46, %v3405_v45  ;;  %v4195_v60 = vcombine.high %v3942_v5, %v3942_v5  ;;  %v5176_v16 = vsel %vm4391_vm3, %v3942_v5, -inf  ;;  %v3945_v38 = vmax.f32 %v3818_v11, 0.0  ;;  %v13227_v39 = vpop.f32.mrf.mxu0  ;;  %v13229_v45 = vpop.f32.mrf.mxu1 }
 0x38a   : > { %v13208_v6 = vmax.f32 %v12943_v42, %v15856_v52  ;;  %v7021_v42 = vsel %vm6430_vm7, %v12971_v54, %v7020_v29  ;;  %v5195_v0 = vrot.slane %v5194_v1, 1  ;;  %v5201_v41 = vmax.f32 %v5199_v61, %v5200_v26 }
 0x38b   : > { %v5177_v51 = vrot.slane %v5176_v16, 4  ;;  %v3944_v4 = vmax.f32 %v3817_v48, 0.0  ;;  %v5183_v46 = vsel %vm4391_vm3, %v4195_v60, -inf  ;;  %v4198_v24 = vcombine.high %v3945_v38, %v3945_v38  ;;  %v13242_v23 = vpop.f32.mrf.mxu0 }
 0x38c   : > { %v5218_v15 = vsel %vm4391_vm3, %v3945_v38, -inf  ;;  %v7022_v27 = vsel %vm6432_vm8, %v12982_v22, %v7021_v42  ;;  %v13225_v34 = vmax.f32 %v5194_v1, %v5195_v0  ;;  %v5202_v14 = vrot.slane %v5201_v41, 1 }
 0x38d   : > { %v5178_v43 = vmax.f32 %v5176_v16, %v5177_v51  ;;  %v5184_v25 = vrot.slane %v5183_v46, 4  ;;  %v5219_v61 = vrot.slane %v5218_v15, 4  ;;  %v5225_v9 = vsel %vm4391_vm3, %v4198_v24, -inf }
 0x38e   : > { %v4197_v5 = vcombine.high %v3944_v4, %v3944_v4  ;;  %v5204_v11 = vsel %vm4391_vm3, %v3944_v4, -inf  ;;  %v13233_v52 = vmax.f32 %v5201_v41, %v5202_v14  ;;  %v5226_v29 = vrot.slane %v5225_v9, 4  ;;  %v13244_v41 = vpop.f32.mrf.mxu1 }
 0x38f   : > { %v5179_v26 = vrot.slane %v5178_v43, 2  ;;  %v5185_v48 = vmax.f32 %v5183_v46, %v5184_v25  ;;  %v5220_v1 = vmax.f32 %v5218_v15, %v5219_v61  ;;  %v5205_v60 = vrot.slane %v5204_v11, 4 }
 0x390   : > { %15857 = vst [vmem:[#allocation17_spill] sm:$0xff] %v13233_v52  ;;  %v5211_v16 = vsel %vm4391_vm3, %v4197_v5, -inf  ;;  %v7023_v38 = vsel %vm6434_vm9, %v12949_v56, %v7022_v27  ;;  %v13240_v51 = vmax.f32 %v5225_v9, %v5226_v29  ;;  %v3420_v14 = vadd.f32 %v13053_v19, %v13104_v18 }
 0x391   : > { %v13238_v42 = vmax.f32 %v5178_v43, %v5179_v26  ;;  %v5186_v0 = vrot.slane %v5185_v48, 2  ;;  %v5212_v24 = vrot.slane %v5211_v16, 4  ;;  %v5221_v4 = vrot.slane %v5220_v1, 2 }
 0x392   : > { %v5206_v46 = vmax.f32 %v5204_v11, %v5205_v60  ;;  %v7024_v15 = vsel %vm6436_vm10, %v13208_v6, %v7023_v38  ;;  %v13256_v11 = vld [vmem:[%s15730_s4] ss:$0 sm:$0xff]  ;;  %v15858_v29 = vrot.slane %v13037_v55, 1  ;;  %v6509_v60 = vsel %vm6426_vm5, %v12929_v50, %v12969_v62  ;;  %v13269_v38 = vpop.f32.mrf.mxu1 }
 0x393   : > { %v5187_v43 = vmax.f32 %v5185_v48, %v5186_v0  ;;  %v5213_v61 = vmax.f32 %v5211_v16, %v5212_v24  ;;  %10675 = vmatmul.mubr.msk.f32.gmra.mxu1 %vm6651_vm11, %v7024_v15  ;;  %v5222_v9 = vmax.f32 %v5220_v1, %v5221_v4  ;;  %v3820_v26 = vadd.f32 %v13256_v11, %v3420_v14  ;;  %v13267_v16 = vpop.f32.mrf.mxu0 }
 0x394   : > { %v5207_v5 = vrot.slane %v5206_v46, 2  ;;  %v5070_v19 = vmax.f32 %v13037_v55, %v15858_v29  ;;  %v3415_v1 = vadd.f32 %v13078_v57, %v13116_v30  ;;  %v6510_v15 = vsel %vm6428_vm6, %v12971_v54, %v6509_v60 }
 0x395   : > { %v5188_v18 = vrot.slane %v5187_v43, 1  ;;  %v5214_v48 = vrot.slane %v5213_v61, 2  ;;  %v5223_v0 = vrot.slane %v5222_v9, 1  ;;  %v3947_v4 = vmax.f32 %v3820_v26, 0.0 }
 0x396   : > { %v5208_v24 = vmax.f32 %v5206_v46, %v5207_v5  ;;  %v6511_v50 = vsel %vm6430_vm7, %v12982_v22, %v6510_v15  ;;  %v7025_v62 = vsel %vm6424_vm4, %v13065_v32, %v5070_v19  ;;  %v13290_v22 = vpop.f32.mrf.mxu1  ;;  %v3430_v60 = vadd.f32 %v13106_v44, %v13125_v40 }
 0x397   : > { %v13273_v55 = vmax.f32 %v5187_v43, %v5188_v18  ;;  %v13275_v14 = vmax.f32 %v5213_v61, %v5214_v48  ;;  %v13281_v57 = vmax.f32 %v5222_v9, %v5223_v0  ;;  %v4200_v29 = vcombine.high %v3947_v4, %v3947_v4  ;;  %v13288_v61 = vpop.f32.mrf.mxu0 }
 0x398   : > { %v5209_v30 = vrot.slane %v5208_v24, 1  ;;  %v5246_v46 = vsel %vm4391_vm3, %v3947_v4, -inf  ;;  %v6512_v54 = vsel %vm6432_vm8, %v12949_v56, %v6511_v50  ;;  %v3819_v43 = vadd.f32 %v13256_v11, %v3415_v1 }
 0x399   : > { %15859 = vst [vmem:[#allocation18_spill] sm:$0xff] %v13281_v57  ;;  %v5247_v26 = vrot.slane %v5246_v46, 4  ;;  %v5253_v9 = vsel %vm4391_vm3, %v4200_v29, -inf  ;;  %v6513_v48 = vsel %vm6434_vm9, %v13208_v6, %v6512_v54  ;;  %v3822_v1 = vadd.f32 %v13256_v11, %v3430_v60  ;;  %v13315_v54 = vpop.f32.mrf.mxu1 }
 0x39a   : > { %v13292_v18 = vmax.f32 %v5208_v24, %v5209_v30  ;;  %v5254_v4 = vrot.slane %v5253_v9, 4  ;;  %v6514_v56 = vsel %vm6436_vm10, %v5070_v19, %v6513_v48  ;;  %v3946_v15 = vmax.f32 %v3819_v43, 0.0  ;;  %15863 = vst [vmem:[#allocation23_spill] sm:$0xff] %v13315_v54 }
 0x39b   : > { %v5248_v0 = vmax.f32 %v5246_v46, %v5247_v26  ;;  %10619 = vmatmul.mubr.msk.f32.gmra.mxu0 %vm6651_vm11, %v6514_v56  ;;  %v3425_v24 = vadd.f32 %v13118_v20, %v13141_v31  ;;  %v15861_v50 = vrot.slane %v13067_v59, 1  ;;  %v15862_v6 = vrot.slane %v13028_v12, 2  ;;  %v13313_v26 = vpop.f32.mrf.mxu0 }
 0x39c   : > { %15860 = vst [vmem:[#allocation15_spill] sm:$0xff] %v13292_v18  ;;  %v5255_v29 = vmax.f32 %v5253_v9, %v5254_v4  ;;  %v4199_v19 = vcombine.high %v3946_v15, %v3946_v15  ;;  %v5232_v46 = vsel %vm4391_vm3, %v3946_v15, -inf  ;;  %v3949_v20 = vmax.f32 %v3822_v1, 0.0 }
 0x39d   : > { %v13307_v30 = vmax.f32 %v13067_v59, %v15861_v50  ;;  %v5117_v40 = vmax.f32 %v13028_v12, %v15862_v6  ;;  %v5249_v44 = vrot.slane %v5248_v0, 2  ;;  %v5233_v43 = vrot.slane %v5232_v46, 4  ;;  %v13322_v1 = vpop.f32.mrf.mxu0 }
 0x39e   : > { %v3821_v31 = vadd.f32 %v13256_v11, %v3425_v24  ;;  %v5256_v60 = vrot.slane %v5255_v29, 2  ;;  %v5239_v56 = vsel %vm4391_vm3, %v4199_v19, -inf  ;;  %v7026_v12 = vsel %vm6426_vm5, %v13015_v49, %v7025_v62  ;;  %v13324_v24 = vpop.f32.mrf.mxu1 }
 0x39f   : > { %v5118_v48 = vrot.slane %v5117_v40, 1  ;;  %v5250_v59 = vmax.f32 %v5248_v0, %v5249_v44  ;;  %v5234_v9 = vmax.f32 %v5232_v46, %v5233_v43  ;;  %v5240_v4 = vrot.slane %v5239_v56, 4  ;;  %15864 = vst [vmem:[#allocation19_spill] sm:$0xff] %v13324_v24 }
 0x3a0   : > { %v4202_v50 = vcombine.high %v3949_v20, %v3949_v20  ;;  %v5274_v15 = vsel %vm4391_vm3, %v3949_v20, -inf  ;;  %v5257_v25 = vmax.f32 %v5255_v29, %v5256_v60  ;;  %v3948_v27 = vmax.f32 %v3821_v31, 0.0 }
 0x3a1   : > { %v5251_v6 = vrot.slane %v5250_v59, 1  ;;  %v5275_v5 = vrot.slane %v5274_v15, 4  ;;  %v5235_v0 = vrot.slane %v5234_v9, 2  ;;  %v5241_v44 = vmax.f32 %v5239_v56, %v5240_v4  ;;  %v13336_v4 = vpop.f32.mrf.mxu0 }
 0x3a2   : > { %v5281_v19 = vsel %vm4391_vm3, %v4202_v50, -inf  ;;  %v13327_v54 = vmax.f32 %v5117_v40, %v5118_v48  ;;  %v5258_v46 = vrot.slane %v5257_v25, 1  ;;  %v4201_v60 = vcombine.high %v3948_v27, %v3948_v27  ;;  %v13338_v40 = vpop.f32.mrf.mxu1 }
 0x3a3   : > { %v13329_v62 = vmax.f32 %v5250_v59, %v5251_v6  ;;  %v5276_v43 = vmax.f32 %v5274_v15, %v5275_v5  ;;  %v5282_v57 = vrot.slane %v5281_v19, 4  ;;  %v13331_v20 = vmax.f32 %v5234_v9, %v5235_v0 }
 0x3a4   : > { %v5242_v29 = vrot.slane %v5241_v44, 2  ;;  %v5260_v31 = vsel %vm4391_vm3, %v3948_v27, -inf  ;;  %v13334_v18 = vmax.f32 %v5257_v25, %v5258_v46  ;;  %v5267_v59 = vsel %vm4391_vm3, %v4201_v60, -inf }
 0x3a5   : > { %v5277_v24 = vrot.slane %v5276_v43, 2  ;;  %v5283_v52 = vmax.f32 %v5281_v19, %v5282_v57  ;;  %v5261_v56 = vrot.slane %v5260_v31, 4  ;;  %v7027_v5 = vsel %vm6428_vm6, %v13022_v2, %v7026_v12  ;;  %v15866_v57 = vld [vmem:[#allocation14_spill] sm:$0xff] }
 0x3a6   : > { %15865 = vst [vmem:[#allocation13_spill] sm:$0xff] %v13334_v18  ;;  %v5243_v48 = vmax.f32 %v5241_v44, %v5242_v29  ;;  %v3440_v9 = vadd.f32 %v13127_v53, %v13162_v13  ;;  %v5268_v15 = vrot.slane %v5267_v59, 4  ;;  %v7028_v0 = vsel %vm6430_vm7, %v15866_v57, %v7027_v5  ;;  %v13351_v18 = vpop.f32.mrf.mxu0  ;;  %v13353_v53 = vpop.f32.mrf.mxu1 }
 0x3a7   : > { %v5278_v50 = vmax.f32 %v5276_v43, %v5277_v24  ;;  %v5284_v27 = vrot.slane %v5283_v52, 2  ;;  %v5262_v25 = vmax.f32 %v5260_v31, %v5261_v56  ;;  %v5125_v44 = vrot.slane %v13131_v37, 1 }
 0x3a8   : > { %v5244_v6 = vrot.slane %v5243_v48, 1  ;;  %v3824_v19 = vadd.f32 %v13256_v11, %v3440_v9  ;;  %v5269_v12 = vmax.f32 %v5267_v59, %v5268_v15  ;;  %v7029_v24 = vsel %vm6432_vm8, %v13307_v30, %v7028_v0 }
 0x3a9   : > { %v5279_v46 = vrot.slane %v5278_v50, 1  ;;  %v13349_v29 = vmax.f32 %v5283_v52, %v5284_v27  ;;  %v5263_v60 = vrot.slane %v5262_v25, 2  ;;  %v5126_v31 = vmax.f32 %v13131_v37, %v5125_v44  ;;  %v15867_v27 = vld [vmem:[#allocation12_spill] sm:$0xff]  ;;  %v13373_v44 = vpop.f32.mrf.mxu0 }
 0x3aa   : > { %v13355_v13 = vmax.f32 %v5243_v48, %v5244_v6  ;;  %v3951_v43 = vmax.f32 %v3824_v19, 0.0  ;;  %v5270_v9 = vrot.slane %v5269_v12, 2  ;;  %v7030_v48 = vsel %vm6434_vm9, %v15867_v27, %v7029_v24 }
 0x3ab   : > { %v13360_v56 = vmax.f32 %v5278_v50, %v5279_v46  ;;  %v5264_v52 = vmax.f32 %v5262_v25, %v5263_v60  ;;  %v7031_v37 = vsel %vm6436_vm10, %v13327_v54, %v7030_v48  ;;  %v13375_v25 = vpop.f32.mrf.mxu1  ;;  %v6515_v60 = vsel %vm6424_vm4, %v13015_v49, %v13065_v32 }
 0x3ac   : > { %v13366_v59 = vsel %vm6424_vm4, %v13329_v62, %v13355_v13  ;;  %v4204_v15 = vcombine.high %v3951_v43, %v3951_v43  ;;  %v5302_v6 = vsel %vm4391_vm3, %v3951_v43, -inf  ;;  %v5271_v19 = vmax.f32 %v5269_v12, %v5270_v9  ;;  %15868 = vst [vmem:[#allocation20_spill] sm:$0xff] %v13375_v25  ;;  %10677 = vmatprep.mubr.msk.f32.mxu1 %vm6651_vm11, %v7031_v37 }
 0x3ad   : > { %v5265_v0 = vrot.slane %v5264_v52, 1  ;;  %v5303_v50 = vrot.slane %v5302_v6, 4  ;;  %v7032_v24 = vsel %vm6424_vm4, %v13152_v35, %v5126_v31  ;;  %v3435_v12 = vadd.f32 %v13143_v3, %v13188_v8 }
 0x3ae   : > { %v5309_v46 = vsel %vm4391_vm3, %v4204_v15, -inf  ;;  %v5272_v9 = vrot.slane %v5271_v19, 1  ;;  %v6516_v37 = vsel %vm6426_vm5, %v13022_v2, %v6515_v60  ;;  %v7033_v15 = vsel %vm6426_vm5, %v13122_v17, %v7032_v24 }
 0x3af   : > { %v13386_v43 = vmax.f32 %v5264_v52, %v5265_v0  ;;  %v5304_v48 = vmax.f32 %v5302_v6, %v5303_v50  ;;  %v5310_v5 = vrot.slane %v5309_v46, 4  ;;  %v3823_v25 = vadd.f32 %v13256_v11, %v3435_v12  ;;  %v13399_v52 = vpop.f32.mrf.mxu0  ;;  %v13401_v6 = vpop.f32.mrf.mxu1 }
 0x3b0   : > { %v3450_v49 = vadd.f32 %v13164_v21, %v13214_v28  ;;  %v13395_v32 = vmax.f32 %v5271_v19, %v5272_v9  ;;  %v6517_v8 = vsel %vm6428_vm6, %v15866_v57, %v6516_v37  ;;  %v3445_v21 = vadd.f32 %v13190_v58, %v13227_v39 }
 0x3b1   : > { %v5305_v35 = vrot.slane %v5304_v48, 2  ;;  %v5311_v3 = vmax.f32 %v5309_v46, %v5310_v5  ;;  %v6518_v2 = vsel %vm6430_vm7, %v13307_v30, %v6517_v8  ;;  %v3950_v17 = vmax.f32 %v3823_v25, 0.0  ;;  %v13419_v9 = vpop.f32.mrf.mxu0 }
 0x3b2   : > { %v3826_v0 = vadd.f32 %v13256_v11, %v3450_v49  ;;  %v6519_v5 = vsel %vm6432_vm8, %v15867_v27, %v6518_v2  ;;  %v15869_v57 = vrot.slane %v13148_v63, 1  ;;  %v13421_v27 = vpop.f32.mrf.mxu1  ;;  %v3825_v37 = vadd.f32 %v13256_v11, %v3445_v21 }
 0x3b3   : > { %v5306_v28 = vmax.f32 %v5304_v48, %v5305_v35  ;;  %v5312_v19 = vrot.slane %v5311_v3, 2  ;;  %v6520_v46 = vsel %vm6434_vm9, %v13327_v54, %v6519_v5  ;;  %v4203_v30 = vcombine.high %v3950_v17, %v3950_v17 }
 0x3b4   : > { %v13413_v50 = vmax.f32 %v13148_v63, %v15869_v57  ;;  %v5288_v25 = vsel %vm4391_vm3, %v3950_v17, -inf  ;;  %v3953_v60 = vmax.f32 %v3826_v0, 0.0  ;;  %v6521_v58 = vsel %vm6436_vm10, %v5126_v31, %v6520_v46  ;;  %v15870_v0 = vld [vmem:[#allocation11_spill] sm:$0xff]  ;;  %v13436_v21 = vpop.f32.mrf.mxu1 }
 0x3b5   : > { %v5307_v24 = vrot.slane %v5306_v28, 1  ;;  %v5313_v12 = vmax.f32 %v5311_v3, %v5312_v19  ;;  %v5289_v39 = vrot.slane %v5288_v25, 4  ;;  %10621 = vmatprep.mubr.msk.f32.mxu0 %vm6651_vm11, %v6521_v58  ;;  %v5295_v63 = vsel %vm4391_vm3, %v4203_v30, -inf  ;;  %15872 = vst [vmem:[#allocation16_spill] sm:$0xff] %v13436_v21 }
 0x3b6   : > { %v4206_v48 = vcombine.high %v3953_v60, %v3953_v60  ;;  %v5330_v54 = vsel %vm4391_vm3, %v3953_v60, -inf  ;;  %v5296_v8 = vrot.slane %v5295_v63, 4  ;;  %v3952_v17 = vmax.f32 %v3825_v37, 0.0  ;;  %v13434_v60 = vpop.f32.mrf.mxu0 }
 0x3b7   : > { %v13427_v49 = vmax.f32 %v5306_v28, %v5307_v24  ;;  %v5314_v35 = vrot.slane %v5313_v12, 1  ;;  %v5290_v3 = vmax.f32 %v5288_v25, %v5289_v39  ;;  %v5331_v31 = vrot.slane %v5330_v54, 4 }
 0x3b8   : > { %v5337_v2 = vsel %vm4391_vm3, %v4206_v48, -inf  ;;  %v7034_v19 = vsel %vm6428_vm6, %v15870_v0, %v7033_v15  ;;  %v5297_v46 = vmax.f32 %v5295_v63, %v5296_v8  ;;  %v4205_v24 = vcombine.high %v3952_v17, %v3952_v17 }
 0x3b9   : > { %v13432_v5 = vmax.f32 %v5313_v12, %v5314_v35  ;;  %v5291_v57 = vrot.slane %v5290_v3, 2  ;;  %v5338_v30 = vrot.slane %v5337_v2, 4  ;;  %v5332_v28 = vmax.f32 %v5330_v54, %v5331_v31 }
 0x3ba   : > { %v5316_v25 = vsel %vm4391_vm3, %v3952_v17, -inf  ;;  %v7035_v58 = vsel %vm6430_vm7, %v13172_v7, %v7034_v19  ;;  %v5298_v48 = vrot.slane %v5297_v46, 2  ;;  %v5323_v63 = vsel %vm4391_vm3, %v4205_v24, -inf  ;;  %v13449_v19 = vpop.f32.mrf.mxu0 }
 0x3bb   : > { %15871 = vst [vmem:[#allocation25_spill] sm:$0xff] %v13432_v5  ;;  %v5292_v39 = vmax.f32 %v5290_v3, %v5291_v57  ;;  %v13441_v37 = vmax.f32 %v5337_v2, %v5338_v30  ;;  %v5317_v15 = vrot.slane %v5316_v25, 4  ;;  %v5333_v12 = vrot.slane %v5332_v28, 2  ;;  %v13451_v3 = vpop.f32.mrf.mxu1 }
 0x3bc   : > { %v7036_v35 = vsel %vm6432_vm8, %v13177_v47, %v7035_v58  ;;  %v3460_v54 = vadd.f32 %v13216_v10, %v13242_v23  ;;  %v5299_v31 = vmax.f32 %v5297_v46, %v5298_v48  ;;  %15873 = vst [vmem:[#allocation24_spill] sm:$0xff] %v13451_v3  ;;  %v5324_v57 = vrot.slane %v5323_v63, 4 }
 0x3bd   : > { %v5293_v8 = vrot.slane %v5292_v39, 1  ;;  %v5318_v21 = vmax.f32 %v5316_v25, %v5317_v15  ;;  %v5334_v2 = vmax.f32 %v5332_v28, %v5333_v12  ;;  %v7037_v30 = vsel %vm6434_vm9, %v13156_v33, %v7036_v35 }
 0x3be   : > { %v3828_v24 = vadd.f32 %v13256_v11, %v3460_v54  ;;  %v5300_v5 = vrot.slane %v5299_v31, 1  ;;  %v7038_v10 = vsel %vm6436_vm10, %v13413_v50, %v7037_v30  ;;  %v5325_v25 = vmax.f32 %v5323_v63, %v5324_v57  ;;  %v13471_v30 = vpop.f32.mrf.mxu1 }
 0x3bf   : > { %v13456_v58 = vmax.f32 %v5292_v39, %v5293_v8  ;;  %v5319_v23 = vrot.slane %v5318_v21, 2  ;;  %v5335_v46 = vrot.slane %v5334_v2, 1  ;;  %10678 = vmatmul.mubr.msk.f32.gmra.mxu1 %vm6651_vm11, %v7038_v10  ;;  %v15874_v28 = vrot.slane %v13238_v42, 1  ;;  %v13469_v8 = vpop.f32.mrf.mxu0  ;;  %15875 = vst [vmem:[#allocation27_spill] sm:$0xff] %v13471_v30 }
 0x3c0   : > { %v3955_v48 = vmax.f32 %v3828_v24, 0.0  ;;  %v5301_v12 = vmax.f32 %v5299_v31, %v5300_v5  ;;  %v6523_v39 = vsel %vm6426_vm5, %v15870_v0, %v13169_v36  ;;  %v3455_v54 = vadd.f32 %v13229_v45, %v13267_v16 }
 0x3c1   : > { %v5182_v15 = vmax.f32 %v13238_v42, %v15874_v28  ;;  %v5320_v35 = vmax.f32 %v5318_v21, %v5319_v23  ;;  %v13473_v63 = vmax.f32 %v5334_v2, %v5335_v46  ;;  %v5326_v57 = vrot.slane %v5325_v25, 2  ;;  %v13495_v28 = vpop.f32.mrf.mxu0 }
 0x3c2   : > { %v4208_v24 = vcombine.high %v3955_v48, %v3955_v48  ;;  %v5358_v10 = vsel %vm4391_vm3, %v3955_v48, -inf  ;;  %v13478_v42 = vsel %vm6424_vm4, %v13427_v49, %v5301_v12  ;;  %v13482_v36 = vsel %vm6424_vm4, %v5301_v12, %v13456_v58  ;;  %v13497_v12 = vpop.f32.mrf.mxu1 }
 0x3c3   : > { %v5321_v0 = vrot.slane %v5320_v35, 1  ;;  %v5359_v45 = vrot.slane %v5358_v10, 4  ;;  %v5327_v16 = vmax.f32 %v5325_v25, %v5326_v57  ;;  %v6524_v21 = vsel %vm6428_vm6, %v13172_v7, %v6523_v39  ;;  %15876 = vst [vmem:[#allocation22_spill] sm:$0xff] %v13497_v12 }
 0x3c4   : > { %v5365_v5 = vsel %vm4391_vm3, %v4208_v24, -inf  ;;  %v13489_v31 = vsel %vm6424_vm4, %v13273_v55, %v5182_v15  ;;  %v6525_v48 = vsel %vm6430_vm7, %v13177_v47, %v6524_v21  ;;  %v3827_v7 = vadd.f32 %v13256_v11, %v3455_v54 }
 0x3c5   : > { %v13491_v2 = vmax.f32 %v5320_v35, %v5321_v0  ;;  %v5360_v23 = vmax.f32 %v5358_v10, %v5359_v45  ;;  %v5366_v46 = vrot.slane %v5365_v5, 4  ;;  %v5328_v25 = vrot.slane %v5327_v16, 1 }
 0x3c6   : > { %v6526_v57 = vsel %vm6432_vm8, %v13156_v33, %v6525_v48  ;;  %v3470_v39 = vadd.f32 %v13244_v41, %v13288_v61  ;;  %v3465_v47 = vadd.f32 %v13269_v38, %v13313_v26  ;;  %v3954_v21 = vmax.f32 %v3827_v7, 0.0  ;;  %v13521_v38 = vpop.f32.mrf.mxu1 }
 0x3c7   : > { %v5361_v35 = vrot.slane %v5360_v23, 2  ;;  %v5367_v24 = vmax.f32 %v5365_v5, %v5366_v46  ;;  %v6527_v10 = vsel %vm6434_vm9, %v13413_v50, %v6526_v57  ;;  %v13508_v0 = vmax.f32 %v5327_v16, %v5328_v25  ;;  %v13519_v5 = vpop.f32.mrf.mxu0  ;;  %15879 = vst [vmem:[#allocation26_spill] sm:$0xff] %v13521_v38 }
 0x3c8   : > { %v6528_v45 = vsel %vm6436_vm10, %v5182_v15, %v6527_v10  ;;  %v3830_v33 = vadd.f32 %v13256_v11, %v3470_v39  ;;  %v3829_v41 = vadd.f32 %v13256_v11, %v3465_v47  ;;  %v15877_v61 = vrot.slane %v13275_v14, 1  ;;  %15878 = vst [vmem:[#allocation21_spill] sm:$0xff] %v13519_v5  ;;  %v13533_v38 = vpop.f32.mrf.mxu1 }
 0x3c9   : > { %v5362_v48 = vmax.f32 %v5360_v23, %v5361_v35  ;;  %v5368_v54 = vrot.slane %v5367_v24, 2  ;;  %10622 = vmatmul.mubr.msk.f32.gmra.mxu0 %vm6651_vm11, %v6528_v45  ;;  %v4207_v26 = vcombine.high %v3954_v21, %v3954_v21  ;;  %v5344_v15 = vsel %vm4391_vm3, %v3954_v21, -inf  ;;  %15882 = vst [vmem:[#allocation12_spill] sm:$0xff] %v13533_v38 }
 0x3ca   : > { %v13517_v50 = vmax.f32 %v13275_v14, %v15877_v61  ;;  %v3957_v16 = vmax.f32 %v3830_v33, 0.0  ;;  %v15880_v23 = vrot.slane %v13240_v51, 2  ;;  %v5345_v7 = vrot.slane %v5344_v15, 4  ;;  %v13531_v33 = vpop.f32.mrf.mxu0  ;;  %v13546_v3 = vpop.f32.mrf.mxu1 }
 0x3cb   : > { %v5363_v25 = vrot.slane %v5362_v48, 1  ;;  %v5369_v57 = vmax.f32 %v5367_v24, %v5368_v54  ;;  %v3956_v39 = vmax.f32 %v3829_v41, 0.0  ;;  %v5351_v35 = vsel %vm4391_vm3, %v4207_v26, -inf  ;;  %15881 = vst [vmem:[#allocation14_spill] sm:$0xff] %v13531_v33  ;;  %15883 = vst [vmem:[#allocation11_spill] sm:$0xff] %v13546_v3 }
 0x3cc   : > { %v5229_v46 = vmax.f32 %v13240_v51, %v15880_v23  ;;  %v4210_v14 = vcombine.high %v3957_v16, %v3957_v16  ;;  %v5386_v10 = vsel %vm4391_vm3, %v3957_v16, -inf  ;;  %v5346_v17 = vmax.f32 %v5344_v15, %v5345_v7 }
 0x3cd   : > { %v13529_v45 = vmax.f32 %v5362_v48, %v5363_v25  ;;  %v5370_v61 = vrot.slane %v5369_v57, 1  ;;  %v5352_v21 = vrot.slane %v5351_v35, 4  ;;  %v5387_v51 = vrot.slane %v5386_v10, 4 }
 0x3ce   : > { %v5230_v47 = vrot.slane %v5229_v46, 1  ;;  %v5393_v24 = vsel %vm4391_vm3, %v4210_v14, -inf  ;;  %v4209_v54 = vcombine.high %v3956_v39, %v3956_v39  ;;  %v5372_v41 = vsel %vm4391_vm3, %v3956_v39, -inf  ;;  %v13544_v14 = vpop.f32.mrf.mxu0 }
 0x3cf   : > { %v13537_v26 = vmax.f32 %v5369_v57, %v5370_v61  ;;  %v5347_v23 = vrot.slane %v5346_v17, 2  ;;  %v5353_v16 = vmax.f32 %v5351_v35, %v5352_v21  ;;  %v5394_v12 = vrot.slane %v5393_v24, 4  ;;  %v15884_v61 = vld [vmem:[#allocation17_spill] sm:$0xff] }
 0x3d0   : > { %v5388_v48 = vmax.f32 %v5386_v10, %v5387_v51  ;;  %v5373_v25 = vrot.slane %v5372_v41, 4  ;;  %v5379_v15 = vsel %vm4391_vm3, %v4209_v54, -inf  ;;  %v13540_v7 = vmax.f32 %v5229_v46, %v5230_v47 }
 0x3d1   : > { %v13542_v33 = vmax.f32 %v5346_v17, %v5347_v23  ;;  %v5354_v38 = vrot.slane %v5353_v16, 2  ;;  %v5395_v30 = vmax.f32 %v5393_v24, %v5394_v12  ;;  %v5380_v5 = vrot.slane %v5379_v15, 4  ;;  %v15885_v24 = vld [vmem:[#allocation15_spill] sm:$0xff] }
 0x3d2   : > { %v5389_v57 = vrot.slane %v5388_v48, 2  ;;  %v5374_v39 = vmax.f32 %v5372_v41, %v5373_v25  ;;  %v7040_v35 = vsel %vm6426_vm5, %v13225_v34, %v13489_v31  ;;  %v3480_v10 = vadd.f32 %v13290_v22, %v13322_v1  ;;  %v13562_v1 = vpop.f32.mrf.mxu0 }
 0x3d3   : > { %v5355_v46 = vmax.f32 %v5353_v16, %v5354_v38  ;;  %v5396_v47 = vrot.slane %v5395_v30, 2  ;;  %v5381_v17 = vmax.f32 %v5379_v15, %v5380_v5  ;;  %v7041_v12 = vsel %vm6428_vm6, %v15884_v61, %v7040_v35  ;;  %v13564_v5 = vpop.f32.mrf.mxu1 }
 0x3d4   : > { %v5390_v21 = vmax.f32 %v5388_v48, %v5389_v57  ;;  %v5375_v51 = vrot.slane %v5374_v39, 2  ;;  %v7042_v54 = vsel %vm6430_vm7, %v15885_v24, %v7041_v12  ;;  %v3832_v41 = vadd.f32 %v13256_v11, %v3480_v10  ;;  %15886 = vst [vmem:[#allocation17_spill] sm:$0xff] %v13564_v5  ;;  %v15887_v48 = vld [vmem:[#allocation18_spill] sm:$0xff] }
 0x3d5   : > { %v5356_v23 = vrot.slane %v5355_v46, 1  ;;  %v13558_v25 = vmax.f32 %v5395_v30, %v5396_v47  ;;  %v5382_v31 = vrot.slane %v5381_v17, 2  ;;  %v7043_v22 = vsel %vm6432_vm8, %v13517_v50, %v7042_v54 }
 0x3d6   : > { %v5391_v38 = vrot.slane %v5390_v21, 1  ;;  %v5376_v16 = vmax.f32 %v5374_v39, %v5375_v51  ;;  %v7044_v15 = vsel %vm6434_vm9, %v15887_v48, %v7043_v22  ;;  %v3959_v57 = vmax.f32 %v3832_v41, 0.0 }
 0x3d7   : > { %v13568_v35 = vmax.f32 %v5355_v46, %v5356_v23  ;;  %v5383_v30 = vmax.f32 %v5381_v17, %v5382_v31  ;;  %v7045_v47 = vsel %vm6436_vm10, %v13540_v7, %v7044_v15  ;;  %v5237_v23 = vrot.slane %v13331_v20, 1  ;;  %v13581_v17 = vpop.f32.mrf.mxu0  ;;  %v13583_v31 = vpop.f32.mrf.mxu1 }
 0x3d8   : > { %v13573_v12 = vmax.f32 %v5390_v21, %v5391_v38  ;;  %v5377_v54 = vrot.slane %v5376_v16, 1  ;;  %10680 = vmatprep.mubr.msk.f32.mxu1 %vm6651_vm11, %v7045_v47  ;;  %v4212_v5 = vcombine.high %v3959_v57, %v3959_v57  ;;  %v5414_v39 = vsel %vm4391_vm3, %v3959_v57, -inf  ;;  %15888 = vst [vmem:[#allocation15_spill] sm:$0xff] %v13581_v17  ;;  %15889 = vst [vmem:[#allocation18_spill] sm:$0xff] %v13583_v31 }
 0x3d9   : > { %v6550_v51 = vsel %vm6424_vm4, %v13529_v45, %v13568_v35  ;;  %v5384_v46 = vrot.slane %v5383_v30, 1  ;;  %v5415_v41 = vrot.slane %v5414_v39, 4  ;;  %v6529_v15 = vsel %vm6424_vm4, %v13225_v34, %v13273_v55 }
 0x3da   : > { %v13585_v21 = vmax.f32 %v5376_v16, %v5377_v54  ;;  %v6551_v22 = vsel %vm6426_vm5, %v13537_v26, %v6550_v51  ;;  %v5421_v38 = vsel %vm4391_vm3, %v4212_v5, -inf  ;;  %v5238_v3 = vmax.f32 %v13331_v20, %v5237_v23  ;;  %v15890_v54 = vld [vmem:[#allocation23_spill] sm:$0xff] }
 0x3db   : > { %v13593_v57 = vmax.f32 %v5383_v30, %v5384_v46  ;;  %v5416_v47 = vmax.f32 %v5414_v39, %v5415_v41  ;;  %v5422_v10 = vrot.slane %v5421_v38, 4  ;;  %v6530_v16 = vsel %vm6426_vm5, %v15884_v61, %v6529_v15  ;;  %v15891_v51 = vld [vmem:[#allocation19_spill] sm:$0xff]  ;;  %v13610_v39 = vpop.f32.mrf.mxu0  ;;  %v13612_v46 = vpop.f32.mrf.mxu1 }
 0x3dc   : > { %v13598_v31 = vsel %vm6428_vm6, %v13585_v21, %v6551_v22  ;;  %v3475_v5 = vadd.f32 %v15890_v54, %v13336_v4  ;;  %v3490_v17 = vadd.f32 %v15891_v51, %v13351_v18  ;;  %v6531_v30 = vsel %vm6428_vm6, %v15885_v24, %v6530_v16  ;;  %15892 = vst [vmem:[#allocation23_spill] sm:$0xff] %v13612_v46 }
 0x3dd   : > { %v5417_v34 = vrot.slane %v5416_v47, 2  ;;  %v5423_v55 = vmax.f32 %v5421_v38, %v5422_v10  ;;  %v7046_v20 = vsel %vm6424_vm4, %v13355_v13, %v5238_v3  ;;  %v6532_v61 = vsel %vm6430_vm7, %v13517_v50, %v6531_v30 }
 0x3de   : > { %v7047_v4 = vsel %vm6426_vm5, %v13329_v62, %v7046_v20  ;;  %v3831_v18 = vadd.f32 %v13256_v11, %v3475_v5  ;;  %v3834_v10 = vadd.f32 %v13256_v11, %v3490_v17  ;;  %v6533_v24 = vsel %vm6432_vm8, %v15887_v48, %v6532_v61  ;;  %v13633_v48 = vpop.f32.mrf.mxu0  ;;  %v13635_v5 = vpop.f32.mrf.mxu1 }
 0x3df   : > { %v5418_v41 = vmax.f32 %v5416_v47, %v5417_v34  ;;  %v5424_v23 = vrot.slane %v5423_v55, 2  ;;  %v3485_v13 = vadd.f32 %v13338_v40, %v13373_v44  ;;  %v6534_v22 = vsel %vm6434_vm9, %v13540_v7, %v6533_v24  ;;  %15894 = vst [vmem:[#allocation19_spill] sm:$0xff] %v13635_v5 }
 0x3e0   : > { %v3958_v38 = vmax.f32 %v3831_v18, 0.0  ;;  %v3961_v50 = vmax.f32 %v3834_v10, 0.0  ;;  %v15893_v15 = vrot.slane %v13349_v29, 1  ;;  %v6535_v47 = vsel %vm6436_vm10, %v5238_v3, %v6534_v22  ;;  %v15895_v18 = vld [vmem:[#allocation13_spill] sm:$0xff] }
 0x3e1   : > { %v5419_v16 = vrot.slane %v5418_v41, 1  ;;  %v5425_v17 = vmax.f32 %v5423_v55, %v5424_v23  ;;  %v3833_v54 = vadd.f32 %v13256_v11, %v3485_v13  ;;  %10624 = vmatprep.mubr.msk.f32.mxu0 %vm6651_vm11, %v6535_v47  ;;  %v7048_v10 = vsel %vm6428_vm6, %v15895_v18, %v7047_v4 }
 0x3e2   : > { %v13629_v62 = vmax.f32 %v13349_v29, %v15893_v15  ;;  %v4211_v40 = vcombine.high %v3958_v38, %v3958_v38  ;;  %v5400_v44 = vsel %vm4391_vm3, %v3958_v38, -inf  ;;  %v4214_v7 = vcombine.high %v3961_v50, %v3961_v50  ;;  %v13648_v38 = vpop.f32.mrf.mxu0 }
 0x3e3   : > { %v5442_v51 = vsel %vm4391_vm3, %v3961_v50, -inf  ;;  %v13640_v29 = vmax.f32 %v5418_v41, %v5419_v16  ;;  %v5426_v34 = vrot.slane %v5425_v17, 1  ;;  %v5401_v55 = vrot.slane %v5400_v44, 4  ;;  %v13650_v41 = vpop.f32.mrf.mxu1 }
 0x3e4   : > { %v5443_v30 = vrot.slane %v5442_v51, 4  ;;  %v5407_v3 = vsel %vm4391_vm3, %v4211_v40, -inf  ;;  %v5449_v20 = vsel %vm4391_vm3, %v4214_v7, -inf  ;;  %v3960_v61 = vmax.f32 %v3833_v54, 0.0  ;;  %15896 = vst [vmem:[#allocation13_spill] sm:$0xff] %v13650_v41  ;;  %v13662_v5 = vpop.f32.mrf.mxu0 }
 0x3e5   : > { %v13646_v23 = vmax.f32 %v5425_v17, %v5426_v34  ;;  %v5402_v24 = vmax.f32 %v5400_v44, %v5401_v55  ;;  %v5408_v13 = vrot.slane %v5407_v3, 4  ;;  %v5450_v50 = vrot.slane %v5449_v20, 4 }
 0x3e6   : > { %v5444_v22 = vmax.f32 %v5442_v51, %v5443_v30  ;;  %v4213_v15 = vcombine.high %v3960_v61, %v3960_v61  ;;  %v5428_v16 = vsel %vm4391_vm3, %v3960_v61, -inf  ;;  %v7049_v47 = vsel %vm6430_vm7, %v13386_v43, %v7048_v10  ;;  %v13664_v10 = vpop.f32.mrf.mxu1 }
 0x3e7   : > { %v5403_v54 = vrot.slane %v5402_v24, 2  ;;  %v5409_v40 = vmax.f32 %v5407_v3, %v5408_v13  ;;  %v5429_v4 = vrot.slane %v5428_v16, 4  ;;  %v13655_v17 = vmax.f32 %v5449_v20, %v5450_v50 }
 0x3e8   : > { %v5445_v7 = vrot.slane %v5444_v22, 2  ;;  %v5435_v44 = vsel %vm4391_vm3, %v4213_v15, -inf  ;;  %v7050_v51 = vsel %vm6432_vm8, %v13395_v32, %v7049_v47  ;;  %v3500_v34 = vadd.f32 %v13353_v53, %v13399_v52 }
 0x3e9   : > { %v5404_v55 = vmax.f32 %v5402_v24, %v5403_v54  ;;  %v5410_v30 = vrot.slane %v5409_v40, 2  ;;  %v5430_v41 = vmax.f32 %v5428_v16, %v5429_v4  ;;  %v5436_v20 = vrot.slane %v5435_v44, 4 }
 0x3ea   : > { %v5446_v61 = vmax.f32 %v5444_v22, %v5445_v7  ;;  %v7051_v13 = vsel %vm6434_vm9, %v13360_v56, %v7050_v51  ;;  %v3836_v50 = vadd.f32 %v13256_v11, %v3500_v34  ;;  %v6537_v16 = vsel %vm6426_vm5, %v15895_v18, %v13366_v59  ;;  %v13682_v34 = vpop.f32.mrf.mxu1 }
 0x3eb   : > { %v5405_v15 = vrot.slane %v5404_v55, 1  ;;  %v5411_v47 = vmax.f32 %v5409_v40, %v5410_v30  ;;  %v5431_v53 = vrot.slane %v5430_v41, 2  ;;  %v5437_v52 = vmax.f32 %v5435_v44, %v5436_v20  ;;  %v13680_v40 = vpop.f32.mrf.mxu0  ;;  %15897 = vst [vmem:[#allocation28_spill] sm:$0xff] %v13682_v34 }
 0x3ec   : > { %v5447_v46 = vrot.slane %v5446_v61, 1  ;;  %v7052_v24 = vsel %vm6436_vm10, %v13629_v62, %v7051_v13  ;;  %v3963_v22 = vmax.f32 %v3836_v50, 0.0  ;;  %v6538_v13 = vsel %vm6428_vm6, %v13386_v43, %v6537_v16 }
 0x3ed   : > { %v13675_v54 = vmax.f32 %v5404_v55, %v5405_v15  ;;  %v5412_v7 = vrot.slane %v5411_v47, 1  ;;  %v5432_v51 = vmax.f32 %v5430_v41, %v5431_v53  ;;  %10681 = vmatmul.mubr.msk.f32.gmra.mxu1 %vm6651_vm11, %v7052_v24  ;;  %v5438_v44 = vrot.slane %v5437_v52, 2  ;;  %v15898_v15 = vld [vmem:[#allocation20_spill] sm:$0xff] }
 0x3ee   : > { %v13677_v4 = vmax.f32 %v5446_v61, %v5447_v46  ;;  %v4216_v30 = vcombine.high %v3963_v22, %v3963_v22  ;;  %v5470_v20 = vsel %vm4391_vm3, %v3963_v22, -inf  ;;  %v6539_v46 = vsel %vm6430_vm7, %v13395_v32, %v6538_v13  ;;  %v13706_v22 = vpop.f32.mrf.mxu1 }
 0x3ef   : > { %v5413_v59 = vmax.f32 %v5411_v47, %v5412_v7  ;;  %v5433_v18 = vrot.slane %v5432_v51, 1  ;;  %v5471_v55 = vrot.slane %v5470_v20, 4  ;;  %v5439_v41 = vmax.f32 %v5437_v52, %v5438_v44  ;;  %v13704_v52 = vpop.f32.mrf.mxu0  ;;  %15899 = vst [vmem:[#allocation20_spill] sm:$0xff] %v13706_v22 }
 0x3f0   : > { %v5477_v61 = vsel %vm4391_vm3, %v4216_v30, -inf  ;;  %v6540_v50 = vsel %vm6432_vm8, %v13360_v56, %v6539_v46  ;;  %v3495_v53 = vadd.f32 %v15898_v15, %v13419_v9 }
 0x3f1   : > { %v13696_v24 = vsel %vm6424_vm4, %v13640_v29, %v5413_v59  ;;  %v13700_v43 = vsel %vm6424_vm4, %v5413_v59, %v13675_v54  ;;  %v13702_v47 = vmax.f32 %v5432_v51, %v5433_v18  ;;  %v5472_v32 = vmax.f32 %v5470_v20, %v5471_v55 }
 0x3f2   : > { %v5440_v16 = vrot.slane %v5439_v41, 1  ;;  %v5478_v56 = vrot.slane %v5477_v61, 4  ;;  %v6541_v9 = vsel %vm6434_vm9, %v13629_v62, %v6540_v50  ;;  %v3835_v7 = vadd.f32 %v13256_v11, %v3495_v53 }
 0x3f3   : > { %v5473_v44 = vrot.slane %v5472_v32, 2  ;;  %v6542_v30 = vsel %vm6436_vm10, %v13456_v58, %v6541_v9  ;;  %v3510_v51 = vadd.f32 %v13401_v6, %v13434_v60  ;;  %v3505_v20 = vadd.f32 %v13421_v27, %v13449_v19  ;;  %v13728_v27 = vpop.f32.mrf.mxu0  ;;  %v13730_v60 = vpop.f32.mrf.mxu1 }
 0x3f4   : > { %v13717_v13 = vmax.f32 %v5439_v41, %v5440_v16  ;;  %v5479_v59 = vmax.f32 %v5477_v61, %v5478_v56  ;;  %10625 = vmatmul.mubr.msk.f32.gmra.mxu0 %vm6651_vm11, %v6542_v30  ;;  %v3962_v18 = vmax.f32 %v3835_v7, 0.0  ;;  %v15900_v62 = vrot.slane %v13441_v37, 2  ;;  %15901 = vst [vmem:[#allocation29_spill] sm:$0xff] %v13730_v60 }
 0x3f5   : > { %v5474_v46 = vmax.f32 %v5472_v32, %v5473_v44  ;;  %v3838_v50 = vadd.f32 %v13256_v11, %v3510_v51  ;;  %v3837_v58 = vadd.f32 %v13256_v11, %v3505_v20  ;;  %v7054_v6 = vsel %vm6426_vm5, %v13427_v49, %v13482_v36  ;;  %v15902_v44 = vld [vmem:[#allocation25_spill] sm:$0xff] }
 0x3f6   : > { %v5341_v55 = vmax.f32 %v13441_v37, %v15900_v62  ;;  %v5480_v19 = vrot.slane %v5479_v59, 2  ;;  %v4215_v41 = vcombine.high %v3962_v18, %v3962_v18  ;;  %v5456_v61 = vsel %vm4391_vm3, %v3962_v18, -inf  ;;  %v13740_v62 = vpop.f32.mrf.mxu0  ;;  %v13742_v18 = vpop.f32.mrf.mxu1 }
 0x3f7   : > { %v5475_v53 = vrot.slane %v5474_v46, 1  ;;  %v5457_v37 = vrot.slane %v5456_v61, 4  ;;  %v3965_v32 = vmax.f32 %v3838_v50, 0.0  ;;  %v3964_v16 = vmax.f32 %v3837_v58, 0.0  ;;  %15903 = vst [vmem:[#allocation25_spill] sm:$0xff] %v13740_v62  ;;  %15904 = vst [vmem:[#allocation30_spill] sm:$0xff] %v13742_v18 }
 0x3f8   : > { %v5342_v15 = vrot.slane %v5341_v55, 1  ;;  %v5481_v56 = vmax.f32 %v5479_v59, %v5480_v19  ;;  %v5463_v9 = vsel %vm4391_vm3, %v4215_v41, -inf  ;;  %v7055_v49 = vsel %vm6428_vm6, %v15902_v44, %v7054_v6  ;;  %v13754_v62 = vpop.f32.mrf.mxu1 }
 0x3f9   : > { %v13738_v36 = vmax.f32 %v5474_v46, %v5475_v53  ;;  %v5458_v30 = vmax.f32 %v5456_v61, %v5457_v37  ;;  %v5464_v51 = vrot.slane %v5463_v9, 4  ;;  %v4218_v20 = vcombine.high %v3965_v32, %v3965_v32 }
 0x3fa   : > { %v13734_v7 = vmax.f32 %v5341_v55, %v5342_v15  ;;  %v5482_v3 = vrot.slane %v5481_v56, 1  ;;  %v5498_v50 = vsel %vm4391_vm3, %v3965_v32, -inf  ;;  %v4217_v59 = vcombine.high %v3964_v16, %v3964_v16  ;;  %v13752_v32 = vpop.f32.mrf.mxu0 }
 0x3fb   : > { %v5484_v58 = vsel %vm4391_vm3, %v3964_v16, -inf  ;;  %v5459_v55 = vrot.slane %v5458_v30, 2  ;;  %v5465_v19 = vmax.f32 %v5463_v9, %v5464_v51  ;;  %v5499_v41 = vrot.slane %v5498_v50, 4 }
 0x3fc   : > { %v5505_v6 = vsel %vm4391_vm3, %v4218_v20, -inf  ;;  %v13747_v46 = vmax.f32 %v5481_v56, %v5482_v3  ;;  %v5485_v15 = vrot.slane %v5484_v58, 4  ;;  %v5491_v53 = vsel %vm4391_vm3, %v4217_v59, -inf  ;;  %v15905_v3 = vld [vmem:[#allocation16_spill] sm:$0xff] }
 0x3fd   : > { %v5506_v61 = vrot.slane %v5505_v6, 4  ;;  %v13750_v37 = vmax.f32 %v5458_v30, %v5459_v55  ;;  %v5466_v18 = vrot.slane %v5465_v19, 2  ;;  %v5500_v60 = vmax.f32 %v5498_v50, %v5499_v41 }
 0x3fe   : > { %v5492_v22 = vrot.slane %v5491_v53, 4  ;;  %v5486_v9 = vmax.f32 %v5484_v58, %v5485_v15  ;;  %v7056_v51 = vsel %vm6430_vm7, %v13491_v2, %v7055_v49  ;;  %v3520_v56 = vadd.f32 %v15905_v3, %v13469_v8  ;;  %v13767_v8 = vpop.f32.mrf.mxu0 }
 0x3ff   : > { %v5507_v16 = vmax.f32 %v5505_v6, %v5506_v61  ;;  %v5467_v20 = vmax.f32 %v5465_v19, %v5466_v18  ;;  %v5501_v34 = vrot.slane %v5500_v60, 2  ;;  %v7057_v30 = vsel %vm6432_vm8, %v13508_v0, %v7056_v51  ;;  %v13769_v18 = vpop.f32.mrf.mxu1 }
 0x400   : > { %v5493_v59 = vmax.f32 %v5491_v53, %v5492_v22  ;;  %v5487_v55 = vrot.slane %v5486_v9, 2  ;;  %v7058_v41 = vsel %vm6434_vm9, %v13473_v63, %v7057_v30  ;;  %v3840_v6 = vadd.f32 %v13256_v11, %v3520_v56  ;;  %15906 = vst [vmem:[#allocation16_spill] sm:$0xff] %v13769_v18 }
 0x401   : > { %v5508_v50 = vrot.slane %v5507_v16, 2  ;;  %v5468_v58 = vrot.slane %v5467_v20, 1  ;;  %v5502_v61 = vmax.f32 %v5500_v60, %v5501_v34  ;;  %v7059_v49 = vsel %vm6436_vm10, %v13734_v7, %v7058_v41 }
 0x402   : > { %v5494_v15 = vrot.slane %v5493_v59, 2  ;;  %v5488_v19 = vmax.f32 %v5486_v9, %v5487_v55  ;;  %10683 = vmatprep.mubr.msk.f32.mxu1 %vm6651_vm11, %v7059_v49  ;;  %v3967_v53 = vmax.f32 %v3840_v6, 0.0  ;;  %v5349_v51 = vrot.slane %v13542_v33, 1  ;;  %v13787_v6 = vpop.f32.mrf.mxu0 }
 0x403   : > { %v13771_v22 = vmax.f32 %v5507_v16, %v5508_v50  ;;  %v13775_v3 = vmax.f32 %v5467_v20, %v5468_v58  ;;  %v5503_v11 = vrot.slane %v5502_v61, 1  ;;  %v6544_v60 = vsel %vm6426_vm5, %v15902_v44, %v13478_v42 }
 0x404   : > { %v5495_v34 = vmax.f32 %v5493_v59, %v5494_v15  ;;  %v5489_v30 = vrot.slane %v5488_v19, 1  ;;  %v4220_v41 = vcombine.high %v3967_v53, %v3967_v53  ;;  %v5526_v16 = vsel %vm4391_vm3, %v3967_v53, -inf  ;;  %v13789_v59 = vpop.f32.mrf.mxu1 }
 0x405   : > { %v6564_v9 = vsel %vm6424_vm4, %v13738_v36, %v13775_v3  ;;  %v13785_v50 = vmax.f32 %v5502_v61, %v5503_v11  ;;  %v5527_v55 = vrot.slane %v5526_v16, 4  ;;  %15907 = vst [vmem:[#allocation31_spill] sm:$0xff] %v13789_v59  ;;  %v5350_v15 = vmax.f32 %v13542_v33, %v5349_v51 }
 0x406   : > { %v5496_v20 = vrot.slane %v5495_v34, 1  ;;  %v13791_v58 = vmax.f32 %v5488_v19, %v5489_v30  ;;  %v6565_v42 = vsel %vm6426_vm5, %v13747_v46, %v6564_v9  ;;  %v5533_v44 = vsel %vm4391_vm3, %v4220_v41, -inf  ;;  %v15908_v41 = vld [vmem:[#allocation24_spill] sm:$0xff]  ;;  %v13817_v9 = vpop.f32.mrf.mxu1 }
 0x407   : > { %v5528_v53 = vmax.f32 %v5526_v16, %v5527_v55  ;;  %v5534_v61 = vrot.slane %v5533_v44, 4  ;;  %v6545_v11 = vsel %vm6428_vm6, %v13491_v2, %v6544_v60  ;;  %v7060_v30 = vsel %vm6424_vm4, %v13568_v35, %v5350_v15  ;;  %v13815_v60 = vpop.f32.mrf.mxu0  ;;  %15909 = vst [vmem:[#allocation24_spill] sm:$0xff] %v13817_v9  ;;  %v13824_v35 = vld [vmem:[%s15730_s4] ss:$0 sm:$0xff]  ;;  %v15911_v55 = vld [vmem:[#allocation27_spill] sm:$0xff] }
 0x408   : > { %v13797_v49 = vmax.f32 %v5495_v34, %v5496_v20  ;;  %v13803_v56 = vsel %vm6428_vm6, %v13791_v58, %v6565_v42  ;;  %v6546_v19 = vsel %vm6430_vm7, %v13508_v0, %v6545_v11  ;;  %v3515_v33 = vadd.f32 %v15908_v41, %v13495_v28  ;;  %v15910_v20 = vld [vmem:[#allocation21_spill] sm:$0xff]  ;;  %v15912_v42 = vld [vmem:[#allocation14_spill] sm:$0xff] }
 0x409   : > { %v5529_v51 = vrot.slane %v5528_v53, 2  ;;  %v5535_v34 = vmax.f32 %v5533_v44, %v5534_v61  ;;  %v6547_v16 = vsel %vm6432_vm8, %v13473_v63, %v6546_v19  ;;  %v7061_v2 = vsel %vm6426_vm5, %v13529_v45, %v7060_v30  ;;  %v15913_v44 = vld [vmem:[#allocation22_spill] sm:$0xff] }
 0x40a   : > { %v6548_v0 = vsel %vm6434_vm9, %v13734_v7, %v6547_v16  ;;  %v3839_v28 = vadd.f32 %v13824_v35, %v3515_v33  ;;  %v3530_v63 = vadd.f32 %v15911_v55, %v15910_v20  ;;  %v3525_v45 = vadd.f32 %v15913_v44, %v15912_v42  ;;  %v13848_v42 = vpop.f32.mrf.mxu1 }
 0x40b   : > { %v5530_v61 = vmax.f32 %v5528_v53, %v5529_v51  ;;  %v5536_v11 = vrot.slane %v5535_v34, 2  ;;  %v6549_v19 = vsel %vm6436_vm10, %v5350_v15, %v6548_v0  ;;  %v15914_v30 = vrot.slane %v13558_v25, 1  ;;  %v15915_v51 = vld [vmem:[#allocation26_spill] sm:$0xff]  ;;  %15917 = vst [vmem:[#allocation27_spill] sm:$0xff] %v13848_v42 }
 0x40c   : > { %10627 = vmatprep.mubr.msk.f32.mxu0 %vm6651_vm11, %v6549_v19  ;;  %v3966_v41 = vmax.f32 %v3839_v28, 0.0  ;;  %v3842_v33 = vadd.f32 %v13824_v35, %v3530_v63  ;;  %v3841_v16 = vadd.f32 %v13824_v35, %v3525_v45  ;;  %v7062_v20 = vsel %vm6428_vm6, %v13537_v26, %v7061_v2 }
 0x40d   : > { %v13835_v7 = vmax.f32 %v13558_v25, %v15914_v30  ;;  %v5531_v55 = vrot.slane %v5530_v61, 1  ;;  %v5537_v53 = vmax.f32 %v5535_v34, %v5536_v11  ;;  %v7063_v15 = vsel %vm6430_vm7, %v13585_v21, %v7062_v20  ;;  %v13846_v25 = vpop.f32.mrf.mxu0 }
 0x40e   : > { %v3540_v0 = vadd.f32 %v15915_v51, %v13544_v14  ;;  %15916 = vst [vmem:[#allocation21_spill] sm:$0xff] %v13846_v25  ;;  %v4219_v28 = vcombine.high %v3966_v41, %v3966_v41  ;;  %v5512_v63 = vsel %vm4391_vm3, %v3966_v41, -inf  ;;  %v3969_v44 = vmax.f32 %v3842_v33, 0.0 }
 0x40f   : > { %v3968_v45 = vmax.f32 %v3841_v16, 0.0  ;;  %v13851_v19 = vmax.f32 %v5530_v61, %v5531_v55  ;;  %v5538_v26 = vrot.slane %v5537_v53, 1  ;;  %v5513_v2 = vrot.slane %v5512_v63, 4  ;;  %v13859_v33 = vpop.f32.mrf.mxu0  ;;  %v13861_v61 = vpop.f32.mrf.mxu1 }
 0x410   : > { %v7064_v34 = vsel %vm6432_vm8, %v13593_v57, %v7063_v15  ;;  %v5519_v21 = vsel %vm4391_vm3, %v4219_v28, -inf  ;;  %v4222_v11 = vcombine.high %v3969_v44, %v3969_v44  ;;  %v5554_v14 = vsel %vm4391_vm3, %v3969_v44, -inf  ;;  %15918 = vst [vmem:[#allocation14_spill] sm:$0xff] %v13859_v33  ;;  %15919 = vst [vmem:[#allocation22_spill] sm:$0xff] %v13861_v61 }
 0x411   : > { %v4221_v30 = vcombine.high %v3968_v45, %v3968_v45  ;;  %v13857_v20 = vmax.f32 %v5537_v53, %v5538_v26  ;;  %v5514_v51 = vmax.f32 %v5512_v63, %v5513_v2  ;;  %v5520_v42 = vrot.slane %v5519_v21, 4 }
 0x412   : > { %v5555_v41 = vrot.slane %v5554_v14, 4  ;;  %v5561_v16 = vsel %vm4391_vm3, %v4222_v11, -inf  ;;  %v5540_v55 = vsel %vm4391_vm3, %v3968_v45, -inf  ;;  %v7065_v28 = vsel %vm6434_vm9, %v13573_v12, %v7064_v34  ;;  %v13876_v34 = vpop.f32.mrf.mxu1 }
 0x413   : > { %v5547_v15 = vsel %vm4391_vm3, %v4221_v30, -inf  ;;  %v5515_v44 = vrot.slane %v5514_v51, 2  ;;  %v5521_v9 = vmax.f32 %v5519_v21, %v5520_v42  ;;  %v5562_v26 = vrot.slane %v5561_v16, 4  ;;  %v13874_v30 = vpop.f32.mrf.mxu0  ;;  %15921 = vst [vmem:[#allocation32_spill] sm:$0xff] %v13876_v34 }
 0x414   : > { %v5556_v53 = vmax.f32 %v5554_v14, %v5555_v41  ;;  %v5541_v63 = vrot.slane %v5540_v55, 4  ;;  %v5548_v2 = vrot.slane %v5547_v15, 4  ;;  %v7066_v33 = vsel %vm6436_vm10, %v13835_v7, %v7065_v28  ;;  %15920 = vst [vmem:[#allocation26_spill] sm:$0xff] %v13874_v30 }
 0x415   : > { %v3844_v61 = vadd.f32 %v13824_v35, %v3540_v0  ;;  %v5516_v59 = vmax.f32 %v5514_v51, %v5515_v44  ;;  %v5522_v11 = vrot.slane %v5521_v9, 2  ;;  %v13871_v45 = vmax.f32 %v5561_v16, %v5562_v26  ;;  %10684 = vmatmul.mubr.msk.f32.gmra.mxu1 %vm6651_vm11, %v7066_v33 }
 0x416   : > { %v5557_v25 = vrot.slane %v5556_v53, 2  ;;  %v5542_v42 = vmax.f32 %v5540_v55, %v5541_v63  ;;  %v5549_v21 = vmax.f32 %v5547_v15, %v5548_v2  ;;  %v6553_v41 = vsel %vm6430_vm7, %v13593_v57, %v13598_v31  ;;  %v13887_v63 = vpop.f32.mrf.mxu1 }
 0x417   : > { %v3971_v14 = vmax.f32 %v3844_v61, 0.0  ;;  %v5517_v28 = vrot.slane %v5516_v59, 1  ;;  %v5523_v0 = vmax.f32 %v5521_v9, %v5522_v11  ;;  %v13885_v61 = vpop.f32.mrf.mxu0  ;;  %15923 = vst [vmem:[#allocation34_spill] sm:$0xff] %v13887_v63 }
 0x418   : > { %v5558_v51 = vmax.f32 %v5556_v53, %v5557_v25  ;;  %v5543_v16 = vrot.slane %v5542_v42, 2  ;;  %v5550_v26 = vrot.slane %v5549_v21, 2  ;;  %15922 = vst [vmem:[#allocation33_spill] sm:$0xff] %v13885_v61  ;;  %v6554_v25 = vsel %vm6432_vm8, %v13573_v12, %v6553_v41  ;;  %v15924_v61 = vld [vmem:[#allocation12_spill] sm:$0xff]  ;;  %v13908_v41 = vpop.f32.mrf.mxu1 }
 0x419   : > { %v4224_v18 = vcombine.high %v3971_v14, %v3971_v14  ;;  %v5582_v33 = vsel %vm4391_vm3, %v3971_v14, -inf  ;;  %v13883_v30 = vmax.f32 %v5516_v59, %v5517_v28  ;;  %v5524_v34 = vrot.slane %v5523_v0, 1  ;;  %15926 = vst [vmem:[#allocation35_spill] sm:$0xff] %v13908_v41 }
 0x41a   : > { %v5559_v55 = vrot.slane %v5558_v51, 1  ;;  %v5583_v15 = vrot.slane %v5582_v33, 4  ;;  %v5544_v31 = vmax.f32 %v5542_v42, %v5543_v16  ;;  %v5551_v57 = vmax.f32 %v5549_v21, %v5550_v26  ;;  %v13906_v21 = vpop.f32.mrf.mxu0 }
 0x41b   : > { %v5589_v9 = vsel %vm4391_vm3, %v4224_v18, -inf  ;;  %v5525_v53 = vmax.f32 %v5523_v0, %v5524_v34  ;;  %v6555_v44 = vsel %vm6434_vm9, %v13835_v7, %v6554_v25  ;;  %v3535_v63 = vadd.f32 %v15924_v61, %v13562_v1  ;;  %15925 = vst [vmem:[#allocation12_spill] sm:$0xff] %v13906_v21  ;;  %v15929_v61 = vld [vmem:[#allocation17_spill] sm:$0xff] }
 0x41c   : > { %v13892_v2 = vmax.f32 %v5558_v51, %v5559_v55  ;;  %v5584_v11 = vmax.f32 %v5582_v33, %v5583_v15  ;;  %v5590_v59 = vrot.slane %v5589_v9, 4  ;;  %v5545_v14 = vrot.slane %v5544_v31, 1  ;;  %v15927_v33 = vld [vmem:[#allocation15_spill] sm:$0xff] }
 0x41d   : > { %v5552_v28 = vrot.slane %v5551_v57, 1  ;;  %v13900_v42 = vsel %vm6424_vm4, %v13851_v19, %v5525_v53  ;;  %v13904_v12 = vsel %vm6424_vm4, %v5525_v53, %v13883_v30  ;;  %v6556_v1 = vsel %vm6436_vm10, %v13675_v54, %v6555_v44  ;;  %v15928_v55 = vld [vmem:[#allocation11_spill] sm:$0xff]  ;;  %v15931_v44 = vld [vmem:[#allocation18_spill] sm:$0xff] }
 0x41e   : > { %v5585_v18 = vrot.slane %v5584_v11, 2  ;;  %v5591_v34 = vmax.f32 %v5589_v9, %v5590_v59  ;;  %v13910_v0 = vmax.f32 %v5544_v31, %v5545_v14  ;;  %v3843_v51 = vadd.f32 %v13824_v35, %v3535_v63  ;;  %10628 = vmatmul.mubr.msk.f32.gmra.mxu0 %vm6651_vm11, %v6556_v1 }
 0x41f   : > { %v13912_v7 = vmax.f32 %v5551_v57, %v5552_v28  ;;  %v3550_v15 = vadd.f32 %v15928_v55, %v15927_v33  ;;  %v3545_v9 = vadd.f32 %v15929_v61, %v13610_v39  ;;  %v15930_v31 = vrot.slane %v13655_v17, 2  ;;  %v13932_v28 = vpop.f32.mrf.mxu0  ;;  %v13934_v39 = vpop.f32.mrf.mxu1 }
 0x420   : > { %v5586_v16 = vmax.f32 %v5584_v11, %v5585_v18  ;;  %v5592_v26 = vrot.slane %v5591_v34, 2  ;;  %v3970_v25 = vmax.f32 %v3843_v51, 0.0  ;;  %v7068_v54 = vsel %vm6426_vm5, %v13640_v29, %v13700_v43  ;;  %15932 = vst [vmem:[#allocation15_spill] sm:$0xff] %v13932_v28  ;;  %15933 = vst [vmem:[#allocation11_spill] sm:$0xff] %v13934_v39 }
 0x421   : > { %v5453_v57 = vmax.f32 %v13655_v17, %v15930_v31  ;;  %v3560_v63 = vadd.f32 %v15931_v44, %v13633_v48  ;;  %v3846_v59 = vadd.f32 %v13824_v35, %v3550_v15  ;;  %v3845_v14 = vadd.f32 %v13824_v35, %v3545_v9  ;;  %v13948_v44 = vpop.f32.mrf.mxu0 }
 0x422   : > { %v5587_v53 = vrot.slane %v5586_v16, 1  ;;  %v5593_v11 = vmax.f32 %v5591_v34, %v5592_v26  ;;  %v4223_v18 = vcombine.high %v3970_v25, %v3970_v25  ;;  %v5568_v17 = vsel %vm4391_vm3, %v3970_v25, -inf  ;;  %15934 = vst [vmem:[#allocation17_spill] sm:$0xff] %v13948_v44 }
 0x423   : > { %v5454_v1 = vrot.slane %v5453_v57, 1  ;;  %v7069_v29 = vsel %vm6428_vm6, %v13646_v23, %v7068_v54  ;;  %v5569_v51 = vrot.slane %v5568_v17, 4  ;;  %v3973_v34 = vmax.f32 %v3846_v59, 0.0  ;;  %v13962_v41 = vpop.f32.mrf.mxu0 }
 0x424   : > { %v13939_v43 = vmax.f32 %v5586_v16, %v5587_v53  ;;  %v5594_v48 = vrot.slane %v5593_v11, 1  ;;  %v5575_v26 = vsel %vm4391_vm3, %v4223_v18, -inf  ;;  %v3972_v33 = vmax.f32 %v3845_v14, 0.0  ;;  %v13950_v16 = vpop.f32.mrf.mxu1 }
 0x425   : > { %v13942_v55 = vmax.f32 %v5453_v57, %v5454_v1  ;;  %v7070_v15 = vsel %vm6430_vm7, %v13702_v47, %v7069_v29  ;;  %v5570_v9 = vmax.f32 %v5568_v17, %v5569_v51  ;;  %v5576_v25 = vrot.slane %v5575_v26, 4  ;;  %15935 = vst [vmem:[#allocation18_spill] sm:$0xff] %v13950_v16 }
 0x426   : > { %v13946_v61 = vmax.f32 %v5593_v11, %v5594_v48  ;;  %v4226_v31 = vcombine.high %v3973_v34, %v3973_v34  ;;  %v5610_v54 = vsel %vm4391_vm3, %v3973_v34, -inf  ;;  %v4225_v53 = vcombine.high %v3972_v33, %v3972_v33 }
 0x427   : > { %v5596_v59 = vsel %vm4391_vm3, %v3972_v33, -inf  ;;  %v7071_v57 = vsel %vm6432_vm8, %v13717_v13, %v7070_v15  ;;  %v5571_v14 = vrot.slane %v5570_v9, 2  ;;  %v5577_v18 = vmax.f32 %v5575_v26, %v5576_v25  ;;  %v13964_v15 = vpop.f32.mrf.mxu1 }
 0x428   : > { %v5611_v1 = vrot.slane %v5610_v54, 4  ;;  %v5617_v11 = vsel %vm4391_vm3, %v4226_v31, -inf  ;;  %v5597_v29 = vrot.slane %v5596_v59, 4  ;;  %v5603_v48 = vsel %vm4391_vm3, %v4225_v53, -inf  ;;  %15936 = vst [vmem:[#allocation36_spill] sm:$0xff] %v13964_v15 }
 0x429   : > { %v5618_v17 = vrot.slane %v5617_v11, 4  ;;  %v7072_v51 = vsel %vm6434_vm9, %v13677_v4, %v7071_v57  ;;  %v13960_v16 = vmax.f32 %v5570_v9, %v5571_v14  ;;  %v5578_v34 = vrot.slane %v5577_v18, 2 }
 0x42a   : > { %v5612_v39 = vmax.f32 %v5610_v54, %v5611_v1  ;;  %v5604_v33 = vrot.slane %v5603_v48, 4  ;;  %v5598_v25 = vmax.f32 %v5596_v59, %v5597_v29  ;;  %v7073_v31 = vsel %vm6436_vm10, %v13942_v55, %v7072_v51 }
 0x42b   : > { %v5619_v26 = vmax.f32 %v5617_v11, %v5618_v17  ;;  %v3848_v44 = vadd.f32 %v13824_v35, %v3560_v63  ;;  %v5579_v53 = vmax.f32 %v5577_v18, %v5578_v34  ;;  %10686 = vmatprep.mubr.msk.f32.mxu1 %vm6651_vm11, %v7073_v31  ;;  %v5461_v9 = vrot.slane %v13750_v37, 1  ;;  %v13975_v63 = vpop.f32.mrf.mxu0  ;;  %v13977_v18 = vpop.f32.mrf.mxu1 }
 0x42c   : > { %v5613_v28 = vrot.slane %v5612_v39, 2  ;;  %v5605_v21 = vmax.f32 %v5603_v48, %v5604_v33  ;;  %v5599_v57 = vrot.slane %v5598_v25, 2  ;;  %v6558_v1 = vsel %vm6426_vm5, %v13646_v23, %v13696_v24 }
 0x42d   : > { %v5620_v54 = vrot.slane %v5619_v26, 2  ;;  %v3975_v14 = vmax.f32 %v3848_v44, 0.0  ;;  %v5580_v59 = vrot.slane %v5579_v53, 1  ;;  %v5462_v29 = vmax.f32 %v13750_v37, %v5461_v9 }
 0x42e   : > { %v5614_v11 = vmax.f32 %v5612_v39, %v5613_v28  ;;  %v5606_v17 = vrot.slane %v5605_v21, 2  ;;  %v5600_v51 = vmax.f32 %v5598_v25, %v5599_v57  ;;  %v6559_v39 = vsel %vm6428_vm6, %v13702_v47, %v6558_v1 }
 0x42f   : > { %v13979_v48 = vmax.f32 %v5619_v26, %v5620_v54  ;;  %v4228_v34 = vcombine.high %v3975_v14, %v3975_v14  ;;  %v5638_v33 = vsel %vm4391_vm3, %v3975_v14, -inf  ;;  %v13982_v44 = vmax.f32 %v5579_v53, %v5580_v59  ;;  %v13993_v54 = vpop.f32.mrf.mxu0 }
 0x430   : > { %v5615_v31 = vrot.slane %v5614_v11, 1  ;;  %v5607_v15 = vmax.f32 %v5605_v21, %v5606_v17  ;;  %v5639_v23 = vrot.slane %v5638_v33, 4  ;;  %v5601_v28 = vrot.slane %v5600_v51, 1  ;;  %v13995_v21 = vpop.f32.mrf.mxu1 }
 0x431   : > { %v5645_v37 = vsel %vm4391_vm3, %v4228_v34, -inf  ;;  %v6578_v26 = vsel %vm6424_vm4, %v13939_v43, %v13982_v44  ;;  %15937 = vst [vmem:[#allocation37_spill] sm:$0xff] %v13995_v21  ;;  %v6560_v47 = vsel %vm6430_vm7, %v13717_v13, %v6559_v39  ;;  %v7074_v34 = vsel %vm6424_vm4, %v13775_v3, %v5462_v29  ;;  %v15939_v39 = vld [vmem:[#allocation19_spill] sm:$0xff] }
 0x432   : > { %v13991_v25 = vmax.f32 %v5614_v11, %v5615_v31  ;;  %v5608_v9 = vrot.slane %v5607_v15, 1  ;;  %v5640_v53 = vmax.f32 %v5638_v33, %v5639_v23  ;;  %v13997_v57 = vmax.f32 %v5600_v51, %v5601_v28  ;;  %v15938_v28 = vld [vmem:[#allocation23_spill] sm:$0xff] }
 0x433   : > { %v6579_v14 = vsel %vm6426_vm5, %v13946_v61, %v6578_v26  ;;  %v5646_v59 = vrot.slane %v5645_v37, 4  ;;  %v6561_v11 = vsel %vm6432_vm8, %v13677_v4, %v6560_v47  ;;  %v7075_v13 = vsel %vm6426_vm5, %v13738_v36, %v7074_v34  ;;  %v14022_v26 = vpop.f32.mrf.mxu0 }
 0x434   : > { %v14003_v1 = vmax.f32 %v5607_v15, %v5608_v9  ;;  %v5641_v17 = vrot.slane %v5640_v53, 2  ;;  %v14011_v51 = vsel %vm6428_vm6, %v13997_v57, %v6579_v14  ;;  %v6562_v31 = vsel %vm6434_vm9, %v13942_v55, %v6561_v11  ;;  %v14024_v9 = vpop.f32.mrf.mxu1  ;;  %v15941_v55 = vld [vmem:[#allocation13_spill] sm:$0xff] }
 0x435   : > { %v5647_v33 = vmax.f32 %v5645_v37, %v5646_v59  ;;  %v6563_v23 = vsel %vm6436_vm10, %v5462_v29, %v6562_v31  ;;  %v3555_v4 = vadd.f32 %v15938_v28, %v13648_v38  ;;  %v3570_v3 = vadd.f32 %v15939_v39, %v13662_v5  ;;  %15940 = vst [vmem:[#allocation23_spill] sm:$0xff] %v14024_v9 }
 0x436   : > { %v5642_v15 = vmax.f32 %v5640_v53, %v5641_v17  ;;  %10630 = vmatprep.mubr.msk.f32.mxu0 %vm6651_vm11, %v6563_v23  ;;  %v3565_v14 = vadd.f32 %v15941_v55, %v13680_v40  ;;  %v15942_v36 = vrot.slane %v13771_v22, 1  ;;  %v7076_v38 = vsel %vm6428_vm6, %v13747_v46, %v7075_v13  ;;  %v14049_v23 = vpop.f32.mrf.mxu0  ;;  %v14051_v28 = vpop.f32.mrf.mxu1 }
 0x437   : > { %v5648_v37 = vrot.slane %v5647_v33, 2  ;;  %v3847_v5 = vadd.f32 %v13824_v35, %v3555_v4  ;;  %v3850_v59 = vadd.f32 %v13824_v35, %v3570_v3  ;;  %v7077_v47 = vsel %vm6430_vm7, %v13791_v58, %v7076_v38  ;;  %15943 = vst [vmem:[#allocation19_spill] sm:$0xff] %v14049_v23  ;;  %15944 = vst [vmem:[#allocation13_spill] sm:$0xff] %v14051_v28 }
 0x438   : > { %v14032_v29 = vmax.f32 %v13771_v22, %v15942_v36  ;;  %v5643_v53 = vrot.slane %v5642_v15, 1  ;;  %v3849_v11 = vadd.f32 %v13824_v35, %v3565_v14  ;;  %v7078_v40 = vsel %vm6432_vm8, %v13797_v49, %v7077_v47  ;;  %v14064_v47 = vpop.f32.mrf.mxu0 }
 0x439   : > { %v5649_v17 = vmax.f32 %v5647_v33, %v5648_v37  ;;  %v3580_v22 = vadd.f32 %v13664_v10, %v13704_v52  ;;  %v3974_v46 = vmax.f32 %v3847_v5, 0.0  ;;  %v3977_v31 = vmax.f32 %v3850_v59, 0.0  ;;  %15945 = vst [vmem:[#allocation38_spill] sm:$0xff] %v14064_v47 }
 0x43a   : > { %v14045_v34 = vmax.f32 %v5642_v15, %v5643_v53  ;;  %v7079_v13 = vsel %vm6434_vm9, %v13785_v50, %v7078_v40  ;;  %v3976_v33 = vmax.f32 %v3849_v11, 0.0  ;;  %v14066_v11 = vpop.f32.mrf.mxu1 }
 0x43b   : > { %v5650_v58 = vrot.slane %v5649_v17, 1  ;;  %v7080_v4 = vsel %vm6436_vm10, %v14032_v29, %v7079_v13  ;;  %v3852_v39 = vadd.f32 %v13824_v35, %v3580_v22  ;;  %v4227_v3 = vcombine.high %v3974_v46, %v3974_v46  ;;  %15946 = vst [vmem:[#allocation39_spill] sm:$0xff] %v14066_v11 }
 0x43c   : > { %v5624_v10 = vsel %vm4391_vm3, %v3974_v46, -inf  ;;  %v4230_v52 = vcombine.high %v3977_v31, %v3977_v31  ;;  %v5666_v15 = vsel %vm4391_vm3, %v3977_v31, -inf  ;;  %10687 = vmatmul.mubr.msk.f32.gmra.mxu1 %vm6651_vm11, %v7080_v4  ;;  %v4229_v36 = vcombine.high %v3976_v33, %v3976_v33 }
 0x43d   : > { %v14059_v37 = vmax.f32 %v5649_v17, %v5650_v58  ;;  %v5625_v55 = vrot.slane %v5624_v10, 4  ;;  %v5667_v14 = vrot.slane %v5666_v15, 4  ;;  %v5631_v38 = vsel %vm4391_vm3, %v4227_v3, -inf }
 0x43e   : > { %v5673_v53 = vsel %vm4391_vm3, %v4230_v52, -inf  ;;  %v5652_v5 = vsel %vm4391_vm3, %v3976_v33, -inf  ;;  %v3979_v59 = vmax.f32 %v3852_v39, 0.0  ;;  %v5632_v22 = vrot.slane %v5631_v38, 4 }
 0x43f   : > { %v5626_v40 = vmax.f32 %v5624_v10, %v5625_v55  ;;  %v5668_v46 = vmax.f32 %v5666_v15, %v5667_v14  ;;  %v5674_v31 = vrot.slane %v5673_v53, 4  ;;  %v5653_v17 = vrot.slane %v5652_v5, 4  ;;  %v14073_v10 = vpop.f32.mrf.mxu0  ;;  %v14075_v15 = vpop.f32.mrf.mxu1 }
 0x440   : > { %v5659_v13 = vsel %vm4391_vm3, %v4229_v36, -inf  ;;  %v4232_v58 = vcombine.high %v3979_v59, %v3979_v59  ;;  %v5694_v4 = vsel %vm4391_vm3, %v3979_v59, -inf  ;;  %v5633_v24 = vmax.f32 %v5631_v38, %v5632_v22  ;;  %15947 = vst [vmem:[#allocation40_spill] sm:$0xff] %v14073_v10  ;;  %15948 = vst [vmem:[#allocation41_spill] sm:$0xff] %v14075_v15 }
 0x441   : > { %v5627_v3 = vrot.slane %v5626_v40, 2  ;;  %v5669_v52 = vrot.slane %v5668_v46, 2  ;;  %v14070_v28 = vmax.f32 %v5673_v53, %v5674_v31  ;;  %v5654_v33 = vmax.f32 %v5652_v5, %v5653_v17 }
 0x442   : > { %v5660_v39 = vrot.slane %v5659_v13, 4  ;;  %v5695_v9 = vrot.slane %v5694_v4, 4  ;;  %v5701_v11 = vsel %vm4391_vm3, %v4232_v58, -inf  ;;  %v5634_v14 = vrot.slane %v5633_v24, 2 }
 0x443   : > { %v5628_v55 = vmax.f32 %v5626_v40, %v5627_v3  ;;  %v5670_v36 = vmax.f32 %v5668_v46, %v5669_v52  ;;  %v5655_v59 = vrot.slane %v5654_v33, 2  ;;  %v5702_v22 = vrot.slane %v5701_v11, 4  ;;  %v14081_v40 = vpop.f32.mrf.mxu0  ;;  %v14083_v46 = vpop.f32.mrf.mxu1 }
 0x444   : > { %v5661_v21 = vmax.f32 %v5659_v13, %v5660_v39  ;;  %v5696_v38 = vmax.f32 %v5694_v4, %v5695_v9  ;;  %v5635_v31 = vmax.f32 %v5633_v24, %v5634_v14  ;;  %v6567_v17 = vsel %vm6430_vm7, %v13797_v49, %v13803_v56 }
 0x445   : > { %v5629_v53 = vrot.slane %v5628_v55, 1  ;;  %v5671_v5 = vrot.slane %v5670_v36, 1  ;;  %v5656_v58 = vmax.f32 %v5654_v33, %v5655_v59  ;;  %v5703_v15 = vmax.f32 %v5701_v11, %v5702_v22  ;;  %v15949_v33 = vld [vmem:[#allocation28_spill] sm:$0xff]  ;;  %v15950_v59 = vld [vmem:[#allocation25_spill] sm:$0xff] }
 0x446   : > { %v5662_v10 = vrot.slane %v5661_v21, 2  ;;  %v5697_v23 = vrot.slane %v5696_v38, 2  ;;  %v5636_v13 = vrot.slane %v5635_v31, 1  ;;  %v6568_v24 = vsel %vm6432_vm8, %v13785_v50, %v6567_v17  ;;  %v14099_v50 = vpop.f32.mrf.mxu0 }
 0x447   : > { %v14085_v3 = vmax.f32 %v5628_v55, %v5629_v53  ;;  %v14087_v9 = vmax.f32 %v5670_v36, %v5671_v5  ;;  %v5657_v4 = vrot.slane %v5656_v58, 1  ;;  %v5704_v56 = vrot.slane %v5703_v15, 2  ;;  %v15951_v55 = vld [vmem:[#allocation20_spill] sm:$0xff] }
 0x448   : > { %v5663_v52 = vmax.f32 %v5661_v21, %v5662_v10  ;;  %v5698_v39 = vmax.f32 %v5696_v38, %v5697_v23  ;;  %v5637_v49 = vmax.f32 %v5635_v31, %v5636_v13  ;;  %v6569_v11 = vsel %vm6434_vm9, %v14032_v29, %v6568_v24  ;;  %v14101_v21 = vpop.f32.mrf.mxu1  ;;  %v15953_v13 = vld [vmem:[#allocation29_spill] sm:$0xff] }
 0x449   : > { %v3575_v14 = vadd.f32 %v15949_v33, %v13728_v27  ;;  %v3590_v22 = vadd.f32 %v15951_v55, %v15950_v59  ;;  %v14097_v53 = vmax.f32 %v5656_v58, %v5657_v4  ;;  %v5705_v47 = vmax.f32 %v5703_v15, %v5704_v56  ;;  %15952 = vst [vmem:[#allocation28_spill] sm:$0xff] %v14101_v21 }
 0x44a   : > { %v5664_v36 = vrot.slane %v5663_v52, 1  ;;  %v5699_v5 = vrot.slane %v5698_v39, 1  ;;  %v14105_v23 = vsel %vm6424_vm4, %v14045_v34, %v5637_v49  ;;  %v14109_v29 = vsel %vm6424_vm4, %v5637_v49, %v14085_v3 }
 0x44b   : > { %v6570_v27 = vsel %vm6436_vm10, %v13883_v30, %v6569_v11  ;;  %v3851_v10 = vadd.f32 %v13824_v35, %v3575_v14  ;;  %v5706_v31 = vrot.slane %v5705_v47, 1  ;;  %v3854_v17 = vadd.f32 %v13824_v35, %v3590_v22  ;;  %v15955_v11 = vld [vmem:[#allocation30_spill] sm:$0xff]  ;;  %v14134_v14 = vpop.f32.mrf.mxu0 }
 0x44c   : > { %v14114_v38 = vmax.f32 %v5663_v52, %v5664_v36  ;;  %v14116_v15 = vmax.f32 %v5698_v39, %v5699_v5  ;;  %10631 = vmatmul.mubr.msk.f32.gmra.mxu0 %vm6651_vm11, %v6570_v27  ;;  %v3585_v24 = vadd.f32 %v15953_v13, %v13752_v32  ;;  %v15954_v4 = vrot.slane %v13871_v45, 2  ;;  %v14136_v32 = vpop.f32.mrf.mxu1 }
 0x44d   : > { %v3978_v58 = vmax.f32 %v3851_v10, 0.0  ;;  %v7082_v30 = vsel %vm6426_vm5, %v13851_v19, %v13904_v12  ;;  %v14128_v52 = vmax.f32 %v5705_v47, %v5706_v31  ;;  %v3981_v39 = vmax.f32 %v3854_v17, 0.0  ;;  %15956 = vst [vmem:[#allocation25_spill] sm:$0xff] %v14136_v32 }
 0x44e   : > { %v5565_v56 = vmax.f32 %v13871_v45, %v15954_v4  ;;  %v7083_v49 = vsel %vm6428_vm6, %v13857_v20, %v7082_v30  ;;  %v3600_v33 = vadd.f32 %v15955_v11, %v13767_v8  ;;  %v3853_v55 = vadd.f32 %v13824_v35, %v3585_v24  ;;  %v14149_v24 = vpop.f32.mrf.mxu0  ;;  %v14151_v4 = vpop.f32.mrf.mxu1 }
 0x44f   : > { %v4231_v59 = vcombine.high %v3978_v58, %v3978_v58  ;;  %v5680_v45 = vsel %vm4391_vm3, %v3978_v58, -inf  ;;  %v4234_v12 = vcombine.high %v3981_v39, %v3981_v39  ;;  %v5722_v47 = vsel %vm4391_vm3, %v3981_v39, -inf  ;;  %15957 = vst [vmem:[#allocation20_spill] sm:$0xff] %v14151_v4 }
 0x450   : > { %v5566_v22 = vrot.slane %v5565_v56, 1  ;;  %v5681_v19 = vrot.slane %v5680_v45, 4  ;;  %v7084_v36 = vsel %vm6430_vm7, %v13910_v0, %v7083_v49  ;;  %v5723_v8 = vrot.slane %v5722_v47, 4 }
 0x451   : > { %v5687_v5 = vsel %vm4391_vm3, %v4231_v59, -inf  ;;  %v3980_v27 = vmax.f32 %v3853_v55, 0.0  ;;  %v5729_v58 = vsel %vm4391_vm3, %v4234_v12, -inf  ;;  %v7085_v13 = vsel %vm6432_vm8, %v13912_v7, %v7084_v36 }
 0x452   : > { %v14144_v10 = vmax.f32 %v5565_v56, %v5566_v22  ;;  %v5682_v31 = vmax.f32 %v5680_v45, %v5681_v19  ;;  %v5688_v17 = vrot.slane %v5687_v5, 4  ;;  %v5724_v30 = vmax.f32 %v5722_v47, %v5723_v8 }
 0x453   : > { %v5730_v39 = vrot.slane %v5729_v58, 4  ;;  %v4233_v49 = vcombine.high %v3980_v27, %v3980_v27  ;;  %v5708_v11 = vsel %vm4391_vm3, %v3980_v27, -inf  ;;  %v7086_v45 = vsel %vm6434_vm9, %v13892_v2, %v7085_v13  ;;  %v14162_v27 = vpop.f32.mrf.mxu0 }
 0x454   : > { %v5683_v59 = vrot.slane %v5682_v31, 2  ;;  %v5689_v55 = vmax.f32 %v5687_v5, %v5688_v17  ;;  %v5709_v56 = vrot.slane %v5708_v11, 4  ;;  %v5725_v22 = vrot.slane %v5724_v30, 2  ;;  %15958 = vst [vmem:[#allocation29_spill] sm:$0xff] %v14162_v27  ;;  %v14164_v5 = vpop.f32.mrf.mxu1 }
 0x455   : > { %v5731_v19 = vmax.f32 %v5729_v58, %v5730_v39  ;;  %v5715_v12 = vsel %vm4391_vm3, %v4233_v49, -inf  ;;  %v7087_v36 = vsel %vm6436_vm10, %v14144_v10, %v7086_v45  ;;  %15959 = vst [vmem:[#allocation30_spill] sm:$0xff] %v14164_v5  ;;  %v3856_v58 = vadd.f32 %v13824_v35, %v3600_v33  ;;  %v14176_v27 = vpop.f32.mrf.mxu0 }
 0x456   : > { %v14159_v32 = vmax.f32 %v5682_v31, %v5683_v59  ;;  %v5690_v47 = vrot.slane %v5689_v55, 2  ;;  %v5710_v8 = vmax.f32 %v5708_v11, %v5709_v56  ;;  %v5716_v4 = vrot.slane %v5715_v12, 4  ;;  %10689 = vmatprep.mubr.msk.f32.mxu1 %vm6651_vm11, %v7087_v36 }
 0x457   : > { %v5726_v17 = vmax.f32 %v5724_v30, %v5725_v22  ;;  %v5732_v13 = vrot.slane %v5731_v19, 2  ;;  %v5573_v39 = vrot.slane %v13960_v16, 1  ;;  %v6572_v31 = vsel %vm6426_vm5, %v13857_v20, %v13900_v42 }
 0x458   : > { %v5691_v49 = vmax.f32 %v5689_v55, %v5690_v47  ;;  %v5711_v21 = vrot.slane %v5710_v8, 2  ;;  %v5717_v45 = vmax.f32 %v5715_v12, %v5716_v4  ;;  %v3983_v56 = vmax.f32 %v3856_v58, 0.0  ;;  %v14178_v55 = vpop.f32.mrf.mxu1 }
 0x459   : > { %v5727_v11 = vrot.slane %v5726_v17, 1  ;;  %v14171_v59 = vmax.f32 %v5731_v19, %v5732_v13  ;;  %v5574_v36 = vmax.f32 %v13960_v16, %v5573_v39  ;;  %v6573_v33 = vsel %vm6428_vm6, %v13910_v0, %v6572_v31  ;;  %15960 = vst [vmem:[#allocation42_spill] sm:$0xff] %v14178_v55 }
 0x45a   : > { %v5692_v5 = vrot.slane %v5691_v49, 1  ;;  %v5712_v30 = vmax.f32 %v5710_v8, %v5711_v21  ;;  %v5718_v22 = vrot.slane %v5717_v45, 2  ;;  %v4236_v42 = vcombine.high %v3983_v56, %v3983_v56  ;;  %v14200_v31 = vpop.f32.mrf.mxu1 }
 0x45b   : > { %v14180_v4 = vmax.f32 %v5726_v17, %v5727_v11  ;;  %v5750_v19 = vsel %vm4391_vm3, %v3983_v56, -inf  ;;  %v6574_v0 = vsel %vm6430_vm7, %v13912_v7, %v6573_v33  ;;  %v7088_v13 = vsel %vm6424_vm4, %v13982_v44, %v5574_v36  ;;  %15961 = vst [vmem:[#allocation43_spill] sm:$0xff] %v14200_v31 }
 0x45c   : > { %v14184_v12 = vmax.f32 %v5691_v49, %v5692_v5  ;;  %v5713_v16 = vrot.slane %v5712_v30, 1  ;;  %v5719_v47 = vmax.f32 %v5717_v45, %v5718_v22  ;;  %v5751_v21 = vrot.slane %v5750_v19, 4  ;;  %v14198_v45 = vpop.f32.mrf.mxu0 }
 0x45d   : > { %v5757_v8 = vsel %vm4391_vm3, %v4236_v42, -inf  ;;  %v3595_v17 = vadd.f32 %v13754_v62, %v13787_v6  ;;  %v6575_v44 = vsel %vm6432_vm8, %v13892_v2, %v6574_v0  ;;  %v7089_v62 = vsel %vm6426_vm5, %v13939_v43, %v7088_v13  ;;  %v15962_v2 = vld [vmem:[#allocation16_spill] sm:$0xff]  ;;  %v15963_v43 = vld [vmem:[#allocation21_spill] sm:$0xff] }
 0x45e   : > { %v6592_v58 = vsel %vm6424_vm4, %v14116_v15, %v14184_v12  ;;  %v14196_v5 = vmax.f32 %v5712_v30, %v5713_v16  ;;  %v5720_v39 = vrot.slane %v5719_v47, 1  ;;  %v5752_v49 = vmax.f32 %v5750_v19, %v5751_v21 }
 0x45f   : > { %v6593_v7 = vsel %vm6426_vm5, %v14128_v52, %v6592_v58  ;;  %v5758_v11 = vrot.slane %v5757_v8, 4  ;;  %v6576_v22 = vsel %vm6434_vm9, %v14144_v10, %v6575_v44  ;;  %v3855_v19 = vadd.f32 %v13824_v35, %v3595_v17  ;;  %v15967_v44 = vld [vmem:[#allocation14_spill] sm:$0xff] }
 0x460   : > { %v14208_v6 = vmax.f32 %v5719_v47, %v5720_v39  ;;  %v14212_v56 = vsel %vm6428_vm6, %v14196_v5, %v6593_v7  ;;  %v5753_v30 = vrot.slane %v5752_v49, 2  ;;  %v6577_v42 = vsel %vm6436_vm10, %v5574_v36, %v6576_v22  ;;  %v15964_v47 = vld [vmem:[#allocation31_spill] sm:$0xff]  ;;  %v14230_v36 = vpop.f32.mrf.mxu0 }
 0x461   : > { %v5759_v33 = vmax.f32 %v5757_v8, %v5758_v11  ;;  %v3610_v16 = vadd.f32 %v15962_v2, %v13815_v60  ;;  %10633 = vmatprep.mubr.msk.f32.mxu0 %vm6651_vm11, %v6577_v42  ;;  %v3605_v0 = vadd.f32 %v15964_v47, %v15963_v43  ;;  %v15965_v13 = vrot.slane %v13979_v48, 1  ;;  %v14232_v8 = vpop.f32.mrf.mxu1 }
 0x462   : > { %v5754_v21 = vmax.f32 %v5752_v49, %v5753_v30  ;;  %v7090_v10 = vsel %vm6428_vm6, %v13946_v61, %v7089_v62  ;;  %15966 = vst [vmem:[#allocation16_spill] sm:$0xff] %v14232_v8  ;;  %v3982_v60 = vmax.f32 %v3855_v19, 0.0  ;;  %v15968_v30 = vld [vmem:[#allocation24_spill] sm:$0xff]  ;;  %v14247_v47 = vpop.f32.mrf.mxu0 }
 0x463   : > { %v14226_v58 = vmax.f32 %v13979_v48, %v15965_v13  ;;  %v5760_v17 = vrot.slane %v5759_v33, 2  ;;  %v3858_v39 = vadd.f32 %v13824_v35, %v3610_v16  ;;  %v7091_v49 = vsel %vm6430_vm7, %v13997_v57, %v7090_v10  ;;  %15969 = vst [vmem:[#allocation21_spill] sm:$0xff] %v14247_v47 }
 0x464   : > { %v5755_v7 = vrot.slane %v5754_v21, 1  ;;  %v3857_v11 = vadd.f32 %v13824_v35, %v3605_v0  ;;  %v7092_v48 = vsel %vm6432_vm8, %v14003_v1, %v7091_v49  ;;  %v3620_v61 = vadd.f32 %v15968_v30, %v15967_v44  ;;  %v14249_v0 = vpop.f32.mrf.mxu1  ;;  %v14261_v20 = vpop.f32.mrf.mxu0 }
 0x465   : > { %v5761_v62 = vmax.f32 %v5759_v33, %v5760_v17  ;;  %v4235_v22 = vcombine.high %v3982_v60, %v3982_v60  ;;  %v5736_v42 = vsel %vm4391_vm3, %v3982_v60, -inf  ;;  %v3985_v2 = vmax.f32 %v3858_v39, 0.0  ;;  %15970 = vst [vmem:[#allocation31_spill] sm:$0xff] %v14249_v0  ;;  %15972 = vst [vmem:[#allocation24_spill] sm:$0xff] %v14261_v20 }
 0x466   : > { %v14243_v19 = vmax.f32 %v5754_v21, %v5755_v7  ;;  %v5737_v16 = vrot.slane %v5736_v42, 4  ;;  %v3984_v43 = vmax.f32 %v3857_v11, 0.0  ;;  %v7093_v57 = vsel %vm6434_vm9, %v13991_v25, %v7092_v48  ;;  %v14253_v7 = vpop.f32.mrf.mxu1 }
 0x467   : > { %v5762_v13 = vrot.slane %v5761_v62, 1  ;;  %v5743_v10 = vsel %vm4391_vm3, %v4235_v22, -inf  ;;  %v4238_v49 = vcombine.high %v3985_v2, %v3985_v2  ;;  %v5778_v33 = vsel %vm4391_vm3, %v3985_v2, -inf  ;;  %15971 = vst [vmem:[#allocation14_spill] sm:$0xff] %v14253_v7 }
 0x468   : > { %v5738_v17 = vmax.f32 %v5736_v42, %v5737_v16  ;;  %v5744_v60 = vrot.slane %v5743_v10, 4  ;;  %v5779_v39 = vrot.slane %v5778_v33, 4  ;;  %v4237_v21 = vcombine.high %v3984_v43, %v3984_v43  ;;  %v14264_v16 = vpop.f32.mrf.mxu1 }
 0x469   : > { %v14255_v11 = vmax.f32 %v5761_v62, %v5762_v13  ;;  %v5785_v48 = vsel %vm4391_vm3, %v4238_v49, -inf  ;;  %v5764_v44 = vsel %vm4391_vm3, %v3984_v43, -inf  ;;  %v7094_v30 = vsel %vm6436_vm10, %v14226_v58, %v7093_v57  ;;  %15973 = vst [vmem:[#allocation44_spill] sm:$0xff] %v14264_v16  ;;  %v14275_v16 = vpop.f32.mrf.mxu0 }
 0x46a   : > { %v5739_v22 = vrot.slane %v5738_v17, 2  ;;  %v5745_v0 = vmax.f32 %v5743_v10, %v5744_v60  ;;  %v5780_v2 = vmax.f32 %v5778_v33, %v5779_v39  ;;  %v5786_v42 = vrot.slane %v5785_v48, 4  ;;  %10690 = vmatmul.mubr.msk.f32.gmra.mxu1 %vm6651_vm11, %v7094_v30  ;;  %v10594_v10 = vpop.f32.mrf.mxu1  ;;  %15974 = vst [vmem:[#allocation45_spill] sm:$0xff] %v14275_v16 }
 0x46b   : > { %v5765_v7 = vrot.slane %v5764_v44, 4  ;;  %v5771_v62 = vsel %vm4391_vm3, %v4237_v21, -inf  ;;  %v3860_v13 = vadd.f32 %v13824_v35, %v3620_v61  ;;  %v6581_v43 = vsel %vm6430_vm7, %v14003_v1, %v14011_v51 }
 0x46c   : > { %v5740_v57 = vmax.f32 %v5738_v17, %v5739_v22  ;;  %v5746_v49 = vrot.slane %v5745_v0, 2  ;;  %v5781_v8 = vrot.slane %v5780_v2, 2  ;;  %v14271_v20 = vmax.f32 %v5785_v48, %v5786_v42 }
 0x46d   : > { %v5766_v33 = vmax.f32 %v5764_v44, %v5765_v7  ;;  %v5772_v60 = vrot.slane %v5771_v62, 4  ;;  %v3987_v39 = vmax.f32 %v3860_v13, 0.0  ;;  %v6582_v30 = vsel %vm6432_vm8, %v13991_v25, %v6581_v43 }
 0x46e   : > { %v5741_v21 = vrot.slane %v5740_v57, 1  ;;  %v5747_v61 = vmax.f32 %v5745_v0, %v5746_v49  ;;  %v5782_v31 = vmax.f32 %v5780_v2, %v5781_v8  ;;  %v6583_v0 = vsel %vm6434_vm9, %v14226_v58, %v6582_v30  ;;  %v14284_v8 = vpop.f32.mrf.mxu0 }
 0x46f   : > { %v5767_v1 = vrot.slane %v5766_v33, 2  ;;  %v5773_v51 = vmax.f32 %v5771_v62, %v5772_v60  ;;  %v4240_v17 = vcombine.high %v3987_v39, %v3987_v39  ;;  %v5806_v48 = vsel %vm4391_vm3, %v3987_v39, -inf  ;;  %15975 = vst [vmem:[#allocation46_spill] sm:$0xff] %v14284_v8 }
 0x470   : > { %v14279_v22 = vmax.f32 %v5740_v57, %v5741_v21  ;;  %v5748_v7 = vrot.slane %v5747_v61, 1  ;;  %v5783_v44 = vrot.slane %v5782_v31, 1  ;;  %v5807_v42 = vrot.slane %v5806_v48, 4  ;;  %v15976_v21 = vld [vmem:[#allocation26_spill] sm:$0xff] }
 0x471   : > { %v5768_v13 = vmax.f32 %v5766_v33, %v5767_v1  ;;  %v5774_v10 = vrot.slane %v5773_v51, 2  ;;  %v5813_v25 = vsel %vm4391_vm3, %v4240_v17, -inf  ;;  %v6584_v39 = vsel %vm6436_vm10, %v14085_v3, %v6583_v0  ;;  %v15977_v33 = vld [vmem:[#allocation27_spill] sm:$0xff] }
 0x472   : > { %v5749_v2 = vmax.f32 %v5747_v61, %v5748_v7  ;;  %v14286_v43 = vmax.f32 %v5782_v31, %v5783_v44  ;;  %v5808_v62 = vmax.f32 %v5806_v48, %v5807_v42  ;;  %v5814_v49 = vrot.slane %v5813_v25, 4  ;;  %10634 = vmatmul.mubr.msk.f32.gmra.mxu0 %vm6651_vm11, %v6584_v39  ;;  %v15978_v48 = vld [vmem:[#allocation33_spill] sm:$0xff]  ;;  %v15979_v7 = vld [vmem:[#allocation22_spill] sm:$0xff]  ;;  %v14306_v42 = vpop.f32.mrf.mxu0 }
 0x473   : > { %v5769_v60 = vrot.slane %v5768_v13, 1  ;;  %v5775_v57 = vmax.f32 %v5773_v51, %v5774_v10  ;;  %v3615_v1 = vadd.f32 %v15977_v33, %v15976_v21  ;;  %v3630_v44 = vadd.f32 %v15979_v7, %v15978_v48  ;;  %15980 = vst [vmem:[#allocation26_spill] sm:$0xff] %v14306_v42  ;;  %v15981_v21 = vld [vmem:[#allocation12_spill] sm:$0xff] }
 0x474   : > { %v14294_v17 = vsel %vm6424_vm4, %v14243_v19, %v5749_v2  ;;  %v14298_v58 = vsel %vm6424_vm4, %v5749_v2, %v14279_v22  ;;  %v5809_v31 = vrot.slane %v5808_v62, 2  ;;  %v5815_v30 = vmax.f32 %v5813_v25, %v5814_v49  ;;  %v15982_v33 = vld [vmem:[#allocation32_spill] sm:$0xff] }
 0x475   : > { %v14301_v61 = vmax.f32 %v5768_v13, %v5769_v60  ;;  %v5776_v51 = vrot.slane %v5775_v57, 1  ;;  %v3859_v3 = vadd.f32 %v13824_v35, %v3615_v1  ;;  %v3625_v2 = vadd.f32 %v15982_v33, %v15981_v21  ;;  %v10398_v1 = vpop.f32.mrf.mxu0 }
 0x476   : > { %v5810_v10 = vmax.f32 %v5808_v62, %v5809_v31  ;;  %v5816_v0 = vrot.slane %v5815_v30, 2  ;;  %v15983_v47 = vrot.slane %v14070_v28, 2  ;;  %v3862_v60 = vadd.f32 %v13824_v35, %v3630_v44 }
 0x477   : > { %v14313_v49 = vmax.f32 %v5775_v57, %v5776_v51  ;;  %v3986_v13 = vmax.f32 %v3859_v3, 0.0  ;;  %v7096_v39 = vsel %vm6426_vm5, %v14045_v34, %v14109_v29  ;;  %v3861_v31 = vadd.f32 %v13824_v35, %v3625_v2 }
 0x478   : > { %v5677_v25 = vmax.f32 %v14070_v28, %v15983_v47  ;;  %v5811_v48 = vrot.slane %v5810_v10, 1  ;;  %v5817_v62 = vmax.f32 %v5815_v30, %v5816_v0  ;;  %v3989_v42 = vmax.f32 %v3862_v60, 0.0 }
 0x479   : > { %v4239_v21 = vcombine.high %v3986_v13, %v3986_v13  ;;  %v5792_v33 = vsel %vm4391_vm3, %v3986_v13, -inf  ;;  %v7097_v28 = vsel %vm6428_vm6, %v14059_v37, %v7096_v39  ;;  %v3988_v3 = vmax.f32 %v3861_v31, 0.0 }
 0x47a   : > { %v5678_v7 = vrot.slane %v5677_v25, 1  ;;  %v14323_v47 = vmax.f32 %v5810_v10, %v5811_v48  ;;  %v5818_v57 = vrot.slane %v5817_v62, 1  ;;  %v5793_v51 = vrot.slane %v5792_v33, 4 }
 0x47b   : > { %v5799_v34 = vsel %vm4391_vm3, %v4239_v21, -inf  ;;  %v4242_v29 = vcombine.high %v3989_v42, %v3989_v42  ;;  %v5834_v30 = vsel %vm4391_vm3, %v3989_v42, -inf  ;;  %v4241_v39 = vcombine.high %v3988_v3, %v3988_v3 }
 0x47c   : > { %v14327_v44 = vmax.f32 %v5677_v25, %v5678_v7  ;;  %v14329_v35 = vmax.f32 %v5817_v62, %v5818_v57  ;;  %v5794_v0 = vmax.f32 %v5792_v33, %v5793_v51  ;;  %v5800_v2 = vrot.slane %v5799_v34, 4  ;;  %v15984_v7 = vld [vmem:[#allocation15_spill] sm:$0xff]  ;;  %v15985_v33 = vld [vmem:[#allocation34_spill] sm:$0xff] }
 0x47d   : > { %v5835_v13 = vrot.slane %v5834_v30, 4  ;;  %v5841_v60 = vsel %vm4391_vm3, %v4242_v29, -inf  ;;  %v5820_v10 = vsel %vm4391_vm3, %v3988_v3, -inf  ;;  %v7098_v1 = vsel %vm6430_vm7, %v14097_v53, %v7097_v28 }
 0x47e   : > { %v5795_v48 = vrot.slane %v5794_v0, 2  ;;  %v5801_v31 = vmax.f32 %v5799_v34, %v5800_v2  ;;  %v5842_v8 = vrot.slane %v5841_v60, 4  ;;  %v5821_v42 = vrot.slane %v5820_v10, 4 }
 0x47f   : > { %v5836_v21 = vmax.f32 %v5834_v30, %v5835_v13  ;;  %v5827_v25 = vsel %vm4391_vm3, %v4241_v39, -inf  ;;  %v7099_v62 = vsel %vm6432_vm8, %v14114_v38, %v7098_v1  ;;  %v3640_v57 = vadd.f32 %v15985_v33, %v15984_v7  ;;  %v14347_v30 = vld [vmem:[%s15730_s4] ss:$0 sm:$0xff] }
 0x480   : > { %v14340_v51 = vmax.f32 %v5794_v0, %v5795_v48  ;;  %v5802_v29 = vrot.slane %v5801_v31, 2  ;;  %v5843_v16 = vmax.f32 %v5841_v60, %v5842_v8  ;;  %v5822_v55 = vmax.f32 %v5820_v10, %v5821_v42 }
 0x481   : > { %v5837_v3 = vrot.slane %v5836_v21, 2  ;;  %v5828_v28 = vrot.slane %v5827_v25, 4  ;;  %v7100_v34 = vsel %vm6434_vm9, %v14087_v9, %v7099_v62  ;;  %v3864_v2 = vadd.f32 %v14347_v30, %v3640_v57 }
 0x482   : > { %v5803_v13 = vmax.f32 %v5801_v31, %v5802_v29  ;;  %v5844_v1 = vrot.slane %v5843_v16, 2  ;;  %v7101_v0 = vsel %vm6436_vm10, %v14327_v44, %v7100_v34  ;;  %v5823_v48 = vrot.slane %v5822_v55, 2 }
 0x483   : > { %v5838_v39 = vmax.f32 %v5836_v21, %v5837_v3  ;;  %v5829_v8 = vmax.f32 %v5827_v25, %v5828_v28  ;;  %10692 = vmatprep.mubr.msk.f32.mxu1 %vm6651_vm11, %v7101_v0  ;;  %v3991_v60 = vmax.f32 %v3864_v2, 0.0  ;;  %v5685_v10 = vrot.slane %v14159_v32, 1 }
 0x484   : > { %v5804_v42 = vrot.slane %v5803_v13, 1  ;;  %v14354_v7 = vmax.f32 %v5843_v16, %v5844_v1  ;;  %v6586_v31 = vsel %vm6426_vm5, %v14059_v37, %v14105_v23  ;;  %v5824_v21 = vmax.f32 %v5822_v55, %v5823_v48 }
 0x485   : > { %v5839_v62 = vrot.slane %v5838_v39, 1  ;;  %v5830_v33 = vrot.slane %v5829_v8, 2  ;;  %v4244_v57 = vcombine.high %v3991_v60, %v3991_v60  ;;  %v5862_v29 = vsel %vm4391_vm3, %v3991_v60, -inf }
 0x486   : > { %v14360_v3 = vmax.f32 %v5803_v13, %v5804_v42  ;;  %v5846_v28 = vrot.slane %v14354_v7, 1  ;;  %v5863_v34 = vrot.slane %v5862_v29, 4  ;;  %v5825_v2 = vrot.slane %v5824_v21, 1 }
 0x487   : > { %v14362_v25 = vmax.f32 %v5838_v39, %v5839_v62  ;;  %v5831_v0 = vmax.f32 %v5829_v8, %v5830_v33  ;;  %v5869_v16 = vsel %vm4391_vm3, %v4244_v57, -inf  ;;  %v5686_v1 = vmax.f32 %v14159_v32, %v5685_v10 }
 0x488   : > { %v6606_v37 = vsel %vm6424_vm4, %v14323_v47, %v14360_v3  ;;  %v5864_v23 = vmax.f32 %v5862_v29, %v5863_v34  ;;  %v5870_v55 = vrot.slane %v5869_v16, 4  ;;  %v6587_v13 = vsel %vm6428_vm6, %v14097_v53, %v6586_v31  ;;  %v15987_v34 = vld [vmem:[#allocation35_spill] sm:$0xff] }
 0x489   : > { %v14372_v39 = vmax.f32 %v5824_v21, %v5825_v2  ;;  %v5832_v48 = vrot.slane %v5831_v0, 1  ;;  %v6607_v60 = vsel %vm6426_vm5, %v14329_v35, %v6606_v37  ;;  %v6588_v8 = vsel %vm6430_vm7, %v14114_v38, %v6587_v13 }
 0x48a   : > { %v5865_v42 = vrot.slane %v5864_v23, 2  ;;  %v5871_v32 = vmax.f32 %v5869_v16, %v5870_v55  ;;  %v6589_v10 = vsel %vm6432_vm8, %v14087_v9, %v6588_v8  ;;  %v7102_v62 = vsel %vm6424_vm4, %v14184_v12, %v5686_v1  ;;  %v15986_v9 = vld [vmem:[#allocation17_spill] sm:$0xff]  ;;  %v15988_v12 = vld [vmem:[#allocation11_spill] sm:$0xff]  ;;  %v15989_v16 = vld [vmem:[#allocation18_spill] sm:$0xff] }
 0x48b   : > { %v14382_v33 = vmax.f32 %v5831_v0, %v5832_v48  ;;  %v14386_v53 = vsel %vm6428_vm6, %v14372_v39, %v6607_v60  ;;  %v6590_v31 = vsel %vm6434_vm9, %v14327_v44, %v6589_v10  ;;  %v7103_v38 = vsel %vm6426_vm5, %v14116_v15, %v7102_v62 }
 0x48c   : > { %v5866_v21 = vmax.f32 %v5864_v23, %v5865_v42  ;;  %v5872_v57 = vrot.slane %v5871_v32, 2  ;;  %v6591_v29 = vsel %vm6436_vm10, %v5686_v1, %v6590_v31  ;;  %v3635_v2 = vadd.f32 %v15987_v34, %v15986_v9 }
 0x48d   : > { %10636 = vmatprep.mubr.msk.f32.mxu0 %vm6651_vm11, %v6591_v29  ;;  %v3650_v0 = vadd.f32 %v15988_v12, %v13962_v41  ;;  %v3645_v37 = vadd.f32 %v15989_v16, %v13975_v63  ;;  %v15990_v44 = vrot.slane %v14171_v59, 1  ;;  %v7104_v15 = vsel %vm6428_vm6, %v14128_v52, %v7103_v38 }
 0x48e   : > { %v5867_v1 = vrot.slane %v5866_v21, 1  ;;  %v5873_v23 = vmax.f32 %v5871_v32, %v5872_v57  ;;  %v3863_v13 = vadd.f32 %v14347_v30, %v3635_v2  ;;  %v7105_v48 = vsel %vm6430_vm7, %v14196_v5, %v7104_v15 }
 0x48f   : > { %v14403_v55 = vmax.f32 %v14171_v59, %v15990_v44  ;;  %v3866_v41 = vadd.f32 %v14347_v30, %v3650_v0  ;;  %v3865_v60 = vadd.f32 %v14347_v30, %v3645_v37  ;;  %v7106_v63 = vsel %vm6432_vm8, %v14208_v6, %v7105_v48  ;;  %v15991_v59 = vld [vmem:[#allocation36_spill] sm:$0xff] }
 0x490   : > { %v3660_v8 = vadd.f32 %v15991_v59, %v13993_v54  ;;  %v14416_v42 = vmax.f32 %v5866_v21, %v5867_v1  ;;  %v5874_v52 = vrot.slane %v5873_v23, 1  ;;  %v3990_v10 = vmax.f32 %v3863_v13, 0.0 }
 0x491   : > { %v7107_v32 = vsel %vm6434_vm9, %v14180_v4, %v7106_v63  ;;  %v3993_v62 = vmax.f32 %v3866_v41, 0.0  ;;  %v3992_v31 = vmax.f32 %v3865_v60, 0.0  ;;  %v6595_v54 = vsel %vm6430_vm7, %v14208_v6, %v14212_v56 }
 0x492   : > { %v7108_v5 = vsel %vm6436_vm10, %v14403_v55, %v7107_v32  ;;  %v3868_v38 = vadd.f32 %v14347_v30, %v3660_v8  ;;  %v14423_v57 = vmax.f32 %v5873_v23, %v5874_v52  ;;  %v4243_v29 = vcombine.high %v3990_v10, %v3990_v10 }
 0x493   : > { %v5848_v9 = vsel %vm4391_vm3, %v3990_v10, -inf  ;;  %10693 = vmatmul.mubr.msk.f32.gmra.mxu1 %vm6651_vm11, %v7108_v5  ;;  %v4246_v34 = vcombine.high %v3993_v62, %v3993_v62  ;;  %v5890_v2 = vsel %vm4391_vm3, %v3993_v62, -inf  ;;  %v4245_v12 = vcombine.high %v3992_v31, %v3992_v31 }
 0x494   : > { %v5849_v21 = vrot.slane %v5848_v9, 4  ;;  %v5855_v0 = vsel %vm4391_vm3, %v4243_v29, -inf  ;;  %v5891_v16 = vrot.slane %v5890_v2, 4  ;;  %v5876_v37 = vsel %vm4391_vm3, %v3992_v31, -inf }
 0x495   : > { %v3995_v44 = vmax.f32 %v3868_v38, 0.0  ;;  %v5856_v1 = vrot.slane %v5855_v0, 4  ;;  %v5897_v23 = vsel %vm4391_vm3, %v4246_v34, -inf  ;;  %v5877_v13 = vrot.slane %v5876_v37, 4 }
 0x496   : > { %v5850_v15 = vmax.f32 %v5848_v9, %v5849_v21  ;;  %v5892_v48 = vmax.f32 %v5890_v2, %v5891_v16  ;;  %v5898_v41 = vrot.slane %v5897_v23, 4  ;;  %v5883_v6 = vsel %vm4391_vm3, %v4245_v12, -inf }
 0x497   : > { %v4248_v56 = vcombine.high %v3995_v44, %v3995_v44  ;;  %v5857_v63 = vmax.f32 %v5855_v0, %v5856_v1  ;;  %v5878_v59 = vmax.f32 %v5876_v37, %v5877_v13  ;;  %v5884_v8 = vrot.slane %v5883_v6, 4 }
 0x498   : > { %v5851_v60 = vrot.slane %v5850_v15, 2  ;;  %v5893_v52 = vrot.slane %v5892_v48, 2  ;;  %v14435_v10 = vmax.f32 %v5897_v23, %v5898_v41  ;;  %v5918_v32 = vsel %vm4391_vm3, %v3995_v44, -inf }
 0x499   : > { %v5925_v62 = vsel %vm4391_vm3, %v4248_v56, -inf  ;;  %v5858_v5 = vrot.slane %v5857_v63, 2  ;;  %v5879_v38 = vrot.slane %v5878_v59, 2  ;;  %v5885_v29 = vmax.f32 %v5883_v6, %v5884_v8 }
 0x49a   : > { %v5852_v31 = vmax.f32 %v5850_v15, %v5851_v60  ;;  %v5894_v9 = vmax.f32 %v5892_v48, %v5893_v52  ;;  %v5919_v34 = vrot.slane %v5918_v32, 4  ;;  %v5926_v2 = vrot.slane %v5925_v62, 4 }
 0x49b   : > { %v5859_v0 = vmax.f32 %v5857_v63, %v5858_v5  ;;  %v5880_v16 = vmax.f32 %v5878_v59, %v5879_v38  ;;  %v5886_v37 = vrot.slane %v5885_v29, 2  ;;  %v6596_v44 = vsel %vm6432_vm8, %v14180_v4, %v6595_v54  ;;  %v15992_v5 = vld [vmem:[#allocation19_spill] sm:$0xff]  ;;  %v15993_v38 = vld [vmem:[#allocation37_spill] sm:$0xff] }
 0x49c   : > { %v5853_v12 = vrot.slane %v5852_v31, 1  ;;  %v5895_v1 = vrot.slane %v5894_v9, 1  ;;  %v5920_v23 = vmax.f32 %v5918_v32, %v5919_v34  ;;  %v5927_v13 = vmax.f32 %v5925_v62, %v5926_v2  ;;  %v15995_v2 = vld [vmem:[#allocation23_spill] sm:$0xff] }
 0x49d   : > { %v5860_v15 = vrot.slane %v5859_v0, 1  ;;  %v5881_v56 = vrot.slane %v5880_v16, 1  ;;  %v5887_v6 = vmax.f32 %v5885_v29, %v5886_v37  ;;  %v6597_v63 = vsel %vm6434_vm9, %v14403_v55, %v6596_v44  ;;  %v15997_v44 = vld [vmem:[#allocation40_spill] sm:$0xff] }
 0x49e   : > { %v14442_v41 = vmax.f32 %v5852_v31, %v5853_v12  ;;  %v14444_v48 = vmax.f32 %v5894_v9, %v5895_v1  ;;  %v5921_v60 = vrot.slane %v5920_v23, 2  ;;  %v5928_v8 = vrot.slane %v5927_v13, 2 }
 0x49f   : > { %v5861_v59 = vmax.f32 %v5859_v0, %v5860_v15  ;;  %v14448_v52 = vmax.f32 %v5880_v16, %v5881_v56  ;;  %v5888_v32 = vrot.slane %v5887_v6, 1  ;;  %v6598_v62 = vsel %vm6436_vm10, %v14279_v22, %v6597_v63  ;;  %v15994_v22 = vld [vmem:[#allocation38_spill] sm:$0xff]  ;;  %v15998_v15 = vld [vmem:[#allocation13_spill] sm:$0xff] }
 0x4a0   : > { %v5922_v4 = vmax.f32 %v5920_v23, %v5921_v60  ;;  %v5929_v54 = vmax.f32 %v5927_v13, %v5928_v8  ;;  %10637 = vmatmul.mubr.msk.f32.gmra.mxu0 %vm6651_vm11, %v6598_v62  ;;  %v3655_v31 = vadd.f32 %v13977_v18, %v14022_v26  ;;  %v3670_v29 = vadd.f32 %v15993_v38, %v15992_v5 }
 0x4a1   : > { %v14459_v55 = vsel %vm6424_vm4, %v14416_v42, %v5861_v59  ;;  %v14463_v9 = vsel %vm6424_vm4, %v5861_v59, %v14442_v41  ;;  %v14465_v34 = vmax.f32 %v5887_v6, %v5888_v32  ;;  %v3665_v12 = vadd.f32 %v15995_v2, %v15994_v22 }
 0x4a2   : > { %v5923_v0 = vrot.slane %v5922_v4, 1  ;;  %v5930_v16 = vrot.slane %v5929_v54, 1  ;;  %v3867_v18 = vadd.f32 %v14347_v30, %v3655_v31  ;;  %v3870_v26 = vadd.f32 %v14347_v30, %v3670_v29 }
 0x4a3   : > { %v3869_v37 = vadd.f32 %v14347_v30, %v3665_v12  ;;  %v15996_v1 = vrot.slane %v14271_v20, 2  ;;  %v7110_v13 = vsel %vm6426_vm5, %v14243_v19, %v14298_v58  ;;  %v3680_v56 = vadd.f32 %v15998_v15, %v15997_v44 }
 0x4a4   : > { %v14480_v6 = vmax.f32 %v5922_v4, %v5923_v0  ;;  %v14482_v60 = vmax.f32 %v5929_v54, %v5930_v16  ;;  %v3994_v8 = vmax.f32 %v3867_v18, 0.0  ;;  %v3997_v63 = vmax.f32 %v3870_v26, 0.0 }
 0x4a5   : > { %v5789_v23 = vmax.f32 %v14271_v20, %v15996_v1  ;;  %v3996_v59 = vmax.f32 %v3869_v37, 0.0  ;;  %v7111_v62 = vsel %vm6428_vm6, %v14255_v11, %v7110_v13  ;;  %v3872_v20 = vadd.f32 %v14347_v30, %v3680_v56 }
 0x4a6   : > { %v4247_v31 = vcombine.high %v3994_v8, %v3994_v8  ;;  %v5904_v5 = vsel %vm4391_vm3, %v3994_v8, -inf  ;;  %v4250_v19 = vcombine.high %v3997_v63, %v3997_v63  ;;  %v5946_v58 = vsel %vm4391_vm3, %v3997_v63, -inf }
 0x4a7   : > { %v5790_v32 = vrot.slane %v5789_v23, 1  ;;  %v5905_v38 = vrot.slane %v5904_v5, 4  ;;  %v5947_v4 = vrot.slane %v5946_v58, 4  ;;  %v4249_v29 = vcombine.high %v3996_v59, %v3996_v59 }
 0x4a8   : > { %v5932_v54 = vsel %vm4391_vm3, %v3996_v59, -inf  ;;  %v5911_v22 = vsel %vm4391_vm3, %v4247_v31, -inf  ;;  %v5953_v2 = vsel %vm4391_vm3, %v4250_v19, -inf  ;;  %v7112_v44 = vsel %vm6430_vm7, %v14301_v61, %v7111_v62 }
 0x4a9   : > { %v5933_v12 = vrot.slane %v5932_v54, 4  ;;  %v5791_v0 = vmax.f32 %v5789_v23, %v5790_v32  ;;  %v5906_v16 = vmax.f32 %v5904_v5, %v5905_v38  ;;  %v5912_v18 = vrot.slane %v5911_v22, 4 }
 0x4aa   : > { %v5948_v26 = vmax.f32 %v5946_v58, %v5947_v4  ;;  %v5954_v37 = vrot.slane %v5953_v2, 4  ;;  %v5939_v13 = vsel %vm4391_vm3, %v4249_v29, -inf  ;;  %v3999_v15 = vmax.f32 %v3872_v20, 0.0 }
 0x4ab   : > { %v5934_v1 = vmax.f32 %v5932_v54, %v5933_v12  ;;  %v5907_v56 = vrot.slane %v5906_v16, 2  ;;  %v5913_v8 = vmax.f32 %v5911_v22, %v5912_v18  ;;  %v5940_v21 = vrot.slane %v5939_v13, 4 }
 0x4ac   : > { %v5949_v63 = vrot.slane %v5948_v26, 2  ;;  %v5955_v59 = vmax.f32 %v5953_v2, %v5954_v37  ;;  %v7113_v23 = vsel %vm6432_vm8, %v14313_v49, %v7112_v44  ;;  %v4252_v32 = vcombine.high %v3999_v15, %v3999_v15 }
 0x4ad   : > { %v5935_v31 = vrot.slane %v5934_v1, 2  ;;  %v14497_v5 = vmax.f32 %v5906_v16, %v5907_v56  ;;  %v5914_v19 = vrot.slane %v5913_v8, 2  ;;  %v5941_v29 = vmax.f32 %v5939_v13, %v5940_v21 }
 0x4ae   : > { %v5950_v58 = vmax.f32 %v5948_v26, %v5949_v63  ;;  %v5956_v38 = vrot.slane %v5955_v59, 2  ;;  %v7114_v62 = vsel %vm6434_vm9, %v14286_v43, %v7113_v23  ;;  %v5974_v20 = vsel %vm4391_vm3, %v3999_v15, -inf }
 0x4af   : > { %v5936_v4 = vmax.f32 %v5934_v1, %v5935_v31  ;;  %v5915_v54 = vmax.f32 %v5913_v8, %v5914_v19  ;;  %v7115_v12 = vsel %vm6436_vm10, %v5791_v0, %v7114_v62  ;;  %v5942_v37 = vrot.slane %v5941_v29, 2 }
 0x4b0   : > { %v5951_v22 = vrot.slane %v5950_v58, 1  ;;  %v14502_v2 = vmax.f32 %v5955_v59, %v5956_v38  ;;  %10695 = vmatprep.mubr.msk.f32.mxu1 %vm6651_vm11, %v7115_v12  ;;  %v5975_v16 = vrot.slane %v5974_v20, 4  ;;  %v5981_v26 = vsel %vm4391_vm3, %v4252_v32, -inf  ;;  %v15999_v32 = vld [vmem:[#allocation39_spill] sm:$0xff] }
 0x4b1   : > { %v5937_v18 = vrot.slane %v5936_v4, 1  ;;  %v5916_v1 = vrot.slane %v5915_v54, 1  ;;  %v5982_v44 = vrot.slane %v5981_v26, 4  ;;  %v5943_v56 = vmax.f32 %v5941_v29, %v5942_v37 }
 0x4b2   : > { %v14507_v21 = vmax.f32 %v5950_v58, %v5951_v22  ;;  %v5958_v13 = vrot.slane %v14502_v2, 1  ;;  %v5976_v8 = vmax.f32 %v5974_v20, %v5975_v16  ;;  %v5797_v63 = vrot.slane %v14340_v51, 1 }
 0x4b3   : > { %v14510_v15 = vmax.f32 %v5936_v4, %v5937_v18  ;;  %v14513_v59 = vmax.f32 %v5915_v54, %v5916_v1  ;;  %v5983_v31 = vmax.f32 %v5981_v26, %v5982_v44  ;;  %v6600_v23 = vsel %vm6426_vm5, %v14255_v11, %v14294_v17 }
 0x4b4   : > { %v3675_v19 = vadd.f32 %v15999_v32, %v14081_v40  ;;  %v5944_v58 = vrot.slane %v5943_v56, 1  ;;  %v5977_v38 = vrot.slane %v5976_v8, 2  ;;  %v5798_v62 = vmax.f32 %v14340_v51, %v5797_v63  ;;  %v8041_v32 = vld [vmem:[%s15733_s7 + $0x28] sm:$0xff] }
 0x4b5   : > { %v6601_v4 = vsel %vm6428_vm6, %v14301_v61, %v6600_v23  ;;  %v6620_v29 = vsel %vm6424_vm4, %v14480_v6, %v14513_v59  ;;  %v5984_v20 = vrot.slane %v5983_v31, 2 }
 0x4b6   : > { %v6602_v54 = vsel %vm6430_vm7, %v14313_v49, %v6601_v4  ;;  %v3871_v11 = vadd.f32 %v14347_v30, %v3675_v19  ;;  %v14529_v17 = vmax.f32 %v5943_v56, %v5944_v58  ;;  %v6621_v40 = vsel %vm6426_vm5, %v14482_v60, %v6620_v29  ;;  %v16001_v58 = vld [vmem:[#allocation28_spill] sm:$0xff] }
 0x4b7   : > { %v5978_v22 = vmax.f32 %v5976_v8, %v5977_v38  ;;  %v6603_v51 = vsel %vm6432_vm8, %v14286_v43, %v6602_v54  ;;  %v14537_v61 = vsel %vm6428_vm6, %v14510_v15, %v6621_v40  ;;  %v5985_v12 = vmax.f32 %v5983_v31, %v5984_v20  ;;  %v16000_v43 = vld [vmem:[#allocation41_spill] sm:$0xff] }
 0x4b8   : > { %v6604_v18 = vsel %vm6434_vm9, %v5791_v0, %v6603_v51  ;;  %v7116_v49 = vsel %vm6424_vm4, %v14360_v3, %v5798_v62  ;;  %v3998_v1 = vmax.f32 %v3871_v11, 0.0  ;;  %v3690_v56 = vadd.f32 %v16000_v43, %v14099_v50  ;;  %v8043_v0 = vld [vmem:[%s15733_s7 + $0x38] sm:$0xff] }
 0x4b9   : > { %v5979_v37 = vrot.slane %v5978_v22, 1  ;;  %v6605_v16 = vsel %vm6436_vm10, %v5798_v62, %v6604_v18  ;;  %v7117_v26 = vsel %vm6426_vm5, %v14323_v47, %v7116_v49  ;;  %v5986_v44 = vrot.slane %v5985_v12, 1  ;;  %10735 = vmatprep.subr.mxu1 %v8043_v0 }
 0x4ba   : > { %10639 = vmatprep.mubr.msk.f32.mxu0 %vm6651_vm11, %v6605_v16  ;;  %v3685_v8 = vadd.f32 %v14083_v46, %v14134_v14  ;;  %v5847_v3 = vmax.f32 %v14354_v7, %v5846_v28  ;;  %v4251_v47 = vcombine.high %v3998_v1, %v3998_v1  ;;  %v5960_v31 = vsel %vm4391_vm3, %v3998_v1, -inf  ;;  %v8042_v46 = vld [vmem:[%s15733_s7 + $0x30] sm:$0xff]  ;;  %10736 = vmatpush3.msra.mxu1 %v8043_v0  ;;  %v8039_v0 = vld [vmem:[%s15733_s7 + $0x18] sm:$0xff] }
 0x4bb   : > { %v14556_v63 = vmax.f32 %v5978_v22, %v5979_v37  ;;  %v7118_v23 = vsel %vm6428_vm6, %v14329_v35, %v7117_v26  ;;  %v14564_v50 = vmax.f32 %v5985_v12, %v5986_v44  ;;  %v5961_v14 = vrot.slane %v5960_v31, 4  ;;  %10737 = vmatprep.subr.mxu1 %v8042_v46  ;;  %v16002_v22 = vld [vmem:[#allocation29_spill] sm:$0xff]  ;;  %v8040_v37 = vld [vmem:[%s15733_s7 + $0x20] sm:$0xff] }
 0x4bc   : > { %v3874_v7 = vadd.f32 %v14347_v30, %v3690_v56  ;;  %v3873_v28 = vadd.f32 %v14347_v30, %v3685_v8  ;;  %v5967_v19 = vsel %vm4391_vm3, %v4251_v47, -inf  ;;  %v7119_v35 = vsel %vm6430_vm7, %v14372_v39, %v7118_v23  ;;  %10738 = vmatpush3.msra.mxu1 %v8042_v46 }
 0x4bd   : > { %v3700_v38 = vadd.f32 %v16001_v58, %v14149_v24  ;;  %v6609_v62 = vsel %vm6430_vm7, %v14382_v33, %v14386_v53  ;;  %v5962_v4 = vmax.f32 %v5960_v31, %v5961_v14  ;;  %v5968_v29 = vrot.slane %v5967_v19, 4  ;;  %v16003_v24 = vld [vmem:[#allocation25_spill] sm:$0xff]  ;;  %10739 = vmatprep.subr.mxu1 %v8041_v32 }
 0x4be   : > { %v4001_v20 = vmax.f32 %v3874_v7, 0.0  ;;  %v4000_v54 = vmax.f32 %v3873_v28, 0.0  ;;  %v7120_v11 = vsel %vm6432_vm8, %v14382_v33, %v7119_v35  ;;  %v6610_v39 = vsel %vm6432_vm8, %v14362_v25, %v6609_v62  ;;  %10740 = vmatpush3.msra.mxu1 %v8041_v32  ;;  %v8038_v32 = vld [vmem:[%s15733_s7 + $0x10] sm:$0xff] }
 0x4bf   : > { %v3876_v40 = vadd.f32 %v14347_v30, %v3700_v38  ;;  %v3695_v51 = vadd.f32 %v16003_v24, %v16002_v22  ;;  %v5963_v12 = vrot.slane %v5962_v4, 2  ;;  %v5969_v53 = vmax.f32 %v5967_v19, %v5968_v29  ;;  %10741 = vmatprep.subr.mxu1 %v8040_v37 }
 0x4c0   : > { %v4254_v18 = vcombine.high %v4001_v20, %v4001_v20  ;;  %v6002_v49 = vsel %vm4391_vm3, %v4001_v20, -inf  ;;  %v4253_v16 = vcombine.high %v4000_v54, %v4000_v54  ;;  %v5988_v26 = vsel %vm4391_vm3, %v4000_v54, -inf  ;;  %10742 = vmatpush3.msra.mxu1 %v8040_v37  ;;  %v9722_v54 = vld [vmem:[%s15733_s7 + $0x78] sm:$0xff]  ;;  %v8036_v37 = vld [vmem:[%s15733_s7] sm:$0xff] }
 0x4c1   : > { %v6003_v33 = vrot.slane %v6002_v49, 4  ;;  %v7121_v1 = vsel %vm6434_vm9, %v14362_v25, %v7120_v11  ;;  %v5964_v44 = vmax.f32 %v5962_v4, %v5963_v12  ;;  %v5970_v43 = vrot.slane %v5969_v53, 2  ;;  %10743 = vmatprep.subr.mxu1 %v8039_v0  ;;  %v8037_v11 = vld [vmem:[%s15733_s7 + $0x8] sm:$0xff]  ;;  %10707 = vmatprep.subr.mxu0 %v9722_v54 }
 0x4c2   : > { %v6009_v56 = vsel %vm4391_vm3, %v4254_v18, -inf  ;;  %v5989_v8 = vrot.slane %v5988_v26, 4  ;;  %v5995_v23 = vsel %vm4391_vm3, %v4253_v16, -inf  ;;  %v7122_v46 = vsel %vm6436_vm10, %v5847_v3, %v7121_v1  ;;  %10744 = vmatpush3.msra.mxu1 %v8039_v0  ;;  %10708 = vmatpush3.msra.mxu0 %v9722_v54 }
 0x4c3   : > { %v6004_v47 = vmax.f32 %v6002_v49, %v6003_v33  ;;  %v6010_v31 = vrot.slane %v6009_v56, 4  ;;  %v5965_v14 = vrot.slane %v5964_v44, 1  ;;  %v5971_v25 = vmax.f32 %v5969_v53, %v5970_v43  ;;  %10696 = vmatmul.mubr.msk.f32.gmra.mxu1 %vm6651_vm11, %v7122_v46  ;;  %10745 = vmatprep.subr.mxu1 %v8038_v32  ;;  %v9721_v49 = vld [vmem:[%s15733_s7 + $0x70] sm:$0xff] }
 0x4c4   : > { %v5990_v7 = vmax.f32 %v5988_v26, %v5989_v8  ;;  %v5996_v28 = vrot.slane %v5995_v23, 4  ;;  %v4003_v58 = vmax.f32 %v3876_v40, 0.0  ;;  %v6611_v38 = vsel %vm6434_vm9, %v5847_v3, %v6610_v39  ;;  %10746 = vmatpush3.msra.mxu1 %v8038_v32  ;;  %10709 = vmatprep.subr.mxu0 %v9721_v49 }
 0x4c5   : > { %v6005_v19 = vrot.slane %v6004_v47, 2  ;;  %v14603_v35 = vmax.f32 %v6009_v56, %v6010_v31  ;;  %v14606_v62 = vmax.f32 %v5964_v44, %v5965_v14  ;;  %v5972_v4 = vrot.slane %v5971_v25, 1  ;;  %10747 = vmatprep.subr.mxu1 %v8037_v11  ;;  %10710 = vmatpush3.msra.mxu0 %v9721_v49 }
 0x4c6   : > { %v5991_v29 = vrot.slane %v5990_v7, 2  ;;  %v5997_v20 = vmax.f32 %v5995_v23, %v5996_v28  ;;  %v4256_v24 = vcombine.high %v4003_v58, %v4003_v58  ;;  %v6030_v3 = vsel %vm4391_vm3, %v4003_v58, -inf  ;;  %10748 = vmatpush3.msra.mxu1 %v8037_v11  ;;  %v9719_v23 = vld [vmem:[%s15733_s7 + $0x60] sm:$0xff] }
 0x4c7   : > { %v6006_v22 = vmax.f32 %v6004_v47, %v6005_v19  ;;  %v6012_v40 = vrot.slane %v14603_v35, 2  ;;  %v5973_v39 = vmax.f32 %v5971_v25, %v5972_v4  ;;  %v6031_v18 = vrot.slane %v6030_v3, 4  ;;  %10749 = vmatprep.subr.mxu1 %v8036_v37  ;;  %v16004_v25 = vld [vmem:[#allocation20_spill] sm:$0xff]  ;;  %v16005_v28 = vld [vmem:[#allocation30_spill] sm:$0xff] }
 0x4c8   : > { %v5992_v12 = vmax.f32 %v5990_v7, %v5991_v29  ;;  %v5998_v53 = vrot.slane %v5997_v20, 2  ;;  %v6037_v16 = vsel %vm4391_vm3, %v4256_v24, -inf  ;;  %v6612_v26 = vsel %vm6436_vm10, %v14442_v41, %v6611_v38  ;;  %v9720_v41 = vld [vmem:[%s15733_s7 + $0x68] sm:$0xff]  ;;  %10750 = vmatpush3.msra.mxu1 %v8036_v37  ;;  %v9718_v29 = vld [vmem:[%s15733_s7 + $0x58] sm:$0xff] }
 0x4c9   : > { %v6007_v33 = vrot.slane %v6006_v22, 1  ;;  %v3875_v1 = vadd.f32 %v14347_v30, %v3695_v51  ;;  %v14628_v44 = vsel %vm6424_vm4, %v14556_v63, %v5973_v39  ;;  %v14632_v43 = vsel %vm6424_vm4, %v5973_v39, %v14606_v62  ;;  %10640 = vmatmul.mubr.msk.f32.gmra.mxu0 %vm6651_vm11, %v6612_v26  ;;  %10711 = vmatprep.subr.mxu0 %v9720_v41 }
 0x4ca   : > { %v5993_v56 = vrot.slane %v5992_v12, 1  ;;  %v5999_v8 = vmax.f32 %v5997_v20, %v5998_v53  ;;  %v6032_v0 = vmax.f32 %v6030_v3, %v6031_v18  ;;  %v6038_v47 = vrot.slane %v6037_v16, 4  ;;  %10712 = vmatpush3.msra.mxu0 %v9720_v41 }
 0x4cb   : > { %v14638_v51 = vmax.f32 %v6006_v22, %v6007_v33  ;;  %v4002_v31 = vmax.f32 %v3875_v1, 0.0  ;;  %v3710_v7 = vadd.f32 %v16004_v25, %v14176_v27  ;;  %v3705_v32 = vadd.f32 %v16005_v28, %v14198_v45  ;;  %10713 = vmatprep.subr.mxu0 %v9719_v23 }
 0x4cc   : > { %v14643_v46 = vmax.f32 %v5992_v12, %v5993_v56  ;;  %v6000_v14 = vrot.slane %v5999_v8, 1  ;;  %v6033_v19 = vrot.slane %v6032_v0, 2  ;;  %v6039_v58 = vmax.f32 %v6037_v16, %v6038_v47  ;;  %10714 = vmatpush3.msra.mxu0 %v9719_v23  ;;  %v9717_v12 = vld [vmem:[%s15733_s7 + $0x50] sm:$0xff] }
 0x4cd   : > { %v4255_v38 = vcombine.high %v4002_v31, %v4002_v31  ;;  %v6016_v4 = vsel %vm4391_vm3, %v4002_v31, -inf  ;;  %v3878_v11 = vadd.f32 %v14347_v30, %v3710_v7  ;;  %v3877_v27 = vadd.f32 %v14347_v30, %v3705_v32  ;;  %10715 = vmatprep.subr.mxu0 %v9718_v29 }
 0x4ce   : > { %v14653_v20 = vmax.f32 %v5999_v8, %v6000_v14  ;;  %v6017_v54 = vrot.slane %v6016_v4, 4  ;;  %v6034_v45 = vmax.f32 %v6032_v0, %v6033_v19  ;;  %v6040_v22 = vrot.slane %v6039_v58, 2  ;;  %10716 = vmatpush3.msra.mxu0 %v9718_v29 }
 0x4cf   : > { %v6023_v24 = vsel %vm4391_vm3, %v4255_v38, -inf  ;;  %v16006_v3 = vrot.slane %v14435_v10, 2  ;;  %v4005_v49 = vmax.f32 %v3878_v11, 0.0  ;;  %v4004_v37 = vmax.f32 %v3877_v27, 0.0  ;;  %10717 = vmatprep.subr.mxu0 %v9717_v12 }
 0x4d0   : > { %v6018_v53 = vmax.f32 %v6016_v4, %v6017_v54  ;;  %v6024_v18 = vrot.slane %v6023_v24, 4  ;;  %v6035_v33 = vrot.slane %v6034_v45, 1  ;;  %v6041_v16 = vmax.f32 %v6039_v58, %v6040_v22  ;;  %10718 = vmatpush3.msra.mxu0 %v9717_v12 }
 0x4d1   : > { %v5901_v39 = vmax.f32 %v14435_v10, %v16006_v3  ;;  %v7124_v1 = vsel %vm6426_vm5, %v14416_v42, %v14463_v9  ;;  %v9716_v10 = vld [vmem:[%s15733_s7 + $0x48] sm:$0xff]  ;;  %v4258_v41 = vcombine.high %v4005_v49, %v4005_v49  ;;  %v6058_v0 = vsel %vm4391_vm3, %v4005_v49, -inf  ;;  %v9715_v42 = vld [vmem:[%s15733_s7 + $0x40] sm:$0xff] }
 0x4d2   : > { %v6019_v56 = vrot.slane %v6018_v53, 2  ;;  %v6025_v8 = vmax.f32 %v6023_v24, %v6024_v18  ;;  %v14671_v47 = vmax.f32 %v6034_v45, %v6035_v33  ;;  %v6042_v31 = vrot.slane %v6041_v16, 1  ;;  %10719 = vmatprep.subr.mxu0 %v9716_v10 }
 0x4d3   : > { %v5902_v26 = vrot.slane %v5901_v39, 1  ;;  %v6059_v23 = vrot.slane %v6058_v0, 4  ;;  %v4257_v14 = vcombine.high %v4004_v37, %v4004_v37  ;;  %v6065_v7 = vsel %vm4391_vm3, %v4258_v41, -inf  ;;  %10720 = vmatpush3.msra.mxu0 %v9716_v10 }
 0x4d4   : > { %v14676_v9 = vmax.f32 %v6018_v53, %v6019_v56  ;;  %v6026_v25 = vrot.slane %v6025_v8, 2  ;;  %v6044_v28 = vsel %vm4391_vm3, %v4004_v37, -inf  ;;  %v14680_v32 = vmax.f32 %v6041_v16, %v6042_v31  ;;  %10721 = vmatprep.subr.mxu0 %v9715_v42  ;;  %v16007_v53 = vld [vmem:[#allocation42_spill] sm:$0xff] }
 0x4d5   : > { %v6060_v19 = vmax.f32 %v6058_v0, %v6059_v23  ;;  %v6066_v58 = vrot.slane %v6065_v7, 4  ;;  %v6045_v38 = vrot.slane %v6044_v28, 4  ;;  %v6051_v29 = vsel %vm4391_vm3, %v4257_v14, -inf  ;;  %10722 = vmatpush3.msra.mxu0 %v9715_v42 }
 0x4d6   : > { %v6027_v4 = vmax.f32 %v6025_v8, %v6026_v25  ;;  %v5903_v54 = vmax.f32 %v5901_v39, %v5902_v26  ;;  %v7125_v11 = vsel %vm6428_vm6, %v14423_v57, %v7124_v1  ;;  %v6052_v24 = vrot.slane %v6051_v29, 4 }
 0x4d7   : > { %v6061_v27 = vrot.slane %v6060_v19, 2  ;;  %v6067_v45 = vmax.f32 %v6065_v7, %v6066_v58  ;;  %v6046_v22 = vmax.f32 %v6044_v28, %v6045_v38  ;;  %v7126_v12 = vsel %vm6430_vm7, %v14448_v52, %v7125_v11 }
 0x4d8   : > { %v6028_v3 = vrot.slane %v6027_v4, 1  ;;  %v3720_v18 = vadd.f32 %v16007_v53, %v14230_v36  ;;  %v5909_v49 = vrot.slane %v14497_v5, 1  ;;  %v6053_v16 = vmax.f32 %v6051_v29, %v6052_v24  ;;  %v16008_v24 = vld [vmem:[#allocation21_spill] sm:$0xff] }
 0x4d9   : > { %v6062_v37 = vmax.f32 %v6060_v19, %v6061_v27  ;;  %v6068_v39 = vrot.slane %v6067_v45, 2  ;;  %v6047_v33 = vrot.slane %v6046_v22, 2  ;;  %v7127_v1 = vsel %vm6432_vm8, %v14465_v34, %v7126_v12 }
 0x4da   : > { %v14690_v26 = vmax.f32 %v6027_v4, %v6028_v3  ;;  %v3880_v10 = vadd.f32 %v14347_v30, %v3720_v18  ;;  %v5910_v56 = vmax.f32 %v14497_v5, %v5909_v49  ;;  %v6054_v36 = vrot.slane %v6053_v16, 2  ;;  %v16009_v3 = vld [vmem:[#allocation43_spill] sm:$0xff] }
 0x4db   : > { %v6063_v8 = vrot.slane %v6062_v37, 1  ;;  %v14696_v41 = vmax.f32 %v6067_v45, %v6068_v39  ;;  %v6048_v0 = vmax.f32 %v6046_v22, %v6047_v33  ;;  %v7128_v23 = vsel %vm6434_vm9, %v14444_v48, %v7127_v1  ;;  %v16011_v33 = vld [vmem:[#allocation16_spill] sm:$0xff] }
 0x4dc   : > { %v6634_v31 = vsel %vm6424_vm4, %v14671_v47, %v14690_v26  ;;  %v4007_v14 = vmax.f32 %v3880_v10, 0.0  ;;  %v6614_v42 = vsel %vm6426_vm5, %v14423_v57, %v14459_v55  ;;  %v6055_v28 = vmax.f32 %v6053_v16, %v6054_v36  ;;  %v16013_v36 = vld [vmem:[#allocation31_spill] sm:$0xff] }
 0x4dd   : > { %v14706_v25 = vmax.f32 %v6062_v37, %v6063_v8  ;;  %v6070_v5 = vrot.slane %v14696_v41, 1  ;;  %v6049_v7 = vrot.slane %v6048_v0, 1  ;;  %v6635_v19 = vsel %vm6426_vm5, %v14680_v32, %v6634_v31 }
 0x4de   : > { %v7129_v58 = vsel %vm6436_vm10, %v5903_v54, %v7128_v23  ;;  %v4260_v38 = vcombine.high %v4007_v14, %v4007_v14  ;;  %v6086_v4 = vsel %vm4391_vm3, %v4007_v14, -inf  ;;  %v6056_v11 = vrot.slane %v6055_v28, 1 }
 0x4df   : > { %v14713_v29 = vmax.f32 %v6048_v0, %v6049_v7  ;;  %10698 = vmatprep.mubr.msk.f32.mxu1 %vm6651_vm11, %v7129_v58  ;;  %v6087_v57 = vrot.slane %v6086_v4, 4  ;;  %v6615_v55 = vsel %vm6428_vm6, %v14448_v52, %v6614_v42  ;;  %v7130_v22 = vsel %vm6424_vm4, %v14513_v59, %v5910_v56  ;;  %v16010_v59 = vld [vmem:[#allocation24_spill] sm:$0xff]  ;;  %v16012_v0 = vld [vmem:[#allocation45_spill] sm:$0xff] }
 0x4e0   : > { %v6093_v27 = vsel %vm4391_vm3, %v4260_v38, -inf  ;;  %v6616_v45 = vsel %vm6430_vm7, %v14465_v34, %v6615_v55  ;;  %v3715_v12 = vadd.f32 %v16009_v3, %v16008_v24  ;;  %v14725_v53 = vmax.f32 %v6055_v28, %v6056_v11 }
 0x4e1   : > { %v14729_v18 = vsel %vm6428_vm6, %v14713_v29, %v6635_v19  ;;  %v6088_v49 = vmax.f32 %v6086_v4, %v6087_v57  ;;  %v6094_v37 = vrot.slane %v6093_v27, 4  ;;  %v6617_v52 = vsel %vm6432_vm8, %v14444_v48, %v6616_v45 }
 0x4e2   : > { %v7131_v34 = vsel %vm6426_vm5, %v14480_v6, %v7130_v22  ;;  %v3879_v39 = vadd.f32 %v14347_v30, %v3715_v12  ;;  %v3730_v16 = vadd.f32 %v16011_v33, %v16010_v59  ;;  %v6618_v8 = vsel %vm6434_vm9, %v5903_v54, %v6617_v52 }
 0x4e3   : > { %v6089_v1 = vrot.slane %v6088_v49, 2  ;;  %v6095_v10 = vmax.f32 %v6093_v27, %v6094_v37  ;;  %v3725_v31 = vadd.f32 %v16013_v36, %v16012_v0  ;;  %v6619_v23 = vsel %vm6436_vm10, %v5910_v56, %v6618_v8 }
 0x4e4   : > { %v4006_v14 = vmax.f32 %v3879_v39, 0.0  ;;  %v3882_v48 = vadd.f32 %v14347_v30, %v3730_v16  ;;  %v5959_v6 = vmax.f32 %v14502_v2, %v5958_v13  ;;  %10642 = vmatprep.mubr.msk.f32.mxu0 %vm6651_vm11, %v6619_v23  ;;  %v7132_v54 = vsel %vm6428_vm6, %v14482_v60, %v7131_v34 }
 0x4e5   : > { %v6090_v42 = vmax.f32 %v6088_v49, %v6089_v1  ;;  %v6096_v7 = vrot.slane %v6095_v10, 2  ;;  %v3881_v28 = vadd.f32 %v14347_v30, %v3725_v31  ;;  %v7133_v38 = vsel %vm6430_vm7, %v14510_v15, %v7132_v54 }
 0x4e6   : > { %v4259_v19 = vcombine.high %v4006_v14, %v4006_v14  ;;  %v6072_v58 = vsel %vm4391_vm3, %v4006_v14, -inf  ;;  %v4009_v56 = vmax.f32 %v3882_v48, 0.0  ;;  %v7134_v45 = vsel %vm6432_vm8, %v14529_v17, %v7133_v38 }
 0x4e7   : > { %v6091_v4 = vrot.slane %v6090_v42, 1  ;;  %v6097_v11 = vmax.f32 %v6095_v10, %v6096_v7  ;;  %v6073_v57 = vrot.slane %v6072_v58, 4  ;;  %v4008_v2 = vmax.f32 %v3881_v28, 0.0  ;;  %v16015_v7 = vld [vmem:[#allocation14_spill] sm:$0xff] }
 0x4e8   : > { %v6079_v13 = vsel %vm4391_vm3, %v4259_v19, -inf  ;;  %v4262_v55 = vcombine.high %v4009_v56, %v4009_v56  ;;  %v6114_v27 = vsel %vm4391_vm3, %v4009_v56, -inf  ;;  %v7135_v10 = vsel %vm6434_vm9, %v14507_v21, %v7134_v45  ;;  %v2784_v45 = vpop.f32.mrf.mxu0 }
 0x4e9   : > { %v14757_v60 = vmax.f32 %v6090_v42, %v6091_v4  ;;  %v6098_v22 = vrot.slane %v6097_v11, 1  ;;  %v6074_v24 = vmax.f32 %v6072_v58, %v6073_v57  ;;  %v6080_v3 = vrot.slane %v6079_v13, 4  ;;  %v16014_v42 = vld [vmem:[#allocation46_spill] sm:$0xff] }
 0x4ea   : > { %v6115_v12 = vrot.slane %v6114_v27, 4  ;;  %v6121_v15 = vsel %vm4391_vm3, %v4262_v55, -inf  ;;  %v4261_v49 = vcombine.high %v4008_v2, %v4008_v2  ;;  %v6100_v37 = vsel %vm4391_vm3, %v4008_v2, -inf }
 0x4eb   : > { %v14761_v52 = vmax.f32 %v6097_v11, %v6098_v22  ;;  %v6075_v34 = vrot.slane %v6074_v24, 2  ;;  %v6081_v39 = vmax.f32 %v6079_v13, %v6080_v3  ;;  %v6122_v59 = vrot.slane %v6121_v15, 4 }
 0x4ec   : > { %v6116_v33 = vmax.f32 %v6114_v27, %v6115_v12  ;;  %v6101_v16 = vrot.slane %v6100_v37, 4  ;;  %v6107_v1 = vsel %vm4391_vm3, %v4261_v49, -inf  ;;  %v7136_v48 = vsel %vm6436_vm10, %v5959_v6, %v7135_v10  ;;  %v10605_v10 = vpop.f32.mrf.mxu0 }
 0x4ed   : > { %v6076_v8 = vmax.f32 %v6074_v24, %v6075_v34  ;;  %v6082_v0 = vrot.slane %v6081_v39, 2  ;;  %v14766_v36 = vmax.f32 %v6121_v15, %v6122_v59  ;;  %v6108_v31 = vrot.slane %v6107_v1, 4  ;;  %10699 = vmatmul.mubr.msk.f32.gmra.mxu1 %vm6651_vm11, %v7136_v48  ;;  %v3744_v34 = vpop.f32.mrf.mxu1 }
 0x4ee   : > { %v6117_v23 = vrot.slane %v6116_v33, 2  ;;  %v6102_v14 = vmax.f32 %v6100_v37, %v6101_v16  ;;  %v3740_v28 = vadd.f32 %v16015_v7, %v16014_v42  ;;  %v6623_v57 = vsel %vm6430_vm7, %v14529_v17, %v14537_v61  ;;  %v16016_v37 = vld [vmem:[#allocation26_spill] sm:$0xff]  ;;  %v16017_v17 = vld [vmem:[#allocation44_spill] sm:$0xff] }
 0x4ef   : > { %v6077_v54 = vrot.slane %v6076_v8, 1  ;;  %v6083_v19 = vmax.f32 %v6081_v39, %v6082_v0  ;;  %v6124_v58 = vrot.slane %v14766_v36, 2  ;;  %v6109_v56 = vmax.f32 %v6107_v1, %v6108_v31  ;;  %v10849_v31 = vld [vmem:[%s15730_s4] ss:$0 sm:$0xff] }
 0x4f0   : > { %v6118_v38 = vmax.f32 %v6116_v33, %v6117_v23  ;;  %v6103_v4 = vrot.slane %v6102_v14, 2  ;;  %v3884_v11 = vadd.f32 %v14347_v30, %v3740_v28  ;;  %v6624_v27 = vsel %vm6432_vm8, %v14507_v21, %v6623_v57  ;;  %v10661_v28 = vpop.f32.mrf.mxu1 }
 0x4f1   : > { %v14777_v2 = vmax.f32 %v6076_v8, %v6077_v54  ;;  %v6084_v13 = vrot.slane %v6083_v19, 1  ;;  %v6110_v55 = vrot.slane %v6109_v56, 2  ;;  %v6625_v12 = vsel %vm6434_vm9, %v5959_v6, %v6624_v27  ;;  %v14817_v27 = vld [vmem:[%s15732_s6] ss:$0 sm:$0xff] }
 0x4f2   : > { %v6119_v22 = vrot.slane %v6118_v38, 1  ;;  %v6104_v24 = vmax.f32 %v6102_v14, %v6103_v4  ;;  %v4011_v3 = vmax.f32 %v3884_v11, 0.0  ;;  %v6626_v30 = vsel %vm6436_vm10, %v14606_v62, %v6625_v12 }
 0x4f3   : > { %v6085_v15 = vmax.f32 %v6083_v19, %v6084_v13  ;;  %v6111_v49 = vmax.f32 %v6109_v56, %v6110_v55  ;;  %v3735_v61 = vadd.f32 %v16017_v17, %v16016_v37  ;;  %10643 = vmatmul.mubr.msk.f32.gmra.mxu0 %vm6651_vm11, %v6626_v30  ;;  %v3745_v14 = vadd.f32 %v3744_v34, %v2784_v45 }
 0x4f4   : > { %v14786_v39 = vmax.f32 %v6118_v38, %v6119_v22  ;;  %v6105_v59 = vrot.slane %v6104_v24, 1  ;;  %v4264_v33 = vcombine.high %v4011_v3, %v4011_v3  ;;  %v6142_v21 = vsel %vm4391_vm3, %v4011_v3, -inf }
 0x4f5   : > { %v14792_v6 = vsel %vm6424_vm4, %v14757_v60, %v6085_v15  ;;  %v14796_v16 = vsel %vm6424_vm4, %v6085_v15, %v14777_v2  ;;  %v6112_v62 = vrot.slane %v6111_v49, 1  ;;  %v6143_v1 = vrot.slane %v6142_v21, 4 }
 0x4f6   : > { %v14798_v8 = vmax.f32 %v6104_v24, %v6105_v59  ;;  %v6149_v0 = vsel %vm4391_vm3, %v4264_v33, -inf  ;;  %v3883_v23 = vadd.f32 %v10849_v31, %v3735_v61  ;;  %v6013_v54 = vmax.f32 %v14603_v35, %v6012_v40  ;;  %v6782_v59 = vpop.f32.mrf.mxu0 }
 0x4f7   : > { %v14804_v48 = vmax.f32 %v6111_v49, %v6112_v62  ;;  %v6144_v42 = vmax.f32 %v6142_v21, %v6143_v1  ;;  %v6150_v7 = vrot.slane %v6149_v0, 4  ;;  %v3885_v56 = vadd.f32 %v10849_v31, %v3745_v14 }
 0x4f8   : > { %v4010_v19 = vmax.f32 %v3883_v23, 0.0  ;;  %v7138_v38 = vsel %vm6426_vm5, %v14556_v63, %v14632_v43  ;;  %v7297_v4 = vadd.f32 %v10661_v28, %v10605_v10  ;;  %v6014_v13 = vrot.slane %v6013_v54, 1  ;;  %v7291_v23 = vpop.f32.mrf.mxu1 }
 0x4f9   : > { %v6145_v11 = vrot.slane %v6144_v42, 2  ;;  %v6151_v57 = vmax.f32 %v6149_v0, %v6150_v7  ;;  %v7139_v55 = vsel %vm6428_vm6, %v14564_v50, %v7138_v38  ;;  %v4012_v40 = vmax.f32 %v3885_v56, 0.0 }
 0x4fa   : > { %v4263_v45 = vcombine.high %v4010_v19, %v4010_v19  ;;  %v6128_v35 = vsel %vm4391_vm3, %v4010_v19, -inf  ;;  %v7140_v22 = vsel %vm6430_vm7, %v14643_v46, %v7139_v55  ;;  %v6015_v3 = vmax.f32 %v6013_v54, %v6014_v13 }
 0x4fb   : > { %v6146_v63 = vmax.f32 %v6144_v42, %v6145_v11  ;;  %v6152_v43 = vrot.slane %v6151_v57, 2  ;;  %v6129_v24 = vrot.slane %v6128_v35, 4  ;;  %v6156_v15 = vsel %vm4391_vm3, %v4012_v40, -inf }
 0x4fc   : > { %v6135_v12 = vsel %vm4391_vm3, %v4263_v45, -inf  ;;  %v7141_v49 = vsel %vm6432_vm8, %v14653_v20, %v7140_v22  ;;  %v7457_v30 = vadd.f32 %v14817_v27, %v7297_v4  ;;  %v6157_v33 = vrot.slane %v6156_v15, 4  ;;  %v10608_v4 = vpop.f32.mrf.mxu0 }
 0x4fd   : > { %v6147_v37 = vrot.slane %v6146_v63, 1  ;;  %v6153_v17 = vmax.f32 %v6151_v57, %v6152_v43  ;;  %v6130_v61 = vmax.f32 %v6128_v35, %v6129_v24  ;;  %v6136_v34 = vrot.slane %v6135_v12, 4 }
 0x4fe   : > { %v7142_v21 = vsel %vm6434_vm9, %v14638_v51, %v7141_v49  ;;  %v7488_v62 = vmax.f32 %v7457_v30, 0.0  ;;  %v6158_v14 = vmax.f32 %v6156_v15, %v6157_v33  ;;  %v6021_v13 = vrot.slane %v14676_v9, 1 }
 0x4ff   : > { %v14829_v1 = vmax.f32 %v6146_v63, %v6147_v37  ;;  %v6154_v10 = vrot.slane %v6153_v17, 1  ;;  %v6131_v0 = vrot.slane %v6130_v61, 2  ;;  %v6137_v31 = vmax.f32 %v6135_v12, %v6136_v34  ;;  %v10664_v63 = vpop.f32.mrf.mxu1 }
 0x500   : > { %v7143_v42 = vsel %vm6436_vm10, %v6015_v3, %v7142_v21  ;;  %v7549_v7 = vcombine.high %v7488_v62, %v7488_v62  ;;  %v7623_v28 = vsel %vm7608_vm12, %v7488_v62, -inf  ;;  %v6159_v11 = vrot.slane %v6158_v14, 2 }
 0x501   : > { %v14833_v54 = vmax.f32 %v6153_v17, %v6154_v10  ;;  %v14835_v19 = vmax.f32 %v6130_v61, %v6131_v0  ;;  %v6138_v56 = vrot.slane %v6137_v31, 2  ;;  %10701 = vmatprep.mubr.msk.f32.mxu1 %vm6651_vm11, %v7143_v42  ;;  %v7624_v38 = vrot.slane %v7623_v28, 4  ;;  %v7301_v21 = vpop.f32.mrf.mxu1 }
 0x502   : > { %v7630_v57 = vsel %vm7608_vm12, %v7549_v7, -inf  ;;  %v6628_v55 = vsel %vm6426_vm5, %v14564_v50, %v14628_v44  ;;  %v6160_v43 = vmax.f32 %v6158_v14, %v6159_v11  ;;  %v6022_v24 = vmax.f32 %v14676_v9, %v6021_v13  ;;  %v6792_v44 = vpop.f32.mrf.mxu0 }
 0x503   : > { %v6139_v45 = vmax.f32 %v6137_v31, %v6138_v56  ;;  %v7625_v35 = vmax.f32 %v7623_v28, %v7624_v38  ;;  %v7631_v40 = vrot.slane %v7630_v57, 4  ;;  %v6629_v22 = vsel %vm6428_vm6, %v14643_v46, %v6628_v55 }
 0x504   : > { %v6630_v12 = vsel %vm6430_vm7, %v14653_v20, %v6629_v22  ;;  %v7292_v15 = vadd.f32 %v7291_v23, %v6782_v59  ;;  %v6161_v17 = vrot.slane %v6160_v43, 1  ;;  %v7144_v46 = vsel %vm6424_vm4, %v14690_v26, %v6022_v24  ;;  %v10667_v23 = vpop.f32.mrf.mxu1  ;;  %v10611_v42 = vpop.f32.mrf.mxu0 }
 0x505   : > { %v6140_v49 = vrot.slane %v6139_v45, 1  ;;  %v7626_v30 = vrot.slane %v7625_v35, 2  ;;  %v7632_v37 = vmax.f32 %v7630_v57, %v7631_v40  ;;  %v6631_v50 = vsel %vm6432_vm8, %v14638_v51, %v6630_v12 }
 0x506   : > { %v6632_v61 = vsel %vm6434_vm9, %v6015_v3, %v6631_v50  ;;  %v7456_v34 = vadd.f32 %v14817_v27, %v7292_v15  ;;  %v14857_v62 = vmax.f32 %v6160_v43, %v6161_v17  ;;  %v7145_v51 = vsel %vm6426_vm5, %v14671_v47, %v7144_v46 }
 0x507   : > { %v14854_v9 = vmax.f32 %v6139_v45, %v6140_v49  ;;  %v7627_v33 = vmax.f32 %v7625_v35, %v7626_v30  ;;  %v7633_v20 = vrot.slane %v7632_v37, 2  ;;  %v6633_v59 = vsel %vm6436_vm10, %v6022_v24, %v6632_v61 }
 0x508   : > { %10645 = vmatprep.mubr.msk.f32.mxu0 %vm6651_vm11, %v6633_v59  ;;  %v7487_v3 = vmax.f32 %v7456_v34, 0.0  ;;  %v7307_v10 = vadd.f32 %v10664_v63, %v10608_v4  ;;  %v7302_v31 = vadd.f32 %v7301_v21, %v6792_v44  ;;  %v14865_v14 = vmax.f32 %v14696_v41, %v6070_v5 }
 0x509   : > { %v7628_v0 = vrot.slane %v7627_v33, 1  ;;  %v7634_v26 = vmax.f32 %v7632_v37, %v7633_v20  ;;  %v7146_v47 = vsel %vm6428_vm6, %v14680_v32, %v7145_v51  ;;  %v7317_v5 = vadd.f32 %v10667_v23, %v10611_v42 }
 0x50a   : > { %v7548_v7 = vcombine.high %v7487_v3, %v7487_v3  ;;  %v7609_v28 = vsel %vm7608_vm12, %v7487_v3, -inf  ;;  %v7459_v56 = vadd.f32 %v14817_v27, %v7307_v10  ;;  %v7458_v57 = vadd.f32 %v14817_v27, %v7302_v31 }
 0x50b   : > { %v14871_v38 = vmax.f32 %v7627_v33, %v7628_v0  ;;  %v7635_v4 = vrot.slane %v7634_v26, 1  ;;  %v7610_v11 = vrot.slane %v7609_v28, 4  ;;  %v7147_v41 = vsel %vm6430_vm7, %v14713_v29, %v7146_v47 }
 0x50c   : > { %v7616_v13 = vsel %vm7608_vm12, %v7548_v7, -inf  ;;  %v7490_v55 = vmax.f32 %v7459_v56, 0.0  ;;  %v7489_v22 = vmax.f32 %v7458_v57, 0.0  ;;  %v7148_v43 = vsel %vm6432_vm8, %v14725_v53, %v7147_v41  ;;  %v7311_v7 = vpop.f32.mrf.mxu1 }
 0x50d   : > { %v14877_v45 = vmax.f32 %v7634_v26, %v7635_v4  ;;  %v7611_v35 = vmax.f32 %v7609_v28, %v7610_v11  ;;  %v7617_v40 = vrot.slane %v7616_v13, 4  ;;  %v7461_v24 = vadd.f32 %v14817_v27, %v7317_v5  ;;  %v6802_v28 = vpop.f32.mrf.mxu0 }
 0x50e   : > { %v7551_v63 = vcombine.high %v7490_v55, %v7490_v55  ;;  %v7651_v32 = vsel %vm7608_vm12, %v7490_v55, -inf  ;;  %v7550_v30 = vcombine.high %v7489_v22, %v7489_v22  ;;  %v7637_v37 = vsel %vm7608_vm12, %v7489_v22, -inf }
 0x50f   : > { %v7612_v12 = vrot.slane %v7611_v35, 2  ;;  %v7618_v15 = vmax.f32 %v7616_v13, %v7617_v40  ;;  %v7652_v49 = vrot.slane %v7651_v32, 4  ;;  %v7149_v50 = vsel %vm6434_vm9, %v14706_v25, %v7148_v43 }
 0x510   : > { %v7658_v29 = vsel %vm7608_vm12, %v7551_v63, -inf  ;;  %v7492_v44 = vmax.f32 %v7461_v24, 0.0  ;;  %v7638_v33 = vrot.slane %v7637_v37, 4  ;;  %v7644_v20 = vsel %vm7608_vm12, %v7550_v30, -inf }
 0x511   : > { %v7613_v17 = vmax.f32 %v7611_v35, %v7612_v12  ;;  %v7619_v61 = vrot.slane %v7618_v15, 2  ;;  %v7653_v46 = vmax.f32 %v7651_v32, %v7652_v49  ;;  %v7659_v34 = vrot.slane %v7658_v29, 4 }
 0x512   : > { %v7150_v59 = vsel %vm6436_vm10, %v14865_v14, %v7149_v50  ;;  %v7553_v21 = vcombine.high %v7492_v44, %v7492_v44  ;;  %v7639_v26 = vmax.f32 %v7637_v37, %v7638_v33  ;;  %v7645_v31 = vrot.slane %v7644_v20, 4 }
 0x513   : > { %v7614_v51 = vrot.slane %v7613_v17, 1  ;;  %v7620_v3 = vmax.f32 %v7618_v15, %v7619_v61  ;;  %v7654_v10 = vrot.slane %v7653_v46, 2  ;;  %v14890_v0 = vmax.f32 %v7658_v29, %v7659_v34  ;;  %10702 = vmatmul.mubr.msk.f32.gmra.mxu1 %vm6651_vm11, %v7150_v59 }
 0x514   : > { %v7679_v23 = vsel %vm7608_vm12, %v7492_v44, -inf  ;;  %v7686_v42 = vsel %vm7608_vm12, %v7553_v21, -inf  ;;  %v7640_v57 = vrot.slane %v7639_v26, 2  ;;  %v7646_v13 = vmax.f32 %v7644_v20, %v7645_v31 }
 0x515   : > { %v7615_v56 = vmax.f32 %v7613_v17, %v7614_v51  ;;  %v7621_v47 = vrot.slane %v7620_v3, 1  ;;  %v7655_v4 = vmax.f32 %v7653_v46, %v7654_v10  ;;  %v7661_v11 = vrot.slane %v14890_v0, 2 }
 0x516   : > { %v7680_v55 = vrot.slane %v7679_v23, 4  ;;  %v7687_v41 = vrot.slane %v7686_v42, 4  ;;  %v6637_v40 = vsel %vm6430_vm7, %v14725_v53, %v14729_v18  ;;  %v7312_v22 = vadd.f32 %v7311_v7, %v6802_v28 }
 0x517   : > { %v7622_v5 = vmax.f32 %v7620_v3, %v7621_v47  ;;  %v7656_v35 = vrot.slane %v7655_v4, 1  ;;  %v7641_v63 = vmax.f32 %v7639_v26, %v7640_v57  ;;  %v7647_v32 = vrot.slane %v7646_v13, 2  ;;  %v10614_v3 = vpop.f32.mrf.mxu0 }
 0x518   : > { %v7681_v43 = vmax.f32 %v7679_v23, %v7680_v55  ;;  %v7688_v24 = vmax.f32 %v7686_v42, %v7687_v41  ;;  %v6638_v30 = vsel %vm6432_vm8, %v14706_v25, %v6637_v40  ;;  %v7460_v44 = vadd.f32 %v14817_v27, %v7312_v22 }
 0x519   : > { %v14901_v12 = vsel %vm6424_vm4, %v14871_v38, %v7622_v5  ;;  %v14904_v15 = vsel %vm6424_vm4, %v7622_v5, %v7615_v56  ;;  %v14906_v49 = vmax.f32 %v7655_v4, %v7656_v35  ;;  %v7642_v29 = vrot.slane %v7641_v63, 1  ;;  %v6812_v40 = vpop.f32.mrf.mxu0 }
 0x51a   : > { %v7648_v37 = vmax.f32 %v7646_v13, %v7647_v32  ;;  %v7682_v53 = vrot.slane %v7681_v43, 2  ;;  %v7689_v18 = vrot.slane %v7688_v24, 2  ;;  %v6639_v50 = vsel %vm6434_vm9, %v14865_v14, %v6638_v30 }
 0x51b   : > { %v6125_v17 = vmax.f32 %v14766_v36, %v6124_v58  ;;  %v7152_v61 = vsel %vm6426_vm5, %v14757_v60, %v14796_v16  ;;  %v14919_v46 = vmax.f32 %v7641_v63, %v7642_v29  ;;  %v6640_v20 = vsel %vm6436_vm10, %v14777_v2, %v6639_v50  ;;  %v10670_v16 = vpop.f32.mrf.mxu1 }
 0x51c   : > { %v7649_v25 = vrot.slane %v7648_v37, 1  ;;  %v7683_v34 = vmax.f32 %v7681_v43, %v7682_v53  ;;  %v7690_v33 = vmax.f32 %v7688_v24, %v7689_v18  ;;  %v7491_v59 = vmax.f32 %v7460_v44, 0.0  ;;  %10646 = vmatmul.mubr.msk.f32.gmra.mxu0 %vm6651_vm11, %v6640_v20 }
 0x51d   : > { %v6126_v14 = vrot.slane %v6125_v17, 1  ;;  %v7153_v21 = vsel %vm6428_vm6, %v14761_v52, %v7152_v61  ;;  %v6133_v4 = vrot.slane %v14835_v19, 1  ;;  %v6642_v57 = vsel %vm6426_vm5, %v14761_v52, %v14792_v6  ;;  %v7321_v35 = vpop.f32.mrf.mxu1 }
 0x51e   : > { %v14925_v51 = vmax.f32 %v7648_v37, %v7649_v25  ;;  %v7684_v36 = vrot.slane %v7683_v34, 1  ;;  %v7691_v58 = vrot.slane %v7690_v33, 1  ;;  %v7154_v60 = vsel %vm6430_vm7, %v14798_v8, %v7153_v21 }
 0x51f   : > { %v7552_v10 = vcombine.high %v7491_v59, %v7491_v59  ;;  %v7665_v26 = vsel %vm7608_vm12, %v7491_v59, -inf  ;;  %v6127_v2 = vmax.f32 %v6125_v17, %v6126_v14  ;;  %v7155_v31 = vsel %vm6432_vm8, %v14804_v48, %v7154_v60  ;;  %v10673_v20 = vpop.f32.mrf.mxu1  ;;  %v10617_v59 = vpop.f32.mrf.mxu0 }
 0x520   : > { %v14933_v23 = vmax.f32 %v7683_v34, %v7684_v36  ;;  %v14935_v42 = vmax.f32 %v7690_v33, %v7691_v58  ;;  %v7666_v7 = vrot.slane %v7665_v26, 4  ;;  %v7156_v28 = vsel %vm6434_vm9, %v14786_v39, %v7155_v31 }
 0x521   : > { %v7672_v56 = vsel %vm7608_vm12, %v7552_v10, -inf  ;;  %v7157_v47 = vsel %vm6436_vm10, %v6127_v2, %v7156_v28  ;;  %v6643_v41 = vsel %vm6428_vm6, %v14798_v8, %v6642_v57  ;;  %v6648_v5 = vsel %vm6424_vm4, %v14829_v1, %v14854_v9  ;;  %v7331_v28 = vpop.f32.mrf.mxu1 }
 0x522   : > { %v7667_v13 = vmax.f32 %v7665_v26, %v7666_v7  ;;  %v7673_v55 = vrot.slane %v7672_v56, 4  ;;  %10704 = vmatprep.mubr.msk.f32.mxu1 %vm6651_vm11, %v7157_v47  ;;  %v6134_v22 = vmax.f32 %v14835_v19, %v6133_v4  ;;  %v6644_v63 = vsel %vm6430_vm7, %v14804_v48, %v6643_v41 }
 0x523   : > { %v6649_v52 = vsel %vm6426_vm5, %v14833_v54, %v6648_v5  ;;  %v7327_v6 = vadd.f32 %v10670_v16, %v10614_v3  ;;  %v6645_v8 = vsel %vm6432_vm8, %v14786_v39, %v6644_v63  ;;  %v7322_v48 = vadd.f32 %v7321_v35, %v6812_v40 }
 0x524   : > { %v7668_v32 = vrot.slane %v7667_v13, 2  ;;  %v7674_v43 = vmax.f32 %v7672_v56, %v7673_v55  ;;  %v6650_v24 = vsel %vm6428_vm6, %v14857_v62, %v6649_v52  ;;  %v6646_v30 = vsel %vm6434_vm9, %v6127_v2, %v6645_v8  ;;  %v6822_v56 = vpop.f32.mrf.mxu0 }
 0x525   : > { %v7158_v19 = vsel %vm6424_vm4, %v14854_v9, %v6134_v22  ;;  %v7463_v29 = vadd.f32 %v14817_v27, %v7327_v6  ;;  %v6647_v18 = vsel %vm6436_vm10, %v6134_v22, %v6646_v30  ;;  %v7462_v44 = vadd.f32 %v14817_v27, %v7322_v48 }
 0x526   : > { %v7669_v37 = vmax.f32 %v7667_v13, %v7668_v32  ;;  %v7675_v53 = vrot.slane %v7674_v43, 2  ;;  %v7159_v50 = vsel %vm6426_vm5, %v14829_v1, %v7158_v19  ;;  %10648 = vmatprep.mubr.msk.f32.mxu0 %vm6651_vm11, %v6647_v18  ;;  %v7662_v9 = vmax.f32 %v14890_v0, %v7661_v11 }
 0x527   : > { %v7160_v39 = vsel %vm6428_vm6, %v14833_v54, %v7159_v50  ;;  %v7494_v62 = vmax.f32 %v7463_v29, 0.0  ;;  %10649 = vmatmul.mubr.msk.f32.gmra.mxu0 %vm6651_vm11, %v6650_v24  ;;  %v8288_v1 = vsel %vm6426_vm5, %v14871_v38, %v14904_v15  ;;  %v7493_v34 = vmax.f32 %v7462_v44, 0.0 }
 0x528   : > { %v7676_v17 = vmax.f32 %v7674_v43, %v7675_v53  ;;  %10705 = vmatmul.mubr.msk.f32.gmra.mxu1 %vm6651_vm11, %v7160_v39  ;;  %v7670_v61 = vrot.slane %v7669_v37, 1  ;;  %v7663_v33 = vrot.slane %v7662_v9, 1  ;;  %v8289_v11 = vsel %vm6428_vm6, %v14877_v45, %v8288_v1 }
 0x529   : > { %v7555_v25 = vcombine.high %v7494_v62, %v7494_v62  ;;  %v7707_v54 = vsel %vm7608_vm12, %v7494_v62, -inf  ;;  %v7554_v58 = vcombine.high %v7493_v34, %v7493_v34  ;;  %v7693_v60 = vsel %vm7608_vm12, %v7493_v34, -inf }
 0x52a   : > { %v7677_v14 = vrot.slane %v7676_v17, 1  ;;  %v7708_v0 = vrot.slane %v7707_v54, 4  ;;  %v7671_v21 = vmax.f32 %v7669_v37, %v7670_v61  ;;  %v7664_v38 = vmax.f32 %v7662_v9, %v7663_v33 }
 0x52b   : > { %v7714_v36 = vsel %vm7608_vm12, %v7555_v25, -inf  ;;  %v7694_v10 = vrot.slane %v7693_v60, 4  ;;  %v7700_v26 = vsel %vm7608_vm12, %v7554_v58, -inf  ;;  %v8290_v2 = vsel %vm6430_vm7, %v14919_v46, %v8289_v11 }
 0x52c   : > { %v7678_v15 = vmax.f32 %v7676_v17, %v7677_v14  ;;  %v7709_v16 = vmax.f32 %v7707_v54, %v7708_v0  ;;  %v7715_v3 = vrot.slane %v7714_v36, 4  ;;  %v8114_v31 = vsel %vm6426_vm5, %v14877_v45, %v14901_v12  ;;  %v10676_v45 = vpop.f32.mrf.mxu1  ;;  %v10620_v12 = vpop.f32.mrf.mxu0 }
 0x52d   : > { %v7337_v7 = vadd.f32 %v10673_v20, %v10617_v59  ;;  %v7695_v13 = vmax.f32 %v7693_v60, %v7694_v10  ;;  %v7701_v55 = vrot.slane %v7700_v26, 4  ;;  %v8291_v5 = vsel %vm6432_vm8, %v14925_v51, %v8290_v2 }
 0x52e   : > { %v8120_v47 = vsel %vm6424_vm4, %v14933_v23, %v7678_v15  ;;  %v7710_v4 = vrot.slane %v7709_v16, 2  ;;  %v7716_v57 = vmax.f32 %v7714_v36, %v7715_v3  ;;  %v8115_v35 = vsel %vm6428_vm6, %v14919_v46, %v8114_v31  ;;  %v7341_v18 = vpop.f32.mrf.mxu1 }
 0x52f   : > { %v8121_v41 = vsel %vm6426_vm5, %v14935_v42, %v8120_v47  ;;  %v7696_v63 = vrot.slane %v7695_v13, 2  ;;  %v8292_v52 = vsel %vm6434_vm9, %v14906_v49, %v8291_v5  ;;  %v7702_v6 = vmax.f32 %v7700_v26, %v7701_v55 }
 0x530   : > { %v7711_v40 = vmax.f32 %v7709_v16, %v7710_v4  ;;  %v7717_v22 = vrot.slane %v7716_v57, 2  ;;  %v8293_v32 = vsel %vm6436_vm10, %v7664_v38, %v8292_v52  ;;  %v8116_v43 = vsel %vm6430_vm7, %v14925_v51, %v8115_v35  ;;  %v6832_v51 = vpop.f32.mrf.mxu0  ;;  %v10679_v14 = vpop.f32.mrf.mxu1 }
 0x531   : > { %v8294_v8 = vsel %vm6424_vm4, %v7678_v15, %v7671_v21  ;;  %v7697_v19 = vmax.f32 %v7695_v13, %v7696_v63  ;;  %10751 = vmatprep.mubr.msk.f32.mxu1 %vm8165_vm13, %v8293_v32  ;;  %v8117_v46 = vsel %vm6432_vm8, %v14906_v49, %v8116_v43  ;;  %v7703_v29 = vrot.slane %v7702_v6, 2 }
 0x532   : > { %v7712_v24 = vrot.slane %v7711_v40, 1  ;;  %v7718_v30 = vmax.f32 %v7716_v57, %v7717_v22  ;;  %v8118_v48 = vsel %vm6434_vm9, %v7664_v38, %v8117_v46  ;;  %v8295_v37 = vsel %vm6426_vm5, %v14933_v23, %v8294_v8  ;;  %v10623_v0 = vpop.f32.mrf.mxu0 }
 0x533   : > { %v7465_v53 = vadd.f32 %v14817_v27, %v7337_v7  ;;  %v7698_v62 = vrot.slane %v7697_v19, 1  ;;  %v8119_v44 = vsel %vm6436_vm10, %v7671_v21, %v8118_v48  ;;  %v7704_v9 = vmax.f32 %v7702_v6, %v7703_v29 }
 0x534   : > { %v7713_v50 = vmax.f32 %v7711_v40, %v7712_v24  ;;  %v7719_v39 = vrot.slane %v7718_v30, 1  ;;  %10723 = vmatprep.mubr.msk.f32.mxu0 %vm8165_vm13, %v8119_v44  ;;  %v8296_v49 = vsel %vm6428_vm6, %v14935_v42, %v8295_v37  ;;  %v7332_v1 = vadd.f32 %v7331_v28, %v6822_v56 }
 0x535   : > { %v7496_v17 = vmax.f32 %v7465_v53, 0.0  ;;  %v7699_v23 = vmax.f32 %v7697_v19, %v7698_v62  ;;  %v7347_v25 = vadd.f32 %v10676_v45, %v10620_v12  ;;  %v7342_v54 = vadd.f32 %v7341_v18, %v6832_v51 }
 0x536   : > { %v15015_v61 = vmax.f32 %v7718_v30, %v7719_v39  ;;  %v7705_v34 = vrot.slane %v7704_v9, 1  ;;  %v7464_v59 = vadd.f32 %v14817_v27, %v7332_v1  ;;  %v7357_v26 = vadd.f32 %v10679_v14, %v10623_v0  ;;  %v7351_v1 = vpop.f32.mrf.mxu1 }
 0x537   : > { %v7557_v33 = vcombine.high %v7496_v17, %v7496_v17  ;;  %v7735_v20 = vsel %vm7608_vm12, %v7496_v17, -inf  ;;  %v8122_v11 = vsel %vm6428_vm6, %v7699_v23, %v8121_v41  ;;  %v8297_v42 = vsel %vm6430_vm7, %v7699_v23, %v8296_v49  ;;  %v6842_v23 = vpop.f32.mrf.mxu0 }
 0x538   : > { %v7736_v21 = vrot.slane %v7735_v20, 4  ;;  %v7467_v36 = vadd.f32 %v14817_v27, %v7347_v25  ;;  %v7706_v58 = vmax.f32 %v7704_v9, %v7705_v34  ;;  %v7495_v38 = vmax.f32 %v7464_v59, 0.0 }
 0x539   : > { %v7742_v60 = vsel %vm7608_vm12, %v7557_v33, -inf  ;;  %v7466_v15 = vadd.f32 %v14817_v27, %v7342_v54  ;;  %v7469_v0 = vadd.f32 %v14817_v27, %v7357_v26  ;;  %vm8944_vm3 = vcmask 23552  }
 0x53a   : > { %v7737_v16 = vmax.f32 %v7735_v20, %v7736_v21  ;;  %v7743_v3 = vrot.slane %v7742_v60, 4  ;;  %v7498_v10 = vmax.f32 %v7467_v36, 0.0  ;;  %v8123_v2 = vsel %vm6430_vm7, %v7706_v58, %v8122_v11 }
 0x53b   : > { %v7556_v31 = vcombine.high %v7495_v38, %v7495_v38  ;;  %v7721_v7 = vsel %vm7608_vm12, %v7495_v38, -inf  ;;  %v8298_v28 = vsel %vm6432_vm8, %v7706_v58, %v8297_v42  ;;  %v7497_v52 = vmax.f32 %v7466_v15, 0.0 }
 0x53c   : > { %v7738_v56 = vrot.slane %v7737_v16, 2  ;;  %v7744_v47 = vmax.f32 %v7742_v60, %v7743_v3  ;;  %v7722_v4 = vrot.slane %v7721_v7, 4  ;;  %v8299_v57 = vsel %vm6434_vm9, %v7713_v50, %v8298_v28  ;;  %v10682_v28 = vpop.f32.mrf.mxu1 }
 0x53d   : > { %v7728_v13 = vsel %vm7608_vm12, %v7556_v31, -inf  ;;  %v8300_v55 = vsel %vm6436_vm10, %v15015_v61, %v8299_v57  ;;  %v7559_v41 = vcombine.high %v7498_v10, %v7498_v10  ;;  %v7763_v5 = vsel %vm7608_vm12, %v7498_v10, -inf }
 0x53e   : > { %v7739_v35 = vmax.f32 %v7737_v16, %v7738_v56  ;;  %v7745_v45 = vrot.slane %v7744_v47, 2  ;;  %v7723_v12 = vmax.f32 %v7721_v7, %v7722_v4  ;;  %v7729_v40 = vrot.slane %v7728_v13, 4  ;;  %10752 = vmatmul.mubr.msk.f32.vlgmr.msra.gmra.mxu1 %vm8165_vm13, %v8300_v55  ;;  %v10626_v56 = vpop.f32.mrf.mxu0 }
 0x53f   : > { %v7764_v22 = vrot.slane %v7763_v5, 4  ;;  %v7770_v63 = vsel %vm7608_vm12, %v7559_v41, -inf  ;;  %v8124_v6 = vsel %vm6432_vm8, %v7713_v50, %v8123_v2  ;;  %v7558_v46 = vcombine.high %v7497_v52, %v7497_v52 }
 0x540   : > { %v7740_v32 = vrot.slane %v7739_v35, 1  ;;  %v7746_v43 = vmax.f32 %v7744_v47, %v7745_v45  ;;  %v7724_v8 = vrot.slane %v7723_v12, 2  ;;  %v7730_v24 = vmax.f32 %v7728_v13, %v7729_v40 }
 0x541   : > { %v7765_v30 = vmax.f32 %v7763_v5, %v7764_v22  ;;  %v7771_v19 = vrot.slane %v7770_v63, 4  ;;  %v7749_v29 = vsel %vm7608_vm12, %v7497_v52, -inf  ;;  %v7756_v44 = vsel %vm7608_vm12, %v7558_v46, -inf }
 0x542   : > { %v7741_v48 = vmax.f32 %v7739_v35, %v7740_v32  ;;  %v7747_v37 = vrot.slane %v7746_v43, 1  ;;  %v7725_v53 = vmax.f32 %v7723_v12, %v7724_v8  ;;  %v7731_v18 = vrot.slane %v7730_v24, 2  ;;  %v6852_v8 = vpop.f32.mrf.mxu0 }
 0x543   : > { %v7766_v51 = vrot.slane %v7765_v30, 2  ;;  %v7772_v39 = vmax.f32 %v7770_v63, %v7771_v19  ;;  %v7750_v62 = vrot.slane %v7749_v29, 4  ;;  %v7757_v17 = vrot.slane %v7756_v44, 4 }
 0x544   : > { %v15037_v9 = vmax.f32 %v7746_v43, %v7747_v37  ;;  %v7726_v50 = vrot.slane %v7725_v53, 1  ;;  %v7732_v49 = vmax.f32 %v7730_v24, %v7731_v18  ;;  %v8125_v33 = vsel %vm6434_vm9, %v15015_v61, %v8124_v6  ;;  %v7361_v43 = vpop.f32.mrf.mxu1 }
 0x545   : > { %v7767_v25 = vmax.f32 %v7765_v30, %v7766_v51  ;;  %v7773_v54 = vrot.slane %v7772_v39, 2  ;;  %v7751_v34 = vmax.f32 %v7749_v29, %v7750_v62  ;;  %v7758_v14 = vmax.f32 %v7756_v44, %v7757_v17 }
 0x546   : > { %v7727_v20 = vmax.f32 %v7725_v53, %v7726_v50  ;;  %v7733_v59 = vrot.slane %v7732_v49, 1  ;;  %v7352_v42 = vadd.f32 %v7351_v1, %v6842_v23  ;;  %v7500_v15 = vmax.f32 %v7469_v0, 0.0 }
 0x547   : > { %v7768_v11 = vrot.slane %v7767_v25, 1  ;;  %v7752_v21 = vrot.slane %v7751_v34, 2  ;;  %v7774_v36 = vmax.f32 %v7772_v39, %v7773_v54  ;;  %v7759_v60 = vrot.slane %v7758_v14, 2 }
 0x548   : > { %v7734_v58 = vmax.f32 %v7732_v49, %v7733_v59  ;;  %v8126_v38 = vsel %vm6436_vm10, %v7727_v20, %v8125_v33  ;;  %v7468_v61 = vadd.f32 %v14817_v27, %v7352_v42  ;;  %v7561_v7 = vcombine.high %v7500_v15, %v7500_v15  ;;  %v10685_v59 = vpop.f32.mrf.mxu1 }
 0x549   : > { %v15043_v16 = vmax.f32 %v7767_v25, %v7768_v11  ;;  %v7753_v3 = vmax.f32 %v7751_v34, %v7752_v21  ;;  %10724 = vmatmul.mubr.msk.f32.vlgmr.msra.gmra.mxu0 %vm8165_vm13, %v8126_v38  ;;  %v7775_v10 = vrot.slane %v7774_v36, 1  ;;  %v7760_v31 = vmax.f32 %v7758_v14, %v7759_v60  ;;  %v10629_v14 = vpop.f32.mrf.mxu0 }
 0x54a   : > { %v8127_v2 = vsel %vm6424_vm4, %v7741_v48, %v7734_v58  ;;  %v8301_v26 = vsel %vm6424_vm4, %v7734_v58, %v7727_v20  ;;  %v7791_v4 = vsel %vm7608_vm12, %v7500_v15, -inf  ;;  %v7499_v57 = vmax.f32 %v7468_v61, 0.0 }
 0x54b   : > { %v7754_v47 = vrot.slane %v7753_v3, 1  ;;  %v15050_v13 = vmax.f32 %v7774_v36, %v7775_v10  ;;  %v7761_v55 = vrot.slane %v7760_v31, 1  ;;  %v7792_v41 = vrot.slane %v7791_v4, 4 }
 0x54c   : > { %v7798_v5 = vsel %vm7608_vm12, %v7561_v7, -inf  ;;  %v8302_v35 = vsel %vm6426_vm5, %v7741_v48, %v8301_v26  ;;  %v7560_v40 = vcombine.high %v7499_v57, %v7499_v57  ;;  %v7777_v22 = vsel %vm7608_vm12, %v7499_v57, -inf  ;;  %v7371_v7 = vpop.f32.mrf.mxu1 }
 0x54d   : > { %v7755_v45 = vmax.f32 %v7753_v3, %v7754_v47  ;;  %v7799_v12 = vrot.slane %v7798_v5, 4  ;;  %v7762_v63 = vmax.f32 %v7760_v31, %v7761_v55  ;;  %v7793_v52 = vmax.f32 %v7791_v4, %v7792_v41 }
 0x54e   : > { %v7778_v6 = vrot.slane %v7777_v22, 4  ;;  %v8303_v32 = vsel %vm6428_vm6, %v15037_v9, %v8302_v35  ;;  %v7784_v30 = vsel %vm7608_vm12, %v7560_v40, -inf  ;;  %v7367_v46 = vadd.f32 %v10682_v28, %v10626_v56  ;;  %v6862_v28 = vpop.f32.mrf.mxu0 }
 0x54f   : > { %v7800_v24 = vmax.f32 %v7798_v5, %v7799_v12  ;;  %v8304_v19 = vsel %vm6430_vm7, %v7755_v45, %v8303_v32  ;;  %v7794_v29 = vrot.slane %v7793_v52, 2  ;;  %v7785_v37 = vrot.slane %v7784_v30, 4 }
 0x550   : > { %v7779_v48 = vmax.f32 %v7777_v22, %v7778_v6  ;;  %v8305_v53 = vsel %vm6432_vm8, %v7762_v63, %v8304_v19  ;;  %v7471_v39 = vadd.f32 %v14817_v27, %v7367_v46  ;;  %v7362_v62 = vadd.f32 %v7361_v43, %v6852_v8 }
 0x551   : > { %v7801_v18 = vrot.slane %v7800_v24, 2  ;;  %v8306_v51 = vsel %vm6434_vm9, %v15043_v16, %v8305_v53  ;;  %v7795_v44 = vmax.f32 %v7793_v52, %v7794_v29  ;;  %v7786_v49 = vmax.f32 %v7784_v30, %v7785_v37 }
 0x552   : > { %v7780_v50 = vrot.slane %v7779_v48, 2  ;;  %v8307_v17 = vsel %vm6436_vm10, %v15050_v13, %v8306_v51  ;;  %v7502_v23 = vmax.f32 %v7471_v39, 0.0  ;;  %v7470_v25 = vadd.f32 %v14817_v27, %v7362_v62  ;;  %v10688_v51 = vpop.f32.mrf.mxu1  ;;  %v10632_v39 = vpop.f32.mrf.mxu0 }
 0x553   : > { %v7802_v1 = vmax.f32 %v7800_v24, %v7801_v18  ;;  %10754 = vmatprep.mubr.msk.f32.mxu1 %vm8165_vm13, %v8307_v17  ;;  %v7796_v54 = vrot.slane %v7795_v44, 1  ;;  %v7787_v33 = vrot.slane %v7786_v49, 2  ;;  %v8128_v20 = vsel %vm6426_vm5, %v15037_v9, %v8127_v2 }
 0x554   : > { %v7781_v34 = vmax.f32 %v7779_v48, %v7780_v50  ;;  %v7563_v0 = vcombine.high %v7502_v23, %v7502_v23  ;;  %v7819_v11 = vsel %vm7608_vm12, %v7502_v23, -inf  ;;  %v7501_v21 = vmax.f32 %v7470_v25, 0.0 }
 0x555   : > { %v8129_v42 = vsel %vm6428_vm6, %v7755_v45, %v8128_v20  ;;  %v7803_v36 = vrot.slane %v7802_v1, 1  ;;  %v7788_v58 = vmax.f32 %v7786_v49, %v7787_v33  ;;  %v7820_v60 = vrot.slane %v7819_v11, 4 }
 0x556   : > { %v7782_v38 = vrot.slane %v7781_v34, 1  ;;  %v7797_v15 = vmax.f32 %v7795_v44, %v7796_v54  ;;  %v7826_v3 = vsel %vm7608_vm12, %v7563_v0, -inf  ;;  %v7562_v61 = vcombine.high %v7501_v21, %v7501_v21 }
 0x557   : > { %v7805_v10 = vsel %vm7608_vm12, %v7501_v21, -inf  ;;  %v7789_v26 = vrot.slane %v7788_v58, 1  ;;  %v7821_v9 = vmax.f32 %v7819_v11, %v7820_v60  ;;  %v7827_v2 = vrot.slane %v7826_v3, 4  ;;  %v6872_v60 = vpop.f32.mrf.mxu0 }
 0x558   : > { %v7806_v31 = vrot.slane %v7805_v10, 4  ;;  %v7812_v56 = vsel %vm7608_vm12, %v7562_v61, -inf  ;;  %v7783_v47 = vmax.f32 %v7781_v34, %v7782_v38  ;;  %v8130_v4 = vsel %vm6430_vm7, %v7762_v63, %v8129_v42 }
 0x559   : > { %v7377_v57 = vadd.f32 %v10685_v59, %v10629_v14  ;;  %v7790_v55 = vmax.f32 %v7788_v58, %v7789_v26  ;;  %v7822_v41 = vrot.slane %v7821_v9, 2  ;;  %v7828_v5 = vmax.f32 %v7826_v3, %v7827_v2  ;;  %v7381_v58 = vpop.f32.mrf.mxu1 }
 0x55a   : > { %v7807_v35 = vmax.f32 %v7805_v10, %v7806_v31  ;;  %v7813_v45 = vrot.slane %v7812_v56, 4  ;;  %v8131_v12 = vsel %vm6432_vm8, %v15043_v16, %v8130_v4  ;;  %v7372_v22 = vadd.f32 %v7371_v7, %v6862_v28 }
 0x55b   : > { %v7473_v40 = vadd.f32 %v14817_v27, %v7377_v57  ;;  %v7804_v52 = vmax.f32 %v7802_v1, %v7803_v36  ;;  %v7823_v6 = vmax.f32 %v7821_v9, %v7822_v41  ;;  %v7829_v32 = vrot.slane %v7828_v5, 2 }
 0x55c   : > { %v7808_v43 = vrot.slane %v7807_v35, 2  ;;  %v8134_v8 = vsel %vm6424_vm4, %v7797_v15, %v7790_v55  ;;  %v7814_v24 = vmax.f32 %v7812_v56, %v7813_v45  ;;  %v8132_v63 = vsel %vm6434_vm9, %v15050_v13, %v8131_v12 }
 0x55d   : > { %v8308_v30 = vsel %vm6424_vm4, %v7790_v55, %v7783_v47  ;;  %v7824_v19 = vrot.slane %v7823_v6, 1  ;;  %v7830_v46 = vmax.f32 %v7828_v5, %v7829_v32  ;;  %v8133_v16 = vsel %vm6436_vm10, %v7783_v47, %v8132_v63 }
 0x55e   : > { %v7809_v29 = vmax.f32 %v7807_v35, %v7808_v43  ;;  %v7815_v48 = vrot.slane %v7814_v24, 2  ;;  %10726 = vmatprep.mubr.msk.f32.mxu0 %vm8165_vm13, %v8133_v16  ;;  %v8309_v37 = vsel %vm6426_vm5, %v7797_v15, %v8308_v30  ;;  %v7504_v53 = vmax.f32 %v7473_v40, 0.0 }
 0x55f   : > { %v7472_v18 = vadd.f32 %v14817_v27, %v7372_v22  ;;  %v15086_v62 = vmax.f32 %v7823_v6, %v7824_v19  ;;  %v7831_v13 = vrot.slane %v7830_v46, 1  ;;  %v8135_v50 = vsel %vm6426_vm5, %v7804_v52, %v8134_v8  ;;  %v10691_v8 = vpop.f32.mrf.mxu1 }
 0x560   : > { %v7810_v44 = vrot.slane %v7809_v29, 1  ;;  %v7816_v49 = vmax.f32 %v7814_v24, %v7815_v48  ;;  %v7565_v17 = vcombine.high %v7504_v53, %v7504_v53  ;;  %v7847_v1 = vsel %vm7608_vm12, %v7504_v53, -inf  ;;  %v10635_v24 = vpop.f32.mrf.mxu0 }
 0x561   : > { %v7503_v23 = vmax.f32 %v7472_v18, 0.0  ;;  %v7848_v54 = vrot.slane %v7847_v1, 4  ;;  %v8310_v34 = vsel %vm6428_vm6, %v7804_v52, %v8309_v37  ;;  %v7387_v33 = vadd.f32 %v10688_v51, %v10632_v39 }
 0x562   : > { %v7811_v25 = vmax.f32 %v7809_v29, %v7810_v44  ;;  %v7817_v20 = vrot.slane %v7816_v49, 1  ;;  %v7854_v59 = vsel %vm7608_vm12, %v7565_v17, -inf  ;;  %v7832_v36 = vmax.f32 %v7830_v46, %v7831_v13  ;;  %v6882_v17 = vpop.f32.mrf.mxu0 }
 0x563   : > { %v7564_v14 = vcombine.high %v7503_v23, %v7503_v23  ;;  %v7833_v0 = vsel %vm7608_vm12, %v7503_v23, -inf  ;;  %v7849_v11 = vmax.f32 %v7847_v1, %v7848_v54  ;;  %v7855_v21 = vrot.slane %v7854_v59, 4 }
 0x564   : > { %v7834_v42 = vrot.slane %v7833_v0, 4  ;;  %v7818_v38 = vmax.f32 %v7816_v49, %v7817_v20  ;;  %v8311_v3 = vsel %vm6430_vm7, %v7811_v25, %v8310_v34  ;;  %v7475_v61 = vadd.f32 %v14817_v27, %v7387_v33  ;;  %v7391_v49 = vpop.f32.mrf.mxu1 }
 0x565   : > { %v7840_v15 = vsel %vm7608_vm12, %v7564_v14, -inf  ;;  %v7850_v10 = vrot.slane %v7849_v11, 2  ;;  %v7856_v26 = vmax.f32 %v7854_v59, %v7855_v21  ;;  %v8136_v31 = vsel %vm6428_vm6, %v7811_v25, %v8135_v50 }
 0x566   : > { %v7835_v9 = vmax.f32 %v7833_v0, %v7834_v42  ;;  %v7841_v2 = vrot.slane %v7840_v15, 4  ;;  %v8312_v7 = vsel %vm6432_vm8, %v7818_v38, %v8311_v3  ;;  %v7506_v28 = vmax.f32 %v7475_v61, 0.0  ;;  %v10694_v14 = vpop.f32.mrf.mxu1  ;;  %v10638_v0 = vpop.f32.mrf.mxu0 }
 0x567   : > { %v7382_v56 = vadd.f32 %v7381_v58, %v6872_v60  ;;  %v7851_v47 = vmax.f32 %v7849_v11, %v7850_v10  ;;  %v7857_v4 = vrot.slane %v7856_v26, 2  ;;  %v8313_v41 = vsel %vm6434_vm9, %v15086_v62, %v8312_v7 }
 0x568   : > { %v7836_v57 = vrot.slane %v7835_v9, 2  ;;  %v7842_v55 = vmax.f32 %v7840_v15, %v7841_v2  ;;  %v7567_v5 = vcombine.high %v7506_v28, %v7506_v28  ;;  %v7875_v35 = vsel %vm7608_vm12, %v7506_v28, -inf }
 0x569   : > { %v7474_v45 = vadd.f32 %v14817_v27, %v7382_v56  ;;  %v7858_v12 = vmax.f32 %v7856_v26, %v7857_v4  ;;  %v8314_v52 = vsel %vm6436_vm10, %v7832_v36, %v8313_v41  ;;  %v7876_v6 = vrot.slane %v7875_v35, 4 }
 0x56a   : > { %v7837_v40 = vmax.f32 %v7835_v9, %v7836_v57  ;;  %v7843_v22 = vrot.slane %v7842_v55, 2  ;;  %v7882_v32 = vsel %vm7608_vm12, %v7567_v5, -inf  ;;  %v7852_v63 = vrot.slane %v7851_v47, 1  ;;  %10755 = vmatmul.mubr.msk.f32.gmra.mxu1 %vm8165_vm13, %v8314_v52  ;;  %v7401_v57 = vpop.f32.mrf.mxu1 }
 0x56b   : > { %v7505_v43 = vmax.f32 %v7474_v45, 0.0  ;;  %v8137_v46 = vsel %vm6430_vm7, %v7818_v38, %v8136_v31  ;;  %v7877_v29 = vmax.f32 %v7875_v35, %v7876_v6  ;;  %v7883_v27 = vrot.slane %v7882_v32, 4 }
 0x56c   : > { %v7838_v30 = vrot.slane %v7837_v40, 1  ;;  %v7844_v19 = vmax.f32 %v7842_v55, %v7843_v22  ;;  %v7859_v37 = vrot.slane %v7858_v12, 1  ;;  %v8138_v50 = vsel %vm6432_vm8, %v15086_v62, %v8137_v46  ;;  %v6892_v55 = vpop.f32.mrf.mxu0 }
 0x56d   : > { %v7566_v16 = vcombine.high %v7505_v43, %v7505_v43  ;;  %v7861_v48 = vsel %vm7608_vm12, %v7505_v43, -inf  ;;  %v7878_v39 = vrot.slane %v7877_v29, 2  ;;  %v7884_v13 = vmax.f32 %v7882_v32, %v7883_v27 }
 0x56e   : > { %v7839_v53 = vmax.f32 %v7837_v40, %v7838_v30  ;;  %v7845_v18 = vrot.slane %v7844_v19, 1  ;;  %v7862_v51 = vrot.slane %v7861_v48, 4  ;;  %v8139_v54 = vsel %vm6434_vm9, %v7832_v36, %v8138_v50  ;;  %v15122_v36 = vld [vmem:[%s15732_s6] ss:$0 sm:$0xff] }
 0x56f   : > { %v7868_v44 = vsel %vm7608_vm12, %v7566_v16, -inf  ;;  %v7879_v34 = vmax.f32 %v7877_v29, %v7878_v39  ;;  %v7885_v33 = vrot.slane %v7884_v13, 2  ;;  %v7397_v59 = vadd.f32 %v10691_v8, %v10635_v24 }
 0x570   : > { %v15110_v1 = vmax.f32 %v7844_v19, %v7845_v18  ;;  %v7863_v23 = vmax.f32 %v7861_v48, %v7862_v51  ;;  %v7869_v25 = vrot.slane %v7868_v44, 4  ;;  %v8140_v20 = vsel %vm6436_vm10, %v7839_v53, %v8139_v54 }
 0x571   : > { %v15114_v11 = vmax.f32 %v7851_v47, %v7852_v63  ;;  %10727 = vmatmul.mubr.msk.f32.gmra.mxu0 %vm8165_vm13, %v8140_v20  ;;  %v7880_v58 = vrot.slane %v7879_v34, 1  ;;  %v7477_v60 = vadd.f32 %v15122_v36, %v7397_v59  ;;  %v7392_v38 = vadd.f32 %v7391_v49, %v6882_v17 }
 0x572   : > { %v8315_v62 = vsel %vm6424_vm4, %v15110_v1, %v7839_v53  ;;  %v7864_v21 = vrot.slane %v7863_v23, 2  ;;  %v7870_v42 = vmax.f32 %v7868_v44, %v7869_v25  ;;  %v7886_v15 = vmax.f32 %v7884_v13, %v7885_v33 }
 0x573   : > { %v8316_v10 = vsel %vm6426_vm5, %v15114_v11, %v8315_v62  ;;  %v7407_v26 = vadd.f32 %v10694_v14, %v10638_v0  ;;  %v15127_v9 = vmax.f32 %v7858_v12, %v7859_v37  ;;  %v15129_v2 = vmax.f32 %v7879_v34, %v7880_v58 }
 0x574   : > { %v7865_v3 = vmax.f32 %v7863_v23, %v7864_v21  ;;  %v7871_v61 = vrot.slane %v7870_v42, 2  ;;  %v7508_v31 = vmax.f32 %v7477_v60, 0.0  ;;  %v7476_v7 = vadd.f32 %v15122_v36, %v7392_v38 }
 0x575   : > { %v7887_v47 = vrot.slane %v7886_v15, 1  ;;  %v7479_v4 = vadd.f32 %v15122_v36, %v7407_v26  ;;  %v8317_v45 = vsel %vm6428_vm6, %v15127_v9, %v8316_v10  ;;  %v7402_v8 = vadd.f32 %v7401_v57, %v6892_v55 }
 0x576   : > { %v7866_v28 = vrot.slane %v7865_v3, 1  ;;  %v7872_v56 = vmax.f32 %v7870_v42, %v7871_v61  ;;  %v7569_v41 = vcombine.high %v7508_v31, %v7508_v31  ;;  %v7903_v5 = vsel %vm7608_vm12, %v7508_v31, -inf }
 0x577   : > { %v7507_v35 = vmax.f32 %v7476_v7, 0.0  ;;  %v7904_v22 = vrot.slane %v7903_v5, 4  ;;  %v7510_v52 = vmax.f32 %v7479_v4, 0.0  ;;  %v7478_v44 = vadd.f32 %v15122_v36, %v7402_v8 }
 0x578   : > { %v7867_v12 = vmax.f32 %v7865_v3, %v7866_v28  ;;  %v7873_v40 = vrot.slane %v7872_v56, 1  ;;  %v7910_v6 = vsel %vm7608_vm12, %v7569_v41, -inf  ;;  %v7888_v23 = vmax.f32 %v7886_v15, %v7887_v47 }
 0x579   : > { %v7568_v32 = vcombine.high %v7507_v35, %v7507_v35  ;;  %v7889_v43 = vsel %vm7608_vm12, %v7507_v35, -inf  ;;  %v7905_v63 = vmax.f32 %v7903_v5, %v7904_v22  ;;  %v7911_v30 = vrot.slane %v7910_v6, 4 }
 0x57a   : > { %v7874_v24 = vmax.f32 %v7872_v56, %v7873_v40  ;;  %v7890_v19 = vrot.slane %v7889_v43, 4  ;;  %v8318_v29 = vsel %vm6430_vm7, %v7867_v12, %v8317_v45  ;;  %v7571_v27 = vcombine.high %v7510_v52, %v7510_v52 }
 0x57b   : > { %v7896_v46 = vsel %vm7608_vm12, %v7568_v32, -inf  ;;  %v7931_v16 = vsel %vm7608_vm12, %v7510_v52, -inf  ;;  %v7906_v48 = vrot.slane %v7905_v63, 2  ;;  %v7912_v37 = vmax.f32 %v7910_v6, %v7911_v30 }
 0x57c   : > { %v7891_v53 = vmax.f32 %v7889_v43, %v7890_v19  ;;  %v7897_v18 = vrot.slane %v7896_v46, 4  ;;  %v8319_v51 = vsel %vm6432_vm8, %v7874_v24, %v8318_v29  ;;  %v7932_v39 = vrot.slane %v7931_v16, 4 }
 0x57d   : > { %v7938_v13 = vsel %vm7608_vm12, %v7571_v27, -inf  ;;  %v7913_v50 = vrot.slane %v7912_v37, 2  ;;  %v8320_v25 = vsel %vm6434_vm9, %v15129_v2, %v8319_v51  ;;  %v7509_v33 = vmax.f32 %v7478_v44, 0.0 }
 0x57e   : > { %v7892_v49 = vrot.slane %v7891_v53, 2  ;;  %v7898_v17 = vmax.f32 %v7896_v46, %v7897_v18  ;;  %v7933_v54 = vmax.f32 %v7931_v16, %v7932_v39  ;;  %v7939_v34 = vrot.slane %v7938_v13, 4 }
 0x57f   : > { %v7907_v14 = vmax.f32 %v7905_v63, %v7906_v48  ;;  %v8321_v0 = vsel %vm6436_vm10, %v7888_v23, %v8320_v25  ;;  %v7570_v21 = vcombine.high %v7509_v33, %v7509_v33  ;;  %v8141_v42 = vsel %vm6424_vm4, %v15114_v11, %v15110_v1 }
 0x580   : > { %v7893_v20 = vmax.f32 %v7891_v53, %v7892_v49  ;;  %v7899_v59 = vrot.slane %v7898_v17, 2  ;;  %v7940_v62 = vmax.f32 %v7938_v13, %v7939_v34  ;;  %10757 = vmatprep.mubr.msk.f32.mxu1 %vm8165_vm13, %v8321_v0  ;;  %v7917_v60 = vsel %vm7608_vm12, %v7509_v33, -inf }
 0x581   : > { %v7914_v38 = vmax.f32 %v7912_v37, %v7913_v50  ;;  %v7934_v15 = vrot.slane %v7933_v54, 2  ;;  %v7918_v3 = vrot.slane %v7917_v60, 4  ;;  %v7924_v61 = vsel %vm7608_vm12, %v7570_v21, -inf }
 0x582   : > { %v7900_v58 = vmax.f32 %v7898_v17, %v7899_v59  ;;  %v7941_v26 = vrot.slane %v7940_v62, 2  ;;  %v7925_v31 = vrot.slane %v7924_v61, 4  ;;  %v7894_v7 = vrot.slane %v7893_v20, 1 }
 0x583   : > { %v7908_v28 = vrot.slane %v7907_v14, 1  ;;  %v7919_v56 = vmax.f32 %v7917_v60, %v7918_v3  ;;  %v8142_v47 = vsel %vm6426_vm5, %v15127_v9, %v8141_v42  ;;  %v10697_v55 = vpop.f32.mrf.mxu1  ;;  %v7915_v41 = vrot.slane %v7914_v38, 1 }
 0x584   : > { %v7901_v10 = vrot.slane %v7900_v58, 1  ;;  %v7926_v11 = vmax.f32 %v7924_v61, %v7925_v31  ;;  %v7895_v4 = vmax.f32 %v7893_v20, %v7894_v7  ;;  %v8143_v57 = vsel %vm6428_vm6, %v7867_v12, %v8142_v47  ;;  %v8621_v47 = vld [vmem:[%s15735_s9 + $0xf8] sm:$0xff] }
 0x585   : > { %v7935_v5 = vmax.f32 %v7933_v54, %v7934_v15  ;;  %v7920_v35 = vrot.slane %v7919_v56, 2  ;;  %v8144_v45 = vsel %vm6430_vm7, %v7874_v24, %v8143_v57  ;;  %v7942_v40 = vmax.f32 %v7940_v62, %v7941_v26  ;;  %v7411_v30 = vpop.f32.mrf.mxu1  ;;  %8769 = vmatprep.subr.mxu1 %v8621_v47  ;;  %v8614_v47 = vld [vmem:[%s15735_s9 + $0xc0] sm:$0xff] }
 0x586   : > { %v7902_v1 = vmax.f32 %v7900_v58, %v7901_v10  ;;  %v7927_v22 = vrot.slane %v7926_v11, 2  ;;  %v8145_v52 = vsel %vm6432_vm8, %v15129_v2, %v8144_v45  ;;  %v7909_v32 = vmax.f32 %v7907_v14, %v7908_v28 }
 0x587   : > { %v7921_v9 = vmax.f32 %v7919_v56, %v7920_v35  ;;  %v8146_v43 = vsel %vm6434_vm9, %v7888_v23, %v8145_v52  ;;  %v7936_v19 = vrot.slane %v7935_v5, 1  ;;  %v7916_v29 = vmax.f32 %v7914_v38, %v7915_v41 }
 0x588   : > { %v8322_v6 = vsel %vm6424_vm4, %v7902_v1, %v7895_v4  ;;  %v7928_v8 = vmax.f32 %v7926_v11, %v7927_v22  ;;  %v8147_v12 = vsel %vm6436_vm10, %v7895_v4, %v8146_v43  ;;  %v7943_v27 = vrot.slane %v7942_v40, 1  ;;  %v8619_v11 = vld [vmem:[%s15735_s9 + $0xe8] sm:$0xff] }
 0x589   : > { %v10641_v63 = vpop.f32.mrf.mxu0  ;;  %v7922_v46 = vrot.slane %v7921_v9, 1  ;;  %10729 = vmatprep.mubr.msk.f32.mxu0 %vm8165_vm13, %v8147_v12  ;;  %v8323_v24 = vsel %vm6426_vm5, %v7909_v32, %v8322_v6  ;;  %v7937_v51 = vmax.f32 %v7935_v5, %v7936_v19  ;;  %v8148_v23 = vsel %vm6424_vm4, %v7909_v32, %v7902_v1  ;;  %v8620_v1 = vld [vmem:[%s15735_s9 + $0xf0] sm:$0xff]  ;;  %v8617_v5 = vld [vmem:[%s15735_s9 + $0xd8] sm:$0xff] }
 0x58a   : > { %v7929_v2 = vrot.slane %v7928_v8, 1  ;;  %v8324_v18 = vsel %vm6428_vm6, %v7916_v29, %v8323_v24  ;;  %v7944_v44 = vmax.f32 %v7942_v40, %v7943_v27  ;;  %v8149_v33 = vsel %vm6426_vm5, %v7916_v29, %v8148_v23  ;;  %8770 = vmatpush1.msra.mxu1 %v8620_v1  ;;  %v8613_v1 = vld [vmem:[%s15735_s9 + $0xb8] sm:$0xff] }
 0x58b   : > { %v6902_v16 = vpop.f32.mrf.mxu0  ;;  %v7923_v48 = vmax.f32 %v7921_v9, %v7922_v46  ;;  %v7417_v60 = vadd.f32 %v10697_v55, %v10641_v63  ;;  %v8618_v55 = vld [vmem:[%s15735_s9 + $0xe0] sm:$0xff]  ;;  %8771 = vmatprep.subr.mxu1 %v8619_v11  ;;  %v8612_v11 = vld [vmem:[%s15735_s9 + $0xb0] sm:$0xff] }
 0x58c   : > { %v7412_v37 = vadd.f32 %v7411_v30, %v6902_v16  ;;  %v7930_v53 = vmax.f32 %v7928_v8, %v7929_v2  ;;  %8772 = vmatpush1.msra.mxu1 %v8618_v55 }
 0x58d   : > { %v8325_v13 = vsel %vm6430_vm7, %v7923_v48, %v8324_v18  ;;  %v8150_v20 = vsel %vm6428_vm6, %v7923_v48, %v8149_v33  ;;  %v7481_v3 = vadd.f32 %v15122_v36, %v7417_v60  ;;  %8773 = vmatprep.subr.mxu1 %v8617_v5  ;;  %v8610_v5 = vld [vmem:[%s15735_s9 + $0xa0] sm:$0xff] }
 0x58e   : > { %v7480_v39 = vadd.f32 %v15122_v36, %v7412_v37  ;;  %v8326_v50 = vsel %vm6432_vm8, %v7930_v53, %v8325_v13  ;;  %v8151_v0 = vsel %vm6430_vm7, %v7930_v53, %v8150_v20 }
 0x58f   : > { %v8327_v17 = vsel %vm6434_vm9, %v7937_v51, %v8326_v50  ;;  %v8152_v42 = vsel %vm6432_vm8, %v7937_v51, %v8151_v0  ;;  %v7512_v10 = vmax.f32 %v7481_v3, 0.0 }
 0x590   : > { %v7511_v49 = vmax.f32 %v7480_v39, 0.0  ;;  %v8328_v25 = vsel %vm6436_vm10, %v7944_v44, %v8327_v17  ;;  %v8153_v38 = vsel %vm6434_vm9, %v7944_v44, %v8152_v42 }
 0x591   : > { %10758 = vmatmul.mubr.msk.f32.gmra.mxu1 %vm8165_vm13, %v8328_v25  ;;  %v7573_v31 = vcombine.high %v7512_v10, %v7512_v10  ;;  %v7959_v7 = vsel %vm7608_vm12, %v7512_v10, -inf  ;;  %v8616_v10 = vld [vmem:[%s15735_s9 + $0xd0] sm:$0xff] }
 0x592   : > { %v7945_v54 = vsel %vm7608_vm12, %v7511_v49, -inf  ;;  %v7572_v61 = vcombine.high %v7511_v49, %v7511_v49  ;;  %v7960_v56 = vrot.slane %v7959_v7, 4  ;;  %8774 = vmatpush1.msra.mxu1 %v8616_v10 }
 0x593   : > { %v7946_v34 = vrot.slane %v7945_v54, 4  ;;  %v7966_v4 = vsel %vm7608_vm12, %v7573_v31, -inf }
 0x594   : > { %v7952_v26 = vsel %vm7608_vm12, %v7572_v61, -inf  ;;  %v7961_v35 = vmax.f32 %v7959_v7, %v7960_v56  ;;  %v7967_v45 = vrot.slane %v7966_v4, 4 }
 0x595   : > { %v7947_v59 = vmax.f32 %v7945_v54, %v7946_v34  ;;  %v7953_v28 = vrot.slane %v7952_v26, 4 }
 0x596   : > { %v7962_v32 = vrot.slane %v7961_v35, 2  ;;  %v7968_v9 = vmax.f32 %v7966_v4, %v7967_v45  ;;  %v8609_v45 = vld [vmem:[%s15735_s9 + $0x98] sm:$0xff] }
 0x597   : > { %v7948_v14 = vrot.slane %v7947_v59, 2  ;;  %v7954_v57 = vmax.f32 %v7952_v26, %v7953_v28  ;;  %v8615_v26 = vld [vmem:[%s15735_s9 + $0xc8] sm:$0xff] }
 0x598   : > { %v7963_v46 = vmax.f32 %v7961_v35, %v7962_v32  ;;  %v7969_v24 = vrot.slane %v7968_v9, 2  ;;  %8775 = vmatprep.subr.mxu1 %v8615_v26  ;;  %v8607_v32 = vld [vmem:[%s15735_s9 + $0x88] sm:$0xff] }
 0x599   : > { %v7949_v62 = vmax.f32 %v7947_v59, %v7948_v14  ;;  %v7955_v40 = vrot.slane %v7954_v57, 2  ;;  %8776 = vmatpush1.msra.mxu1 %v8614_v47 }
 0x59a   : > { %v7964_v44 = vrot.slane %v7963_v46, 1  ;;  %v7970_v50 = vmax.f32 %v7968_v9, %v7969_v24  ;;  %8777 = vmatprep.subr.mxu1 %v8613_v1  ;;  %v8599_v24 = vld [vmem:[%s15735_s9 + $0x48] sm:$0xff] }
 0x59b   : > { %v7950_v21 = vrot.slane %v7949_v62, 1  ;;  %v7956_v8 = vmax.f32 %v7954_v57, %v7955_v40  ;;  %v8611_v57 = vld [vmem:[%s15735_s9 + $0xa8] sm:$0xff]  ;;  %8778 = vmatpush1.msra.mxu1 %v8612_v11 }
 0x59c   : > { %v7971_v14 = vrot.slane %v7970_v50, 1  ;;  %8779 = vmatprep.subr.mxu1 %v8611_v57 }
 0x59d   : > { %v15177_v58 = vmax.f32 %v7949_v62, %v7950_v21  ;;  %v7957_v29 = vrot.slane %v7956_v8, 1  ;;  %v15213_v21 = vmax.f32 %v7963_v46, %v7964_v44  ;;  %8780 = vmatpush1.msra.mxu1 %v8610_v5  ;;  %v8600_v46 = vld [vmem:[%s15735_s9 + $0x50] sm:$0xff] }
 0x59e   : > { %8781 = vmatprep.subr.mxu1 %v8609_v45 }
 0x59f   : > { %v8154_v15 = vsel %vm6436_vm10, %v15177_v58, %v8153_v38  ;;  %v15207_v49 = vmax.f32 %v7956_v8, %v7957_v29  ;;  %v8605_v8 = vld [vmem:[%s15735_s9 + $0x78] sm:$0xff] }
 0x5a0   : > { %10730 = vmatmul.mubr.msk.f32.gmra.mxu0 %vm8165_vm13, %v8154_v15  ;;  %v9771_v29 = vld [vmem:[%s15735_s9 + $0x1f8] sm:$0xff] }
 0x5a1   : > { %v8329_v0 = vsel %vm6424_vm4, %v15207_v49, %v15177_v58  ;;  %v15223_v58 = vmax.f32 %v7970_v50, %v7971_v14  ;;  %8679 = vmatprep.subr.mxu0 %v9771_v29  ;;  %v8594_v50 = vld [vmem:[%s15735_s9 + $0x20] sm:$0xff] }
 0x5a2   : > { %v8330_v61 = vsel %vm6426_vm5, %v15213_v21, %v8329_v0 }
 0x5a3   : > { %v8331_v4 = vsel %vm6428_vm6, %v15223_v58, %v8330_v61 }
 0x5ad   : > { %v10700_v41 = vpop.f32.mrf.mxu1 }
 0x5af   : > { %v7421_v52 = vpop.f32.mrf.mxu1 }
 0x5b3   : > { %v10644_v22 = vpop.f32.mrf.mxu0 }
 0x5b4   : > { %v7427_v6 = vadd.f32 %v10700_v41, %v10644_v22 }
 0x5b5   : > { %v6912_v43 = vpop.f32.mrf.mxu0 }
 0x5b6   : > { %v7483_v12 = vadd.f32 %v15122_v36, %v7427_v6  ;;  %v7422_v63 = vadd.f32 %v7421_v52, %v6912_v43  ;;  %v8608_v52 = vld [vmem:[%s15735_s9 + $0x90] sm:$0xff]  ;;  %v8606_v43 = vld [vmem:[%s15735_s9 + $0x80] sm:$0xff] }
 0x5b7   : > { %8782 = vmatpush1.msra.mxu1 %v8608_v52 }
 0x5b8   : > { %v7514_v30 = vmax.f32 %v7483_v12, 0.0  ;;  %v7482_v19 = vadd.f32 %v15122_v36, %v7422_v63  ;;  %8783 = vmatprep.subr.mxu1 %v8607_v32  ;;  %v8604_v12 = vld [vmem:[%s15735_s9 + $0x70] sm:$0xff]  ;;  %v8603_v63 = vld [vmem:[%s15735_s9 + $0x68] sm:$0xff] }
 0x5b9   : > { %8784 = vmatpush1.msra.mxu1 %v8606_v43 }
 0x5ba   : > { %v7575_v27 = vcombine.high %v7514_v30, %v7514_v30  ;;  %v7987_v2 = vsel %vm7608_vm12, %v7514_v30, -inf  ;;  %v7513_v16 = vmax.f32 %v7482_v19, 0.0  ;;  %8785 = vmatprep.subr.mxu1 %v8605_v8  ;;  %v8602_v30 = vld [vmem:[%s15735_s9 + $0x60] sm:$0xff]  ;;  %v8601_v19 = vld [vmem:[%s15735_s9 + $0x58] sm:$0xff] }
 0x5bb   : > { %v7988_v48 = vrot.slane %v7987_v2, 4  ;;  %8786 = vmatpush1.msra.mxu1 %v8604_v12 }
 0x5bc   : > { %v7994_v37 = vsel %vm7608_vm12, %v7575_v27, -inf  ;;  %v7574_v53 = vcombine.high %v7513_v16, %v7513_v16  ;;  %v7973_v18 = vsel %vm7608_vm12, %v7513_v16, -inf  ;;  %8787 = vmatprep.subr.mxu1 %v8603_v63  ;;  %v9770_v27 = vld [vmem:[%s15735_s9 + $0x1f0] sm:$0xff]  ;;  %v8598_v16 = vld [vmem:[%s15735_s9 + $0x40] sm:$0xff] }
 0x5bd   : > { %v7989_v51 = vmax.f32 %v7987_v2, %v7988_v48  ;;  %v7995_v39 = vrot.slane %v7994_v37, 4  ;;  %v7974_v13 = vrot.slane %v7973_v18, 4  ;;  %8788 = vmatpush1.msra.mxu1 %v8602_v30  ;;  %v9769_v2 = vld [vmem:[%s15735_s9 + $0x1e8] sm:$0xff]  ;;  %v9768_v48 = vld [vmem:[%s15735_s9 + $0x1e0] sm:$0xff]  ;;  %8680 = vmatpush1.msra.mxu0 %v9770_v27 }
 0x5be   : > { %v7980_v17 = vsel %vm7608_vm12, %v7574_v53, -inf  ;;  %8789 = vmatprep.subr.mxu1 %v8601_v19  ;;  %v9767_v53 = vld [vmem:[%s15735_s9 + $0x1d8] sm:$0xff]  ;;  %8681 = vmatprep.subr.mxu0 %v9769_v2 }
 0x5bf   : > { %v7990_v23 = vrot.slane %v7989_v51, 2  ;;  %v7996_v25 = vmax.f32 %v7994_v37, %v7995_v39  ;;  %v7975_v54 = vmax.f32 %v7973_v18, %v7974_v13  ;;  %v7981_v34 = vrot.slane %v7980_v17, 4  ;;  %8790 = vmatpush1.msra.mxu1 %v8600_v46  ;;  %v8597_v37 = vld [vmem:[%s15735_s9 + $0x38] sm:$0xff]  ;;  %v8596_v18 = vld [vmem:[%s15735_s9 + $0x30] sm:$0xff]  ;;  %v8595_v39 = vld [vmem:[%s15735_s9 + $0x28] sm:$0xff]  ;;  %8682 = vmatpush1.msra.mxu0 %v9768_v48 }
 0x5c0   : > { %8791 = vmatprep.subr.mxu1 %v8599_v24  ;;  %v9765_v13 = vld [vmem:[%s15735_s9 + $0x1c8] sm:$0xff]  ;;  %8683 = vmatprep.subr.mxu0 %v9767_v53 }
 0x5c1   : > { %v7997_v33 = vrot.slane %v7996_v25, 2  ;;  %v7976_v20 = vrot.slane %v7975_v54, 2  ;;  %v7982_v59 = vmax.f32 %v7980_v17, %v7981_v34  ;;  %v7991_v62 = vmax.f32 %v7989_v51, %v7990_v23  ;;  %v9766_v51 = vld [vmem:[%s15735_s9 + $0x1d0] sm:$0xff]  ;;  %8792 = vmatpush1.msra.mxu1 %v8598_v16  ;;  %v9764_v17 = vld [vmem:[%s15735_s9 + $0x1c0] sm:$0xff]  ;;  %v8593_v23 = vld [vmem:[%s15735_s9 + $0x18] sm:$0xff] }
 0x5c2   : > { %8793 = vmatprep.subr.mxu1 %v8597_v37  ;;  %8684 = vmatpush1.msra.mxu0 %v9766_v51  ;;  %v8591_v34 = vld [vmem:[%s15735_s9 + $0x8] sm:$0xff] }
 0x5c3   : > { %v7977_v42 = vmax.f32 %v7975_v54, %v7976_v20  ;;  %v7983_v60 = vrot.slane %v7982_v59, 2  ;;  %v7998_v38 = vmax.f32 %v7996_v25, %v7997_v33  ;;  %v7992_v31 = vrot.slane %v7991_v62, 1  ;;  %8794 = vmatpush1.msra.mxu1 %v8596_v18  ;;  %v9763_v25 = vld [vmem:[%s15735_s9 + $0x1b8] sm:$0xff]  ;;  %v8592_v54 = vld [vmem:[%s15735_s9 + $0x10] sm:$0xff]  ;;  %8685 = vmatprep.subr.mxu0 %v9765_v13 }
 0x5c4   : > { %8795 = vmatprep.subr.mxu1 %v8595_v39  ;;  %8686 = vmatpush1.msra.mxu0 %v9764_v17  ;;  %v9761_v39 = vld [vmem:[%s15735_s9 + $0x1a8] sm:$0xff] }
 0x5c5   : > { %v7978_v15 = vrot.slane %v7977_v42, 1  ;;  %v7984_v3 = vmax.f32 %v7982_v59, %v7983_v60  ;;  %v7999_v56 = vrot.slane %v7998_v38, 1  ;;  %v15248_v35 = vmax.f32 %v7991_v62, %v7992_v31  ;;  %8796 = vmatpush1.msra.mxu1 %v8594_v50  ;;  %v8590_v59 = vld [vmem:[%s15735_s9] sm:$0xff]  ;;  %8687 = vmatprep.subr.mxu0 %v9763_v25 }
 0x5c6   : > { %8797 = vmatprep.subr.mxu1 %v8593_v23 }
 0x5c7   : > { %v15225_v7 = vmax.f32 %v7977_v42, %v7978_v15  ;;  %v7985_v28 = vrot.slane %v7984_v3, 1  ;;  %v15253_v40 = vmax.f32 %v7998_v38, %v7999_v56  ;;  %8798 = vmatpush1.msra.mxu1 %v8592_v54  ;;  %v8155_v15 = vsel %vm6424_vm4, %v15213_v21, %v15207_v49  ;;  %v9760_v54 = vld [vmem:[%s15735_s9 + $0x1a0] sm:$0xff] }
 0x5c8   : > { %8799 = vmatprep.subr.mxu1 %v8591_v34  ;;  %v9759_v34 = vld [vmem:[%s15735_s9 + $0x198] sm:$0xff] }
 0x5c9   : > { %v15241_v55 = vmax.f32 %v7984_v3, %v7985_v28  ;;  %v8332_v41 = vsel %vm6430_vm7, %v15225_v7, %v8331_v4  ;;  %8800 = vmatpush1.msra.mxu1 %v8590_v59 }
 0x5cb   : > { %v8333_v22 = vsel %vm6432_vm8, %v15241_v55, %v8332_v41  ;;  %v8156_v41 = vsel %vm6426_vm5, %v15223_v58, %v8155_v15  ;;  %v9754_v15 = vld [vmem:[%s15735_s9 + $0x170] sm:$0xff] }
 0x5cc   : > { %v8334_v6 = vsel %vm6434_vm9, %v15248_v35, %v8333_v22  ;;  %v8157_v21 = vsel %vm6428_vm6, %v15225_v7, %v8156_v41  ;;  %v9744_v41 = vld [vmem:[%s15735_s9 + $0x120] sm:$0xff] }
 0x5cd   : > { %v8335_v9 = vsel %vm6436_vm10, %v15253_v40, %v8334_v6  ;;  %v8158_v58 = vsel %vm6430_vm7, %v15241_v55, %v8157_v21  ;;  %v9762_v55 = vld [vmem:[%s15735_s9 + $0x1b0] sm:$0xff] }
 0x5ce   : > { %10760 = vmatprep.mubr.msk.f32.mxu1 %vm8165_vm13, %v8335_v9  ;;  %v8159_v2 = vsel %vm6432_vm8, %v15248_v35, %v8158_v58  ;;  %8688 = vmatpush1.msra.mxu0 %v9762_v55  ;;  %v9742_v21 = vld [vmem:[%s15735_s9 + $0x110] sm:$0xff] }
 0x5cf   : > { %8689 = vmatprep.subr.mxu0 %v9761_v39 }
 0x5d0   : > { %8690 = vmatpush1.msra.mxu0 %v9760_v54 }
 0x5d1   : > { %8691 = vmatprep.subr.mxu0 %v9759_v34 }
 0x5d3   : > { %v10703_v44 = vpop.f32.mrf.mxu1 }
 0x5d5   : > { %v7431_v20 = vpop.f32.mrf.mxu1 }
 0x5dc   : > { %v10647_v33 = vpop.f32.mrf.mxu0 }
 0x5dd   : > { %v7437_v14 = vadd.f32 %v10703_v44, %v10647_v33  ;;  %v9758_v33 = vld [vmem:[%s15735_s9 + $0x190] sm:$0xff] }
 0x5de   : > { %v6922_v0 = vpop.f32.mrf.mxu0  ;;  %8692 = vmatpush1.msra.mxu0 %v9758_v33 }
 0x5df   : > { %v7485_v62 = vadd.f32 %v15122_v36, %v7437_v14  ;;  %v7432_v42 = vadd.f32 %v7431_v20, %v6922_v0  ;;  %v9757_v14 = vld [vmem:[%s15735_s9 + $0x188] sm:$0xff]  ;;  %v9756_v0 = vld [vmem:[%s15735_s9 + $0x180] sm:$0xff] }
 0x5e0   : > { %8693 = vmatprep.subr.mxu0 %v9757_v14 }
 0x5e1   : > { %v7516_v60 = vmax.f32 %v7485_v62, 0.0  ;;  %v7484_v38 = vadd.f32 %v15122_v36, %v7432_v42  ;;  %8694 = vmatpush1.msra.mxu0 %v9756_v0 }
 0x5e3   : > { %v7577_v3 = vcombine.high %v7516_v60, %v7516_v60  ;;  %v8015_v61 = vsel %vm7608_vm12, %v7516_v60, -inf  ;;  %v7515_v10 = vmax.f32 %v7484_v38, 0.0  ;;  %v16018_v60 = vmov 0.0   ;;  %v9755_v38 = vld [vmem:[%s15735_s9 + $0x178] sm:$0xff] }
 0x5e4   : > { %v8016_v26 = vrot.slane %v8015_v61, 4  ;;  %8695 = vmatprep.subr.mxu0 %v9755_v38 }
 0x5e5   : > { %v8022_v31 = vsel %vm7608_vm12, %v7577_v3, -inf  ;;  %v7576_v28 = vcombine.high %v7515_v10, %v7515_v10  ;;  %v8001_v56 = vsel %vm7608_vm12, %v7515_v10, -inf  ;;  %8696 = vmatpush1.msra.mxu0 %v9754_v15 }
 0x5e6   : > { %v8017_v47 = vmax.f32 %v8015_v61, %v8016_v26  ;;  %v8023_v1 = vrot.slane %v8022_v31, 4  ;;  %v8002_v11 = vrot.slane %v8001_v56, 4  ;;  %v9753_v61 = vld [vmem:[%s15735_s9 + $0x168] sm:$0xff]  ;;  %v9752_v26 = vld [vmem:[%s15735_s9 + $0x160] sm:$0xff] }
 0x5e7   : > { %v10650_v4 = vpop.f32.mrf.mxu0  ;;  %v8008_v49 = vsel %vm7608_vm12, %v7576_v28, -inf  ;;  %v9751_v28 = vld [vmem:[%s15735_s9 + $0x158] sm:$0xff]  ;;  %8697 = vmatprep.subr.mxu0 %v9753_v61 }
 0x5e8   : > { %v10706_v57 = vpop.f32.mrf.mxu1  ;;  %v8018_v5 = vrot.slane %v8017_v47, 2  ;;  %v8024_v45 = vmax.f32 %v8022_v31, %v8023_v1  ;;  %v8003_v22 = vmax.f32 %v8001_v56, %v8002_v11  ;;  %v8009_v52 = vrot.slane %v8008_v49, 4  ;;  %v9750_v56 = vld [vmem:[%s15735_s9 + $0x150] sm:$0xff]  ;;  %8698 = vmatpush1.msra.mxu0 %v9752_v26  ;;  %v9748_v1 = vld [vmem:[%s15735_s9 + $0x140] sm:$0xff]  ;;  %v9747_v11 = vld [vmem:[%s15735_s9 + $0x138] sm:$0xff] }
 0x5e9   : > { %v6932_v6 = vpop.f32.mrf.mxu0  ;;  %8699 = vmatprep.subr.mxu0 %v9751_v28  ;;  %v9746_v4 = vld [vmem:[%s15735_s9 + $0x130] sm:$0xff]  ;;  %v9745_v57 = vld [vmem:[%s15735_s9 + $0x128] sm:$0xff] }
 0x5ea   : > { %v7441_v32 = vpop.f32.mrf.mxu1  ;;  %v8025_v43 = vrot.slane %v8024_v45, 2  ;;  %v8004_v8 = vrot.slane %v8003_v22, 2  ;;  %v8010_v12 = vmax.f32 %v8008_v49, %v8009_v52  ;;  %v8019_v63 = vmax.f32 %v8017_v47, %v8018_v5  ;;  %v9749_v47 = vld [vmem:[%s15735_s9 + $0x148] sm:$0xff]  ;;  %8700 = vmatpush1.msra.mxu0 %v9750_v56  ;;  %v9743_v49 = vld [vmem:[%s15735_s9 + $0x118] sm:$0xff] }
 0x5eb   : > { %v7442_v9 = vadd.f32 %v7441_v32, %v6932_v6  ;;  %8701 = vmatprep.subr.mxu0 %v9749_v47  ;;  %v9741_v5 = vld [vmem:[%s15735_s9 + $0x108] sm:$0xff] }
 0x5ec   : > { %v8026_v19 = vmax.f32 %v8024_v45, %v8025_v43  ;;  %v8005_v46 = vmax.f32 %v8003_v22, %v8004_v8  ;;  %v8011_v24 = vrot.slane %v8010_v12, 2  ;;  %v8020_v16 = vrot.slane %v8019_v63, 1  ;;  %8702 = vmatpush1.msra.mxu0 %v9748_v1  ;;  %v9740_v45 = vld [vmem:[%s15735_s9 + $0x100] sm:$0xff] }
 0x5ed   : > { %v7486_v30 = vadd.f32 %v15122_v36, %v7442_v9  ;;  %v8160_v36 = vsel %vm6434_vm9, %v15253_v40, %v8159_v2  ;;  %8703 = vmatprep.subr.mxu0 %v9747_v11  ;;  %v15451_v43 = vld [vmem:[%s15734_s8] ss:$0 sm:$0xff] }
 0x5ee   : > { %v8012_v29 = vmax.f32 %v8010_v12, %v8011_v24  ;;  %v8006_v27 = vrot.slane %v8005_v46, 1  ;;  %v8027_v37 = vrot.slane %v8026_v19, 1  ;;  %v8021_v50 = vmax.f32 %v8019_v63, %v8020_v16  ;;  %8704 = vmatpush1.msra.mxu0 %v9746_v4 }
 0x5ef   : > { %v7517_v7 = vmax.f32 %v7486_v30, 0.0  ;;  %8705 = vmatprep.subr.mxu0 %v9745_v57 }
 0x5f0   : > { %v8013_v53 = vrot.slane %v8012_v29, 1  ;;  %v8007_v51 = vmax.f32 %v8005_v46, %v8006_v27  ;;  %v8028_v23 = vmax.f32 %v8026_v19, %v8027_v37  ;;  %8706 = vmatpush1.msra.mxu0 %v9744_v41 }
 0x5f1   : > { %v8029_v48 = vsel %vm7608_vm12, %v7517_v7, -inf  ;;  %8707 = vmatprep.subr.mxu0 %v9743_v49 }
 0x5f2   : > { %v8030_v18 = vrot.slane %v8029_v48, 4  ;;  %v8014_v13 = vmax.f32 %v8012_v29, %v8013_v53  ;;  %v8161_v44 = vsel %vm6436_vm10, %v8007_v51, %v8160_v36  ;;  %8708 = vmatpush1.msra.mxu0 %v9742_v21 }
 0x5f3   : > { %10732 = vmatprep.mubr.msk.f32.mxu0 %vm8165_vm13, %v8161_v44  ;;  %8709 = vmatprep.subr.mxu0 %v9741_v5 }
 0x5f4   : > { %v8031_v35 = vmax.f32 %v8029_v48, %v8030_v18  ;;  %v8336_v40 = vsel %vm6424_vm4, %v8014_v13, %v8007_v51  ;;  %v8162_v42 = vsel %vm6424_vm4, %v8021_v50, %v8014_v13  ;;  %8710 = vmatpush1.msra.mxu0 %v9740_v45 }
 0x5f5   : > { %v8337_v25 = vsel %vm6426_vm5, %v8021_v50, %v8336_v40  ;;  %v8163_v10 = vsel %vm6426_vm5, %v8028_v23, %v8162_v42 }
 0x5f6   : > { %v8032_v17 = vrot.slane %v8031_v35, 2  ;;  %v8338_v59 = vsel %vm6428_vm6, %v8028_v23, %v8337_v25 }
 0x5f7   : > { %10761 = vmatmul.mubr.msk.f32.gmra.mxu1 %vm8165_vm13, %v8338_v59 }
 0x5f8   : > { %v8033_v20 = vmax.f32 %v8031_v35, %v8032_v17  ;;  %8833 = vmatprep.mubr.f32.mxu1 %v16018_v60 }
 0x5fa   : > { %v8034_v62 = vrot.slane %v8033_v20, 1 }
 0x5fc   : > { %v8035_v3 = vmax.f32 %v8033_v20, %v8034_v62 }
 0x5fe   : > { %v8164_v31 = vsel %vm6428_vm6, %v8035_v3, %v8163_v10  ;;  %v10753_v52 = vpop.f32.mrf.mxu1 }
 0x5ff   : > { %10733 = vmatmul.mubr.msk.f32.gmra.mxu0 %vm8165_vm13, %v8164_v31 }
 0x600   : > { %8743 = vmatprep.mubr.f32.mxu0 %v16018_v60  ;;  %v8421_v32 = vpop.f32.mrf.mxu1 }
 0x609   : > { %v10725_v22 = vpop.f32.mrf.mxu0 }
 0x60a   : > { %v8427_v12 = vadd.f32 %v10753_v52, %v10725_v22 }
 0x60b   : > { %v8248_v6 = vpop.f32.mrf.mxu0 }
 0x60c   : > { %v8422_v9 = vadd.f32 %v8421_v32, %v8248_v6  ;;  %v8467_v30 = vadd.f32 %v15451_v43, %v8427_v12 }
 0x60e   : > { %v8466_v8 = vadd.f32 %v15451_v43, %v8422_v9  ;;  %v8474_v19 = vmax.f32 %v8467_v30, 0.0 }
 0x610   : > { %v8473_v63 = vmax.f32 %v8466_v8, 0.0  ;;  %v8487_v7 = vcombine.high %v8474_v19, %v8474_v19  ;;  %v8513_v29 = vsel %vm8498_vm14, %v8474_v19, -inf }
 0x611   : > { %v8514_v16 = vrot.slane %v8513_v29, 4 }
 0x612   : > { %v8486_v58 = vcombine.high %v8473_v63, %v8473_v63  ;;  %v8499_v24 = vsel %vm8498_vm14, %v8473_v63, -inf  ;;  %v8520_v48 = vsel %vm8498_vm14, %v8487_v7, -inf }
 0x613   : > { %v8500_v2 = vrot.slane %v8499_v24, 4  ;;  %v8515_v18 = vmax.f32 %v8513_v29, %v8514_v16  ;;  %v8521_v51 = vrot.slane %v8520_v48, 4 }
 0x614   : > { %v8506_v46 = vsel %vm8498_vm14, %v8486_v58, -inf }
 0x615   : > { %v8507_v27 = vrot.slane %v8506_v46, 4  ;;  %v8501_v53 = vmax.f32 %v8499_v24, %v8500_v2  ;;  %v8516_v44 = vrot.slane %v8515_v18, 2  ;;  %v8522_v50 = vmax.f32 %v8520_v48, %v8521_v51 }
 0x617   : > { %v8508_v37 = vmax.f32 %v8506_v46, %v8507_v27  ;;  %v8502_v13 = vrot.slane %v8501_v53, 2  ;;  %v8517_v59 = vmax.f32 %v8515_v18, %v8516_v44  ;;  %v8523_v14 = vrot.slane %v8522_v50, 2 }
 0x619   : > { %v8509_v55 = vrot.slane %v8508_v37, 2  ;;  %v8503_v34 = vmax.f32 %v8501_v53, %v8502_v13  ;;  %v8518_v47 = vrot.slane %v8517_v59, 1  ;;  %v8524_v1 = vmax.f32 %v8522_v50, %v8523_v14 }
 0x61b   : > { %v8510_v40 = vmax.f32 %v8508_v37, %v8509_v55  ;;  %v8504_v3 = vrot.slane %v8503_v34, 1  ;;  %v8525_v6 = vrot.slane %v8524_v1, 1  ;;  %v8519_v8 = vmax.f32 %v8517_v59, %v8518_v47 }
 0x61d   : > { %v8511_v0 = vrot.slane %v8510_v40, 1  ;;  %v8505_v5 = vmax.f32 %v8503_v34, %v8504_v3  ;;  %v8526_v24 = vmax.f32 %v8524_v1, %v8525_v6 }
 0x61f   : > { %v8512_v11 = vmax.f32 %v8510_v40, %v8511_v0 }
 0x621   : > { %v8757_v32 = vsel %vm6424_vm4, %v8512_v11, %v8505_v5 }
 0x622   : > { %v8758_v58 = vsel %vm6426_vm5, %v8519_v8, %v8757_v32 }
 0x623   : > { %v8759_v16 = vsel %vm6428_vm6, %v8526_v24, %v8758_v58 }
 0x62a   : > { %v10756_v36 = vpop.f32.mrf.mxu1 }
 0x62c   : > { %v8431_v17 = vpop.f32.mrf.mxu1 }
 0x631   : > { %v10728_v39 = vpop.f32.mrf.mxu0 }
 0x632   : > { %v8437_v35 = vadd.f32 %v10756_v36, %v10728_v39 }
 0x633   : > { %v8258_v23 = vpop.f32.mrf.mxu0 }
 0x634   : > { %v8469_v25 = vadd.f32 %v15451_v43, %v8437_v35  ;;  %v8432_v54 = vadd.f32 %v8431_v17, %v8258_v23 }
 0x636   : > { %v8476_v33 = vmax.f32 %v8469_v25, 0.0  ;;  %v8468_v20 = vadd.f32 %v15451_v43, %v8432_v54  ;;  %v8667_v54 = vsel %vm6424_vm4, %v8519_v8, %v8512_v11 }
 0x638   : > { %v8489_v62 = vcombine.high %v8476_v33, %v8476_v33  ;;  %v8541_v42 = vsel %vm8498_vm14, %v8476_v33, -inf  ;;  %v8475_v38 = vmax.f32 %v8468_v20, 0.0 }
 0x639   : > { %v8542_v15 = vrot.slane %v8541_v42, 4 }
 0x63a   : > { %v8548_v61 = vsel %vm8498_vm14, %v8489_v62, -inf  ;;  %v8488_v10 = vcombine.high %v8475_v38, %v8475_v38  ;;  %v8527_v26 = vsel %vm8498_vm14, %v8475_v38, -inf }
 0x63b   : > { %v8543_v31 = vmax.f32 %v8541_v42, %v8542_v15  ;;  %v8549_v28 = vrot.slane %v8548_v61, 4  ;;  %v8528_v56 = vrot.slane %v8527_v26, 4  ;;  %v8668_v42 = vsel %vm6426_vm5, %v8526_v24, %v8667_v54  ;;  %v9049_v54 = vld [vmem:[%s15737_s11 + $0x68] sm:$0xff] }
 0x63c   : > { %v8534_v4 = vsel %vm8498_vm14, %v8488_v10, -inf }
 0x63d   : > { %v8544_v57 = vrot.slane %v8543_v31, 2  ;;  %v8550_v41 = vmax.f32 %v8548_v61, %v8549_v28  ;;  %v8529_v49 = vmax.f32 %v8527_v26, %v8528_v56  ;;  %v8535_v21 = vrot.slane %v8534_v4, 4 }
 0x63f   : > { %v8551_v45 = vrot.slane %v8550_v41, 2  ;;  %v8530_v22 = vrot.slane %v8529_v49, 2  ;;  %v8536_v52 = vmax.f32 %v8534_v4, %v8535_v21  ;;  %v8545_v9 = vmax.f32 %v8543_v31, %v8544_v57 }
 0x641   : > { %v8552_v12 = vmax.f32 %v8550_v41, %v8551_v45  ;;  %v8531_v63 = vmax.f32 %v8529_v49, %v8530_v22  ;;  %v8537_v30 = vrot.slane %v8536_v52, 2  ;;  %v8546_v7 = vrot.slane %v8545_v9, 1 }
 0x643   : > { %v8532_v19 = vrot.slane %v8531_v63, 1  ;;  %v8538_v46 = vmax.f32 %v8536_v52, %v8537_v30  ;;  %v8553_v29 = vrot.slane %v8552_v12, 1  ;;  %v8547_v53 = vmax.f32 %v8545_v9, %v8546_v7 }
 0x645   : > { %v8533_v27 = vmax.f32 %v8531_v63, %v8532_v19  ;;  %v8539_v2 = vrot.slane %v8538_v46, 1  ;;  %v8554_v18 = vmax.f32 %v8552_v12, %v8553_v29 }
 0x647   : > { %v8540_v48 = vmax.f32 %v8538_v46, %v8539_v2  ;;  %v8760_v37 = vsel %vm6430_vm7, %v8533_v27, %v8759_v16  ;;  %v8669_v61 = vsel %vm6428_vm6, %v8533_v27, %v8668_v42  ;;  %v9045_v42 = vld [vmem:[%s15737_s11 + $0x48] sm:$0xff] }
 0x649   : > { %v8761_v51 = vsel %vm6432_vm8, %v8540_v48, %v8760_v37  ;;  %v8670_v57 = vsel %vm6430_vm7, %v8540_v48, %v8669_v61  ;;  %v9043_v61 = vld [vmem:[%s15737_s11 + $0x38] sm:$0xff] }
 0x64a   : > { %v8762_v36 = vsel %vm6434_vm9, %v8547_v53, %v8761_v51  ;;  %v8671_v52 = vsel %vm6432_vm8, %v8547_v53, %v8670_v57  ;;  %v9038_v57 = vld [vmem:[%s15737_s11 + $0x10] sm:$0xff] }
 0x64b   : > { %v8763_v55 = vsel %vm6436_vm10, %v8554_v18, %v8762_v36  ;;  %v8672_v8 = vsel %vm6434_vm9, %v8554_v18, %v8671_v52 }
 0x64c   : > { %8834 = vmatmul.mubr.f32.vlgmr.msra.gmra.mxu1 %v8763_v55 }
 0x64d   : > { %8839 = vmatprep.mubr.f32.mxu1 %v16018_v60 }
 0x651   : > { %v10759_v39 = vpop.f32.mrf.mxu1 }
 0x653   : > { %v8441_v44 = vpop.f32.mrf.mxu1 }
 0x660   : > { %v10731_v13 = vpop.f32.mrf.mxu0 }
 0x661   : > { %v8447_v35 = vadd.f32 %v10759_v39, %v10731_v13 }
 0x662   : > { %v8268_v50 = vpop.f32.mrf.mxu0 }
 0x663   : > { %v8471_v17 = vadd.f32 %v15451_v43, %v8447_v35  ;;  %v8442_v23 = vadd.f32 %v8441_v44, %v8268_v50 }
 0x665   : > { %v8478_v40 = vmax.f32 %v8471_v17, 0.0  ;;  %v8470_v25 = vadd.f32 %v15451_v43, %v8442_v23  ;;  %v9067_v17 = vld [vmem:[%s15737_s11 + $0xf8] sm:$0xff]  ;;  %v9066_v23 = vld [vmem:[%s15737_s11 + $0xf0] sm:$0xff] }
 0x666   : > { %10151 = vmatprep.subr.mxu1 %v9067_v17 }
 0x667   : > { %v8491_v34 = vcombine.high %v8478_v40, %v8478_v40  ;;  %v8569_v33 = vsel %vm8498_vm14, %v8478_v40, -inf  ;;  %v8477_v20 = vmax.f32 %v8470_v25, 0.0  ;;  %v9050_v40 = vld [vmem:[%s15737_s11 + $0x70] sm:$0xff]  ;;  %v9065_v25 = vld [vmem:[%s15737_s11 + $0xe8] sm:$0xff] }
 0x668   : > { %v8570_v59 = vrot.slane %v8569_v33, 4 }
 0x669   : > { %v8576_v14 = vsel %vm8498_vm14, %v8491_v34, -inf  ;;  %v8490_v0 = vcombine.high %v8477_v20, %v8477_v20  ;;  %v8555_v62 = vsel %vm8498_vm14, %v8477_v20, -inf  ;;  %v9064_v34 = vld [vmem:[%s15737_s11 + $0xe0] sm:$0xff]  ;;  %v9063_v20 = vld [vmem:[%s15737_s11 + $0xd8] sm:$0xff] }
 0x66a   : > { %v8571_v38 = vmax.f32 %v8569_v33, %v8570_v59  ;;  %v8577_v15 = vrot.slane %v8576_v14, 4  ;;  %v8556_v3 = vrot.slane %v8555_v62, 4  ;;  %v9048_v33 = vld [vmem:[%s15737_s11 + $0x60] sm:$0xff]  ;;  %v9047_v59 = vld [vmem:[%s15737_s11 + $0x58] sm:$0xff] }
 0x66b   : > { %v8562_v10 = vsel %vm8498_vm14, %v8490_v0, -inf  ;;  %v9046_v0 = vld [vmem:[%s15737_s11 + $0x50] sm:$0xff] }
 0x66c   : > { %v8572_v26 = vrot.slane %v8571_v38, 2  ;;  %v8578_v31 = vmax.f32 %v8576_v14, %v8577_v15  ;;  %v8557_v28 = vmax.f32 %v8555_v62, %v8556_v3  ;;  %v8563_v56 = vrot.slane %v8562_v10, 4  ;;  %v9062_v14 = vld [vmem:[%s15737_s11 + $0xd0] sm:$0xff]  ;;  %v9061_v62 = vld [vmem:[%s15737_s11 + $0xc8] sm:$0xff]  ;;  %v9044_v15 = vld [vmem:[%s15737_s11 + $0x40] sm:$0xff] }
 0x66d   : > { %v9059_v3 = vld [vmem:[%s15737_s11 + $0xb8] sm:$0xff] }
 0x66e   : > { %v8573_v47 = vmax.f32 %v8571_v38, %v8572_v26  ;;  %v8579_v1 = vrot.slane %v8578_v31, 2  ;;  %v8558_v11 = vrot.slane %v8557_v28, 2  ;;  %v8564_v4 = vmax.f32 %v8562_v10, %v8563_v56  ;;  %v9060_v38 = vld [vmem:[%s15737_s11 + $0xc0] sm:$0xff]  ;;  %v9058_v10 = vld [vmem:[%s15737_s11 + $0xb0] sm:$0xff] }
 0x66f   : > { %v9042_v26 = vld [vmem:[%s15737_s11 + $0x30] sm:$0xff]  ;;  %v9056_v56 = vld [vmem:[%s15737_s11 + $0xa0] sm:$0xff] }
 0x670   : > { %v8559_v41 = vmax.f32 %v8557_v28, %v8558_v11  ;;  %v8565_v49 = vrot.slane %v8564_v4, 2  ;;  %v8580_v21 = vmax.f32 %v8578_v31, %v8579_v1  ;;  %v8574_v5 = vrot.slane %v8573_v47, 1  ;;  %v9057_v31 = vld [vmem:[%s15737_s11 + $0xa8] sm:$0xff]  ;;  %v9055_v1 = vld [vmem:[%s15737_s11 + $0x98] sm:$0xff] }
 0x671   : > { %v9041_v28 = vld [vmem:[%s15737_s11 + $0x28] sm:$0xff]  ;;  %v9039_v11 = vld [vmem:[%s15737_s11 + $0x18] sm:$0xff] }
 0x672   : > { %v8560_v45 = vrot.slane %v8559_v41, 1  ;;  %v8566_v22 = vmax.f32 %v8564_v4, %v8565_v49  ;;  %v8581_v6 = vrot.slane %v8580_v21, 1  ;;  %v8575_v12 = vmax.f32 %v8573_v47, %v8574_v5  ;;  %v9040_v47 = vld [vmem:[%s15737_s11 + $0x20] sm:$0xff]  ;;  %v9054_v4 = vld [vmem:[%s15737_s11 + $0x90] sm:$0xff] }
 0x674   : > { %v8561_v32 = vmax.f32 %v8559_v41, %v8560_v45  ;;  %v8567_v9 = vrot.slane %v8566_v22, 1  ;;  %v8582_v58 = vmax.f32 %v8580_v21, %v8581_v6  ;;  %v8848_v41 = vlaneseq  ;;  %v8846_v6 = vld [vmem:[%s15736_s10] sm:$0x3] }
 0x676   : > { %v8568_v63 = vmax.f32 %v8566_v22, %v8567_v9  ;;  %v8673_v30 = vsel %vm6436_vm10, %v8561_v32, %v8672_v8  ;;  %v15580_v21 = vshrl.u32 %v8848_v41, 7 }
 0x677   : > { %8744 = vmatmul.mubr.f32.vlgmr.msra.gmra.mxu0 %v8673_v30 }
 0x678   : > { %v8764_v19 = vsel %vm6424_vm4, %v8568_v63, %v8561_v32  ;;  %8749 = vmatprep.mubr.f32.mxu0 %v16018_v60  ;;  %v8674_v46 = vsel %vm6424_vm4, %v8575_v12, %v8568_v63  ;;  %v8854_v45 = vsub.s32 1, %v15580_v21  ;;  %v8850_v32 = vsub.s32 0, %v15580_v21 }
 0x679   : > { %v8765_v24 = vsel %vm6426_vm5, %v8575_v12, %v8764_v19  ;;  %v8675_v7 = vsel %vm6426_vm5, %v8582_v58, %v8674_v46 }
 0x67a   : > { %v8766_v29 = vsel %vm6428_vm6, %v8582_v58, %v8765_v24  ;;  %v8855_v8 = vrot.slane %v8846_v6, %v8854_v45  ;;  %v8851_v63 = vrot.slane %v8846_v6, %v8850_v32 }
 0x67b   : > { %8840 = vmatmul.mubr.f32.gmra.mxu1 %v8766_v29 }
 0x6b7   : > { %v10762_v27 = vpop.f32.mrf.mxu1 }
 0x6b9   : > { %v8451_v16 = vpop.f32.mrf.mxu1 }
 0x6bf   : > { %v10734_v2 = vpop.f32.mrf.mxu0 }
 0x6c1   : > { %v8278_v48 = vpop.f32.mrf.mxu0 }
 0x6c2   : > { %v8452_v37 = vadd.f32 %v8451_v16, %v8278_v48 }
 0x6c4   : > { %v8472_v53 = vadd.f32 %v15451_v43, %v8452_v37  ;;  %v9051_v43 = vld [vmem:[%s15737_s11 + $0x78] sm:$0xff] }
 0x6c5   : > { %10152 = vmatpush3.msra.mxu1 %v9051_v43 }
 0x6c6   : > { %v8479_v18 = vmax.f32 %v8472_v53, 0.0  ;;  %10153 = vmatprep.subr.mxu1 %v9066_v23 }
 0x6c7   : > { %10154 = vmatpush3.msra.mxu1 %v9050_v40 }
 0x6c8   : > { %v8583_v51 = vsel %vm8498_vm14, %v8479_v18, -inf  ;;  %10155 = vmatprep.subr.mxu1 %v9065_v25 }
 0x6c9   : > { %v8584_v36 = vrot.slane %v8583_v51, 4  ;;  %10156 = vmatpush3.msra.mxu1 %v9049_v54 }
 0x6ca   : > { %10157 = vmatprep.subr.mxu1 %v9064_v34 }
 0x6cb   : > { %v8585_v55 = vmax.f32 %v8583_v51, %v8584_v36  ;;  %10158 = vmatpush3.msra.mxu1 %v9048_v33 }
 0x6cc   : > { %10159 = vmatprep.subr.mxu1 %v9063_v20 }
 0x6cd   : > { %v8586_v39 = vrot.slane %v8585_v55, 2  ;;  %10160 = vmatpush3.msra.mxu1 %v9047_v59 }
 0x6ce   : > { %10161 = vmatprep.subr.mxu1 %v9062_v14 }
 0x6cf   : > { %v8587_v13 = vmax.f32 %v8585_v55, %v8586_v39  ;;  %10162 = vmatpush3.msra.mxu1 %v9046_v0 }
 0x6d0   : > { %10163 = vmatprep.subr.mxu1 %v9061_v62 }
 0x6d1   : > { %v8588_v35 = vrot.slane %v8587_v13, 1  ;;  %10164 = vmatpush3.msra.mxu1 %v9045_v42 }
 0x6d2   : > { %10165 = vmatprep.subr.mxu1 %v9060_v38  ;;  %v8928_v38 = vmul.u32 2, %v15580_v21 }
 0x6d3   : > { %v8589_v44 = vmax.f32 %v8587_v13, %v8588_v35  ;;  %10166 = vmatpush3.msra.mxu1 %v9044_v15 }
 0x6d4   : > { %10167 = vmatprep.subr.mxu1 %v9059_v3 }
 0x6d5   : > { %v8676_v50 = vsel %vm6428_vm6, %v8589_v44, %v8675_v7  ;;  %10168 = vmatpush3.msra.mxu1 %v9043_v61 }
 0x6d6   : > { %8750 = vmatmul.mubr.f32.gmra.mxu0 %v8676_v50  ;;  %10169 = vmatprep.subr.mxu1 %v9058_v10 }
 0x6d7   : > { %9017 = vmatprep.mubr.f32.mxu0 %v16018_v60  ;;  %10170 = vmatpush3.msra.mxu1 %v9042_v26 }
 0x6d8   : > { %10171 = vmatprep.subr.mxu1 %v9057_v31 }
 0x6d9   : > { %10172 = vmatpush3.msra.mxu1 %v9041_v28 }
 0x6da   : > { %10173 = vmatprep.subr.mxu1 %v9056_v56 }
 0x6db   : > { %10174 = vmatpush3.msra.mxu1 %v9040_v47  ;;  %v8925_v47 = vand.u32 127, %v8848_v41 }
 0x6dc   : > { %10175 = vmatprep.subr.mxu1 %v9055_v1 }
 0x6dd   : > { %10176 = vmatpush3.msra.mxu1 %v9039_v11  ;;  %vm8929_vm15 = vcmp.ge.s32.totalorder %v8925_v47, %v8928_v38 }
 0x6de   : > { %10177 = vmatprep.subr.mxu1 %v9054_v4  ;;  %v8930_v4 = vadd.s32 1, %v8928_v38 }
 0x6df   : > { %10178 = vmatpush3.msra.mxu1 %v9038_v57 }
 0x6e0   : > { %vm8931_vm0 = vcmp.lt.s32.totalorder %v8925_v47, %v8930_v4 }
 0x6e1   : > { %vm8932_vm1 = vmand %vm8929_vm15, %vm8931_vm0 }
 0x70c   : > { %v8835_v5 = vpop.f32.mrf.mxu1 }
 0x70e   : > { %v8837_v52 = vpop.f32.mrf.mxu1 }
 0x737   : > { %v8745_v49 = vpop.f32.mrf.mxu0 }
 0x738   : > { %v8836_v12 = vadd.f32 %v8835_v5, %v8745_v49 }
 0x739   : > { %v8747_v22 = vpop.f32.mrf.mxu0 }
 0x73a   : > { %v8838_v9 = vadd.f32 %v8837_v52, %v8747_v22  ;;  %v8858_v58 = vadd.f32 %v8851_v63, %v8836_v12 }
 0x73b   : > { %v8841_v51 = vpop.f32.mrf.mxu1 }
 0x73c   : > { %v8859_v30 = vadd.f32 %v8855_v8, %v8838_v9  ;;  %v8862_v46 = vmax.f32 %v8858_v58, 0.0 }
 0x73d   : > { %v8843_v50 = vpop.f32.mrf.mxu1 }
 0x73e   : > { %v8863_v19 = vmax.f32 %v8859_v30, 0.0 }
 0x740   : > { %v9772_v24 = vcombine.low %v8863_v19, %v8863_v19  ;;  %v9773_v7 = vcombine.high %v8863_v19, %v8863_v19  ;;  %v8870_v29 = vcombine.low %v8862_v46, %v8863_v19  ;;  %v8871_v27 = vcombine.high %v8862_v46, %v8863_v19 }
 0x742   : > { %v8889_v2 = vsel %vm8498_vm14, %v9772_v24, -inf  ;;  %v8903_v16 = vsel %vm8498_vm14, %v9773_v7, -inf  ;;  %v8882_v48 = vsel %vm8498_vm14, %v8870_v29, -inf  ;;  %v8896_v37 = vsel %vm8498_vm14, %v8871_v27, -inf  ;;  %v9053_v27 = vld [vmem:[%s15737_s11 + $0x88] sm:$0xff] }
 0x743   : > { %v8890_v53 = vrot.slane %v8889_v2, 4  ;;  %v8904_v18 = vrot.slane %v8903_v16, 4  ;;  %v8883_v36 = vrot.slane %v8882_v48, 4  ;;  %v8897_v55 = vrot.slane %v8896_v37, 4  ;;  %10179 = vmatprep.subr.mxu1 %v9053_v27 }
 0x744   : > { %v8933_v29 = vsel %vm8932_vm1, 1.0, %v16018_v60 }
 0x745   : > { %v8891_v35 = vmax.f32 %v8889_v2, %v8890_v53  ;;  %v8905_v44 = vmax.f32 %v8903_v16, %v8904_v18  ;;  %v8884_v43 = vmax.f32 %v8882_v48, %v8883_v36  ;;  %v8898_v23 = vmax.f32 %v8896_v37, %v8897_v55  ;;  %v9037_v2 = vld [vmem:[%s15737_s11 + $0x8] sm:$0xff]  ;;  %v9052_v16 = vld [vmem:[%s15737_s11 + $0x80] sm:$0xff]  ;;  %v9160_v37 = vld [vmem:[%s15739_s13 + $0x78] sm:$0xff] }
 0x746   : > { %10180 = vmatpush3.msra.mxu1 %v9037_v2  ;;  %v9036_v48 = vld [vmem:[%s15737_s11] sm:$0xff]  ;;  %v9159_v53 = vld [vmem:[%s15739_s13 + $0x70] sm:$0xff]  ;;  %v9158_v18 = vld [vmem:[%s15739_s13 + $0x68] sm:$0xff] }
 0x747   : > { %v8892_v34 = vrot.slane %v8891_v35, 2  ;;  %v8906_v33 = vrot.slane %v8905_v44, 2  ;;  %v8885_v20 = vrot.slane %v8884_v43, 2  ;;  %v8899_v59 = vrot.slane %v8898_v23, 2  ;;  %10181 = vmatprep.subr.mxu1 %v9052_v16  ;;  %v9156_v36 = vld [vmem:[%s15739_s13 + $0x58] sm:$0xff]  ;;  %v9155_v55 = vld [vmem:[%s15739_s13 + $0x50] sm:$0xff] }
 0x748   : > { %10182 = vmatpush3.msra.mxu1 %v9036_v48 }
 0x749   : > { %v8893_v15 = vmax.f32 %v8891_v35, %v8892_v34  ;;  %v8907_v3 = vmax.f32 %v8905_v44, %v8906_v33  ;;  %v8886_v26 = vmax.f32 %v8884_v43, %v8885_v20  ;;  %v8900_v31 = vmax.f32 %v8898_v23, %v8899_v59  ;;  %v9152_v35 = vld [vmem:[%s15739_s13 + $0x38] sm:$0xff]  ;;  %v9151_v44 = vld [vmem:[%s15739_s13 + $0x30] sm:$0xff]  ;;  %v9146_v34 = vld [vmem:[%s15739_s13 + $0x8] sm:$0xff] }
 0x74a   : > { %v9145_v33 = vld [vmem:[%s15739_s13] sm:$0xff] }
 0x74b   : > { %v8894_v57 = vrot.slane %v8893_v15, 1  ;;  %v8908_v49 = vrot.slane %v8907_v3, 1  ;;  %v8887_v5 = vrot.slane %v8886_v26, 1  ;;  %v8901_v45 = vrot.slane %v8900_v31, 1  ;;  %v9779_v59 = vld [vmem:[%s15738_s12] ss:$0 sm:$0xff] }
 0x74d   : > { %v8895_v32 = vmax.f32 %v8893_v15, %v8894_v57  ;;  %v8909_v9 = vmax.f32 %v8907_v3, %v8908_v49  ;;  %v8902_v12 = vmax.f32 %v8900_v31, %v8901_v45 }
 0x74f   : > { %v8942_v19 = vsel %vm6424_vm4, %v8909_v9, %v8895_v32 }
 0x796   : > { %v8751_v39 = vpop.f32.mrf.mxu0 }
 0x797   : > { %v8842_v13 = vadd.f32 %v8841_v51, %v8751_v39  ;;  %v9157_v51 = vld [vmem:[%s15739_s13 + $0x60] sm:$0xff]  ;;  %v9154_v39 = vld [vmem:[%s15739_s13 + $0x48] sm:$0xff] }
 0x798   : > { %v8753_v17 = vpop.f32.mrf.mxu0 }
 0x799   : > { %v8860_v40 = vadd.f32 %v8851_v63, %v8842_v13  ;;  %v8844_v25 = vadd.f32 %v8843_v50, %v8753_v17  ;;  %v9153_v13 = vld [vmem:[%s15739_s13 + $0x40] sm:$0xff]  ;;  %v9150_v50 = vld [vmem:[%s15739_s13 + $0x28] sm:$0xff] }
 0x79a   : > { %v9149_v17 = vld [vmem:[%s15739_s13 + $0x20] sm:$0xff] }
 0x79b   : > { %v8861_v54 = vadd.f32 %v8855_v8, %v8844_v25  ;;  %v8864_v14 = vmax.f32 %v8860_v40, 0.0  ;;  %v8888_v8 = vmax.f32 %v8886_v26, %v8887_v5  ;;  %v9148_v25 = vld [vmem:[%s15739_s13 + $0x18] sm:$0xff] }
 0x79d   : > { %v8865_v0 = vmax.f32 %v8861_v54, 0.0  ;;  %v8940_v46 = vsel %vm6424_vm4, %v8902_v12, %v8888_v8  ;;  %v9147_v54 = vld [vmem:[%s15739_s13 + $0x10] sm:$0xff]  ;;  %vm10915_vm4 = vmmov 0  }
 0x79f   : > { %v8872_v62 = vcombine.low %v8864_v14, %v8865_v0  ;;  %v9774_v42 = vcombine.low %v8865_v0, %v8865_v0 }
 0x7a1   : > { %v8910_v61 = vsel %vm8498_vm14, %v8872_v62, -inf  ;;  %v8917_v10 = vsel %vm8498_vm14, %v9774_v42, -inf  ;;  %v9780_v42 = vld [vmem:[%s15740_s14] ss:$0 sm:$0xff] }
 0x7a2   : > { %v8911_v28 = vrot.slane %v8910_v61, 4  ;;  %v8918_v56 = vrot.slane %v8917_v10, 4 }
 0x7a4   : > { %v8912_v1 = vmax.f32 %v8910_v61, %v8911_v28  ;;  %v8919_v11 = vmax.f32 %v8917_v10, %v8918_v56 }
 0x7a6   : > { %v8913_v22 = vrot.slane %v8912_v1, 2  ;;  %v8920_v21 = vrot.slane %v8919_v11, 2 }
 0x7a8   : > { %v8914_v52 = vmax.f32 %v8912_v1, %v8913_v22  ;;  %v8921_v6 = vmax.f32 %v8919_v11, %v8920_v21 }
 0x7aa   : > { %v8915_v63 = vrot.slane %v8914_v52, 1  ;;  %v8922_v30 = vrot.slane %v8921_v6, 1 }
 0x7ac   : > { %v8923_v41 = vmax.f32 %v8921_v6, %v8922_v30  ;;  %v8916_v58 = vmax.f32 %v8914_v52, %v8915_v63 }
 0x7ae   : > { %v8943_v24 = vsel %vm6426_vm5, %v8923_v41, %v8942_v19  ;;  %v8941_v7 = vsel %vm6426_vm5, %v8916_v58, %v8940_v46  ;;  %vm9238_vm5 = vcmask 41984  }
 0x7af   : > { %9775 = vmatprep.subr.msk.mxu0 %vm8948_vm2, %v8943_v24 }
 0x7b0   : > { %9776 = vmatpush1.msk.msra.mxu0 %vm8948_vm2, %v8941_v7 }
 0x7b1   : > { %9777 = vmatmul.mubr.msk.f32.vlgmr.msra.gmra.mxu0 %vm8944_vm3, %v8933_v29  ;;  %10763 = vmatprep.subr.mxu0 %v16018_v60 }
 0x7b2   : > { %10764 = vmatpush3.msra.mxu0 %v9160_v37  ;;  %10795 = vmatprep.mubr.msk.f32.mxu0 %vm10915_vm4, %v16018_v60 }
 0x7b3   : > { %10765 = vmatprep.subr.mxu0 %v16018_v60 }
 0x7b4   : > { %10766 = vmatpush3.msra.mxu0 %v9159_v53 }
 0x7b5   : > { %10767 = vmatprep.subr.mxu0 %v16018_v60 }
 0x7b6   : > { %10768 = vmatpush3.msra.mxu0 %v9158_v18 }
 0x7b7   : > { %10769 = vmatprep.subr.mxu0 %v16018_v60 }
 0x7b8   : > { %10770 = vmatpush3.msra.mxu0 %v9157_v51 }
 0x7b9   : > { %10771 = vmatprep.subr.mxu0 %v16018_v60 }
 0x7ba   : > { %10772 = vmatpush3.msra.mxu0 %v9156_v36 }
 0x7bb   : > { %10773 = vmatprep.subr.mxu0 %v16018_v60 }
 0x7bc   : > { %10774 = vmatpush3.msra.mxu0 %v9155_v55 }
 0x7bd   : > { %10775 = vmatprep.subr.mxu0 %v16018_v60 }
 0x7be   : > { %10776 = vmatpush3.msra.mxu0 %v9154_v39 }
 0x7bf   : > { %10777 = vmatprep.subr.mxu0 %v16018_v60 }
 0x7c0   : > { %10778 = vmatpush3.msra.mxu0 %v9153_v13 }
 0x7c1   : > { %10779 = vmatprep.subr.mxu0 %v16018_v60 }
 0x7c2   : > { %10780 = vmatpush3.msra.mxu0 %v9152_v35 }
 0x7c3   : > { %10781 = vmatprep.subr.mxu0 %v16018_v60 }
 0x7c4   : > { %10782 = vmatpush3.msra.mxu0 %v9151_v44 }
 0x7c5   : > { %10783 = vmatprep.subr.mxu0 %v16018_v60 }
 0x7c6   : > { %10784 = vmatpush3.msra.mxu0 %v9150_v50 }
 0x7c7   : > { %10785 = vmatprep.subr.mxu0 %v16018_v60 }
 0x7c8   : > { %10786 = vmatpush3.msra.mxu0 %v9149_v17 }
 0x7c9   : > { %10787 = vmatprep.subr.mxu0 %v16018_v60 }
 0x7ca   : > { %10788 = vmatpush3.msra.mxu0 %v9148_v25 }
 0x7cb   : > { %10789 = vmatprep.subr.mxu0 %v16018_v60 }
 0x7cc   : > { %10790 = vmatpush3.msra.mxu0 %v9147_v54 }
 0x7cd   : > { %10791 = vmatprep.subr.mxu0 %v16018_v60 }
 0x7ce   : > { %10792 = vmatpush3.msra.mxu0 %v9146_v34 }
 0x7cf   : > { %10793 = vmatprep.subr.mxu0 %v16018_v60 }
 0x7d0   : > { %10794 = vmatpush3.msra.mxu0 %v9145_v33 }
 0x871   : > { %v9019_v43 = vpop.f32.mrf.mxu0 }
 0x873   : > { %v9021_v23 = vpop.f32.mrf.mxu0 }
 0x874   : > { %v9026_v40 = vcombine.low %v9019_v43, %v9021_v23  ;;  %9139 = vmatprep.mubr.f32.mxu1 %v9021_v23 }
 0x875   : > { %9140 = vmatmul.mubr.f32.vlgmr.msra.gmra.mxu1 %v9019_v43 }
 0x876   : > { %9778 = vst.sshfl [vmem:[%s532_s24] sm:$0x33 pattern:$0x76325410] %v9026_v40  ;;  %s9350_s24 = sshll.u32 %s513_s23, 1 }
 0x877   : > { %s515_s28 = scalar_lea.vmem [#allocation2], %s9350_s24  ;;  %s10855_s24 = sshll.u32 %s10916_s25, 4  ;;  %s10856_s24 = int_to_ptr.vmem [resolvable:$false] %s10855_s24 }
 0x878   : > { %s9259_s18 = sshll.u32 %s515_s28, 4  ;;  %s10857_s27 = scalar_lea.vmem %s10856_s24, 64  ;;  %s9260_s18 = int_to_ptr.vmem [resolvable:$true] %s9259_s18 }
 0x879   : > { %s10851_s21 = scalar_lea.vmem %s9260_s18, 32  ;;  %p10858_p0 = scmp.lt.s32.totalorder %s9260_s18, %s10856_s24 }
 0x87a   : > { %p10852_p11 = scmp.ne.s32.totalorder %s9260_s18, %s10851_s21  ;;  %p10859_p1 = scmp.lt.s32.totalorder %s10857_s27, %s10851_s21 }
 0x87c   : > { %p10853_p12 = pnand %p10852_p11, %p11040_p5  ;;  %p10860_p2 = por %p10859_p1, %p10858_p0 }
 0x87e   : > { %p10854_p13 = pneg %p10853_p12 }
 0x880   : > { %p10861_p3 = pnand %p10860_p2, %p10854_p13 }
 0x935   : > { %v10183_v20 = vpop.f32.mrf.mxu1 }
 0x937   : > { %v10184_v14 = vpop.f32.mrf.mxu1 }
 0x938   : > { %v10185_v0 = vadd.f32 %v10184_v14, %v10183_v20 }
 0x93a   : > { %v9142_v62 = vadd.f32 %v10185_v0, %v9779_v59 }
 0x93c   : > { %10796 = vmatmul.mubr.f32.vlgmr.msra.gmra.mxu0 %v9142_v62 }
 0x9fc   : > { %v9234_v60 = vpop.f32.mrf.mxu0 }
 0x9fd   : > { %v9235_v38 = vadd.f32 %v9780_v42, %v9234_v60 }
 0x9fe   : > { %v10797_v15 = vpop.f32.mrf.mxu0 }
 0x9ff   : > { %9239 = vst.msk [vmem:[%s515_s28] sm:$0x3] %vm9238_vm5, %v9235_v38 }
 0xa00   : > { %10864 = shalt.err (!%p10861_p3)
}
 0xa01   : > { %s10865_s30 = scalar_lea.hbm %s15691_s19, 32  ;;  %s10869_s28 = scalar_lea.hbm %s15741_s15, 64 }
 0xa02   : > { %p10866_p4 = scmp.ne.s32.totalorder %s15691_s19, %s10865_s30  ;;  %p10870_p9 = scmp.lt.s32.totalorder %s15691_s19, %s15741_s15 }
 0xa03   : > { %p10871_p10 = scmp.lt.s32.totalorder %s10869_s28, %s10865_s30 }
 0xa04   : > { %p10867_p7 = pnand %p10866_p4, %p11040_p5 }
 0xa05   : > { %p10872_p11 = por %p10871_p10, %p10870_p9 }
 0xa06   : > { %p10868_p8 = pneg %p10867_p7 }
 0xa08   : > { %p10873_p12 = pnand %p10872_p11, %p10868_p8 }
 0xa0a   : > { %10876 = shalt.err (!%p10873_p12)
}
 0xa0b   : > { %10800 = dma.vmem_to_hbm [thread:$0]  (%p11040_p5), %s9260_s18, 32, %s15691_s19, %s9241_s20  }
 0xa0c PF: > { %s16019_s21 = sld [smem:[#allocation7_spill]] }
 0xa0d   : > { %s16020_s25 = sld [smem:[#allocation5_spill]] }
 0xa12   : > { %p10806_p13 = scmp.ge.s32.totalorder %s16019_s21, 2 }
 0xa13   : > { %s9274_s27 = sand.u32 1, %s16020_s25  }
 0xa14   : > { %p10803_p0 = pnand %p10806_p13, %p11044_p6  ;;  %s9275_s23 = scalar_lea.sflag [#allocation3], %s9274_s27 }
 0xa16   : > { %p10804_p1 = pneg %p10803_p0 }
 0xa18   : > { %10894 = dma.done.wait (%p10804_p1), %s9275_s23, 32  }
 0xa19   : > { %10896 = vsyncadd (%p10804_p1), %s9275_s23, 4294967264  ;;  %s16022_s24 = sld [smem:[#allocation8_spill]]  ;;  %s16025_s21 = smov %s10903_s22 }
 0xa1a   : > { %s16023_s30 = sld [smem:[#allocation6_spill]] }
 0xa1b   : > { %s16024_s23 = sld [smem:[#allocation9_spill]] }
 0xa1f   : > { %p27_p2 = scmp.ge.s32.totalorder %s16022_s24, 4  }
 0xa20   : > { %s16026_s22 = smov %s16023_s30 }
 0xa21   :  { %29 = sbr.rel (!%p27_p2) target bundleno = 5 (0x5), region = 131 }
 0xa26   :  { %9288 = vsyncpa [#allocation3], 1 }
 0xa27   :  { %9290 = vsyncpa [#allocation3 + $0x1], 1 }

</bundles_post_ra>
